<compile_context>
chip_gen: v5e
topology: v5e:2x2
jax: 0.10.0
libtpu: 0.0.40
codegen_flags: <defaults>
</compile_context>

<pallas_src>
import jax
import jax.numpy as jnp
from jax.experimental import pallas as pl
from jax.experimental.pallas import tpu as pltpu


# ----------------------------- Pallas kernels ------------------------------

def _mm_kernel(x_ref, w_ref, o_ref):
    """(M, K) @ (K, N): bf16 operands, f32 accumulate."""
    o_ref[...] = jnp.dot(x_ref[...], w_ref[...],
                         preferred_element_type=jnp.float32)


def _bn_relu_mm_kernel(x_ref, g_ref, b_ref, w_ref, o_ref):
    """Fused train-mode BatchNorm (stats over rows) + ReLU + matmul.

    x_ref: (M, Cin) f32 slab (M = N*H*W, channels on lanes)
    g_ref/b_ref: (1, Cin) f32
    w_ref: (Cin, Cout*KH*KW) bf16
    """
    x = x_ref[...]
    mean = jnp.mean(x, axis=0, keepdims=True)
    var = jnp.mean((x - mean) ** 2, axis=0, keepdims=True)   # biased var (PyTorch fwd)
    y = (x - mean) * jax.lax.rsqrt(var + 1e-5) * g_ref[...] + b_ref[...]
    y = jnp.maximum(y, 0.0)
    o_ref[...] = jnp.dot(y.astype(jnp.bfloat16), w_ref[...],
                         preferred_element_type=jnp.float32)


def _tanh_kernel(x_ref, o_ref):
    o_ref[...] = jnp.tanh(x_ref[...])


# ------------------------------ wrappers ------------------------------------

def matmul_pallas(x2d, w2):
    """(M, K) @ (K, N) on the MXU; pads M to a sublane multiple (zero rows)."""
    M, K = x2d.shape
    K2, Nout = w2.shape
    assert K == K2
    Mp = ((M + 7) // 8) * 8
    xb = x2d.astype(jnp.bfloat16)
    if Mp != M:
        xb = jnp.pad(xb, ((0, Mp - M), (0, 0)))
    out = pl.pallas_call(
        _mm_kernel,
        out_shape=jax.ShapeDtypeStruct((Mp, Nout), jnp.float32),
        grid=(1,),
        in_specs=[pl.BlockSpec((Mp, K), lambda i: (0, 0)),
                  pl.BlockSpec((K, Nout), lambda i: (0, 0))],
        out_specs=pl.BlockSpec((Mp, Nout), lambda i: (0, 0)),
        compiler_params=pltpu.CompilerParams(dimension_semantics=("arbitrary",)),
    )(xb, w2.astype(jnp.bfloat16))
    return out[:M] if Mp != M else out


def bn_relu_matmul_pallas(x2d, gamma, beta, w2):
    """Fused BN(train stats over rows)+ReLU+matmul on a whole (M, K) slab."""
    M, K = x2d.shape
    K2, Nout = w2.shape
    assert K == K2
    assert M % 8 == 0, "BN slab rows must be a sublane multiple at these shapes"
    return pl.pallas_call(
        _bn_relu_mm_kernel,
        out_shape=jax.ShapeDtypeStruct((M, Nout), jnp.float32),
        grid=(1,),
        in_specs=[pl.BlockSpec((M, K), lambda i: (0, 0)),
                  pl.BlockSpec((1, K), lambda i: (0, 0)),
                  pl.BlockSpec((1, K), lambda i: (0, 0)),
                  pl.BlockSpec((K, Nout), lambda i: (0, 0))],
        out_specs=pl.BlockSpec((M, Nout), lambda i: (0, 0)),
        compiler_params=pltpu.CompilerParams(dimension_semantics=("arbitrary",)),
    )(x2d, gamma.reshape(1, K), beta.reshape(1, K), w2.astype(jnp.bfloat16))


def tanh_pallas(x):
    """Elementwise tanh in f32 on a lane-dense (rows, 128) reshape of x."""
    shape = x.shape
    flat = x.reshape(-1)
    total = flat.shape[0]
    padded = ((total + 1023) // 1024) * 1024
    if padded != total:
        flat = jnp.pad(flat, (0, padded - total))
    x2 = flat.reshape(padded // 128, 128)
    y2 = pl.pallas_call(
        _tanh_kernel,
        out_shape=jax.ShapeDtypeStruct(x2.shape, jnp.float32),
        grid=(1,),
        in_specs=[pl.BlockSpec(x2.shape, lambda i: (0, 0))],
        out_specs=pl.BlockSpec(x2.shape, lambda i: (0, 0)),
    )(x2)
    return y2.reshape(-1)[:total].reshape(shape)


def col2im_add(y, N, H, W, Cout, KH, KW, stride, padding):
    """Overlap-add (N*H*W, Cout*KH*KW) matmul output into NHWC conv output.

    out[n, h*s - p + kh, w*s - p + kw, co] += y[n, h, w, co, kh, kw]
    which is exactly PyTorch ConvTranspose2d (bias=False).
    """
    s, p = stride, padding
    y6 = y.reshape(N, H, W, Cout, KH, KW)
    Hp = (H - 1) * s + KH
    Wp = (W - 1) * s + KW
    buf = jnp.zeros((N, Hp, Wp, Cout), jnp.float32)
    for kh in range(KH):
        for kw in range(KW):
            buf = buf.at[:, kh:kh + (H - 1) * s + 1:s,
                            kw:kw + (W - 1) * s + 1:s, :].add(y6[:, :, :, :, kh, kw])
    OH = (H - 1) * s - 2 * p + KH
    OW = (W - 1) * s - 2 * p + KW
    return buf[:, p:p + OH, p:p + OW, :]                      # (N, OH, OW, Cout)


def conv_transpose_first(x_nhwc, w, stride, padding):
    """ConvTranspose2d (no preceding BN).  w: (Cin, Cout, KH, KW) PyTorch layout."""
    N, H, W, Cin = x_nhwc.shape
    _, Cout, KH, KW = w.shape
    y = matmul_pallas(x_nhwc.reshape(N * H * W, Cin),
                      w.reshape(Cin, Cout * KH * KW))
    return col2im_add(y, N, H, W, Cout, KH, KW, stride, padding)


def bn_relu_conv_transpose(x_nhwc, gamma, beta, w, stride, padding):
    """BN(train stats)+ReLU of the incoming activation fused into this ConvT."""
    N, H, W, Cin = x_nhwc.shape
    _, Cout, KH, KW = w.shape
    y = bn_relu_matmul_pallas(x_nhwc.reshape(N * H * W, Cin), gamma, beta,
                              w.reshape(Cin, Cout * KH * KW))
    return col2im_add(y, N, H, W, Cout, KH, KW, stride, padding)


# ------------------------------ Generator -----------------------------------

def init_generator_params(key, feature_map_size, input_size, color_channels):
    F, Z, C = feature_map_size, input_size, color_channels
    specs = [
        (Z,     F * 8),   # input block, s=1, p=0
        (F * 8, F * 4),   # intermediate 1, s=2, p=1
        (F * 4, F * 2),   # intermediate 2
        (F * 2, F),       # intermediate 3
        (F,     C),       # output block
    ]
    params = {"conv_w": [], "bn_gamma": [], "bn_beta": []}
    keys = jax.random.split(key, len(specs))
    for k, (cin, cout) in zip(keys, specs):
        # deterministic synthetic init (DCGAN-style N(0, 0.02))
        params["conv_w"].append(
            0.02 * jax.random.normal(k, (cin, cout, 4, 4), dtype=jnp.float32))
    for cout in (F * 8, F * 4, F * 2, F):
        params["bn_gamma"].append(jnp.ones((cout,), jnp.float32))   # PyTorch BN init
        params["bn_beta"].append(jnp.zeros((cout,), jnp.float32))
    return params


def generator_forward(params, x):
    """x: (N, input_size, 1, 1) NCHW latent -> (N, color_channels, 64, 64) NCHW."""
    w = params["conv_w"]
    g = params["bn_gamma"]
    b = params["bn_beta"]

    h = x.transpose(0, 2, 3, 1)                               # NCHW -> NHWC (N,1,1,Z)
    # Input block: ConvT s=1 p=0 (its BN+ReLU is fused into the next matmul)
    h = conv_transpose_first(h, w[0], stride=1, padding=0)    # (N, 4, 4, 8F)
    # Intermediate blocks: [BN+ReLU of previous output] + ConvT s=2 p=1
    h = bn_relu_conv_transpose(h, g[0], b[0], w[1], 2, 1)     # (N, 8, 8, 4F)
    h = bn_relu_conv_transpose(h, g[1], b[1], w[2], 2, 1)     # (N,16,16, 2F)
    h = bn_relu_conv_transpose(h, g[2], b[2], w[3], 2, 1)     # (N,32,32,  F)
    # Output block: [BN+ReLU] + ConvT s=2 p=1, then Tanh after overlap-add
    h = bn_relu_conv_transpose(h, g[3], b[3], w[4], 2, 1)     # (N,64,64,  C)
    h = tanh_pallas(h)
    return h.transpose(0, 3, 1, 2)                            # back to NCHW


if __name__ == "__main__":
    feature_map_size = 8
    input_size = 16
    color_channels = 3
    batch = 2

    key = jax.random.PRNGKey(0)
    pkey, xkey = jax.random.split(key)
    params = init_generator_params(pkey, feature_map_size, input_size, color_channels)

    # latent input, NCHW: (N, input_size, 1, 1)
    x = jax.random.normal(xkey, (batch, input_size, 1, 1), dtype=jnp.float32)

    fwd = jax.jit(generator_forward)
    out = jax.block_until_ready(fwd(params, x))

    assert out.shape == (batch, color_channels, 64, 64), out.shape
    assert bool(jnp.all(jnp.isfinite(out)))
    assert bool(jnp.all(jnp.abs(out) <= 1.0))   # tanh range
    print("KERNEL_OK")
</pallas_src>

<mosaic_0001>
module attributes {stable_mosaic.version = 11 : i64} {
  func.func @_mm_kernel(%arg0: i32, %arg1: memref<8x16xbf16, #tpu.memory_space<vmem>>, %arg2: memref<16x1024xbf16, #tpu.memory_space<vmem>>, %arg3: memref<8x1024xf32, #tpu.memory_space<vmem>>) attributes {dimension_semantics = [#tpu.dimension_semantics<arbitrary>], iteration_bounds = array<i64: 1>, scalar_prefetch = 0 : i64, scratch_operands = 0 : i64, tpu.core_type = #tpu.core_type<tc>, window_params = [{pipeline_mode = #tpu.pipeline_mode<synchronous>, transform_indices = @transform_0, window_bounds = array<i64: 8, 16>}, {pipeline_mode = #tpu.pipeline_mode<synchronous>, transform_indices = @transform_1, window_bounds = array<i64: 16, 1024>}, {pipeline_mode = #tpu.pipeline_mode<synchronous>, transform_indices = @transform_2, window_bounds = array<i64: 8, 1024>}]} {
    %c0 = arith.constant 0 : index
    %c0_0 = arith.constant 0 : index
    %0 = vector.load %arg1[%c0, %c0_0] : memref<8x16xbf16, #tpu.memory_space<vmem>>, vector<8x16xbf16>
    %c0_1 = arith.constant 0 : index
    %c0_2 = arith.constant 0 : index
    %1 = vector.load %arg2[%c0_1, %c0_2] : memref<16x1024xbf16, #tpu.memory_space<vmem>>, vector<16x1024xbf16>
    %cst = arith.constant dense<0.000000e+00> : vector<8x1024xf32>
    %2 = tpu.matmul %0, %1, %cst {dimension_numbers = #tpu.dot_dimension_numbers<[1], [0], [0], [1], [0, 0, 1, 1], [], []>} : vector<8x16xbf16>, vector<16x1024xbf16>, vector<8x1024xf32> -> vector<8x1024xf32>
    %c0_3 = arith.constant 0 : index
    %c0_4 = arith.constant 0 : index
    %3 = vector.load %arg3[%c0_3, %c0_4] : memref<8x1024xf32, #tpu.memory_space<vmem>>, vector<8x1024xf32>
    tpu.vector_store %arg3[%c0_3, %c0_4], %2 {strides = array<i32>} : memref<8x1024xf32, #tpu.memory_space<vmem>>, vector<8x1024xf32>,
    return
  }
  func.func @transform_0(%arg0: i32) -> (i32, i32) {
    %c0_i32 = arith.constant 0 : i32
    %c0_i32_0 = arith.constant 0 : i32
    %c0_i32_1 = arith.constant 0 : i32
    return %c0_i32, %c0_i32_0 : i32, i32
  }
  func.func @transform_1(%arg0: i32) -> (i32, i32) {
    %c0_i32 = arith.constant 0 : i32
    %c0_i32_0 = arith.constant 0 : i32
    %c0_i32_1 = arith.constant 0 : i32
    return %c0_i32, %c0_i32_0 : i32, i32
  }
  func.func @transform_2(%arg0: i32) -> (i32, i32) {
    %c0_i32 = arith.constant 0 : i32
    %c0_i32_0 = arith.constant 0 : i32
    %c0_i32_1 = arith.constant 0 : i32
    return %c0_i32, %c0_i32_0 : i32, i32
  }
}

module attributes {stable_mosaic.version = 11 : i64} {
  func.func @_bn_relu_mm_kernel(%arg0: i32, %arg1: memref<32x64xf32, #tpu.memory_space<vmem>>, %arg2: memref<1x64xf32, #tpu.memory_space<vmem>>, %arg3: memref<1x64xf32, #tpu.memory_space<vmem>>, %arg4: memref<64x512xbf16, #tpu.memory_space<vmem>>, %arg5: memref<32x512xf32, #tpu.memory_space<vmem>>) attributes {dimension_semantics = [#tpu.dimension_semantics<arbitrary>], iteration_bounds = array<i64: 1>, scalar_prefetch = 0 : i64, scratch_operands = 0 : i64, tpu.core_type = #tpu.core_type<tc>, window_params = [{pipeline_mode = #tpu.pipeline_mode<synchronous>, transform_indices = @transform_0, window_bounds = array<i64: 32, 64>}, {pipeline_mode = #tpu.pipeline_mode<synchronous>, transform_indices = @transform_1, window_bounds = array<i64: 1, 64>}, {pipeline_mode = #tpu.pipeline_mode<synchronous>, transform_indices = @transform_2, window_bounds = array<i64: 1, 64>}, {pipeline_mode = #tpu.pipeline_mode<synchronous>, transform_indices = @transform_3, window_bounds = array<i64: 64, 512>}, {pipeline_mode = #tpu.pipeline_mode<synchronous>, transform_indices = @transform_4, window_bounds = array<i64: 32, 512>}]} {
    %c0 = arith.constant 0 : index
    %c0_0 = arith.constant 0 : index
    %0 = vector.load %arg1[%c0, %c0_0] : memref<32x64xf32, #tpu.memory_space<vmem>>, vector<32x64xf32>
    %cst = arith.constant dense<0.000000e+00> : vector<64xf32>
    %1 = vector.multi_reduction <add>, %0, %cst [0] : vector<32x64xf32> to vector<64xf32>
    %2 = vector.shape_cast %1 : vector<64xf32> to vector<1x64xf32>
    %cst_1 = arith.constant 3.200000e+01 : f32
    %3 = vector.broadcast %cst_1 : f32 to vector<1x64xf32>
    %4 = arith.divf %2, %3 : vector<1x64xf32>
    %5 = vector.broadcast %4 : vector<1x64xf32> to vector<32x64xf32>
    %6 = arith.subf %0, %5 : vector<32x64xf32>
    %7 = arith.mulf %6, %6 : vector<32x64xf32>
    %cst_2 = arith.constant dense<0.000000e+00> : vector<64xf32>
    %8 = vector.multi_reduction <add>, %7, %cst_2 [0] : vector<32x64xf32> to vector<64xf32>
    %9 = vector.shape_cast %8 : vector<64xf32> to vector<1x64xf32>
    %cst_3 = arith.constant 3.200000e+01 : f32
    %10 = vector.broadcast %cst_3 : f32 to vector<1x64xf32>
    %11 = arith.divf %9, %10 : vector<1x64xf32>
    %12 = vector.broadcast %4 : vector<1x64xf32> to vector<32x64xf32>
    %13 = arith.subf %0, %12 : vector<32x64xf32>
    %cst_4 = arith.constant 9.99999974E-6 : f32
    %14 = vector.broadcast %cst_4 : f32 to vector<1x64xf32>
    %15 = arith.addf %11, %14 : vector<1x64xf32>
    %16 = math.rsqrt %15 : vector<1x64xf32>
    %17 = vector.broadcast %16 : vector<1x64xf32> to vector<32x64xf32>
    %18 = arith.mulf %13, %17 : vector<32x64xf32>
    %c0_5 = arith.constant 0 : index
    %c0_6 = arith.constant 0 : index
    %19 = vector.load %arg2[%c0_5, %c0_6] : memref<1x64xf32, #tpu.memory_space<vmem>>, vector<1x64xf32>
    %20 = vector.broadcast %19 : vector<1x64xf32> to vector<32x64xf32>
    %21 = arith.mulf %18, %20 : vector<32x64xf32>
    %c0_7 = arith.constant 0 : index
    %c0_8 = arith.constant 0 : index
    %22 = vector.load %arg3[%c0_7, %c0_8] : memref<1x64xf32, #tpu.memory_space<vmem>>, vector<1x64xf32>
    %23 = vector.broadcast %22 : vector<1x64xf32> to vector<32x64xf32>
    %24 = arith.addf %21, %23 : vector<32x64xf32>
    %cst_9 = arith.constant 0.000000e+00 : f32
    %25 = vector.broadcast %cst_9 : f32 to vector<32x64xf32>
    %26 = arith.maximumf %24, %25 : vector<32x64xf32>
    %27 = arith.truncf %26 : vector<32x64xf32> to vector<32x64xbf16>
    %c0_10 = arith.constant 0 : index
    %c0_11 = arith.constant 0 : index
    %28 = vector.load %arg4[%c0_10, %c0_11] : memref<64x512xbf16, #tpu.memory_space<vmem>>, vector<64x512xbf16>
    %cst_12 = arith.constant dense<0.000000e+00> : vector<32x512xf32>
    %29 = tpu.matmul %27, %28, %cst_12 {dimension_numbers = #tpu.dot_dimension_numbers<[1], [0], [0], [1], [0, 0, 1, 1], [], []>} : vector<32x64xbf16>, vector<64x512xbf16>, vector<32x512xf32> -> vector<32x512xf32>
    %c0_13 = arith.constant 0 : index
    %c0_14 = arith.constant 0 : index
    %30 = vector.load %arg5[%c0_13, %c0_14] : memref<32x512xf32, #tpu.memory_space<vmem>>, vector<32x512xf32>
    tpu.vector_store %arg5[%c0_13, %c0_14], %29 {strides = array<i32>} : memref<32x512xf32, #tpu.memory_space<vmem>>, vector<32x512xf32>,
    return
  }
  func.func @transform_0(%arg0: i32) -> (i32, i32) {
    %c0_i32 = arith.constant 0 : i32
    %c0_i32_0 = arith.constant 0 : i32
    %c0_i32_1 = arith.constant 0 : i32
    return %c0_i32, %c0_i32_0 : i32, i32
  }
  func.func @transform_1(%arg0: i32) -> (i32, i32) {
    %c0_i32 = arith.constant 0 : i32
    %c0_i32_0 = arith.constant 0 : i32
    %c0_i32_1 = arith.constant 0 : i32
    return %c0_i32, %c0_i32_0 : i32, i32
  }
  func.func @transform_2(%arg0: i32) -> (i32, i32) {
    %c0_i32 = arith.constant 0 : i32
    %c0_i32_0 = arith.constant 0 : i32
    %c0_i32_1 = arith.constant 0 : i32
    return %c0_i32, %c0_i32_0 : i32, i32
  }
  func.func @transform_3(%arg0: i32) -> (i32, i32) {
    %c0_i32 = arith.constant 0 : i32
    %c0_i32_0 = arith.constant 0 : i32
    %c0_i32_1 = arith.constant 0 : i32
    return %c0_i32, %c0_i32_0 : i32, i32
  }
  func.func @transform_4(%arg0: i32) -> (i32, i32) {
    %c0_i32 = arith.constant 0 : i32
    %c0_i32_0 = arith.constant 0 : i32
    %c0_i32_1 = arith.constant 0 : i32
    return %c0_i32, %c0_i32_0 : i32, i32
  }
}

module attributes {stable_mosaic.version = 11 : i64} {
  func.func @_bn_relu_mm_kernel(%arg0: i32, %arg1: memref<128x32xf32, #tpu.memory_space<vmem>>, %arg2: memref<1x32xf32, #tpu.memory_space<vmem>>, %arg3: memref<1x32xf32, #tpu.memory_space<vmem>>, %arg4: memref<32x256xbf16, #tpu.memory_space<vmem>>, %arg5: memref<128x256xf32, #tpu.memory_space<vmem>>) attributes {dimension_semantics = [#tpu.dimension_semantics<arbitrary>], iteration_bounds = array<i64: 1>, scalar_prefetch = 0 : i64, scratch_operands = 0 : i64, tpu.core_type = #tpu.core_type<tc>, window_params = [{pipeline_mode = #tpu.pipeline_mode<synchronous>, transform_indices = @transform_0, window_bounds = array<i64: 128, 32>}, {pipeline_mode = #tpu.pipeline_mode<synchronous>, transform_indices = @transform_1, window_bounds = array<i64: 1, 32>}, {pipeline_mode = #tpu.pipeline_mode<synchronous>, transform_indices = @transform_2, window_bounds = array<i64: 1, 32>}, {pipeline_mode = #tpu.pipeline_mode<synchronous>, transform_indices = @transform_3, window_bounds = array<i64: 32, 256>}, {pipeline_mode = #tpu.pipeline_mode<synchronous>, transform_indices = @transform_4, window_bounds = array<i64: 128, 256>}]} {
    %c0 = arith.constant 0 : index
    %c0_0 = arith.constant 0 : index
    %0 = vector.load %arg1[%c0, %c0_0] : memref<128x32xf32, #tpu.memory_space<vmem>>, vector<128x32xf32>
    %cst = arith.constant dense<0.000000e+00> : vector<32xf32>
    %1 = vector.multi_reduction <add>, %0, %cst [0] : vector<128x32xf32> to vector<32xf32>
    %2 = vector.shape_cast %1 : vector<32xf32> to vector<1x32xf32>
    %cst_1 = arith.constant 1.280000e+02 : f32
    %3 = vector.broadcast %cst_1 : f32 to vector<1x32xf32>
    %4 = arith.divf %2, %3 : vector<1x32xf32>
    %5 = vector.broadcast %4 : vector<1x32xf32> to vector<128x32xf32>
    %6 = arith.subf %0, %5 : vector<128x32xf32>
    %7 = arith.mulf %6, %6 : vector<128x32xf32>
    %cst_2 = arith.constant dense<0.000000e+00> : vector<32xf32>
    %8 = vector.multi_reduction <add>, %7, %cst_2 [0] : vector<128x32xf32> to vector<32xf32>
    %9 = vector.shape_cast %8 : vector<32xf32> to vector<1x32xf32>
    %cst_3 = arith.constant 1.280000e+02 : f32
    %10 = vector.broadcast %cst_3 : f32 to vector<1x32xf32>
    %11 = arith.divf %9, %10 : vector<1x32xf32>
    %12 = vector.broadcast %4 : vector<1x32xf32> to vector<128x32xf32>
    %13 = arith.subf %0, %12 : vector<128x32xf32>
    %cst_4 = arith.constant 9.99999974E-6 : f32
    %14 = vector.broadcast %cst_4 : f32 to vector<1x32xf32>
    %15 = arith.addf %11, %14 : vector<1x32xf32>
    %16 = math.rsqrt %15 : vector<1x32xf32>
    %17 = vector.broadcast %16 : vector<1x32xf32> to vector<128x32xf32>
    %18 = arith.mulf %13, %17 : vector<128x32xf32>
    %c0_5 = arith.constant 0 : index
    %c0_6 = arith.constant 0 : index
    %19 = vector.load %arg2[%c0_5, %c0_6] : memref<1x32xf32, #tpu.memory_space<vmem>>, vector<1x32xf32>
    %20 = vector.broadcast %19 : vector<1x32xf32> to vector<128x32xf32>
    %21 = arith.mulf %18, %20 : vector<128x32xf32>
    %c0_7 = arith.constant 0 : index
    %c0_8 = arith.constant 0 : index
    %22 = vector.load %arg3[%c0_7, %c0_8] : memref<1x32xf32, #tpu.memory_space<vmem>>, vector<1x32xf32>
    %23 = vector.broadcast %22 : vector<1x32xf32> to vector<128x32xf32>
    %24 = arith.addf %21, %23 : vector<128x32xf32>
    %cst_9 = arith.constant 0.000000e+00 : f32
    %25 = vector.broadcast %cst_9 : f32 to vector<128x32xf32>
    %26 = arith.maximumf %24, %25 : vector<128x32xf32>
    %27 = arith.truncf %26 : vector<128x32xf32> to vector<128x32xbf16>
    %c0_10 = arith.constant 0 : index
    %c0_11 = arith.constant 0 : index
    %28 = vector.load %arg4[%c0_10, %c0_11] : memref<32x256xbf16, #tpu.memory_space<vmem>>, vector<32x256xbf16>
    %cst_12 = arith.constant dense<0.000000e+00> : vector<128x256xf32>
    %29 = tpu.matmul %27, %28, %cst_12 {dimension_numbers = #tpu.dot_dimension_numbers<[1], [0], [0], [1], [0, 0, 1, 1], [], []>} : vector<128x32xbf16>, vector<32x256xbf16>, vector<128x256xf32> -> vector<128x256xf32>
    %c0_13 = arith.constant 0 : index
    %c0_14 = arith.constant 0 : index
    %30 = vector.load %arg5[%c0_13, %c0_14] : memref<128x256xf32, #tpu.memory_space<vmem>>, vector<128x256xf32>
    tpu.vector_store %arg5[%c0_13, %c0_14], %29 {strides = array<i32>} : memref<128x256xf32, #tpu.memory_space<vmem>>, vector<128x256xf32>,
    return
  }
  func.func @transform_0(%arg0: i32) -> (i32, i32) {
    %c0_i32 = arith.constant 0 : i32
    %c0_i32_0 = arith.constant 0 : i32
    %c0_i32_1 = arith.constant 0 : i32
    return %c0_i32, %c0_i32_0 : i32, i32
  }
  func.func @transform_1(%arg0: i32) -> (i32, i32) {
    %c0_i32 = arith.constant 0 : i32
    %c0_i32_0 = arith.constant 0 : i32
    %c0_i32_1 = arith.constant 0 : i32
    return %c0_i32, %c0_i32_0 : i32, i32
  }
  func.func @transform_2(%arg0: i32) -> (i32, i32) {
    %c0_i32 = arith.constant 0 : i32
    %c0_i32_0 = arith.constant 0 : i32
    %c0_i32_1 = arith.constant 0 : i32
    return %c0_i32, %c0_i32_0 : i32, i32
  }
  func.func @transform_3(%arg0: i32) -> (i32, i32) {
    %c0_i32 = arith.constant 0 : i32
    %c0_i32_0 = arith.constant 0 : i32
    %c0_i32_1 = arith.constant 0 : i32
    return %c0_i32, %c0_i32_0 : i32, i32
  }
  func.func @transform_4(%arg0: i32) -> (i32, i32) {
    %c0_i32 = arith.constant 0 : i32
    %c0_i32_0 = arith.constant 0 : i32
    %c0_i32_1 = arith.constant 0 : i32
    return %c0_i32, %c0_i32_0 : i32, i32
  }
}

module attributes {stable_mosaic.version = 11 : i64} {
  func.func @_bn_relu_mm_kernel(%arg0: i32, %arg1: memref<512x16xf32, #tpu.memory_space<vmem>>, %arg2: memref<1x16xf32, #tpu.memory_space<vmem>>, %arg3: memref<1x16xf32, #tpu.memory_space<vmem>>, %arg4: memref<16x128xbf16, #tpu.memory_space<vmem>>, %arg5: memref<512x128xf32, #tpu.memory_space<vmem>>) attributes {dimension_semantics = [#tpu.dimension_semantics<arbitrary>], iteration_bounds = array<i64: 1>, scalar_prefetch = 0 : i64, scratch_operands = 0 : i64, tpu.core_type = #tpu.core_type<tc>, window_params = [{pipeline_mode = #tpu.pipeline_mode<synchronous>, transform_indices = @transform_0, window_bounds = array<i64: 512, 16>}, {pipeline_mode = #tpu.pipeline_mode<synchronous>, transform_indices = @transform_1, window_bounds = array<i64: 1, 16>}, {pipeline_mode = #tpu.pipeline_mode<synchronous>, transform_indices = @transform_2, window_bounds = array<i64: 1, 16>}, {pipeline_mode = #tpu.pipeline_mode<synchronous>, transform_indices = @transform_3, window_bounds = array<i64: 16, 128>}, {pipeline_mode = #tpu.pipeline_mode<synchronous>, transform_indices = @transform_4, window_bounds = array<i64: 512, 128>}]} {
    %c0 = arith.constant 0 : index
    %c0_0 = arith.constant 0 : index
    %0 = vector.load %arg1[%c0, %c0_0] : memref<512x16xf32, #tpu.memory_space<vmem>>, vector<512x16xf32>
    %cst = arith.constant dense<0.000000e+00> : vector<16xf32>
    %1 = vector.multi_reduction <add>, %0, %cst [0] : vector<512x16xf32> to vector<16xf32>
    %2 = vector.shape_cast %1 : vector<16xf32> to vector<1x16xf32>
    %cst_1 = arith.constant 5.120000e+02 : f32
    %3 = vector.broadcast %cst_1 : f32 to vector<1x16xf32>
    %4 = arith.divf %2, %3 : vector<1x16xf32>
    %5 = vector.broadcast %4 : vector<1x16xf32> to vector<512x16xf32>
    %6 = arith.subf %0, %5 : vector<512x16xf32>
    %7 = arith.mulf %6, %6 : vector<512x16xf32>
    %cst_2 = arith.constant dense<0.000000e+00> : vector<16xf32>
    %8 = vector.multi_reduction <add>, %7, %cst_2 [0] : vector<512x16xf32> to vector<16xf32>
    %9 = vector.shape_cast %8 : vector<16xf32> to vector<1x16xf32>
    %cst_3 = arith.constant 5.120000e+02 : f32
    %10 = vector.broadcast %cst_3 : f32 to vector<1x16xf32>
    %11 = arith.divf %9, %10 : vector<1x16xf32>
    %12 = vector.broadcast %4 : vector<1x16xf32> to vector<512x16xf32>
    %13 = arith.subf %0, %12 : vector<512x16xf32>
    %cst_4 = arith.constant 9.99999974E-6 : f32
    %14 = vector.broadcast %cst_4 : f32 to vector<1x16xf32>
    %15 = arith.addf %11, %14 : vector<1x16xf32>
    %16 = math.rsqrt %15 : vector<1x16xf32>
    %17 = vector.broadcast %16 : vector<1x16xf32> to vector<512x16xf32>
    %18 = arith.mulf %13, %17 : vector<512x16xf32>
    %c0_5 = arith.constant 0 : index
    %c0_6 = arith.constant 0 : index
    %19 = vector.load %arg2[%c0_5, %c0_6] : memref<1x16xf32, #tpu.memory_space<vmem>>, vector<1x16xf32>
    %20 = vector.broadcast %19 : vector<1x16xf32> to vector<512x16xf32>
    %21 = arith.mulf %18, %20 : vector<512x16xf32>
    %c0_7 = arith.constant 0 : index
    %c0_8 = arith.constant 0 : index
    %22 = vector.load %arg3[%c0_7, %c0_8] : memref<1x16xf32, #tpu.memory_space<vmem>>, vector<1x16xf32>
    %23 = vector.broadcast %22 : vector<1x16xf32> to vector<512x16xf32>
    %24 = arith.addf %21, %23 : vector<512x16xf32>
    %cst_9 = arith.constant 0.000000e+00 : f32
    %25 = vector.broadcast %cst_9 : f32 to vector<512x16xf32>
    %26 = arith.maximumf %24, %25 : vector<512x16xf32>
    %27 = arith.truncf %26 : vector<512x16xf32> to vector<512x16xbf16>
    %c0_10 = arith.constant 0 : index
    %c0_11 = arith.constant 0 : index
    %28 = vector.load %arg4[%c0_10, %c0_11] : memref<16x128xbf16, #tpu.memory_space<vmem>>, vector<16x128xbf16>
    %cst_12 = arith.constant dense<0.000000e+00> : vector<512x128xf32>
    %29 = tpu.matmul %27, %28, %cst_12 {dimension_numbers = #tpu.dot_dimension_numbers<[1], [0], [0], [1], [0, 0, 1, 1], [], []>} : vector<512x16xbf16>, vector<16x128xbf16>, vector<512x128xf32> -> vector<512x128xf32>
    %c0_13 = arith.constant 0 : index
    %c0_14 = arith.constant 0 : index
    %30 = vector.load %arg5[%c0_13, %c0_14] : memref<512x128xf32, #tpu.memory_space<vmem>>, vector<512x128xf32>
    tpu.vector_store %arg5[%c0_13, %c0_14], %29 {strides = array<i32>} : memref<512x128xf32, #tpu.memory_space<vmem>>, vector<512x128xf32>,
    return
  }
  func.func @transform_0(%arg0: i32) -> (i32, i32) {
    %c0_i32 = arith.constant 0 : i32
    %c0_i32_0 = arith.constant 0 : i32
    %c0_i32_1 = arith.constant 0 : i32
    return %c0_i32, %c0_i32_0 : i32, i32
  }
  func.func @transform_1(%arg0: i32) -> (i32, i32) {
    %c0_i32 = arith.constant 0 : i32
    %c0_i32_0 = arith.constant 0 : i32
    %c0_i32_1 = arith.constant 0 : i32
    return %c0_i32, %c0_i32_0 : i32, i32
  }
  func.func @transform_2(%arg0: i32) -> (i32, i32) {
    %c0_i32 = arith.constant 0 : i32
    %c0_i32_0 = arith.constant 0 : i32
    %c0_i32_1 = arith.constant 0 : i32
    return %c0_i32, %c0_i32_0 : i32, i32
  }
  func.func @transform_3(%arg0: i32) -> (i32, i32) {
    %c0_i32 = arith.constant 0 : i32
    %c0_i32_0 = arith.constant 0 : i32
    %c0_i32_1 = arith.constant 0 : i32
    return %c0_i32, %c0_i32_0 : i32, i32
  }
  func.func @transform_4(%arg0: i32) -> (i32, i32) {
    %c0_i32 = arith.constant 0 : i32
    %c0_i32_0 = arith.constant 0 : i32
    %c0_i32_1 = arith.constant 0 : i32
    return %c0_i32, %c0_i32_0 : i32, i32
  }
}

module attributes {stable_mosaic.version = 11 : i64} {
  func.func @_bn_relu_mm_kernel(%arg0: i32, %arg1: memref<2048x8xf32, #tpu.memory_space<vmem>>, %arg2: memref<1x8xf32, #tpu.memory_space<vmem>>, %arg3: memref<1x8xf32, #tpu.memory_space<vmem>>, %arg4: memref<8x48xbf16, #tpu.memory_space<vmem>>, %arg5: memref<2048x48xf32, #tpu.memory_space<vmem>>) attributes {dimension_semantics = [#tpu.dimension_semantics<arbitrary>], iteration_bounds = array<i64: 1>, scalar_prefetch = 0 : i64, scratch_operands = 0 : i64, tpu.core_type = #tpu.core_type<tc>, window_params = [{pipeline_mode = #tpu.pipeline_mode<synchronous>, transform_indices = @transform_0, window_bounds = array<i64: 2048, 8>}, {pipeline_mode = #tpu.pipeline_mode<synchronous>, transform_indices = @transform_1, window_bounds = array<i64: 1, 8>}, {pipeline_mode = #tpu.pipeline_mode<synchronous>, transform_indices = @transform_2, window_bounds = array<i64: 1, 8>}, {pipeline_mode = #tpu.pipeline_mode<synchronous>, transform_indices = @transform_3, window_bounds = array<i64: 8, 48>}, {pipeline_mode = #tpu.pipeline_mode<synchronous>, transform_indices = @transform_4, window_bounds = array<i64: 2048, 48>}]} {
    %c0 = arith.constant 0 : index
    %c0_0 = arith.constant 0 : index
    %0 = vector.load %arg1[%c0, %c0_0] : memref<2048x8xf32, #tpu.memory_space<vmem>>, vector<2048x8xf32>
    %cst = arith.constant dense<0.000000e+00> : vector<8xf32>
    %1 = vector.multi_reduction <add>, %0, %cst [0] : vector<2048x8xf32> to vector<8xf32>
    %2 = vector.shape_cast %1 : vector<8xf32> to vector<1x8xf32>
    %cst_1 = arith.constant 2.048000e+03 : f32
    %3 = vector.broadcast %cst_1 : f32 to vector<1x8xf32>
    %4 = arith.divf %2, %3 : vector<1x8xf32>
    %5 = vector.broadcast %4 : vector<1x8xf32> to vector<2048x8xf32>
    %6 = arith.subf %0, %5 : vector<2048x8xf32>
    %7 = arith.mulf %6, %6 : vector<2048x8xf32>
    %cst_2 = arith.constant dense<0.000000e+00> : vector<8xf32>
    %8 = vector.multi_reduction <add>, %7, %cst_2 [0] : vector<2048x8xf32> to vector<8xf32>
    %9 = vector.shape_cast %8 : vector<8xf32> to vector<1x8xf32>
    %cst_3 = arith.constant 2.048000e+03 : f32
    %10 = vector.broadcast %cst_3 : f32 to vector<1x8xf32>
    %11 = arith.divf %9, %10 : vector<1x8xf32>
    %12 = vector.broadcast %4 : vector<1x8xf32> to vector<2048x8xf32>
    %13 = arith.subf %0, %12 : vector<2048x8xf32>
    %cst_4 = arith.constant 9.99999974E-6 : f32
    %14 = vector.broadcast %cst_4 : f32 to vector<1x8xf32>
    %15 = arith.addf %11, %14 : vector<1x8xf32>
    %16 = math.rsqrt %15 : vector<1x8xf32>
    %17 = vector.broadcast %16 : vector<1x8xf32> to vector<2048x8xf32>
    %18 = arith.mulf %13, %17 : vector<2048x8xf32>
    %c0_5 = arith.constant 0 : index
    %c0_6 = arith.constant 0 : index
    %19 = vector.load %arg2[%c0_5, %c0_6] : memref<1x8xf32, #tpu.memory_space<vmem>>, vector<1x8xf32>
    %20 = vector.broadcast %19 : vector<1x8xf32> to vector<2048x8xf32>
    %21 = arith.mulf %18, %20 : vector<2048x8xf32>
    %c0_7 = arith.constant 0 : index
    %c0_8 = arith.constant 0 : index
    %22 = vector.load %arg3[%c0_7, %c0_8] : memref<1x8xf32, #tpu.memory_space<vmem>>, vector<1x8xf32>
    %23 = vector.broadcast %22 : vector<1x8xf32> to vector<2048x8xf32>
    %24 = arith.addf %21, %23 : vector<2048x8xf32>
    %cst_9 = arith.constant 0.000000e+00 : f32
    %25 = vector.broadcast %cst_9 : f32 to vector<2048x8xf32>
    %26 = arith.maximumf %24, %25 : vector<2048x8xf32>
    %27 = arith.truncf %26 : vector<2048x8xf32> to vector<2048x8xbf16>
    %c0_10 = arith.constant 0 : index
    %c0_11 = arith.constant 0 : index
    %28 = vector.load %arg4[%c0_10, %c0_11] : memref<8x48xbf16, #tpu.memory_space<vmem>>, vector<8x48xbf16>
    %cst_12 = arith.constant dense<0.000000e+00> : vector<2048x48xf32>
    %29 = tpu.matmul %27, %28, %cst_12 {dimension_numbers = #tpu.dot_dimension_numbers<[1], [0], [0], [1], [0, 0, 1, 1], [], []>} : vector<2048x8xbf16>, vector<8x48xbf16>, vector<2048x48xf32> -> vector<2048x48xf32>
    %c0_13 = arith.constant 0 : index
    %c0_14 = arith.constant 0 : index
    %30 = vector.load %arg5[%c0_13, %c0_14] : memref<2048x48xf32, #tpu.memory_space<vmem>>, vector<2048x48xf32>
    tpu.vector_store %arg5[%c0_13, %c0_14], %29 {strides = array<i32>} : memref<2048x48xf32, #tpu.memory_space<vmem>>, vector<2048x48xf32>,
    return
  }
  func.func @transform_0(%arg0: i32) -> (i32, i32) {
    %c0_i32 = arith.constant 0 : i32
    %c0_i32_0 = arith.constant 0 : i32
    %c0_i32_1 = arith.constant 0 : i32
    return %c0_i32, %c0_i32_0 : i32, i32
  }
  func.func @transform_1(%arg0: i32) -> (i32, i32) {
    %c0_i32 = arith.constant 0 : i32
    %c0_i32_0 = arith.constant 0 : i32
    %c0_i32_1 = arith.constant 0 : i32
    return %c0_i32, %c0_i32_0 : i32, i32
  }
  func.func @transform_2(%arg0: i32) -> (i32, i32) {
    %c0_i32 = arith.constant 0 : i32
    %c0_i32_0 = arith.constant 0 : i32
    %c0_i32_1 = arith.constant 0 : i32
    return %c0_i32, %c0_i32_0 : i32, i32
  }
  func.func @transform_3(%arg0: i32) -> (i32, i32) {
    %c0_i32 = arith.constant 0 : i32
    %c0_i32_0 = arith.constant 0 : i32
    %c0_i32_1 = arith.constant 0 : i32
    return %c0_i32, %c0_i32_0 : i32, i32
  }
  func.func @transform_4(%arg0: i32) -> (i32, i32) {
    %c0_i32 = arith.constant 0 : i32
    %c0_i32_0 = arith.constant 0 : i32
    %c0_i32_1 = arith.constant 0 : i32
    return %c0_i32, %c0_i32_0 : i32, i32
  }
}

module attributes {stable_mosaic.version = 11 : i64} {
  func.func @_tanh_kernel(%arg0: i32, %arg1: memref<192x128xf32, #tpu.memory_space<vmem>>, %arg2: memref<192x128xf32, #tpu.memory_space<vmem>>) attributes {dimension_semantics = [#tpu.dimension_semantics<arbitrary>], iteration_bounds = array<i64: 1>, scalar_prefetch = 0 : i64, scratch_operands = 0 : i64, tpu.core_type = #tpu.core_type<tc>, window_params = [{pipeline_mode = #tpu.pipeline_mode<synchronous>, transform_indices = @transform_0, window_bounds = array<i64: 192, 128>}, {pipeline_mode = #tpu.pipeline_mode<synchronous>, transform_indices = @transform_1, window_bounds = array<i64: 192, 128>}]} {
    %c0 = arith.constant 0 : index
    %c0_0 = arith.constant 0 : index
    %0 = vector.load %arg1[%c0, %c0_0] : memref<192x128xf32, #tpu.memory_space<vmem>>, vector<192x128xf32>
    %1 = math.tanh %0 : vector<192x128xf32>
    %c0_1 = arith.constant 0 : index
    %c0_2 = arith.constant 0 : index
    %2 = vector.load %arg2[%c0_1, %c0_2] : memref<192x128xf32, #tpu.memory_space<vmem>>, vector<192x128xf32>
    tpu.vector_store %arg2[%c0_1, %c0_2], %1 {strides = array<i32>} : memref<192x128xf32, #tpu.memory_space<vmem>>, vector<192x128xf32>,
    return
  }
  func.func @transform_0(%arg0: i32) -> (i32, i32) {
    %c0_i32 = arith.constant 0 : i32
    %c0_i32_0 = arith.constant 0 : i32
    %c0_i32_1 = arith.constant 0 : i32
    return %c0_i32, %c0_i32_0 : i32, i32
  }
  func.func @transform_1(%arg0: i32) -> (i32, i32) {
    %c0_i32 = arith.constant 0 : i32
    %c0_i32_0 = arith.constant 0 : i32
    %c0_i32_1 = arith.constant 0 : i32
    return %c0_i32, %c0_i32_0 : i32, i32
  }
}

</mosaic_0001>

<bundles_post_ra>
// kernel: generator_forward.6
= control target key start
LH: loop header
LB: loop body
LE: loop exit
PB: predicated region body
PF: predicated region fallthrough
CT: control target
= control target key end

     0   :  { %vm61_vm0 = vcmask 130048   ;;  %s327_s1 = inlined_call_operand.vmem [shape: bf16[16,1024], index: 1, kind: input, shape index: {}]   ;;  %s328_s0 = inlined_call_operand.vmem [shape: bf16[8,16], index: 0, kind: input, shape index: {}]   ;;  %s329_s2 = inlined_call_operand.vmem [shape: f32[8,1024], index: 2, kind: output, shape index: {}]  }
   0x1   :  { %v183_v0 = vld [vmem:[%s327_s1] sm:$0xf]  ;;  %v221_v2 = vld [vmem:[%s327_s1 + $0x4] sm:$0xf]  ;;  %v191_v5 = vld [vmem:[%s327_s1 + $0x8] sm:$0xf] }
   0x2   :  { %v225_v1 = vld [vmem:[%s327_s1 + $0x1c] sm:$0xf0]  ;;  %v185_v4 = vld [vmem:[%s327_s1 + $0x20] sm:$0xf0]  ;;  %v226_v6 = vld [vmem:[%s327_s1 + $0x24] sm:$0xf0] }
   0x3   :  { %v184_v3 = vor.u32 %v225_v1, %v183_v0  ;;  %v188_v7 = vor.u32 %v221_v2, %v185_v4  ;;  %v192_v8 = vor.u32 %v226_v6, %v191_v5  ;;  %v222_v9 = vld [vmem:[%s327_s1 + $0xc] sm:$0xf]  ;;  %v12_v11 = vld [vmem:[%s328_s0] sm:$0xf]  ;;  %v207_v13 = vld [vmem:[%s327_s1 + $0x18] sm:$0xf] }
   0x4   :  { %v193_v10 = vld [vmem:[%s327_s1 + $0x28] sm:$0xf0]  ;;  %v228_v14 = vld [vmem:[%s327_s1 + $0x34] sm:$0xf0]  ;;  %v224_v15 = vld [vmem:[%s327_s1 + $0x1c] sm:$0xf] }
   0x5   :  { %72 = vmatpush.bf16.msra.mxu0 %v184_v3  ;;  %v196_v12 = vor.u32 %v222_v9, %v193_v10  ;;  %85 = vmatpush.bf16.msra.mxu1 %v188_v7  ;;  %v208_v16 = vor.u32 %v228_v14, %v207_v13  ;;  %v209_v17 = vld [vmem:[%s327_s1 + $0x38] sm:$0xf0]  ;;  %v199_v18 = vld [vmem:[%s327_s1 + $0x10] sm:$0xf]  ;;  %v223_v22 = vld [vmem:[%s327_s1 + $0x14] sm:$0xf] }
   0x6   :  { %98 = vmatpush.bf16.msra.mxu2 %v192_v8  ;;  %v227_v19 = vld [vmem:[%s327_s1 + $0x2c] sm:$0xf0]  ;;  %v212_v20 = vor.u32 %v224_v15, %v209_v17  ;;  %v201_v23 = vld [vmem:[%s327_s1 + $0x30] sm:$0xf0] }
   0x7   :  { %111 = vmatpush.bf16.msra.mxu3 %v196_v12  ;;  %v200_v21 = vor.u32 %v227_v19, %v199_v18  ;;  %v204_v24 = vor.u32 %v223_v22, %v201_v23 }
   0x8   :  { %213 = vmatmul.msk.bf16.vlgmr.msra.gmra.mxu0 %vm61_vm0, %v12_v11  ;;  %214 = vmatmul.msk.bf16.vlgmr.msra.gmra.mxu1 %vm61_vm0, %v12_v11 }
   0x9   :  { %215 = vmatmul.msk.bf16.vlgmr.msra.gmra.mxu2 %vm61_vm0, %v12_v11  ;;  %124 = vmatpush.bf16.msrb.mxu0 %v200_v21 }
   0xa   :  { %150 = vmatpush.bf16.msrb.mxu2 %v208_v16  ;;  %216 = vmatmul.msk.bf16.vlgmr.msra.gmra.mxu3 %vm61_vm0, %v12_v11 }
   0xb   :  { %163 = vmatpush.bf16.msrb.mxu3 %v212_v20  ;;  %137 = vmatpush.bf16.msrb.mxu1 %v204_v24 }
  0x18   :  { %217 = vmatmul.msk.bf16.vlgmr.msrb.gmra.mxu0 %vm61_vm0, %v12_v11  ;;  %218 = vmatmul.msk.bf16.vlgmr.msrb.gmra.mxu1 %vm61_vm0, %v12_v11 }
  0x19   :  { %219 = vmatmul.msk.bf16.vlgmr.msrb.gmra.mxu2 %vm61_vm0, %v12_v11 }
  0x1a   :  { %220 = vmatmul.msk.bf16.vlgmr.msrb.gmra.mxu3 %vm61_vm0, %v12_v11 }
  0x85   :  { %v74_v25 = vpop.f32.mrf.mxu0  ;;  %v87_v26 = vpop.f32.mrf.mxu1 }
  0x86   :  { %169 = vst [vmem:[%s329_s2] sm:$0xff] %v74_v25 }
  0x87   :  { %170 = vst [vmem:[%s329_s2 + $0x8] sm:$0xff] %v87_v26 }
  0x8c   :  { %v100_v27 = vpop.f32.mrf.mxu2 }
  0x8d   :  { %171 = vst [vmem:[%s329_s2 + $0x10] sm:$0xff] %v100_v27  ;;  %v113_v28 = vpop.f32.mrf.mxu3  ;;  %v76_v29 = vpop.f32.mrf.mxu0 }
  0x8e   :  { %172 = vst [vmem:[%s329_s2 + $0x18] sm:$0xff] %v113_v28  ;;  %v89_v30 = vpop.f32.mrf.mxu1 }
  0x94   :  { %v102_v31 = vpop.f32.mrf.mxu2 }
  0x95   :  { %v115_v32 = vpop.f32.mrf.mxu3  ;;  %v126_v33 = vpop.f32.mrf.mxu0 }
  0x96   :  { %173 = vst [vmem:[%s329_s2 + $0x20] sm:$0xff] %v126_v33  ;;  %v139_v34 = vpop.f32.mrf.mxu1 }
  0x97   :  { %174 = vst [vmem:[%s329_s2 + $0x28] sm:$0xff] %v139_v34 }
  0x9c   :  { %v152_v35 = vpop.f32.mrf.mxu2 }
  0x9d   :  { %175 = vst [vmem:[%s329_s2 + $0x30] sm:$0xff] %v152_v35  ;;  %v165_v36 = vpop.f32.mrf.mxu3  ;;  %v128_v37 = vpop.f32.mrf.mxu0 }
  0x9e   :  { %176 = vst [vmem:[%s329_s2 + $0x38] sm:$0xff] %v165_v36  ;;  %v141_v38 = vpop.f32.mrf.mxu1 }
  0xa4   :  { %v154_v39 = vpop.f32.mrf.mxu2 }
  0xa5   :  { %v167_v40 = vpop.f32.mrf.mxu3 }

// kernel: generator_forward.7
= control target key start
LH: loop header
LB: loop body
LE: loop exit
PB: predicated region body
PF: predicated region fallthrough
CT: control target
= control target key end

     0   :  { %vm22_vm0 = vcmask 523264   ;;  %v396_v16 = vmov 32.0   ;;  %s600_s3 = inlined_call_operand.vmem [shape: bf16[64,512], index: 3, kind: input, shape index: {}]   ;;  %s601_s0 = inlined_call_operand.vmem [shape: f32[32,64], index: 0, kind: input, shape index: {}]   ;;  %s602_s1 = inlined_call_operand.vmem [shape: f32[1,64], index: 1, kind: input, shape index: {}]   ;;  %s603_s2 = inlined_call_operand.vmem [shape: f32[1,64], index: 2, kind: input, shape index: {}]   ;;  %s604_s4 = inlined_call_operand.vmem [shape: f32[32,512], index: 4, kind: output, shape index: {}]  }
   0x1   :  { %v351_v0 = vld [vmem:[%s600_s3 + $0x60] sm:$0xf]  ;;  %v387_v1 = vld [vmem:[%s600_s3 + $0x6c] sm:$0xf0]  ;;  %v385_v2 = vld [vmem:[%s600_s3 + $0x64] sm:$0xf]  ;;  %392 = vrcp.f32 %v396_v16 }
   0x2   :  { %v352_v3 = vor.u32 %v387_v1, %v351_v0  ;;  %v353_v4 = vld [vmem:[%s600_s3 + $0x70] sm:$0xf0]  ;;  %v359_v5 = vld [vmem:[%s600_s3 + $0x68] sm:$0xf]  ;;  %v388_v6 = vld [vmem:[%s600_s3 + $0x74] sm:$0xf0] }
   0x3   :  { %v356_v7 = vor.u32 %v385_v2, %v353_v4  ;;  %v360_v8 = vor.u32 %v388_v6, %v359_v5  ;;  %v386_v9 = vld [vmem:[%s600_s3 + $0x6c] sm:$0xf]  ;;  %v361_v10 = vld [vmem:[%s600_s3 + $0x78] sm:$0xf0]  ;;  %v335_v11 = vld [vmem:[%s600_s3 + $0x40] sm:$0xf] }
   0x4   :  { %209 = vmatpush.bf16.msra.mxu0 %v352_v3  ;;  %v364_v12 = vor.u32 %v386_v9, %v361_v10  ;;  %v383_v13 = vld [vmem:[%s600_s3 + $0x4c] sm:$0xf0]  ;;  %v381_v14 = vld [vmem:[%s600_s3 + $0x44] sm:$0xf]  ;;  %v337_v15 = vld [vmem:[%s600_s3 + $0x50] sm:$0xf0] }
   0x5   :  { %228 = vmatpush.bf16.msra.mxu1 %v356_v7  ;;  %247 = vmatpush.bf16.msra.mxu2 %v360_v8  ;;  %v336_v17 = vor.u32 %v383_v13, %v335_v11  ;;  %v340_v18 = vor.u32 %v381_v14, %v337_v15  ;;  %v343_v19 = vld [vmem:[%s600_s3 + $0x48] sm:$0xf]  ;;  %v384_v20 = vld [vmem:[%s600_s3 + $0x54] sm:$0xf0]  ;;  %v382_v21 = vld [vmem:[%s600_s3 + $0x4c] sm:$0xf] }
   0x6   :  { %266 = vmatpush.bf16.msra.mxu3 %v364_v12  ;;  %v344_v22 = vor.u32 %v384_v20, %v343_v19  ;;  %v345_v23 = vld [vmem:[%s600_s3 + $0x58] sm:$0xf0]  ;;  %v319_v24 = vld [vmem:[%s600_s3 + $0x20] sm:$0xf]  ;;  %v379_v25 = vld [vmem:[%s600_s3 + $0x2c] sm:$0xf0] }
   0x7   :  { %v348_v26 = vor.u32 %v382_v21, %v345_v23  ;;  %v377_v27 = vld [vmem:[%s600_s3 + $0x24] sm:$0xf]  ;;  %v321_v28 = vld [vmem:[%s600_s3 + $0x30] sm:$0xf0]  ;;  %v327_v29 = vld [vmem:[%s600_s3 + $0x28] sm:$0xf]  ;;  %v320_v30 = vor.u32 %v379_v25, %v319_v24  ;;  %v393_v39 = vpop.eup %392 }
   0x8   :  { %210 = vmatpush.bf16.msra.mxu0 %v336_v17  ;;  %v380_v31 = vld [vmem:[%s600_s3 + $0x34] sm:$0xf0]  ;;  %v378_v32 = vld [vmem:[%s600_s3 + $0x2c] sm:$0xf]  ;;  %v329_v33 = vld [vmem:[%s600_s3 + $0x38] sm:$0xf0]  ;;  %v324_v34 = vor.u32 %v377_v27, %v321_v28  ;;  %vm41_vm1 = vweird.f32 %v393_v39 }
   0x9   :  { %229 = vmatpush.bf16.msra.mxu1 %v340_v18  ;;  %248 = vmatpush.bf16.msra.mxu2 %v344_v22  ;;  %v328_v35 = vor.u32 %v380_v31, %v327_v29  ;;  %v303_v36 = vld [vmem:[%s600_s3] sm:$0xf]  ;;  %v375_v37 = vld [vmem:[%s600_s3 + $0xc] sm:$0xf0]  ;;  %v373_v38 = vld [vmem:[%s600_s3 + $0x4] sm:$0xf]  ;;  %v332_v40 = vor.u32 %v378_v32, %v329_v33 }
   0xa   :  { %267 = vmatpush.bf16.msra.mxu3 %v348_v26  ;;  %v305_v41 = vld [vmem:[%s600_s3 + $0x10] sm:$0xf0]  ;;  %v311_v42 = vld [vmem:[%s600_s3 + $0x8] sm:$0xf]  ;;  %v376_v43 = vld [vmem:[%s600_s3 + $0x14] sm:$0xf0]  ;;  %v304_v47 = vor.u32 %v375_v37, %v303_v36 }
   0xb   :  { %v374_v44 = vld [vmem:[%s600_s3 + $0xc] sm:$0xf]  ;;  %v313_v45 = vld [vmem:[%s600_s3 + $0x18] sm:$0xf0]  ;;  %v18_v46 = vld [vmem:[%s601_s0] sm:$0xff]  ;;  %v308_v48 = vor.u32 %v373_v38, %v305_v41  ;;  %v312_v53 = vor.u32 %v376_v43, %v311_v42  ;;  %v37_v56 = vmul.f32 32.0, %v393_v39 }
   0xc   :  { %211 = vmatpush.bf16.msra.mxu0 %v320_v30  ;;  %v19_v49 = vld [vmem:[%s601_s0 + $0x8] sm:$0xff]  ;;  %v20_v50 = vld [vmem:[%s601_s0 + $0x10] sm:$0xff]  ;;  %v21_v51 = vld [vmem:[%s601_s0 + $0x18] sm:$0xff]  ;;  %v23_v52 = vsel %vm22_vm0, %v18_v46, 0.0  ;;  %v316_v57 = vor.u32 %v374_v44, %v313_v45 }
   0xd   :  { %230 = vmatpush.bf16.msra.mxu1 %v324_v34  ;;  %249 = vmatpush.bf16.msra.mxu2 %v328_v35  ;;  %v24_v54 = vsel %vm22_vm0, %v19_v49, 0.0  ;;  %v26_v55 = vsel %vm22_vm0, %v20_v50, 0.0  ;;  %v28_v59 = vsel %vm22_vm0, %v21_v51, 0.0  ;;  %v38_v61 = vsub.f32 1.0, %v37_v56  ;;  %v390_v38 = vld [vmem:[%s602_s1] ss:$0 sm:$0xff] }
   0xe   :  { %268 = vmatpush.bf16.msra.mxu3 %v332_v40  ;;  %v25_v58 = vadd.f32 %v24_v54, %v23_v52  ;;  %v391_v42 = vld [vmem:[%s603_s2] ss:$0 sm:$0xff] }
   0xf   :  { %v39_v0 = vmul.f32 %v393_v39, %v38_v61 }
  0x10   :  { %212 = vmatpush.bf16.msra.mxu0 %v304_v47  ;;  %v27_v60 = vadd.f32 %v26_v55, %v25_v58 }
  0x11   :  { %231 = vmatpush.bf16.msra.mxu1 %v308_v48  ;;  %250 = vmatpush.bf16.msra.mxu2 %v312_v53  ;;  %v40_v3 = vadd.f32 %v393_v39, %v39_v0 }
  0x12   :  { %269 = vmatpush.bf16.msra.mxu3 %v316_v57  ;;  %v29_v62 = vadd.f32 %v28_v59, %v27_v60 }
  0x13   :  { %v42_v6 = vsel %vm41_vm1, %v393_v39, %v40_v3 }
  0x14   :  { %v30_v63 = vrot.slane %v29_v62, 4 }
  0x16   :  { %v31_v1 = vadd.f32 %v30_v63, %v29_v62 }
  0x18   :  { %v32_v2 = vrot.slane %v31_v1, 2 }
  0x1a   :  { %v33_v4 = vadd.f32 %v32_v2, %v31_v1 }
  0x1c   :  { %v34_v5 = vrot.slane %v33_v4, 1 }
  0x1e   :  { %v35_v7 = vadd.f32 %v34_v5, %v33_v4 }
  0x20   :  { %v43_v8 = vmul.f32 %v42_v6, %v35_v7 }
  0x22   :  { %v44_v9 = vsub.f32 %v18_v46, %v43_v8  ;;  %v45_v10 = vsub.f32 %v19_v49, %v43_v8  ;;  %v46_v11 = vsub.f32 %v20_v50, %v43_v8  ;;  %v47_v12 = vsub.f32 %v21_v51, %v43_v8 }
  0x24   :  { %v48_v13 = vmul.f32 %v44_v9, %v44_v9  ;;  %v49_v14 = vmul.f32 %v45_v10, %v45_v10  ;;  %v50_v15 = vmul.f32 %v46_v11, %v46_v11  ;;  %v51_v16 = vmul.f32 %v47_v12, %v47_v12 }
  0x26   :  { %v52_v17 = vsel %vm22_vm0, %v48_v13, 0.0  ;;  %v53_v18 = vsel %vm22_vm0, %v49_v14, 0.0  ;;  %v55_v19 = vsel %vm22_vm0, %v50_v15, 0.0  ;;  %v57_v21 = vsel %vm22_vm0, %v51_v16, 0.0 }
  0x27   :  { %v54_v20 = vadd.f32 %v53_v18, %v52_v17 }
  0x29   :  { %v56_v22 = vadd.f32 %v55_v19, %v54_v20 }
  0x2b   :  { %v58_v23 = vadd.f32 %v57_v21, %v56_v22 }
  0x2d   :  { %v59_v24 = vrot.slane %v58_v23, 4 }
  0x2f   :  { %v60_v25 = vadd.f32 %v59_v24, %v58_v23 }
  0x31   :  { %v61_v26 = vrot.slane %v60_v25, 2 }
  0x33   :  { %v62_v27 = vadd.f32 %v61_v26, %v60_v25 }
  0x35   :  { %v63_v28 = vrot.slane %v62_v27, 1 }
  0x37   :  { %v64_v29 = vadd.f32 %v63_v28, %v62_v27 }
  0x39   :  { %v65_v30 = vmul.f32 %v64_v29, %v42_v6 }
  0x3b   :  { %v66_v31 = vadd.f32 1e-05, %v65_v30 }
  0x3d   :  { %394 = vrsqrt.f32 %v66_v31  ;;  %vm73_vm2 = vweird.f32 %v66_v31 }
  0x43   :  { %v395_v32 = vpop.eup %394 }
  0x44   :  { %v68_v33 = vmul.f32 %v395_v32, %v66_v31  ;;  %vm74_vm3 = vweird.f32 %v395_v32 }
  0x45   :  { %vm75_vm4 = vmor %vm73_vm2, %vm74_vm3 }
  0x46   :  { %v69_v34 = vmul.f32 %v395_v32, %v68_v33 }
  0x48   :  { %v70_v35 = vmul.f32 0.5, %v69_v34 }
  0x4a   :  { %v71_v36 = vsub.f32 1.5, %v70_v35 }
  0x4c   :  { %v72_v37 = vmul.f32 %v395_v32, %v71_v36 }
  0x4e   :  { %v76_v39 = vsel %vm75_vm4, %v395_v32, %v72_v37 }
  0x4f   :  { %v77_v40 = vmul.f32 %v76_v39, %v44_v9  ;;  %v78_v41 = vmul.f32 %v76_v39, %v45_v10  ;;  %v79_v43 = vmul.f32 %v76_v39, %v46_v11  ;;  %v80_v44 = vmul.f32 %v76_v39, %v47_v12 }
  0x51   :  { %v85_v45 = vmul.f32 %v390_v38, %v77_v40  ;;  %v86_v46 = vmul.f32 %v390_v38, %v78_v41  ;;  %v87_v47 = vmul.f32 %v390_v38, %v79_v43  ;;  %v88_v48 = vmul.f32 %v390_v38, %v80_v44 }
  0x53   :  { %v93_v49 = vadd.f32 %v391_v42, %v85_v45  ;;  %v94_v50 = vadd.f32 %v391_v42, %v86_v46  ;;  %v95_v51 = vadd.f32 %v391_v42, %v87_v47  ;;  %v96_v52 = vadd.f32 %v391_v42, %v88_v48 }
  0x55   :  { %v97_v53 = vmax.f32 %v93_v49, 0.0  ;;  %v98_v54 = vmax.f32 %v94_v50, 0.0  ;;  %v99_v55 = vmax.f32 %v95_v51, 0.0  ;;  %v100_v56 = vmax.f32 %v96_v52, 0.0 }
  0x57   :  { %v101_v57 = vpack.c.bf16 %v98_v54, %v97_v53  ;;  %v102_v58 = vpack.c.bf16 %v100_v56, %v99_v55 }
  0x59   :  { %365 = vmatmul.msk.bf16.vlgmr.msra.gmra.mxu0 %vm22_vm0, %v101_v57  ;;  %367 = vmatmul.msk.bf16.vlgmr.msra.gmra.mxu1 %vm22_vm0, %v101_v57 }
  0x5a   :  { %369 = vmatmul.msk.bf16.vlgmr.msra.gmra.mxu2 %vm22_vm0, %v101_v57  ;;  %371 = vmatmul.msk.bf16.vlgmr.msra.gmra.mxu3 %vm22_vm0, %v101_v57 }
  0x69   :  { %366 = vmatmul.msk.bf16.gmra.mxu0 %vm22_vm0, %v102_v58  ;;  %368 = vmatmul.msk.bf16.gmra.mxu1 %vm22_vm0, %v102_v58 }
  0x6a   :  { %370 = vmatmul.msk.bf16.gmra.mxu2 %vm22_vm0, %v102_v58  ;;  %372 = vmatmul.msk.bf16.gmra.mxu3 %vm22_vm0, %v102_v58 }
  0xd6   :  { %v214_v59 = vpop.f32.mrf.mxu0  ;;  %v233_v60 = vpop.f32.mrf.mxu1 }
  0xd7   :  { %281 = vst [vmem:[%s604_s4] sm:$0xff] %v214_v59 }
  0xd8   :  { %282 = vst [vmem:[%s604_s4 + $0x8] sm:$0xff] %v233_v60 }
  0xdd   :  { %v252_v61 = vpop.f32.mrf.mxu2  ;;  %v271_v62 = vpop.f32.mrf.mxu3 }
  0xde   :  { %283 = vst [vmem:[%s604_s4 + $0x10] sm:$0xff] %v252_v61  ;;  %v216_v63 = vpop.f32.mrf.mxu0  ;;  %v235_v0 = vpop.f32.mrf.mxu1 }
  0xdf   :  { %284 = vst [vmem:[%s604_s4 + $0x18] sm:$0xff] %v271_v62 }
  0xe0   :  { %285 = vst [vmem:[%s604_s4 + $0x20] sm:$0xff] %v216_v63 }
  0xe1   :  { %286 = vst [vmem:[%s604_s4 + $0x28] sm:$0xff] %v235_v0 }
  0xe5   :  { %v254_v1 = vpop.f32.mrf.mxu2  ;;  %v273_v2 = vpop.f32.mrf.mxu3 }
  0xe6   :  { %287 = vst [vmem:[%s604_s4 + $0x30] sm:$0xff] %v254_v1  ;;  %v219_v3 = vpop.f32.mrf.mxu0  ;;  %v238_v4 = vpop.f32.mrf.mxu1 }
  0xe7   :  { %288 = vst [vmem:[%s604_s4 + $0x38] sm:$0xff] %v273_v2 }
  0xe8   :  { %289 = vst [vmem:[%s604_s4 + $0x40] sm:$0xff] %v219_v3 }
  0xe9   :  { %290 = vst [vmem:[%s604_s4 + $0x48] sm:$0xff] %v238_v4 }
  0xed   :  { %v257_v5 = vpop.f32.mrf.mxu2  ;;  %v276_v6 = vpop.f32.mrf.mxu3 }
  0xee   :  { %291 = vst [vmem:[%s604_s4 + $0x50] sm:$0xff] %v257_v5  ;;  %v221_v7 = vpop.f32.mrf.mxu0  ;;  %v240_v8 = vpop.f32.mrf.mxu1 }
  0xef   :  { %292 = vst [vmem:[%s604_s4 + $0x58] sm:$0xff] %v276_v6 }
  0xf0   :  { %293 = vst [vmem:[%s604_s4 + $0x60] sm:$0xff] %v221_v7 }
  0xf1   :  { %294 = vst [vmem:[%s604_s4 + $0x68] sm:$0xff] %v240_v8 }
  0xf5   :  { %v259_v9 = vpop.f32.mrf.mxu2  ;;  %v278_v10 = vpop.f32.mrf.mxu3 }
  0xf6   :  { %295 = vst [vmem:[%s604_s4 + $0x70] sm:$0xff] %v259_v9 }
  0xf7   :  { %296 = vst [vmem:[%s604_s4 + $0x78] sm:$0xff] %v278_v10 }

// kernel: generator_forward.8
= control target key start
LH: loop header
LB: loop body
LE: loop exit
PB: predicated region body
PF: predicated region fallthrough
CT: control target
= control target key end

     0   :  { %vm34_vm0 = vcmask 261120   ;;  %v470_v42 = vmov 128.0   ;;  %s916_s3 = inlined_call_operand.vmem [shape: bf16[32,256], index: 3, kind: input, shape index: {}]   ;;  %s917_s0 = inlined_call_operand.vmem [shape: f32[128,32], index: 0, kind: input, shape index: {}]   ;;  %s918_s1 = inlined_call_operand.vmem [shape: f32[1,32], index: 1, kind: input, shape index: {}]   ;;  %s919_s2 = inlined_call_operand.vmem [shape: f32[1,32], index: 2, kind: input, shape index: {}]   ;;  %s920_s4 = inlined_call_operand.vmem [shape: f32[128,256], index: 4, kind: output, shape index: {}]  }
   0x1   :  { %v433_v0 = vld [vmem:[%s916_s3 + $0x10] sm:$0xf]  ;;  %v458_v1 = vld [vmem:[%s916_s3 + $0x14] sm:$0xf0]  ;;  %v457_v2 = vld [vmem:[%s916_s3 + $0x14] sm:$0xf]  ;;  %466 = vrcp.f32 %v470_v42 }
   0x2   :  { %v434_v3 = vor.u32 %v458_v1, %v433_v0  ;;  %v435_v4 = vld [vmem:[%s916_s3 + $0x18] sm:$0xf0]  ;;  %v425_v5 = vld [vmem:[%s916_s3] sm:$0xf]  ;;  %v456_v6 = vld [vmem:[%s916_s3 + $0x4] sm:$0xf0] }
   0x3   :  { %v438_v7 = vor.u32 %v457_v2, %v435_v4  ;;  %v455_v8 = vld [vmem:[%s916_s3 + $0x4] sm:$0xf]  ;;  %v427_v9 = vld [vmem:[%s916_s3 + $0x8] sm:$0xf0]  ;;  %v426_v11 = vor.u32 %v456_v6, %v425_v5  ;;  %v533_v13 = vld [vmem:[%s917_s0 + $0x10] sm:$0xff] }
   0x4   :  { %v523_v10 = vld [vmem:[%s917_s0] sm:$0xff]  ;;  %295 = vmatpush.bf16.msra.mxu0 %v434_v3  ;;  %459 = vmatpush.bf16.msra.mxu2 %v434_v3  ;;  %v528_v12 = vld [vmem:[%s917_s0 + $0x8] sm:$0xff]  ;;  %v538_v14 = vld [vmem:[%s917_s0 + $0x18] sm:$0xff]  ;;  %v430_v16 = vor.u32 %v455_v8, %v427_v9  ;;  %v38_v18 = vsel %vm34_vm0, %v533_v13, 0.0 }
   0x5   :  { %v35_v15 = vsel %vm34_vm0, %v523_v10, 0.0  ;;  %344 = vmatpush.bf16.msra.mxu1 %v438_v7  ;;  %461 = vmatpush.bf16.msra.mxu3 %v438_v7  ;;  %v36_v17 = vsel %vm34_vm0, %v528_v12, 0.0  ;;  %v549_v19 = vld [vmem:[%s917_s0 + $0x20] sm:$0xff]  ;;  %v40_v21 = vsel %vm34_vm0, %v538_v14, 0.0  ;;  %v556_v22 = vld [vmem:[%s917_s0 + $0x28] sm:$0xff]  ;;  %v24_v25 = vld [vmem:[%s917_s0 + $0x30] sm:$0xff] }
   0x6   :  { %v37_v20 = vadd.f32 %v36_v17, %v35_v15  ;;  %v42_v24 = vsel %vm34_vm0, %v549_v19, 0.0  ;;  %v44_v27 = vsel %vm34_vm0, %v556_v22, 0.0  ;;  %v568_v28 = vld [vmem:[%s917_s0 + $0x38] sm:$0xff]  ;;  %v46_v30 = vsel %vm34_vm0, %v24_v25, 0.0  ;;  %v574_v31 = vld [vmem:[%s917_s0 + $0x40] sm:$0xff]  ;;  %v581_v34 = vld [vmem:[%s917_s0 + $0x48] sm:$0xff] }
   0x7   :  { %v48_v33 = vsel %vm34_vm0, %v568_v28, 0.0  ;;  %v50_v36 = vsel %vm34_vm0, %v574_v31, 0.0  ;;  %v588_v37 = vld [vmem:[%s917_s0 + $0x50] sm:$0xff]  ;;  %v52_v39 = vsel %vm34_vm0, %v581_v34, 0.0  ;;  %v595_v40 = vld [vmem:[%s917_s0 + $0x58] sm:$0xff]  ;;  %v602_v44 = vld [vmem:[%s917_s0 + $0x60] sm:$0xff]  ;;  %v467_v50 = vpop.eup %466 }
   0x8   :  { %296 = vmatpush.bf16.msra.mxu0 %v426_v11  ;;  %460 = vmatpush.bf16.msra.mxu2 %v426_v11  ;;  %v39_v23 = vadd.f32 %v38_v18, %v37_v20  ;;  %v54_v43 = vsel %vm34_vm0, %v588_v37, 0.0  ;;  %v56_v46 = vsel %vm34_vm0, %v595_v40, 0.0  ;;  %v609_v47 = vld [vmem:[%s917_s0 + $0x68] sm:$0xff]  ;;  %v58_v49 = vsel %vm34_vm0, %v602_v44, 0.0  ;;  %v616_v51 = vld [vmem:[%s917_s0 + $0x70] sm:$0xff]  ;;  %v623_v54 = vld [vmem:[%s917_s0 + $0x78] sm:$0xff] }
   0x9   :  { %345 = vmatpush.bf16.msra.mxu1 %v430_v16  ;;  %462 = vmatpush.bf16.msra.mxu3 %v430_v16  ;;  %v60_v53 = vsel %vm34_vm0, %v609_v47, 0.0  ;;  %v62_v56 = vsel %vm34_vm0, %v616_v51, 0.0  ;;  %v73_v57 = vmul.f32 128.0, %v467_v50  ;;  %v64_v59 = vsel %vm34_vm0, %v623_v54, 0.0 }
   0xa   :  { %v41_v26 = vadd.f32 %v40_v21, %v39_v23  ;;  %vm77_vm1 = vweird.f32 %v467_v50 }
   0xb   :  { %v74_v61 = vsub.f32 1.0, %v73_v57 }
   0xc   :  { %v43_v29 = vadd.f32 %v42_v24, %v41_v26 }
   0xd   :  { %v75_v0 = vmul.f32 %v467_v50, %v74_v61 }
   0xe   :  { %v45_v32 = vadd.f32 %v44_v27, %v43_v29 }
   0xf   :  { %v76_v3 = vadd.f32 %v467_v50, %v75_v0 }
  0x10   :  { %v47_v35 = vadd.f32 %v46_v30, %v45_v32 }
  0x11   :  { %v629_v6 = vsel %vm77_vm1, %v467_v50, %v76_v3 }
  0x12   :  { %v49_v38 = vadd.f32 %v48_v33, %v47_v35 }
  0x14   :  { %v51_v41 = vadd.f32 %v50_v36, %v49_v38 }
  0x16   :  { %v53_v45 = vadd.f32 %v52_v39, %v51_v41 }
  0x18   :  { %v55_v48 = vadd.f32 %v54_v43, %v53_v45 }
  0x1a   :  { %v57_v52 = vadd.f32 %v56_v46, %v55_v48 }
  0x1c   :  { %v59_v55 = vadd.f32 %v58_v49, %v57_v52 }
  0x1e   :  { %v61_v58 = vadd.f32 %v60_v53, %v59_v55 }
  0x20   :  { %v63_v60 = vadd.f32 %v62_v56, %v61_v58 }
  0x22   :  { %v65_v62 = vadd.f32 %v64_v59, %v63_v60 }
  0x24   :  { %v66_v63 = vrot.slane %v65_v62, 4 }
  0x26   :  { %v67_v1 = vadd.f32 %v66_v63, %v65_v62 }
  0x28   :  { %v68_v2 = vrot.slane %v67_v1, 2 }
  0x2a   :  { %v69_v4 = vadd.f32 %v68_v2, %v67_v1 }
  0x2c   :  { %v70_v5 = vrot.slane %v69_v4, 1 }
  0x2e   :  { %v71_v7 = vadd.f32 %v70_v5, %v69_v4 }
  0x30   :  { %v79_v8 = vmul.f32 %v629_v6, %v71_v7 }
  0x32   :  { %v633_v9 = vsub.f32 %v523_v10, %v79_v8  ;;  %v636_v11 = vsub.f32 %v528_v12, %v79_v8  ;;  %v639_v15 = vsub.f32 %v533_v13, %v79_v8  ;;  %v642_v16 = vsub.f32 %v538_v14, %v79_v8 }
  0x33   :  { %v645_v17 = vsub.f32 %v549_v19, %v79_v8  ;;  %v654_v12 = vsub.f32 %v556_v22, %v79_v8  ;;  %v658_v14 = vsub.f32 %v24_v25, %v79_v8  ;;  %v666_v27 = vsub.f32 %v568_v28, %v79_v8 }
  0x34   :  { %v96_v18 = vmul.f32 %v633_v9, %v633_v9  ;;  %v97_v20 = vmul.f32 %v636_v11, %v636_v11  ;;  %v98_v10 = vmul.f32 %v639_v15, %v639_v15  ;;  %v99_v13 = vmul.f32 %v642_v16, %v642_v16 }
  0x35   :  { %v100_v19 = vmul.f32 %v645_v17, %v645_v17  ;;  %v101_v22 = vmul.f32 %v654_v12, %v654_v12  ;;  %v672_v30 = vsub.f32 %v574_v31, %v79_v8  ;;  %v102_v32 = vmul.f32 %v658_v14, %v658_v14 }
  0x36   :  { %v112_v21 = vsel %vm34_vm0, %v96_v18, 0.0  ;;  %v113_v23 = vsel %vm34_vm0, %v97_v20, 0.0  ;;  %v115_v24 = vsel %vm34_vm0, %v98_v10, 0.0  ;;  %v117_v29 = vsel %vm34_vm0, %v99_v13, 0.0 }
  0x37   :  { %v114_v26 = vadd.f32 %v113_v23, %v112_v21  ;;  %v119_v33 = vsel %vm34_vm0, %v100_v19, 0.0  ;;  %v678_v36 = vsub.f32 %v581_v34, %v79_v8  ;;  %v103_v28 = vmul.f32 %v666_v27, %v666_v27 }
  0x38   :  { %v121_v38 = vsel %vm34_vm0, %v101_v22, 0.0  ;;  %v684_v41 = vsub.f32 %v588_v37, %v79_v8  ;;  %v104_v31 = vmul.f32 %v672_v30, %v672_v30  ;;  %v123_v42 = vsel %vm34_vm0, %v102_v32, 0.0 }
  0x39   :  { %v116_v25 = vadd.f32 %v115_v24, %v114_v26  ;;  %v690_v45 = vsub.f32 %v595_v40, %v79_v8  ;;  %v105_v34 = vmul.f32 %v678_v36, %v678_v36  ;;  %v125_v46 = vsel %vm34_vm0, %v103_v28, 0.0 }
  0x3a   :  { %v696_v49 = vsub.f32 %v602_v44, %v79_v8  ;;  %v106_v37 = vmul.f32 %v684_v41, %v684_v41  ;;  %v127_v50 = vsel %vm34_vm0, %v104_v31, 0.0  ;;  %v702_v53 = vsub.f32 %v609_v47, %v79_v8 }
  0x3b   :  { %v118_v35 = vadd.f32 %v117_v29, %v116_v25  ;;  %v107_v40 = vmul.f32 %v690_v45, %v690_v45  ;;  %v129_v55 = vsel %vm34_vm0, %v105_v34, 0.0  ;;  %v708_v57 = vsub.f32 %v616_v51, %v79_v8 }
  0x3c   :  { %v108_v44 = vmul.f32 %v696_v49, %v696_v49  ;;  %v131_v58 = vsel %vm34_vm0, %v106_v37, 0.0  ;;  %v714_v60 = vsub.f32 %v623_v54, %v79_v8  ;;  %v109_v47 = vmul.f32 %v702_v53, %v702_v53 }
  0x3d   :  { %v120_v39 = vadd.f32 %v119_v33, %v118_v35  ;;  %v133_v61 = vsel %vm34_vm0, %v107_v40, 0.0  ;;  %v110_v63 = vmul.f32 %v708_v57, %v708_v57  ;;  %v731_v35 = vld [vmem:[%s918_s1] ss:$0 sm:$0xff] }
  0x3e   :  { %v135_v51 = vsel %vm34_vm0, %v108_v44, 0.0  ;;  %v111_v1 = vmul.f32 %v714_v60, %v714_v60  ;;  %v137_v2 = vsel %vm34_vm0, %v109_v47, 0.0 }
  0x3f   :  { %v122_v43 = vadd.f32 %v121_v38, %v120_v39  ;;  %v139_v54 = vsel %vm34_vm0, %v110_v63, 0.0  ;;  %v742_v39 = vld [vmem:[%s919_s2] ss:$0 sm:$0xff] }
  0x40   :  { %v141_v5 = vsel %vm34_vm0, %v111_v1, 0.0 }
  0x41   :  { %v124_v48 = vadd.f32 %v123_v42, %v122_v43 }
  0x43   :  { %v126_v52 = vadd.f32 %v125_v46, %v124_v48 }
  0x45   :  { %v128_v56 = vadd.f32 %v127_v50, %v126_v52 }
  0x47   :  { %v130_v59 = vadd.f32 %v129_v55, %v128_v56 }
  0x49   :  { %v132_v62 = vadd.f32 %v131_v58, %v130_v59 }
  0x4b   :  { %v134_v0 = vadd.f32 %v133_v61, %v132_v62 }
  0x4d   :  { %v136_v3 = vadd.f32 %v135_v51, %v134_v0 }
  0x4f   :  { %v138_v4 = vadd.f32 %v137_v2, %v136_v3 }
  0x51   :  { %v140_v7 = vadd.f32 %v139_v54, %v138_v4 }
  0x53   :  { %v142_v8 = vadd.f32 %v141_v5, %v140_v7 }
  0x55   :  { %v143_v18 = vrot.slane %v142_v8, 4 }
  0x57   :  { %v144_v20 = vadd.f32 %v143_v18, %v142_v8 }
  0x59   :  { %v145_v10 = vrot.slane %v144_v20, 2 }
  0x5b   :  { %v146_v13 = vadd.f32 %v145_v10, %v144_v20 }
  0x5d   :  { %v147_v19 = vrot.slane %v146_v13, 1 }
  0x5f   :  { %v148_v21 = vadd.f32 %v147_v19, %v146_v13 }
  0x61   :  { %v149_v23 = vmul.f32 %v148_v21, %v629_v6 }
  0x63   :  { %v150_v24 = vadd.f32 1e-05, %v149_v23 }
  0x65   :  { %468 = vrsqrt.f32 %v150_v24  ;;  %vm157_vm2 = vweird.f32 %v150_v24 }
  0x6b   :  { %v469_v26 = vpop.eup %468 }
  0x6c   :  { %v152_v22 = vmul.f32 %v469_v26, %v150_v24  ;;  %vm158_vm3 = vweird.f32 %v469_v26 }
  0x6d   :  { %vm159_vm4 = vmor %vm157_vm2, %vm158_vm3 }
  0x6e   :  { %v153_v29 = vmul.f32 %v469_v26, %v152_v22 }
  0x70   :  { %v154_v25 = vmul.f32 0.5, %v153_v29 }
  0x72   :  { %v155_v32 = vsub.f32 1.5, %v154_v25 }
  0x74   :  { %v156_v33 = vmul.f32 %v469_v26, %v155_v32 }
  0x76   :  { %v733_v28 = vsel %vm159_vm4, %v469_v26, %v156_v33 }
  0x77   :  { %v161_v6 = vmul.f32 %v733_v28, %v633_v9  ;;  %v162_v38 = vmul.f32 %v733_v28, %v636_v11  ;;  %v169_v31 = vmul.f32 %v733_v28, %v672_v30  ;;  %v170_v42 = vmul.f32 %v733_v28, %v678_v36 }
  0x78   :  { %v163_v30 = vmul.f32 %v733_v28, %v639_v15  ;;  %v164_v36 = vmul.f32 %v733_v28, %v642_v16  ;;  %v171_v52 = vmul.f32 %v733_v28, %v684_v41  ;;  %v172_v40 = vmul.f32 %v733_v28, %v690_v45 }
  0x79   :  { %v181_v43 = vmul.f32 %v731_v35, %v161_v6  ;;  %v182_v34 = vmul.f32 %v731_v35, %v162_v38  ;;  %v189_v9 = vmul.f32 %v731_v35, %v169_v31  ;;  %v190_v46 = vmul.f32 %v731_v35, %v170_v42 }
  0x7a   :  { %v183_v61 = vmul.f32 %v731_v35, %v163_v30  ;;  %v184_v15 = vmul.f32 %v731_v35, %v164_v36  ;;  %v191_v16 = vmul.f32 %v731_v35, %v171_v52  ;;  %v192_v41 = vmul.f32 %v731_v35, %v172_v40 }
  0x7b   :  { %v201_v11 = vadd.f32 %v742_v39, %v181_v43  ;;  %v202_v48 = vadd.f32 %v742_v39, %v182_v34  ;;  %v209_v37 = vadd.f32 %v742_v39, %v189_v9  ;;  %v210_v50 = vadd.f32 %v742_v39, %v190_v46 }
  0x7c   :  { %v203_v45 = vadd.f32 %v742_v39, %v183_v61  ;;  %v204_v62 = vadd.f32 %v742_v39, %v184_v15  ;;  %v211_v63 = vadd.f32 %v742_v39, %v191_v16  ;;  %v212_v51 = vadd.f32 %v742_v39, %v192_v41 }
  0x7d   :  { %v217_v55 = vmax.f32 %v201_v11, 0.0  ;;  %v218_v56 = vmax.f32 %v202_v48, 0.0  ;;  %v225_v44 = vmax.f32 %v209_v37, 0.0  ;;  %v226_v58 = vmax.f32 %v210_v50, 0.0 }
  0x7e   :  { %v219_v0 = vmax.f32 %v203_v45, 0.0  ;;  %v220_v1 = vmax.f32 %v204_v62, 0.0  ;;  %v227_v2 = vmax.f32 %v211_v63, 0.0  ;;  %v228_v3 = vmax.f32 %v212_v51, 0.0 }
  0x7f   :  { %v233_v59 = vpack.c.bf16 %v218_v56, %v217_v55  ;;  %v237_v47 = vpack.c.bf16 %v226_v58, %v225_v44  ;;  %v165_v54 = vmul.f32 %v733_v28, %v645_v17  ;;  %v166_v4 = vmul.f32 %v733_v28, %v654_v12 }
  0x80   :  { %v234_v5 = vpack.c.bf16 %v220_v1, %v219_v0  ;;  %v238_v7 = vpack.c.bf16 %v228_v3, %v227_v2  ;;  %v173_v8 = vmul.f32 %v733_v28, %v696_v49  ;;  %v174_v18 = vmul.f32 %v733_v28, %v702_v53 }
  0x81   :  { %439 = vmatmul.msk.bf16.vlgmr.msra.gmra.mxu0 %vm34_vm0, %v233_v59  ;;  %443 = vmatmul.msk.bf16.vlgmr.msra.gmra.mxu2 %vm34_vm0, %v237_v47  ;;  %v185_v20 = vmul.f32 %v731_v35, %v165_v54  ;;  %v186_v10 = vmul.f32 %v731_v35, %v166_v4  ;;  %v167_v22 = vmul.f32 %v733_v28, %v658_v14 }
  0x82   :  { %447 = vmatmul.msk.bf16.vlgmr.msra.gmra.mxu1 %vm34_vm0, %v233_v59  ;;  %451 = vmatmul.msk.bf16.vlgmr.msra.gmra.mxu3 %vm34_vm0, %v237_v47  ;;  %v193_v17 = vmul.f32 %v731_v35, %v173_v8  ;;  %v194_v12 = vmul.f32 %v731_v35, %v174_v18  ;;  %v168_v29 = vmul.f32 %v733_v28, %v666_v27 }
  0x83   :  { %v205_v49 = vadd.f32 %v742_v39, %v185_v20  ;;  %v206_v53 = vadd.f32 %v742_v39, %v186_v10  ;;  %v175_v33 = vmul.f32 %v733_v28, %v708_v57  ;;  %v176_v6 = vmul.f32 %v733_v28, %v714_v60 }
  0x84   :  { %v213_v13 = vadd.f32 %v742_v39, %v193_v17  ;;  %v214_v19 = vadd.f32 %v742_v39, %v194_v12  ;;  %v187_v38 = vmul.f32 %v731_v35, %v167_v22  ;;  %v188_v31 = vmul.f32 %v731_v35, %v168_v29 }
  0x85   :  { %v221_v21 = vmax.f32 %v205_v49, 0.0  ;;  %v222_v23 = vmax.f32 %v206_v53, 0.0  ;;  %v195_v14 = vmul.f32 %v731_v35, %v175_v33  ;;  %v196_v27 = vmul.f32 %v731_v35, %v176_v6 }
  0x86   :  { %v229_v24 = vmax.f32 %v213_v13, 0.0  ;;  %v230_v26 = vmax.f32 %v214_v19, 0.0  ;;  %v207_v57 = vadd.f32 %v742_v39, %v187_v38  ;;  %v208_v60 = vadd.f32 %v742_v39, %v188_v31 }
  0x87   :  { %v235_v25 = vpack.c.bf16 %v222_v23, %v221_v21  ;;  %v215_v28 = vadd.f32 %v742_v39, %v195_v14  ;;  %v216_v42 = vadd.f32 %v742_v39, %v196_v27 }
  0x88   :  { %v239_v32 = vpack.c.bf16 %v230_v26, %v229_v24  ;;  %v223_v43 = vmax.f32 %v207_v57, 0.0  ;;  %v224_v34 = vmax.f32 %v208_v60, 0.0 }
  0x89   :  { %v231_v9 = vmax.f32 %v215_v28, 0.0  ;;  %v232_v46 = vmax.f32 %v216_v42, 0.0 }
  0x8a   :  { %v236_v11 = vpack.c.bf16 %v224_v34, %v223_v43 }
  0x8b   :  { %v240_v48 = vpack.c.bf16 %v232_v46, %v231_v9 }
  0x91   :  { %440 = vmatmul.msk.bf16.gmra.mxu0 %vm34_vm0, %v234_v5  ;;  %444 = vmatmul.msk.bf16.gmra.mxu2 %vm34_vm0, %v238_v7 }
  0x92   :  { %448 = vmatmul.msk.bf16.gmra.mxu1 %vm34_vm0, %v234_v5  ;;  %452 = vmatmul.msk.bf16.gmra.mxu3 %vm34_vm0, %v238_v7 }
  0xa1   :  { %441 = vmatmul.msk.bf16.gmra.mxu0 %vm34_vm0, %v235_v25  ;;  %445 = vmatmul.msk.bf16.gmra.mxu2 %vm34_vm0, %v239_v32 }
  0xa2   :  { %449 = vmatmul.msk.bf16.gmra.mxu1 %vm34_vm0, %v235_v25  ;;  %453 = vmatmul.msk.bf16.gmra.mxu3 %vm34_vm0, %v239_v32 }
  0xb1   :  { %442 = vmatmul.msk.bf16.gmra.mxu0 %vm34_vm0, %v236_v11  ;;  %446 = vmatmul.msk.bf16.gmra.mxu2 %vm34_vm0, %v240_v48 }
  0xb2   :  { %450 = vmatmul.msk.bf16.gmra.mxu1 %vm34_vm0, %v236_v11  ;;  %454 = vmatmul.msk.bf16.gmra.mxu3 %vm34_vm0, %v240_v48 }
  0xfe   :  { %v298_v35 = vpop.f32.mrf.mxu0 }
  0xff   :  { %387 = vst [vmem:[%s920_s4] sm:$0xff] %v298_v35  ;;  %v347_v39 = vpop.f32.mrf.mxu1 }
 0x100   :  { %388 = vst [vmem:[%s920_s4 + $0x8] sm:$0xff] %v347_v39 }
 0x104   :  { %v318_v37 = vpop.f32.mrf.mxu2 }
 0x105   :  { %403 = vst [vmem:[%s920_s4 + $0x80] sm:$0xff] %v318_v37  ;;  %v367_v50 = vpop.f32.mrf.mxu3 }
 0x106   :  { %404 = vst [vmem:[%s920_s4 + $0x88] sm:$0xff] %v367_v50  ;;  %v300_v30 = vpop.f32.mrf.mxu0 }
 0x107   :  { %389 = vst [vmem:[%s920_s4 + $0x10] sm:$0xff] %v300_v30  ;;  %v349_v36 = vpop.f32.mrf.mxu1 }
 0x108   :  { %390 = vst [vmem:[%s920_s4 + $0x18] sm:$0xff] %v349_v36 }
 0x10c   :  { %v320_v52 = vpop.f32.mrf.mxu2 }
 0x10d   :  { %405 = vst [vmem:[%s920_s4 + $0x90] sm:$0xff] %v320_v52  ;;  %v369_v40 = vpop.f32.mrf.mxu3 }
 0x10e   :  { %406 = vst [vmem:[%s920_s4 + $0x98] sm:$0xff] %v369_v40  ;;  %v303_v55 = vpop.f32.mrf.mxu0 }
 0x10f   :  { %391 = vst [vmem:[%s920_s4 + $0x20] sm:$0xff] %v303_v55  ;;  %v352_v56 = vpop.f32.mrf.mxu1 }
 0x110   :  { %392 = vst [vmem:[%s920_s4 + $0x28] sm:$0xff] %v352_v56 }
 0x114   :  { %v323_v44 = vpop.f32.mrf.mxu2 }
 0x115   :  { %407 = vst [vmem:[%s920_s4 + $0xa0] sm:$0xff] %v323_v44  ;;  %v372_v58 = vpop.f32.mrf.mxu3 }
 0x116   :  { %408 = vst [vmem:[%s920_s4 + $0xa8] sm:$0xff] %v372_v58  ;;  %v305_v59 = vpop.f32.mrf.mxu0 }
 0x117   :  { %393 = vst [vmem:[%s920_s4 + $0x30] sm:$0xff] %v305_v59  ;;  %v354_v47 = vpop.f32.mrf.mxu1 }
 0x118   :  { %394 = vst [vmem:[%s920_s4 + $0x38] sm:$0xff] %v354_v47 }
 0x11c   :  { %v325_v61 = vpop.f32.mrf.mxu2 }
 0x11d   :  { %409 = vst [vmem:[%s920_s4 + $0xb0] sm:$0xff] %v325_v61  ;;  %v374_v15 = vpop.f32.mrf.mxu3 }
 0x11e   :  { %410 = vst [vmem:[%s920_s4 + $0xb8] sm:$0xff] %v374_v15  ;;  %v308_v16 = vpop.f32.mrf.mxu0 }
 0x11f   :  { %395 = vst [vmem:[%s920_s4 + $0x40] sm:$0xff] %v308_v16  ;;  %v357_v41 = vpop.f32.mrf.mxu1 }
 0x120   :  { %396 = vst [vmem:[%s920_s4 + $0x48] sm:$0xff] %v357_v41 }
 0x124   :  { %v328_v45 = vpop.f32.mrf.mxu2 }
 0x125   :  { %411 = vst [vmem:[%s920_s4 + $0xc0] sm:$0xff] %v328_v45  ;;  %v377_v62 = vpop.f32.mrf.mxu3 }
 0x126   :  { %412 = vst [vmem:[%s920_s4 + $0xc8] sm:$0xff] %v377_v62  ;;  %v310_v63 = vpop.f32.mrf.mxu0 }
 0x127   :  { %397 = vst [vmem:[%s920_s4 + $0x50] sm:$0xff] %v310_v63  ;;  %v359_v51 = vpop.f32.mrf.mxu1 }
 0x128   :  { %398 = vst [vmem:[%s920_s4 + $0x58] sm:$0xff] %v359_v51 }
 0x12c   :  { %v330_v0 = vpop.f32.mrf.mxu2 }
 0x12d   :  { %413 = vst [vmem:[%s920_s4 + $0xd0] sm:$0xff] %v330_v0  ;;  %v379_v1 = vpop.f32.mrf.mxu3 }
 0x12e   :  { %414 = vst [vmem:[%s920_s4 + $0xd8] sm:$0xff] %v379_v1  ;;  %v313_v2 = vpop.f32.mrf.mxu0 }
 0x12f   :  { %399 = vst [vmem:[%s920_s4 + $0x60] sm:$0xff] %v313_v2  ;;  %v362_v3 = vpop.f32.mrf.mxu1 }
 0x130   :  { %400 = vst [vmem:[%s920_s4 + $0x68] sm:$0xff] %v362_v3 }
 0x134   :  { %v333_v54 = vpop.f32.mrf.mxu2 }
 0x135   :  { %415 = vst [vmem:[%s920_s4 + $0xe0] sm:$0xff] %v333_v54  ;;  %v382_v4 = vpop.f32.mrf.mxu3 }
 0x136   :  { %416 = vst [vmem:[%s920_s4 + $0xe8] sm:$0xff] %v382_v4  ;;  %v315_v5 = vpop.f32.mrf.mxu0 }
 0x137   :  { %401 = vst [vmem:[%s920_s4 + $0x70] sm:$0xff] %v315_v5  ;;  %v364_v7 = vpop.f32.mrf.mxu1 }
 0x138   :  { %402 = vst [vmem:[%s920_s4 + $0x78] sm:$0xff] %v364_v7 }
 0x13c   :  { %v335_v8 = vpop.f32.mrf.mxu2 }
 0x13d   :  { %417 = vst [vmem:[%s920_s4 + $0xf0] sm:$0xff] %v335_v8  ;;  %v384_v18 = vpop.f32.mrf.mxu3 }
 0x13e   :  { %418 = vst [vmem:[%s920_s4 + $0xf8] sm:$0xff] %v384_v18 }

// kernel: generator_forward.9
= control target key start
LH: loop header
LB: loop body
LE: loop exit
PB: predicated region body
PF: predicated region fallthrough
CT: control target
= control target key end

     0   :  { %vm82_vm0 = vcmask 130048   ;;  %s2604_s3 = inlined_call_operand.vmem [shape: bf16[16,128], index: 3, kind: input, shape index: {}]   ;;  %s2605_s0 = inlined_call_operand.vmem [shape: f32[512,16], index: 0, kind: input, shape index: {}]   ;;  %s2606_s1 = inlined_call_operand.vmem [shape: f32[1,16], index: 1, kind: input, shape index: {}]   ;;  %s2607_s2 = inlined_call_operand.vmem [shape: f32[1,16], index: 2, kind: input, shape index: {}]   ;;  %s2608_s4 = inlined_call_operand.vmem [shape: f32[512,128], index: 4, kind: output, shape index: {}]  }
   0x1   :  { %v1170_v0 = vld [vmem:[%s2604_s3] sm:$0xff]  ;;  %v1218_v2 = vld [vmem:[%s2605_s0 + $0x8] sm:$0xff]  ;;  %v1223_v3 = vld [vmem:[%s2605_s0 + $0x10] sm:$0xff] }
   0x2   :  { %v1213_v1 = vld [vmem:[%s2605_s0] sm:$0xff]  ;;  %v1228_v4 = vld [vmem:[%s2605_s0 + $0x18] sm:$0xff]  ;;  %v84_v6 = vsel %vm82_vm0, %v1218_v2, 0.0  ;;  %904 = vmatpush.bf16.msra.mxu0 %v1170_v0  ;;  %1171 = vmatpush.bf16.msra.mxu1 %v1170_v0  ;;  %v86_v9 = vsel %vm82_vm0, %v1223_v3, 0.0  ;;  %v1246_v11 = vld [vmem:[%s2605_s0 + $0x28] sm:$0xff] }
   0x3   :  { %v83_v5 = vsel %vm82_vm0, %v1213_v1, 0.0  ;;  %v1237_v7 = vld [vmem:[%s2605_s0 + $0x20] sm:$0xff]  ;;  %1172 = vmatpush.bf16.msra.mxu2 %v1170_v0  ;;  %1173 = vmatpush.bf16.msra.mxu3 %v1170_v0  ;;  %v88_v10 = vsel %vm82_vm0, %v1228_v4, 0.0  ;;  %v1253_v14 = vld [vmem:[%s2605_s0 + $0x30] sm:$0xff]  ;;  %v92_v16 = vsel %vm82_vm0, %v1246_v11, 0.0  ;;  %v1260_v17 = vld [vmem:[%s2605_s0 + $0x38] sm:$0xff] }
   0x4   :  { %v85_v8 = vadd.f32 %v84_v6, %v83_v5  ;;  %v90_v13 = vsel %vm82_vm0, %v1237_v7, 0.0  ;;  %v94_v19 = vsel %vm82_vm0, %v1253_v14, 0.0  ;;  %v1267_v20 = vld [vmem:[%s2605_s0 + $0x40] sm:$0xff]  ;;  %v96_v22 = vsel %vm82_vm0, %v1260_v17, 0.0  ;;  %v1274_v23 = vld [vmem:[%s2605_s0 + $0x48] sm:$0xff]  ;;  %v1281_v26 = vld [vmem:[%s2605_s0 + $0x50] sm:$0xff] }
   0x5   :  { %v98_v25 = vsel %vm82_vm0, %v1267_v20, 0.0  ;;  %v100_v28 = vsel %vm82_vm0, %v1274_v23, 0.0  ;;  %v1288_v29 = vld [vmem:[%s2605_s0 + $0x58] sm:$0xff]  ;;  %v102_v31 = vsel %vm82_vm0, %v1281_v26, 0.0  ;;  %v1295_v32 = vld [vmem:[%s2605_s0 + $0x60] sm:$0xff]  ;;  %v1302_v35 = vld [vmem:[%s2605_s0 + $0x68] sm:$0xff] }
   0x6   :  { %v87_v12 = vadd.f32 %v86_v9, %v85_v8  ;;  %v104_v34 = vsel %vm82_vm0, %v1288_v29, 0.0  ;;  %v106_v37 = vsel %vm82_vm0, %v1295_v32, 0.0  ;;  %v1309_v38 = vld [vmem:[%s2605_s0 + $0x70] sm:$0xff]  ;;  %v108_v40 = vsel %vm82_vm0, %v1302_v35, 0.0  ;;  %v1316_v41 = vld [vmem:[%s2605_s0 + $0x78] sm:$0xff]  ;;  %v1323_v44 = vld [vmem:[%s2605_s0 + $0x80] sm:$0xff] }
   0x7   :  { %v110_v43 = vsel %vm82_vm0, %v1309_v38, 0.0  ;;  %v112_v46 = vsel %vm82_vm0, %v1316_v41, 0.0  ;;  %v1330_v47 = vld [vmem:[%s2605_s0 + $0x88] sm:$0xff]  ;;  %v114_v49 = vsel %vm82_vm0, %v1323_v44, 0.0  ;;  %v1337_v50 = vld [vmem:[%s2605_s0 + $0x90] sm:$0xff]  ;;  %v1344_v53 = vld [vmem:[%s2605_s0 + $0x98] sm:$0xff] }
   0x8   :  { %v89_v15 = vadd.f32 %v88_v10, %v87_v12  ;;  %v116_v52 = vsel %vm82_vm0, %v1330_v47, 0.0  ;;  %v118_v55 = vsel %vm82_vm0, %v1337_v50, 0.0  ;;  %v1351_v56 = vld [vmem:[%s2605_s0 + $0xa0] sm:$0xff]  ;;  %v120_v58 = vsel %vm82_vm0, %v1344_v53, 0.0  ;;  %v1358_v59 = vld [vmem:[%s2605_s0 + $0xa8] sm:$0xff]  ;;  %v1365_v62 = vld [vmem:[%s2605_s0 + $0xb0] sm:$0xff] }
   0x9   :  { %v122_v61 = vsel %vm82_vm0, %v1351_v56, 0.0  ;;  %v124_v0 = vsel %vm82_vm0, %v1358_v59, 0.0  ;;  %v1372_v5 = vld [vmem:[%s2605_s0 + $0xb8] sm:$0xff]  ;;  %v126_v8 = vsel %vm82_vm0, %v1365_v62, 0.0  ;;  %v1379_v9 = vld [vmem:[%s2605_s0 + $0xc0] sm:$0xff] }
   0xa   :  { %v91_v18 = vadd.f32 %v90_v13, %v89_v15  ;;  %v128_v12 = vsel %vm82_vm0, %v1372_v5, 0.0  ;;  %v1386_v13 = vld [vmem:[%s2605_s0 + $0xc8] sm:$0xff] }
   0xc   :  { %v93_v21 = vadd.f32 %v92_v16, %v91_v18  ;;  %v130_v16 = vsel %vm82_vm0, %v1379_v9, 0.0  ;;  %v1393_v18 = vld [vmem:[%s2605_s0 + $0xd0] sm:$0xff] }
   0xe   :  { %v95_v24 = vadd.f32 %v94_v19, %v93_v21  ;;  %v132_v21 = vsel %vm82_vm0, %v1386_v13, 0.0 }
  0x10   :  { %v97_v27 = vadd.f32 %v96_v22, %v95_v24  ;;  %v1400_v22 = vld [vmem:[%s2605_s0 + $0xd8] sm:$0xff] }
  0x12   :  { %v99_v30 = vadd.f32 %v98_v25, %v97_v27  ;;  %v134_v25 = vsel %vm82_vm0, %v1393_v18, 0.0  ;;  %v1407_v27 = vld [vmem:[%s2605_s0 + $0xe0] sm:$0xff] }
  0x14   :  { %v101_v33 = vadd.f32 %v100_v28, %v99_v30  ;;  %v136_v30 = vsel %vm82_vm0, %v1400_v22, 0.0 }
  0x16   :  { %v103_v36 = vadd.f32 %v102_v31, %v101_v33  ;;  %v1414_v31 = vld [vmem:[%s2605_s0 + $0xe8] sm:$0xff] }
  0x18   :  { %v105_v39 = vadd.f32 %v104_v34, %v103_v36  ;;  %v138_v34 = vsel %vm82_vm0, %v1407_v27, 0.0  ;;  %v1421_v36 = vld [vmem:[%s2605_s0 + $0xf0] sm:$0xff] }
  0x1a   :  { %v107_v42 = vadd.f32 %v106_v37, %v105_v39  ;;  %v140_v39 = vsel %vm82_vm0, %v1414_v31, 0.0 }
  0x1c   :  { %v109_v45 = vadd.f32 %v108_v40, %v107_v42  ;;  %v1428_v40 = vld [vmem:[%s2605_s0 + $0xf8] sm:$0xff] }
  0x1e   :  { %v111_v48 = vadd.f32 %v110_v43, %v109_v45  ;;  %v142_v43 = vsel %vm82_vm0, %v1421_v36, 0.0  ;;  %v1435_v45 = vld [vmem:[%s2605_s0 + $0x100] sm:$0xff] }
  0x20   :  { %v113_v51 = vadd.f32 %v112_v46, %v111_v48  ;;  %v144_v48 = vsel %vm82_vm0, %v1428_v40, 0.0 }
  0x22   :  { %v115_v54 = vadd.f32 %v114_v49, %v113_v51  ;;  %v1442_v49 = vld [vmem:[%s2605_s0 + $0x108] sm:$0xff] }
  0x24   :  { %v117_v57 = vadd.f32 %v116_v52, %v115_v54  ;;  %v146_v52 = vsel %vm82_vm0, %v1435_v45, 0.0  ;;  %v1449_v54 = vld [vmem:[%s2605_s0 + $0x110] sm:$0xff] }
  0x26   :  { %v119_v60 = vadd.f32 %v118_v55, %v117_v57  ;;  %v148_v57 = vsel %vm82_vm0, %v1442_v49, 0.0 }
  0x28   :  { %v121_v63 = vadd.f32 %v120_v58, %v119_v60  ;;  %v1456_v58 = vld [vmem:[%s2605_s0 + $0x118] sm:$0xff] }
  0x2a   :  { %v123_v6 = vadd.f32 %v122_v61, %v121_v63  ;;  %v150_v61 = vsel %vm82_vm0, %v1449_v54, 0.0  ;;  %v1463_v63 = vld [vmem:[%s2605_s0 + $0x120] sm:$0xff] }
  0x2c   :  { %v125_v10 = vadd.f32 %v124_v0, %v123_v6  ;;  %v152_v6 = vsel %vm82_vm0, %v1456_v58, 0.0 }
  0x2e   :  { %v127_v15 = vadd.f32 %v126_v8, %v125_v10  ;;  %v1470_v8 = vld [vmem:[%s2605_s0 + $0x128] sm:$0xff] }
  0x30   :  { %v129_v19 = vadd.f32 %v128_v12, %v127_v15  ;;  %v154_v12 = vsel %vm82_vm0, %v1463_v63, 0.0  ;;  %v1477_v15 = vld [vmem:[%s2605_s0 + $0x130] sm:$0xff] }
  0x32   :  { %v131_v24 = vadd.f32 %v130_v16, %v129_v19  ;;  %v156_v19 = vsel %vm82_vm0, %v1470_v8, 0.0 }
  0x34   :  { %v133_v28 = vadd.f32 %v132_v21, %v131_v24  ;;  %v1484_v21 = vld [vmem:[%s2605_s0 + $0x138] sm:$0xff] }
  0x36   :  { %v135_v33 = vadd.f32 %v134_v25, %v133_v28  ;;  %v158_v25 = vsel %vm82_vm0, %v1477_v15, 0.0  ;;  %v1491_v28 = vld [vmem:[%s2605_s0 + $0x140] sm:$0xff] }
  0x38   :  { %v137_v37 = vadd.f32 %v136_v30, %v135_v33  ;;  %v160_v33 = vsel %vm82_vm0, %v1484_v21, 0.0 }
  0x3a   :  { %v139_v42 = vadd.f32 %v138_v34, %v137_v37  ;;  %v1498_v34 = vld [vmem:[%s2605_s0 + $0x148] sm:$0xff] }
  0x3c   :  { %v141_v46 = vadd.f32 %v140_v39, %v139_v42  ;;  %v162_v39 = vsel %vm82_vm0, %v1491_v28, 0.0  ;;  %v1505_v42 = vld [vmem:[%s2605_s0 + $0x150] sm:$0xff] }
  0x3e   :  { %v143_v51 = vadd.f32 %v142_v43, %v141_v46  ;;  %v164_v46 = vsel %vm82_vm0, %v1498_v34, 0.0 }
  0x40   :  { %v145_v55 = vadd.f32 %v144_v48, %v143_v51  ;;  %v1512_v48 = vld [vmem:[%s2605_s0 + $0x158] sm:$0xff] }
  0x42   :  { %v147_v60 = vadd.f32 %v146_v52, %v145_v55  ;;  %v166_v52 = vsel %vm82_vm0, %v1505_v42, 0.0  ;;  %v1519_v55 = vld [vmem:[%s2605_s0 + $0x160] sm:$0xff] }
  0x44   :  { %v149_v0 = vadd.f32 %v148_v57, %v147_v60  ;;  %v168_v60 = vsel %vm82_vm0, %v1512_v48, 0.0 }
  0x46   :  { %v151_v10 = vadd.f32 %v150_v61, %v149_v0  ;;  %v1526_v61 = vld [vmem:[%s2605_s0 + $0x168] sm:$0xff] }
  0x47   :  { %2649 = vst [vmem:[#allocation2_spill] sm:$0xff] %v1526_v61 }
  0x48   :  { %v153_v16 = vadd.f32 %v152_v6, %v151_v10  ;;  %v170_v6 = vsel %vm82_vm0, %v1519_v55, 0.0  ;;  %v1533_v10 = vld [vmem:[%s2605_s0 + $0x170] sm:$0xff] }
  0x49   :  { %2650 = vst [vmem:[#allocation3_spill] sm:$0xff] %v1533_v10 }
  0x4a   :  { %v155_v24 = vadd.f32 %v154_v12, %v153_v16  ;;  %v172_v16 = vsel %vm82_vm0, %v1526_v61, 0.0 }
  0x4c   :  { %v157_v30 = vadd.f32 %v156_v19, %v155_v24  ;;  %v1540_v19 = vld [vmem:[%s2605_s0 + $0x178] sm:$0xff] }
  0x4d   :  { %2651 = vst [vmem:[#allocation4_spill] sm:$0xff] %v1540_v19 }
  0x4e   :  { %v159_v37 = vadd.f32 %v158_v25, %v157_v30  ;;  %v174_v25 = vsel %vm82_vm0, %v1533_v10, 0.0  ;;  %v1547_v30 = vld [vmem:[%s2605_s0 + $0x180] sm:$0xff] }
  0x4f   :  { %2652 = vst [vmem:[#allocation5_spill] sm:$0xff] %v1547_v30 }
  0x50   :  { %v161_v43 = vadd.f32 %v160_v33, %v159_v37  ;;  %v176_v37 = vsel %vm82_vm0, %v1540_v19, 0.0 }
  0x52   :  { %v163_v51 = vadd.f32 %v162_v39, %v161_v43  ;;  %v1554_v39 = vld [vmem:[%s2605_s0 + $0x188] sm:$0xff] }
  0x53   :  { %2653 = vst [vmem:[#allocation6_spill] sm:$0xff] %v1554_v39 }
  0x54   :  { %v165_v57 = vadd.f32 %v164_v46, %v163_v51  ;;  %v178_v46 = vsel %vm82_vm0, %v1547_v30, 0.0  ;;  %v1561_v51 = vld [vmem:[%s2605_s0 + $0x190] sm:$0xff] }
  0x55   :  { %2654 = vst [vmem:[#allocation7_spill] sm:$0xff] %v1561_v51 }
  0x56   :  { %v167_v0 = vadd.f32 %v166_v52, %v165_v57  ;;  %v180_v57 = vsel %vm82_vm0, %v1554_v39, 0.0 }
  0x58   :  { %v169_v12 = vadd.f32 %v168_v60, %v167_v0  ;;  %v1568_v60 = vld [vmem:[%s2605_s0 + $0x198] sm:$0xff] }
  0x59   :  { %2655 = vst [vmem:[#allocation8_spill] sm:$0xff] %v1568_v60 }
  0x5a   :  { %v171_v24 = vadd.f32 %v170_v6, %v169_v12  ;;  %v182_v6 = vsel %vm82_vm0, %v1561_v51, 0.0  ;;  %v1575_v12 = vld [vmem:[%s2605_s0 + $0x1a0] sm:$0xff] }
  0x5b   :  { %2656 = vst [vmem:[#allocation9_spill] sm:$0xff] %v1575_v12 }
  0x5c   :  { %v173_v33 = vadd.f32 %v172_v16, %v171_v24  ;;  %v184_v24 = vsel %vm82_vm0, %v1568_v60, 0.0 }
  0x5e   :  { %v175_v43 = vadd.f32 %v174_v25, %v173_v33  ;;  %v1582_v25 = vld [vmem:[%s2605_s0 + $0x1a8] sm:$0xff] }
  0x5f   :  { %2657 = vst [vmem:[#allocation10_spill] sm:$0xff] %v1582_v25 }
  0x60   :  { %v177_v52 = vadd.f32 %v176_v37, %v175_v43  ;;  %v186_v37 = vsel %vm82_vm0, %v1575_v12, 0.0  ;;  %v1589_v43 = vld [vmem:[%s2605_s0 + $0x1b0] sm:$0xff] }
  0x61   :  { %2658 = vst [vmem:[#allocation11_spill] sm:$0xff] %v1589_v43 }
  0x62   :  { %v179_v0 = vadd.f32 %v178_v46, %v177_v52  ;;  %v188_v52 = vsel %vm82_vm0, %v1582_v25, 0.0 }
  0x64   :  { %v181_v16 = vadd.f32 %v180_v57, %v179_v0  ;;  %v1596_v57 = vld [vmem:[%s2605_s0 + $0x1b8] sm:$0xff] }
  0x65   :  { %2659 = vst [vmem:[#allocation12_spill] sm:$0xff] %v1596_v57 }
  0x66   :  { %v183_v33 = vadd.f32 %v182_v6, %v181_v16  ;;  %v190_v6 = vsel %vm82_vm0, %v1589_v43, 0.0  ;;  %v1603_v16 = vld [vmem:[%s2605_s0 + $0x1c0] sm:$0xff] }
  0x67   :  { %2660 = vst [vmem:[#allocation13_spill] sm:$0xff] %v1603_v16 }
  0x68   :  { %v185_v46 = vadd.f32 %v184_v24, %v183_v33  ;;  %v192_v24 = vsel %vm82_vm0, %v1596_v57, 0.0  ;;  %v1610_v33 = vld [vmem:[%s2605_s0 + $0x1c8] sm:$0xff] }
  0x69   :  { %2661 = vst [vmem:[#allocation14_spill] sm:$0xff] %v1610_v33 }
  0x6a   :  { %v187_v0 = vadd.f32 %v186_v37, %v185_v46  ;;  %v194_v37 = vsel %vm82_vm0, %v1603_v16, 0.0  ;;  %v1617_v46 = vld [vmem:[%s2605_s0 + $0x1d0] sm:$0xff] }
  0x6b   :  { %2662 = vst [vmem:[#allocation15_spill] sm:$0xff] %v1617_v46 }
  0x6c   :  { %v189_v12 = vadd.f32 %v188_v52, %v187_v0  ;;  %v196_v52 = vsel %vm82_vm0, %v1610_v33, 0.0  ;;  %v1624_v0 = vld [vmem:[%s2605_s0 + $0x1d8] sm:$0xff] }
  0x6d   :  { %2663 = vst [vmem:[#allocation16_spill] sm:$0xff] %v1624_v0  ;;  %v200_v16 = vsel %vm82_vm0, %v1624_v0, 0.0 }
  0x6e   :  { %v191_v25 = vadd.f32 %v190_v6, %v189_v12  ;;  %v198_v12 = vsel %vm82_vm0, %v1617_v46, 0.0 }
  0x70   :  { %v193_v43 = vadd.f32 %v192_v24, %v191_v25  ;;  %v1633_v25 = vld [vmem:[%s2605_s0 + $0x1e0] sm:$0xff] }
  0x71   :  { %2664 = vst [vmem:[#allocation17_spill] sm:$0xff] %v1633_v25  ;;  %v202_v60 = vsel %vm82_vm0, %v1633_v25, 0.0 }
  0x72   :  { %v195_v57 = vadd.f32 %v194_v37, %v193_v43  ;;  %v1640_v43 = vld [vmem:[%s2605_s0 + $0x1e8] sm:$0xff] }
  0x73   :  { %2665 = vst [vmem:[#allocation18_spill] sm:$0xff] %v1640_v43 }
  0x74   :  { %v197_v6 = vadd.f32 %v196_v52, %v195_v57  ;;  %v204_v57 = vsel %vm82_vm0, %v1640_v43, 0.0  ;;  %v1647_v52 = vld [vmem:[%s2605_s0 + $0x1f0] sm:$0xff] }
  0x75   :  { %2666 = vst [vmem:[#allocation19_spill] sm:$0xff] %v1647_v52 }
  0x76   :  { %v199_v24 = vadd.f32 %v198_v12, %v197_v6  ;;  %v1654_v12 = vld [vmem:[%s2605_s0 + $0x1f8] sm:$0xff] }
  0x78   :  { %v201_v33 = vadd.f32 %v200_v16, %v199_v24  ;;  %v206_v16 = vsel %vm82_vm0, %v1647_v52, 0.0  ;;  %v1181_v24 = vmov 512.0  }
  0x79   :  { %1177 = vrcp.f32 %v1181_v24 }
  0x7a   :  { %v203_v37 = vadd.f32 %v202_v60, %v201_v33  ;;  %v208_v60 = vsel %vm82_vm0, %v1654_v12, 0.0 }
  0x7c   :  { %v205_v0 = vadd.f32 %v204_v57, %v203_v37 }
  0x7e   :  { %v207_v6 = vadd.f32 %v206_v16, %v205_v0 }
  0x7f   :  { %v1178_v25 = vpop.eup %1177 }
  0x80   :  { %v209_v33 = vadd.f32 %v208_v60, %v207_v6  ;;  %v217_v51 = vmul.f32 512.0, %v1178_v25  ;;  %vm221_vm1 = vweird.f32 %v1178_v25 }
  0x82   :  { %v210_v43 = vrot.slane %v209_v33, 4  ;;  %v218_v57 = vsub.f32 1.0, %v217_v51 }
  0x84   :  { %v211_v46 = vadd.f32 %v210_v43, %v209_v33  ;;  %v219_v52 = vmul.f32 %v1178_v25, %v218_v57 }
  0x86   :  { %v212_v37 = vrot.slane %v211_v46, 2  ;;  %v220_v19 = vadd.f32 %v1178_v25, %v219_v52 }
  0x88   :  { %v213_v39 = vadd.f32 %v212_v37, %v211_v46  ;;  %v1658_v61 = vsel %vm221_vm1, %v1178_v25, %v220_v19 }
  0x8a   :  { %v214_v30 = vrot.slane %v213_v39, 1 }
  0x8c   :  { %v215_v10 = vadd.f32 %v214_v30, %v213_v39 }
  0x8e   :  { %v1661_v0 = vmul.f32 %v1658_v61, %v215_v10 }
  0x90   :  { %v1665_v16 = vsub.f32 %v1213_v1, %v1661_v0  ;;  %v1669_v43 = vsub.f32 %v1218_v2, %v1661_v0  ;;  %v1673_v51 = vsub.f32 %v1223_v3, %v1661_v0  ;;  %v1677_v30 = vsub.f32 %v1228_v4, %v1661_v0 }
  0x91   :  { %v1681_v10 = vsub.f32 %v1237_v7, %v1661_v0  ;;  %v1691_v3 = vsub.f32 %v1246_v11, %v1661_v0  ;;  %v1697_v7 = vsub.f32 %v1253_v14, %v1661_v0  ;;  %v1706_v11 = vsub.f32 %v1260_v17, %v1661_v0 }
  0x92   :  { %v288_v1 = vmul.f32 %v1665_v16, %v1665_v16  ;;  %v289_v19 = vmul.f32 %v1669_v43, %v1669_v43  ;;  %v290_v2 = vmul.f32 %v1673_v51, %v1673_v51  ;;  %v291_v4 = vmul.f32 %v1677_v30, %v1677_v30 }
  0x93   :  { %v292_v39 = vmul.f32 %v1681_v10, %v1681_v10  ;;  %v293_v60 = vmul.f32 %v1691_v3, %v1691_v3  ;;  %v1713_v24 = vsub.f32 %v1267_v20, %v1661_v0  ;;  %v294_v37 = vmul.f32 %v1697_v7, %v1697_v7 }
  0x94   :  { %v352_v46 = vsel %vm82_vm0, %v288_v1, 0.0  ;;  %v353_v25 = vsel %vm82_vm0, %v289_v19, 0.0  ;;  %v355_v52 = vsel %vm82_vm0, %v290_v2, 0.0  ;;  %v357_v14 = vsel %vm82_vm0, %v291_v4, 0.0 }
  0x95   :  { %v354_v6 = vadd.f32 %v353_v25, %v352_v46  ;;  %v359_v57 = vsel %vm82_vm0, %v292_v39, 0.0  ;;  %v1720_v17 = vsub.f32 %v1274_v23, %v1661_v0  ;;  %v295_v19 = vmul.f32 %v1706_v11, %v1706_v11 }
  0x96   :  { %v361_v2 = vsel %vm82_vm0, %v293_v60, 0.0  ;;  %v1727_v20 = vsub.f32 %v1281_v26, %v1661_v0  ;;  %v296_v46 = vmul.f32 %v1713_v24, %v1713_v24  ;;  %v363_v39 = vsel %vm82_vm0, %v294_v37, 0.0 }
  0x97   :  { %v356_v33 = vadd.f32 %v355_v52, %v354_v6  ;;  %v1734_v23 = vsub.f32 %v1288_v29, %v1661_v0  ;;  %v297_v52 = vmul.f32 %v1720_v17, %v1720_v17  ;;  %v365_v6 = vsel %vm82_vm0, %v295_v19, 0.0 }
  0x98   :  { %v1741_v26 = vsub.f32 %v1295_v32, %v1661_v0  ;;  %v1748_v29 = vsub.f32 %v1302_v35, %v1661_v0  ;;  %v1755_v32 = vsub.f32 %v1309_v38, %v1661_v0  ;;  %v1762_v35 = vsub.f32 %v1316_v41, %v1661_v0 }
  0x99   :  { %v358_v1 = vadd.f32 %v357_v14, %v356_v33  ;;  %v298_v14 = vmul.f32 %v1727_v20, %v1727_v20  ;;  %v367_v33 = vsel %vm82_vm0, %v296_v46, 0.0  ;;  %v1769_v38 = vsub.f32 %v1323_v44, %v1661_v0 }
  0x9a   :  { %2667 = vst [vmem:[#allocation20_spill] sm:$0xff] %v1741_v26  ;;  %v1776_v41 = vsub.f32 %v1330_v47, %v1661_v0  ;;  %v1783_v44 = vsub.f32 %v1337_v50, %v1661_v0  ;;  %v1790_v47 = vsub.f32 %v1344_v53, %v1661_v0  ;;  %v1797_v50 = vsub.f32 %v1351_v56, %v1661_v0 }
  0x9b   :  { %v360_v4 = vadd.f32 %v359_v57, %v358_v1  ;;  %2668 = vst [vmem:[#allocation21_spill] sm:$0xff] %v1748_v29  ;;  %v299_v57 = vmul.f32 %v1734_v23, %v1734_v23  ;;  %v369_v1 = vsel %vm82_vm0, %v297_v52, 0.0  ;;  %v1804_v53 = vsub.f32 %v1358_v59, %v1661_v0 }
  0x9c   :  { %2669 = vst [vmem:[#allocation22_spill] sm:$0xff] %v1755_v32  ;;  %v1811_v56 = vsub.f32 %v1365_v62, %v1661_v0  ;;  %v1818_v59 = vsub.f32 %v1372_v5, %v1661_v0  ;;  %v1825_v62 = vsub.f32 %v1379_v9, %v1661_v0  ;;  %v1832_v5 = vsub.f32 %v1386_v13, %v1661_v0 }
  0x9d   :  { %v362_v25 = vadd.f32 %v361_v2, %v360_v4  ;;  %v300_v2 = vmul.f32 %v1741_v26, %v1741_v26  ;;  %v371_v4 = vsel %vm82_vm0, %v298_v14, 0.0  ;;  %2670 = vst [vmem:[#allocation23_spill] sm:$0xff] %v1762_v35  ;;  %v1839_v9 = vsub.f32 %v1393_v18, %v1661_v0 }
  0x9e   :  { %v1846_v13 = vsub.f32 %v1400_v22, %v1661_v0  ;;  %v1853_v18 = vsub.f32 %v1407_v27, %v1661_v0  ;;  %v1860_v22 = vsub.f32 %v1414_v31, %v1661_v0  ;;  %v1867_v27 = vsub.f32 %v1421_v36, %v1661_v0 }
  0x9f   :  { %v364_v60 = vadd.f32 %v363_v39, %v362_v25  ;;  %v301_v39 = vmul.f32 %v1748_v29, %v1748_v29  ;;  %v373_v25 = vsel %vm82_vm0, %v299_v57, 0.0  ;;  %2671 = vst [vmem:[#allocation24_spill] sm:$0xff] %v1839_v9  ;;  %v1874_v31 = vsub.f32 %v1428_v40, %v1661_v0 }
  0xa0   :  { %2672 = vst [vmem:[#allocation25_spill] sm:$0xff] %v1846_v13  ;;  %v1881_v36 = vsub.f32 %v1435_v45, %v1661_v0  ;;  %v1888_v40 = vsub.f32 %v1442_v49, %v1661_v0  ;;  %v1895_v45 = vsub.f32 %v1449_v54, %v1661_v0  ;;  %v1902_v49 = vsub.f32 %v1456_v58, %v1661_v0 }
  0xa1   :  { %v366_v37 = vadd.f32 %v365_v6, %v364_v60  ;;  %v302_v6 = vmul.f32 %v1755_v32, %v1755_v32  ;;  %v375_v60 = vsel %vm82_vm0, %v300_v2, 0.0  ;;  %2673 = vst [vmem:[#allocation26_spill] sm:$0xff] %v1853_v18  ;;  %v1909_v54 = vsub.f32 %v1463_v63, %v1661_v0 }
  0xa2   :  { %2674 = vst [vmem:[#allocation27_spill] sm:$0xff] %v1860_v22  ;;  %v1916_v58 = vsub.f32 %v1470_v8, %v1661_v0  ;;  %v1923_v63 = vsub.f32 %v1477_v15, %v1661_v0  ;;  %v1930_v8 = vsub.f32 %v1484_v21, %v1661_v0  ;;  %v1937_v15 = vsub.f32 %v1491_v28, %v1661_v0 }
  0xa3   :  { %v368_v19 = vadd.f32 %v367_v33, %v366_v37  ;;  %v303_v33 = vmul.f32 %v1762_v35, %v1762_v35  ;;  %v377_v37 = vsel %vm82_vm0, %v301_v39, 0.0  ;;  %2675 = vst [vmem:[#allocation28_spill] sm:$0xff] %v1867_v27  ;;  %v1944_v21 = vsub.f32 %v1498_v34, %v1661_v0 }
  0xa4   :  { %2676 = vst [vmem:[#allocation29_spill] sm:$0xff] %v1874_v31  ;;  %v1951_v28 = vsub.f32 %v1505_v42, %v1661_v0  ;;  %v1958_v34 = vsub.f32 %v1512_v48, %v1661_v0  ;;  %v1965_v42 = vsub.f32 %v1519_v55, %v1661_v0 }
  0xa5   :  { %v370_v46 = vadd.f32 %v369_v1, %v368_v19  ;;  %v304_v1 = vmul.f32 %v1769_v38, %v1769_v38  ;;  %v379_v19 = vsel %vm82_vm0, %v302_v6, 0.0 }
  0xa6   :  { %2677 = vst [vmem:[#allocation30_spill] sm:$0xff] %v1951_v28 }
  0xa7   :  { %v372_v52 = vadd.f32 %v371_v4, %v370_v46  ;;  %v305_v4 = vmul.f32 %v1776_v41, %v1776_v41  ;;  %v381_v46 = vsel %vm82_vm0, %v303_v33, 0.0  ;;  %2678 = vst [vmem:[#allocation31_spill] sm:$0xff] %v1958_v34 }
  0xa8   :  { %2679 = vst [vmem:[#allocation32_spill] sm:$0xff] %v1965_v42 }
  0xa9   :  { %v374_v14 = vadd.f32 %v373_v25, %v372_v52  ;;  %v306_v25 = vmul.f32 %v1783_v44, %v1783_v44  ;;  %v383_v52 = vsel %vm82_vm0, %v304_v1, 0.0 }
  0xab   :  { %v376_v57 = vadd.f32 %v375_v60, %v374_v14  ;;  %v307_v60 = vmul.f32 %v1790_v47, %v1790_v47  ;;  %v385_v14 = vsel %vm82_vm0, %v305_v4, 0.0 }
  0xad   :  { %v378_v2 = vadd.f32 %v377_v37, %v376_v57  ;;  %v308_v37 = vmul.f32 %v1797_v50, %v1797_v50  ;;  %v387_v57 = vsel %vm82_vm0, %v306_v25, 0.0 }
  0xaf   :  { %v380_v39 = vadd.f32 %v379_v19, %v378_v2  ;;  %v309_v19 = vmul.f32 %v1804_v53, %v1804_v53  ;;  %v389_v2 = vsel %vm82_vm0, %v307_v60, 0.0 }
  0xb1   :  { %v382_v6 = vadd.f32 %v381_v46, %v380_v39  ;;  %v310_v46 = vmul.f32 %v1811_v56, %v1811_v56  ;;  %v391_v39 = vsel %vm82_vm0, %v308_v37, 0.0 }
  0xb3   :  { %v384_v33 = vadd.f32 %v383_v52, %v382_v6  ;;  %v311_v52 = vmul.f32 %v1818_v59, %v1818_v59  ;;  %v393_v6 = vsel %vm82_vm0, %v309_v19, 0.0 }
  0xb5   :  { %v386_v1 = vadd.f32 %v385_v14, %v384_v33  ;;  %v312_v14 = vmul.f32 %v1825_v62, %v1825_v62  ;;  %v395_v33 = vsel %vm82_vm0, %v310_v46, 0.0 }
  0xb7   :  { %v388_v4 = vadd.f32 %v387_v57, %v386_v1  ;;  %v313_v57 = vmul.f32 %v1832_v5, %v1832_v5  ;;  %v397_v1 = vsel %vm82_vm0, %v311_v52, 0.0 }
  0xb9   :  { %v390_v25 = vadd.f32 %v389_v2, %v388_v4  ;;  %v314_v2 = vmul.f32 %v1839_v9, %v1839_v9  ;;  %v399_v4 = vsel %vm82_vm0, %v312_v14, 0.0 }
  0xbb   :  { %v392_v60 = vadd.f32 %v391_v39, %v390_v25  ;;  %v315_v39 = vmul.f32 %v1846_v13, %v1846_v13  ;;  %v401_v25 = vsel %vm82_vm0, %v313_v57, 0.0 }
  0xbd   :  { %v394_v37 = vadd.f32 %v393_v6, %v392_v60  ;;  %v316_v6 = vmul.f32 %v1853_v18, %v1853_v18  ;;  %v403_v60 = vsel %vm82_vm0, %v314_v2, 0.0 }
  0xbf   :  { %v396_v19 = vadd.f32 %v395_v33, %v394_v37  ;;  %v317_v33 = vmul.f32 %v1860_v22, %v1860_v22  ;;  %v405_v37 = vsel %vm82_vm0, %v315_v39, 0.0 }
  0xc1   :  { %v398_v46 = vadd.f32 %v397_v1, %v396_v19  ;;  %v318_v1 = vmul.f32 %v1867_v27, %v1867_v27  ;;  %v407_v19 = vsel %vm82_vm0, %v316_v6, 0.0 }
  0xc3   :  { %v400_v52 = vadd.f32 %v399_v4, %v398_v46  ;;  %v319_v4 = vmul.f32 %v1874_v31, %v1874_v31  ;;  %v409_v46 = vsel %vm82_vm0, %v317_v33, 0.0 }
  0xc5   :  { %v402_v14 = vadd.f32 %v401_v25, %v400_v52  ;;  %v320_v25 = vmul.f32 %v1881_v36, %v1881_v36  ;;  %v411_v52 = vsel %vm82_vm0, %v318_v1, 0.0 }
  0xc7   :  { %v404_v57 = vadd.f32 %v403_v60, %v402_v14  ;;  %v321_v60 = vmul.f32 %v1888_v40, %v1888_v40  ;;  %v413_v14 = vsel %vm82_vm0, %v319_v4, 0.0 }
  0xc9   :  { %v406_v2 = vadd.f32 %v405_v37, %v404_v57  ;;  %v322_v37 = vmul.f32 %v1895_v45, %v1895_v45  ;;  %v415_v57 = vsel %vm82_vm0, %v320_v25, 0.0 }
  0xcb   :  { %v408_v39 = vadd.f32 %v407_v19, %v406_v2  ;;  %v323_v19 = vmul.f32 %v1902_v49, %v1902_v49  ;;  %v417_v2 = vsel %vm82_vm0, %v321_v60, 0.0 }
  0xcd   :  { %v410_v6 = vadd.f32 %v409_v46, %v408_v39  ;;  %v324_v46 = vmul.f32 %v1909_v54, %v1909_v54  ;;  %v419_v39 = vsel %vm82_vm0, %v322_v37, 0.0 }
  0xcf   :  { %v412_v33 = vadd.f32 %v411_v52, %v410_v6  ;;  %v325_v52 = vmul.f32 %v1916_v58, %v1916_v58  ;;  %v421_v6 = vsel %vm82_vm0, %v323_v19, 0.0 }
  0xd1   :  { %v414_v1 = vadd.f32 %v413_v14, %v412_v33  ;;  %v326_v14 = vmul.f32 %v1923_v63, %v1923_v63  ;;  %v423_v33 = vsel %vm82_vm0, %v324_v46, 0.0 }
  0xd3   :  { %v416_v4 = vadd.f32 %v415_v57, %v414_v1  ;;  %v327_v57 = vmul.f32 %v1930_v8, %v1930_v8  ;;  %v425_v1 = vsel %vm82_vm0, %v325_v52, 0.0 }
  0xd5   :  { %v418_v25 = vadd.f32 %v417_v2, %v416_v4  ;;  %v328_v2 = vmul.f32 %v1937_v15, %v1937_v15  ;;  %v427_v4 = vsel %vm82_vm0, %v326_v14, 0.0 }
  0xd7   :  { %v420_v60 = vadd.f32 %v419_v39, %v418_v25  ;;  %v329_v39 = vmul.f32 %v1944_v21, %v1944_v21  ;;  %v429_v25 = vsel %vm82_vm0, %v327_v57, 0.0 }
  0xd9   :  { %v422_v37 = vadd.f32 %v421_v6, %v420_v60  ;;  %v330_v6 = vmul.f32 %v1951_v28, %v1951_v28  ;;  %v431_v60 = vsel %vm82_vm0, %v328_v2, 0.0  ;;  %v433_v57 = vsel %vm82_vm0, %v329_v39, 0.0 }
  0xdb   :  { %v424_v19 = vadd.f32 %v423_v33, %v422_v37  ;;  %v2680_v33 = vld [vmem:[#allocation2_spill] sm:$0xff]  ;;  %v331_v37 = vmul.f32 %v1958_v34, %v1958_v34  ;;  %v435_v2 = vsel %vm82_vm0, %v330_v6, 0.0 }
  0xdc   :  { %v1972_v48 = vsub.f32 %v2680_v33, %v1661_v0 }
  0xdd   :  { %v426_v46 = vadd.f32 %v425_v1, %v424_v19  ;;  %v2682_v19 = vld [vmem:[#allocation3_spill] sm:$0xff]  ;;  %v437_v39 = vsel %vm82_vm0, %v331_v37, 0.0 }
  0xde   :  { %2681 = vst [vmem:[#allocation2_spill] sm:$0xff] %v1972_v48  ;;  %v1979_v55 = vsub.f32 %v2682_v19, %v1661_v0  ;;  %v333_v33 = vmul.f32 %v1972_v48, %v1972_v48 }
  0xdf   :  { %v428_v52 = vadd.f32 %v427_v4, %v426_v46  ;;  %v332_v4 = vmul.f32 %v1965_v42, %v1965_v42 }
  0xe0   :  { %2683 = vst [vmem:[#allocation3_spill] sm:$0xff] %v1979_v55  ;;  %v334_v31 = vmul.f32 %v1979_v55, %v1979_v55  ;;  %v441_v37 = vsel %vm82_vm0, %v333_v33, 0.0 }
  0xe1   :  { %v430_v14 = vadd.f32 %v429_v25, %v428_v52  ;;  %v2684_v25 = vld [vmem:[#allocation4_spill] sm:$0xff]  ;;  %v439_v6 = vsel %vm82_vm0, %v332_v4, 0.0 }
  0xe2   :  { %v1986_v52 = vsub.f32 %v2684_v25, %v1661_v0  ;;  %v443_v4 = vsel %vm82_vm0, %v334_v31, 0.0 }
  0xe3   :  { %v432_v1 = vadd.f32 %v431_v60, %v430_v14  ;;  %v2686_v14 = vld [vmem:[#allocation5_spill] sm:$0xff] }
  0xe4   :  { %2685 = vst [vmem:[#allocation4_spill] sm:$0xff] %v1986_v52  ;;  %v1993_v19 = vsub.f32 %v2686_v14, %v1661_v0  ;;  %v335_v27 = vmul.f32 %v1986_v52, %v1986_v52 }
  0xe5   :  { %v434_v46 = vadd.f32 %v433_v57, %v432_v1  ;;  %v2687_v1 = vld [vmem:[#allocation6_spill] sm:$0xff] }
  0xe6   :  { %v2000_v25 = vsub.f32 %v2687_v1, %v1661_v0  ;;  %v336_v55 = vmul.f32 %v1993_v19, %v1993_v19  ;;  %v445_v33 = vsel %vm82_vm0, %v335_v27, 0.0 }
  0xe7   :  { %v436_v60 = vadd.f32 %v435_v2, %v434_v46  ;;  %v2688_v46 = vld [vmem:[#allocation7_spill] sm:$0xff] }
  0xe8   :  { %v2007_v14 = vsub.f32 %v2688_v46, %v1661_v0  ;;  %v337_v52 = vmul.f32 %v2000_v25, %v2000_v25  ;;  %v447_v31 = vsel %vm82_vm0, %v336_v55, 0.0 }
  0xe9   :  { %v438_v57 = vadd.f32 %v437_v39, %v436_v60  ;;  %v2689_v60 = vld [vmem:[#allocation8_spill] sm:$0xff] }
  0xea   :  { %v2014_v1 = vsub.f32 %v2689_v60, %v1661_v0  ;;  %v338_v35 = vmul.f32 %v2007_v14, %v2007_v14  ;;  %v449_v27 = vsel %vm82_vm0, %v337_v52, 0.0 }
  0xeb   :  { %v440_v2 = vadd.f32 %v439_v6, %v438_v57  ;;  %v2690_v57 = vld [vmem:[#allocation9_spill] sm:$0xff] }
  0xec   :  { %v2021_v46 = vsub.f32 %v2690_v57, %v1661_v0  ;;  %v339_v32 = vmul.f32 %v2014_v1, %v2014_v1  ;;  %v451_v55 = vsel %vm82_vm0, %v338_v35, 0.0 }
  0xed   :  { %v442_v39 = vadd.f32 %v441_v37, %v440_v2  ;;  %v2691_v2 = vld [vmem:[#allocation10_spill] sm:$0xff] }
  0xee   :  { %v2028_v60 = vsub.f32 %v2691_v2, %v1661_v0  ;;  %v340_v48 = vmul.f32 %v2021_v46, %v2021_v46  ;;  %v453_v52 = vsel %vm82_vm0, %v339_v32, 0.0 }
  0xef   :  { %v444_v6 = vadd.f32 %v443_v4, %v442_v39  ;;  %v2692_v39 = vld [vmem:[#allocation11_spill] sm:$0xff] }
  0xf0   :  { %v2035_v57 = vsub.f32 %v2692_v39, %v1661_v0  ;;  %v341_v42 = vmul.f32 %v2028_v60, %v2028_v60  ;;  %v455_v35 = vsel %vm82_vm0, %v340_v48, 0.0 }
  0xf1   :  { %v446_v37 = vadd.f32 %v445_v33, %v444_v6  ;;  %v2693_v6 = vld [vmem:[#allocation12_spill] sm:$0xff] }
  0xf2   :  { %v2042_v2 = vsub.f32 %v2693_v6, %v1661_v0  ;;  %v342_v22 = vmul.f32 %v2035_v57, %v2035_v57  ;;  %v457_v32 = vsel %vm82_vm0, %v341_v42, 0.0 }
  0xf3   :  { %v448_v4 = vadd.f32 %v447_v31, %v446_v37  ;;  %v2694_v37 = vld [vmem:[#allocation13_spill] sm:$0xff] }
  0xf4   :  { %v2049_v39 = vsub.f32 %v2694_v37, %v1661_v0  ;;  %v343_v18 = vmul.f32 %v2042_v2, %v2042_v2  ;;  %v459_v48 = vsel %vm82_vm0, %v342_v22, 0.0 }
  0xf5   :  { %v450_v33 = vadd.f32 %v449_v27, %v448_v4  ;;  %v2695_v4 = vld [vmem:[#allocation14_spill] sm:$0xff] }
  0xf6   :  { %v2056_v6 = vsub.f32 %v2695_v4, %v1661_v0  ;;  %v344_v29 = vmul.f32 %v2049_v39, %v2049_v39  ;;  %v461_v42 = vsel %vm82_vm0, %v343_v18, 0.0 }
  0xf7   :  { %v452_v31 = vadd.f32 %v451_v55, %v450_v33  ;;  %v2696_v33 = vld [vmem:[#allocation15_spill] sm:$0xff] }
  0xf8   :  { %v2063_v37 = vsub.f32 %v2696_v33, %v1661_v0  ;;  %v345_v26 = vmul.f32 %v2056_v6, %v2056_v6  ;;  %v463_v22 = vsel %vm82_vm0, %v344_v29, 0.0 }
  0xf9   :  { %v454_v27 = vadd.f32 %v453_v52, %v452_v31  ;;  %v2698_v31 = vld [vmem:[#allocation16_spill] sm:$0xff] }
  0xfa   :  { %2697 = vst [vmem:[#allocation5_spill] sm:$0xff] %v2063_v37  ;;  %v2070_v4 = vsub.f32 %v2698_v31, %v1661_v0  ;;  %v346_v34 = vmul.f32 %v2063_v37, %v2063_v37  ;;  %v465_v18 = vsel %vm82_vm0, %v345_v26, 0.0 }
  0xfb   :  { %v456_v55 = vadd.f32 %v455_v35, %v454_v27  ;;  %v2700_v27 = vld [vmem:[#allocation17_spill] sm:$0xff] }
  0xfc   :  { %2699 = vst [vmem:[#allocation6_spill] sm:$0xff] %v2070_v4  ;;  %v2077_v33 = vsub.f32 %v2700_v27, %v1661_v0  ;;  %v347_v28 = vmul.f32 %v2070_v4, %v2070_v4  ;;  %v467_v29 = vsel %vm82_vm0, %v346_v34, 0.0 }
  0xfd   :  { %v458_v52 = vadd.f32 %v457_v32, %v456_v55  ;;  %v2702_v55 = vld [vmem:[#allocation18_spill] sm:$0xff] }
  0xfe   :  { %2701 = vst [vmem:[#allocation7_spill] sm:$0xff] %v2077_v33  ;;  %v2084_v31 = vsub.f32 %v2702_v55, %v1661_v0  ;;  %v348_v37 = vmul.f32 %v2077_v33, %v2077_v33  ;;  %v469_v26 = vsel %vm82_vm0, %v347_v28, 0.0 }
  0xff   :  { %v460_v35 = vadd.f32 %v459_v48, %v458_v52  ;;  %v2704_v52 = vld [vmem:[#allocation19_spill] sm:$0xff] }
 0x100   :  { %2703 = vst [vmem:[#allocation8_spill] sm:$0xff] %v2084_v31  ;;  %v2091_v27 = vsub.f32 %v2704_v52, %v1661_v0  ;;  %v349_v55 = vmul.f32 %v2084_v31, %v2084_v31  ;;  %v471_v52 = vsel %vm82_vm0, %v348_v37, 0.0 }
 0x101   :  { %v462_v32 = vadd.f32 %v461_v42, %v460_v35  ;;  %v2098_v35 = vsub.f32 %v1654_v12, %v1661_v0 }
 0x102   :  { %2705 = vst [vmem:[#allocation9_spill] sm:$0xff] %v2091_v27 }
 0x103   :  { %v464_v48 = vadd.f32 %v463_v22, %v462_v32  ;;  %2706 = vst [vmem:[#allocation10_spill] sm:$0xff] %v2098_v35  ;;  %v350_v32 = vmul.f32 %v2091_v27, %v2091_v27  ;;  %v351_v34 = vmul.f32 %v2098_v35, %v2098_v35 }
 0x105   :  { %v466_v42 = vadd.f32 %v465_v18, %v464_v48  ;;  %v473_v18 = vsel %vm82_vm0, %v349_v55, 0.0  ;;  %v475_v12 = vsel %vm82_vm0, %v350_v32, 0.0  ;;  %v477_v31 = vsel %vm82_vm0, %v351_v34, 0.0 }
 0x107   :  { %v468_v22 = vadd.f32 %v467_v29, %v466_v42 }
 0x109   :  { %v470_v4 = vadd.f32 %v469_v26, %v468_v22 }
 0x10b   :  { %v472_v48 = vadd.f32 %v471_v52, %v470_v4 }
 0x10d   :  { %v474_v0 = vadd.f32 %v473_v18, %v472_v48 }
 0x10f   :  { %v476_v33 = vadd.f32 %v475_v12, %v474_v0 }
 0x111   :  { %v478_v28 = vadd.f32 %v477_v31, %v476_v33  ;;  %v2115_v33 = vld [vmem:[%s2606_s1] ss:$0 sm:$0xff] }
 0x112   :  { %v2126_v31 = vld [vmem:[%s2607_s2] ss:$0 sm:$0xff] }
 0x113   :  { %v479_v29 = vrot.slane %v478_v28, 4 }
 0x115   :  { %v480_v42 = vadd.f32 %v479_v29, %v478_v28 }
 0x117   :  { %v481_v13 = vrot.slane %v480_v42, 2 }
 0x119   :  { %v482_v27 = vadd.f32 %v481_v13, %v480_v42 }
 0x11b   :  { %v483_v9 = vrot.slane %v482_v27, 1 }
 0x11d   :  { %v484_v37 = vadd.f32 %v483_v9, %v482_v27 }
 0x11f   :  { %v485_v26 = vmul.f32 %v484_v37, %v1658_v61 }
 0x121   :  { %v486_v22 = vadd.f32 1e-05, %v485_v26 }
 0x123   :  { %1179 = vrsqrt.f32 %v486_v22  ;;  %vm493_vm2 = vweird.f32 %v486_v22 }
 0x129   :  { %v1180_v35 = vpop.eup %1179 }
 0x12a   :  { %v488_v55 = vmul.f32 %v1180_v35, %v486_v22  ;;  %vm494_vm3 = vweird.f32 %v1180_v35 }
 0x12b   :  { %vm495_vm4 = vmor %vm493_vm2, %vm494_vm3 }
 0x12c   :  { %v489_v4 = vmul.f32 %v1180_v35, %v488_v55 }
 0x12e   :  { %v490_v52 = vmul.f32 0.5, %v489_v4 }
 0x130   :  { %v491_v32 = vsub.f32 1.5, %v490_v52 }
 0x132   :  { %v492_v34 = vmul.f32 %v1180_v35, %v491_v32 }
 0x134   :  { %v2117_v13 = vsel %vm495_vm4, %v1180_v35, %v492_v34 }
 0x135   :  { %v497_v61 = vmul.f32 %v2117_v13, %v1665_v16  ;;  %v498_v9 = vmul.f32 %v2117_v13, %v1669_v43  ;;  %v513_v27 = vmul.f32 %v2117_v13, %v1769_v38  ;;  %v514_v18 = vmul.f32 %v2117_v13, %v1776_v41 }
 0x136   :  { %v529_v35 = vmul.f32 %v2117_v13, %v1881_v36  ;;  %v530_v16 = vmul.f32 %v2117_v13, %v1888_v40  ;;  %v545_v43 = vmul.f32 %v2117_v13, %v1993_v19  ;;  %v546_v48 = vmul.f32 %v2117_v13, %v2000_v25 }
 0x137   :  { %v565_v12 = vmul.f32 %v2115_v33, %v497_v61  ;;  %v566_v0 = vmul.f32 %v2115_v33, %v498_v9  ;;  %v581_v38 = vmul.f32 %v2115_v33, %v513_v27  ;;  %v582_v41 = vmul.f32 %v2115_v33, %v514_v18 }
 0x138   :  { %v597_v28 = vmul.f32 %v2115_v33, %v529_v35  ;;  %v598_v36 = vmul.f32 %v2115_v33, %v530_v16  ;;  %v613_v40 = vmul.f32 %v2115_v33, %v545_v43  ;;  %v614_v29 = vmul.f32 %v2115_v33, %v546_v48 }
 0x139   :  { %v633_v19 = vadd.f32 %v2126_v31, %v565_v12  ;;  %v634_v25 = vadd.f32 %v2126_v31, %v566_v0  ;;  %v649_v42 = vadd.f32 %v2126_v31, %v581_v38  ;;  %v650_v37 = vadd.f32 %v2126_v31, %v582_v41 }
 0x13a   :  { %v665_v26 = vadd.f32 %v2126_v31, %v597_v28  ;;  %v666_v22 = vadd.f32 %v2126_v31, %v598_v36  ;;  %v681_v55 = vadd.f32 %v2126_v31, %v613_v40  ;;  %v682_v4 = vadd.f32 %v2126_v31, %v614_v29 }
 0x13b   :  { %v697_v52 = vmax.f32 %v633_v19, 0.0  ;;  %v698_v32 = vmax.f32 %v634_v25, 0.0  ;;  %v713_v34 = vmax.f32 %v649_v42, 0.0  ;;  %v714_v61 = vmax.f32 %v650_v37, 0.0 }
 0x13c   :  { %v729_v9 = vmax.f32 %v665_v26, 0.0  ;;  %v730_v27 = vmax.f32 %v666_v22, 0.0  ;;  %v745_v18 = vmax.f32 %v681_v55, 0.0  ;;  %v746_v35 = vmax.f32 %v682_v4, 0.0 }
 0x13d   :  { %v761_v16 = vpack.c.bf16 %v698_v32, %v697_v52  ;;  %v769_v43 = vpack.c.bf16 %v714_v61, %v713_v34  ;;  %v499_v48 = vmul.f32 %v2117_v13, %v1673_v51  ;;  %v500_v12 = vmul.f32 %v2117_v13, %v1677_v30 }
 0x13e   :  { %v777_v0 = vpack.c.bf16 %v730_v27, %v729_v9  ;;  %v785_v38 = vpack.c.bf16 %v746_v35, %v745_v18  ;;  %v515_v41 = vmul.f32 %v2117_v13, %v1783_v44  ;;  %v516_v28 = vmul.f32 %v2117_v13, %v1790_v47 }
 0x13f   :  { %1138 = vmatmul.msk.bf16.vlgmr.msra.gmra.mxu0 %vm82_vm0, %v761_v16  ;;  %1146 = vmatmul.msk.bf16.vlgmr.msra.gmra.mxu1 %vm82_vm0, %v769_v43  ;;  %v567_v36 = vmul.f32 %v2115_v33, %v499_v48  ;;  %v568_v40 = vmul.f32 %v2115_v33, %v500_v12  ;;  %v531_v51 = vmul.f32 %v2117_v13, %v1895_v45 }
 0x140   :  { %1154 = vmatmul.msk.bf16.vlgmr.msra.gmra.mxu2 %vm82_vm0, %v777_v0  ;;  %1162 = vmatmul.msk.bf16.vlgmr.msra.gmra.mxu3 %vm82_vm0, %v785_v38  ;;  %v583_v30 = vmul.f32 %v2115_v33, %v515_v41  ;;  %v584_v44 = vmul.f32 %v2115_v33, %v516_v28  ;;  %v532_v47 = vmul.f32 %v2117_v13, %v1902_v49 }
 0x141   :  { %v599_v29 = vmul.f32 %v2115_v33, %v531_v51  ;;  %v547_v19 = vmul.f32 %v2117_v13, %v2007_v14  ;;  %v635_v25 = vadd.f32 %v2126_v31, %v567_v36  ;;  %v548_v42 = vmul.f32 %v2117_v13, %v2014_v1 }
 0x142   :  { %v600_v45 = vmul.f32 %v2115_v33, %v532_v47  ;;  %v636_v37 = vadd.f32 %v2126_v31, %v568_v40  ;;  %v651_v26 = vadd.f32 %v2126_v31, %v583_v30  ;;  %v652_v22 = vadd.f32 %v2126_v31, %v584_v44 }
 0x143   :  { %v615_v49 = vmul.f32 %v2115_v33, %v547_v19  ;;  %v667_v55 = vadd.f32 %v2126_v31, %v599_v29  ;;  %v616_v14 = vmul.f32 %v2115_v33, %v548_v42  ;;  %v699_v34 = vmax.f32 %v635_v25, 0.0 }
 0x144   :  { %v668_v4 = vadd.f32 %v2126_v31, %v600_v45  ;;  %v700_v1 = vmax.f32 %v636_v37, 0.0  ;;  %v715_v61 = vmax.f32 %v651_v26, 0.0  ;;  %v716_v9 = vmax.f32 %v652_v22, 0.0 }
 0x145   :  { %v683_v52 = vadd.f32 %v2126_v31, %v615_v49  ;;  %v684_v32 = vadd.f32 %v2126_v31, %v616_v14  ;;  %v731_v27 = vmax.f32 %v667_v55, 0.0  ;;  %v501_v43 = vmul.f32 %v2117_v13, %v1681_v10 }
 0x146   :  { %v732_v18 = vmax.f32 %v668_v4, 0.0  ;;  %v502_v48 = vmul.f32 %v2117_v13, %v1691_v3  ;;  %v517_v12 = vmul.f32 %v2117_v13, %v1797_v50  ;;  %v518_v0 = vmul.f32 %v2117_v13, %v1804_v53 }
 0x147   :  { %v747_v35 = vmax.f32 %v683_v52, 0.0  ;;  %v748_v16 = vmax.f32 %v684_v32, 0.0  ;;  %v762_v38 = vpack.c.bf16 %v700_v1, %v699_v34  ;;  %v770_v41 = vpack.c.bf16 %v716_v9, %v715_v61 }
 0x148   :  { %v533_v28 = vmul.f32 %v2117_v13, %v1909_v54  ;;  %v534_v36 = vmul.f32 %v2117_v13, %v1916_v58  ;;  %v778_v40 = vpack.c.bf16 %v732_v18, %v731_v27  ;;  %v549_v10 = vmul.f32 %v2117_v13, %v2021_v46 }
 0x149   :  { %v786_v51 = vpack.c.bf16 %v748_v16, %v747_v35  ;;  %v550_v3 = vmul.f32 %v2117_v13, %v2028_v60  ;;  %v569_v50 = vmul.f32 %v2115_v33, %v501_v43  ;;  %v570_v53 = vmul.f32 %v2115_v33, %v502_v48 }
 0x14a   :  { %v585_v30 = vmul.f32 %v2115_v33, %v517_v12  ;;  %v586_v44 = vmul.f32 %v2115_v33, %v518_v0  ;;  %v601_v54 = vmul.f32 %v2115_v33, %v533_v28  ;;  %v602_v58 = vmul.f32 %v2115_v33, %v534_v36 }
 0x14b   :  { %v617_v46 = vmul.f32 %v2115_v33, %v549_v10  ;;  %v618_v60 = vmul.f32 %v2115_v33, %v550_v3  ;;  %v637_v47 = vadd.f32 %v2126_v31, %v569_v50  ;;  %v638_v29 = vadd.f32 %v2126_v31, %v570_v53 }
 0x14c   :  { %v653_v19 = vadd.f32 %v2126_v31, %v585_v30  ;;  %v654_v25 = vadd.f32 %v2126_v31, %v586_v44  ;;  %v669_v45 = vadd.f32 %v2126_v31, %v601_v54  ;;  %v670_v42 = vadd.f32 %v2126_v31, %v602_v58 }
 0x14d   :  { %v685_v37 = vadd.f32 %v2126_v31, %v617_v46  ;;  %v686_v26 = vadd.f32 %v2126_v31, %v618_v60  ;;  %v701_v22 = vmax.f32 %v637_v47, 0.0  ;;  %v702_v49 = vmax.f32 %v638_v29, 0.0 }
 0x14e   :  { %v717_v55 = vmax.f32 %v653_v19, 0.0  ;;  %v718_v4 = vmax.f32 %v654_v25, 0.0  ;;  %v733_v14 = vmax.f32 %v669_v45, 0.0  ;;  %v734_v52 = vmax.f32 %v670_v42, 0.0 }
 0x14f   :  { %1139 = vmatmul.msk.bf16.gmra.mxu0 %vm82_vm0, %v762_v38  ;;  %1147 = vmatmul.msk.bf16.gmra.mxu1 %vm82_vm0, %v770_v41  ;;  %v749_v32 = vmax.f32 %v685_v37, 0.0  ;;  %v750_v34 = vmax.f32 %v686_v26, 0.0  ;;  %v763_v1 = vpack.c.bf16 %v702_v49, %v701_v22  ;;  %v503_v9 = vmul.f32 %v2117_v13, %v1697_v7 }
 0x150   :  { %1155 = vmatmul.msk.bf16.gmra.mxu2 %vm82_vm0, %v778_v40  ;;  %1163 = vmatmul.msk.bf16.gmra.mxu3 %vm82_vm0, %v786_v51  ;;  %v771_v61 = vpack.c.bf16 %v718_v4, %v717_v55  ;;  %v504_v27 = vmul.f32 %v2117_v13, %v1706_v11  ;;  %v779_v18 = vpack.c.bf16 %v734_v52, %v733_v14 }
 0x151   :  { %v519_v35 = vmul.f32 %v2117_v13, %v1811_v56  ;;  %v520_v16 = vmul.f32 %v2117_v13, %v1818_v59  ;;  %v535_v43 = vmul.f32 %v2117_v13, %v1923_v63  ;;  %v787_v48 = vpack.c.bf16 %v750_v34, %v749_v32 }
 0x152   :  { %v536_v12 = vmul.f32 %v2117_v13, %v1930_v8  ;;  %v551_v7 = vmul.f32 %v2117_v13, %v2035_v57  ;;  %v552_v11 = vmul.f32 %v2117_v13, %v2042_v2  ;;  %v571_v0 = vmul.f32 %v2115_v33, %v503_v9 }
 0x153   :  { %v572_v56 = vmul.f32 %v2115_v33, %v504_v27  ;;  %v587_v59 = vmul.f32 %v2115_v33, %v519_v35  ;;  %v588_v63 = vmul.f32 %v2115_v33, %v520_v16  ;;  %v603_v8 = vmul.f32 %v2115_v33, %v535_v43 }
 0x154   :  { %v604_v57 = vmul.f32 %v2115_v33, %v536_v12  ;;  %v619_v2 = vmul.f32 %v2115_v33, %v551_v7  ;;  %v620_v38 = vmul.f32 %v2115_v33, %v552_v11  ;;  %v639_v41 = vadd.f32 %v2126_v31, %v571_v0 }
 0x155   :  { %v640_v28 = vadd.f32 %v2126_v31, %v572_v56  ;;  %v655_v36 = vadd.f32 %v2126_v31, %v587_v59  ;;  %v656_v40 = vadd.f32 %v2126_v31, %v588_v63  ;;  %v671_v51 = vadd.f32 %v2126_v31, %v603_v8 }
 0x156   :  { %v672_v10 = vadd.f32 %v2126_v31, %v604_v57  ;;  %v687_v3 = vadd.f32 %v2126_v31, %v619_v2  ;;  %v688_v50 = vadd.f32 %v2126_v31, %v620_v38  ;;  %v703_v53 = vmax.f32 %v639_v41, 0.0  ;;  %v2707_v2 = vld [vmem:[#allocation24_spill] sm:$0xff]  ;;  %v2708_v41 = vld [vmem:[#allocation25_spill] sm:$0xff] }
 0x157   :  { %v704_v30 = vmax.f32 %v640_v28, 0.0  ;;  %v719_v44 = vmax.f32 %v655_v36, 0.0  ;;  %v720_v54 = vmax.f32 %v656_v40, 0.0  ;;  %v735_v58 = vmax.f32 %v671_v51, 0.0  ;;  %v2709_v36 = vld [vmem:[#allocation30_spill] sm:$0xff] }
 0x158   :  { %v736_v46 = vmax.f32 %v672_v10, 0.0  ;;  %v751_v60 = vmax.f32 %v687_v3, 0.0  ;;  %v752_v47 = vmax.f32 %v688_v50, 0.0  ;;  %v505_v29 = vmul.f32 %v2117_v13, %v1713_v24  ;;  %v2710_v10 = vld [vmem:[#allocation31_spill] sm:$0xff]  ;;  %v2711_v50 = vld [vmem:[#allocation5_spill] sm:$0xff] }
 0x159   :  { %v506_v19 = vmul.f32 %v2117_v13, %v1720_v17  ;;  %v521_v25 = vmul.f32 %v2117_v13, %v1825_v62  ;;  %v522_v45 = vmul.f32 %v2117_v13, %v1832_v5  ;;  %v764_v42 = vpack.c.bf16 %v704_v30, %v703_v53  ;;  %v2712_v53 = vld [vmem:[#allocation6_spill] sm:$0xff] }
 0x15a   :  { %v772_v37 = vpack.c.bf16 %v720_v54, %v719_v44  ;;  %v537_v26 = vmul.f32 %v2117_v13, %v1937_v15  ;;  %v538_v22 = vmul.f32 %v2117_v13, %v1944_v21  ;;  %v780_v49 = vpack.c.bf16 %v736_v46, %v735_v58 }
 0x15b   :  { %v788_v55 = vpack.c.bf16 %v752_v47, %v751_v60  ;;  %v553_v24 = vmul.f32 %v2117_v13, %v2049_v39  ;;  %v554_v17 = vmul.f32 %v2117_v13, %v2056_v6  ;;  %v573_v62 = vmul.f32 %v2115_v33, %v505_v29 }
 0x15c   :  { %v574_v5 = vmul.f32 %v2115_v33, %v506_v19  ;;  %v589_v4 = vmul.f32 %v2115_v33, %v521_v25  ;;  %v590_v14 = vmul.f32 %v2115_v33, %v522_v45  ;;  %v605_v15 = vmul.f32 %v2115_v33, %v537_v26 }
 0x15d   :  { %v606_v21 = vmul.f32 %v2115_v33, %v538_v22  ;;  %v621_v39 = vmul.f32 %v2115_v33, %v553_v24  ;;  %v622_v6 = vmul.f32 %v2115_v33, %v554_v17  ;;  %v641_v52 = vadd.f32 %v2126_v31, %v573_v62 }
 0x15e   :  { %v642_v32 = vadd.f32 %v2126_v31, %v574_v5  ;;  %v657_v34 = vadd.f32 %v2126_v31, %v589_v4  ;;  %v507_v63 = vmul.f32 %v2117_v13, %v1727_v20  ;;  %v508_v8 = vmul.f32 %v2117_v13, %v1734_v23 }
 0x15f   :  { %1140 = vmatmul.msk.bf16.gmra.mxu0 %vm82_vm0, %v763_v1  ;;  %1148 = vmatmul.msk.bf16.gmra.mxu1 %vm82_vm0, %v771_v61  ;;  %v658_v1 = vadd.f32 %v2126_v31, %v590_v14  ;;  %v673_v61 = vadd.f32 %v2126_v31, %v605_v15  ;;  %v674_v9 = vadd.f32 %v2126_v31, %v606_v21  ;;  %v705_v35 = vmax.f32 %v641_v52, 0.0  ;;  %v2713_v21 = vld [vmem:[#allocation20_spill] sm:$0xff] }
 0x160   :  { %1156 = vmatmul.msk.bf16.gmra.mxu2 %vm82_vm0, %v779_v18  ;;  %1164 = vmatmul.msk.bf16.gmra.mxu3 %vm82_vm0, %v787_v48  ;;  %v689_v27 = vadd.f32 %v2126_v31, %v621_v39  ;;  %v690_v18 = vadd.f32 %v2126_v31, %v622_v6  ;;  %v706_v16 = vmax.f32 %v642_v32, 0.0  ;;  %v721_v43 = vmax.f32 %v657_v34, 0.0  ;;  %v2714_v6 = vld [vmem:[#allocation21_spill] sm:$0xff]  ;;  %v2715_v32 = vld [vmem:[#allocation26_spill] sm:$0xff] }
 0x161   :  { %v722_v48 = vmax.f32 %v658_v1, 0.0  ;;  %v737_v12 = vmax.f32 %v673_v61, 0.0  ;;  %v738_v7 = vmax.f32 %v674_v9, 0.0  ;;  %v523_v38 = vmul.f32 %v2117_v13, %v2707_v2  ;;  %v2716_v1 = vld [vmem:[#allocation27_spill] sm:$0xff] }
 0x162   :  { %v753_v11 = vmax.f32 %v689_v27, 0.0  ;;  %v754_v0 = vmax.f32 %v690_v18, 0.0  ;;  %v765_v56 = vpack.c.bf16 %v706_v16, %v705_v35  ;;  %v524_v28 = vmul.f32 %v2117_v13, %v2708_v41  ;;  %v2717_v18 = vld [vmem:[#allocation32_spill] sm:$0xff]  ;;  %v2718_v16 = vld [vmem:[#allocation2_spill] sm:$0xff] }
 0x163   :  { %v773_v59 = vpack.c.bf16 %v722_v48, %v721_v43  ;;  %v781_v57 = vpack.c.bf16 %v738_v7, %v737_v12  ;;  %v539_v40 = vmul.f32 %v2117_v13, %v2709_v36  ;;  %v540_v3 = vmul.f32 %v2117_v13, %v2710_v10  ;;  %v2719_v7 = vld [vmem:[#allocation7_spill] sm:$0xff] }
 0x164   :  { %v789_v51 = vpack.c.bf16 %v754_v0, %v753_v11  ;;  %v555_v20 = vmul.f32 %v2117_v13, %v2711_v50  ;;  %v556_v23 = vmul.f32 %v2117_v13, %v2712_v53  ;;  %v575_v30 = vmul.f32 %v2115_v33, %v507_v63  ;;  %v2720_v0 = vld [vmem:[#allocation8_spill] sm:$0xff] }
 0x165   :  { %v576_v44 = vmul.f32 %v2115_v33, %v508_v8  ;;  %v591_v54 = vmul.f32 %v2115_v33, %v523_v38  ;;  %v592_v58 = vmul.f32 %v2115_v33, %v524_v28  ;;  %v607_v46 = vmul.f32 %v2115_v33, %v539_v40 }
 0x166   :  { %v608_v60 = vmul.f32 %v2115_v33, %v540_v3  ;;  %v623_v47 = vmul.f32 %v2115_v33, %v555_v20  ;;  %v624_v29 = vmul.f32 %v2115_v33, %v556_v23  ;;  %v643_v19 = vadd.f32 %v2126_v31, %v575_v30 }
 0x167   :  { %v644_v25 = vadd.f32 %v2126_v31, %v576_v44  ;;  %v659_v45 = vadd.f32 %v2126_v31, %v591_v54  ;;  %v509_v39 = vmul.f32 %v2117_v13, %v2713_v21  ;;  %v510_v52 = vmul.f32 %v2117_v13, %v2714_v6 }
 0x168   :  { %v676_v26 = vadd.f32 %v2126_v31, %v608_v60  ;;  %v691_v22 = vadd.f32 %v2126_v31, %v623_v47  ;;  %v525_v34 = vmul.f32 %v2117_v13, %v2715_v32  ;;  %v526_v61 = vmul.f32 %v2117_v13, %v2716_v1 }
 0x169   :  { %v708_v24 = vmax.f32 %v644_v25, 0.0  ;;  %v723_v17 = vmax.f32 %v659_v45, 0.0  ;;  %v541_v35 = vmul.f32 %v2117_v13, %v2717_v18  ;;  %v542_v43 = vmul.f32 %v2117_v13, %v2718_v16  ;;  %v2721_v25 = vld [vmem:[#allocation22_spill] sm:$0xff] }
 0x16a   :  { %v740_v4 = vmax.f32 %v676_v26, 0.0  ;;  %v755_v14 = vmax.f32 %v691_v22, 0.0  ;;  %v557_v11 = vmul.f32 %v2117_v13, %v2719_v7  ;;  %v578_v63 = vmul.f32 %v2115_v33, %v510_v52  ;;  %v2723_v22 = vld [vmem:[#allocation28_spill] sm:$0xff] }
 0x16b   :  { %v593_v8 = vmul.f32 %v2115_v33, %v525_v34  ;;  %v609_v2 = vmul.f32 %v2115_v33, %v541_v35  ;;  %v610_v38 = vmul.f32 %v2115_v33, %v542_v43  ;;  %v511_v45 = vmul.f32 %v2117_v13, %v2721_v25 }
 0x16c   :  { %v625_v41 = vmul.f32 %v2115_v33, %v557_v11  ;;  %v646_v40 = vadd.f32 %v2126_v31, %v578_v63 }
 0x16d   :  { %v677_v3 = vadd.f32 %v2126_v31, %v609_v2  ;;  %v678_v50 = vadd.f32 %v2126_v31, %v610_v38  ;;  %v579_v52 = vmul.f32 %v2115_v33, %v511_v45 }
 0x16e   :  { %v693_v20 = vadd.f32 %v2126_v31, %v625_v41  ;;  %v710_v30 = vmax.f32 %v646_v40, 0.0 }
 0x16f   :  { %1141 = vmatmul.msk.bf16.gmra.mxu0 %vm82_vm0, %v764_v42  ;;  %1149 = vmatmul.msk.bf16.gmra.mxu1 %vm82_vm0, %v772_v37  ;;  %v660_v42 = vadd.f32 %v2126_v31, %v592_v58  ;;  %v675_v37 = vadd.f32 %v2126_v31, %v607_v46  ;;  %v741_v58 = vmax.f32 %v677_v3, 0.0  ;;  %v742_v46 = vmax.f32 %v678_v50, 0.0 }
 0x170   :  { %1157 = vmatmul.msk.bf16.gmra.mxu2 %vm82_vm0, %v780_v49  ;;  %1165 = vmatmul.msk.bf16.gmra.mxu3 %vm82_vm0, %v788_v55  ;;  %v692_v49 = vadd.f32 %v2126_v31, %v624_v29  ;;  %v707_v55 = vmax.f32 %v643_v19, 0.0  ;;  %v757_v60 = vmax.f32 %v693_v20, 0.0  ;;  %v647_v18 = vadd.f32 %v2126_v31, %v579_v52 }
 0x171   :  { %v724_v62 = vmax.f32 %v660_v42, 0.0  ;;  %v739_v5 = vmax.f32 %v675_v37, 0.0  ;;  %v2722_v42 = vld [vmem:[#allocation23_spill] sm:$0xff]  ;;  %v783_v26 = vpack.c.bf16 %v742_v46, %v741_v58 }
 0x172   :  { %v756_v15 = vmax.f32 %v692_v49, 0.0  ;;  %v766_v9 = vpack.c.bf16 %v708_v24, %v707_v55  ;;  %v512_v37 = vmul.f32 %v2117_v13, %v2722_v42  ;;  %v527_v49 = vmul.f32 %v2117_v13, %v2723_v22  ;;  %v2724_v55 = vld [vmem:[#allocation29_spill] sm:$0xff] }
 0x173   :  { %v774_v27 = vpack.c.bf16 %v724_v62, %v723_v17  ;;  %v782_v48 = vpack.c.bf16 %v740_v4, %v739_v5  ;;  %v528_v24 = vmul.f32 %v2117_v13, %v2724_v55  ;;  %v2725_v17 = vld [vmem:[#allocation3_spill] sm:$0xff]  ;;  %v2726_v4 = vld [vmem:[#allocation4_spill] sm:$0xff] }
 0x174   :  { %v790_v12 = vpack.c.bf16 %v756_v15, %v755_v14  ;;  %v543_v62 = vmul.f32 %v2117_v13, %v2725_v17  ;;  %v544_v14 = vmul.f32 %v2117_v13, %v2726_v4  ;;  %v2727_v15 = vld [vmem:[#allocation9_spill] sm:$0xff]  ;;  %v580_v32 = vmul.f32 %v2115_v33, %v512_v37 }
 0x175   :  { %v559_v21 = vmul.f32 %v2117_v13, %v2727_v15  ;;  %v595_v34 = vmul.f32 %v2115_v33, %v527_v49  ;;  %v596_v1 = vmul.f32 %v2115_v33, %v528_v24 }
 0x176   :  { %v648_v35 = vadd.f32 %v2126_v31, %v580_v32 }
 0x177   :  { %v663_v16 = vadd.f32 %v2126_v31, %v595_v34  ;;  %v664_v43 = vadd.f32 %v2126_v31, %v596_v1 }
 0x17f   :  { %1142 = vmatmul.msk.bf16.gmra.mxu0 %vm82_vm0, %v765_v56  ;;  %1150 = vmatmul.msk.bf16.gmra.mxu1 %vm82_vm0, %v773_v59  ;;  %v558_v56 = vmul.f32 %v2117_v13, %v2720_v0  ;;  %v577_v59 = vmul.f32 %v2115_v33, %v509_v39  ;;  %v2728_v39 = vld [vmem:[#allocation10_spill] sm:$0xff]  ;;  %v711_v0 = vmax.f32 %v647_v18, 0.0 }
 0x180   :  { %1158 = vmatmul.msk.bf16.gmra.mxu2 %vm82_vm0, %v781_v57  ;;  %1166 = vmatmul.msk.bf16.gmra.mxu3 %vm82_vm0, %v789_v51  ;;  %v594_v57 = vmul.f32 %v2115_v33, %v526_v61  ;;  %v661_v51 = vadd.f32 %v2126_v31, %v593_v8  ;;  %v560_v6 = vmul.f32 %v2117_v13, %v2728_v39 }
 0x181   :  { %v626_v28 = vmul.f32 %v2115_v33, %v558_v56  ;;  %v645_v36 = vadd.f32 %v2126_v31, %v577_v59  ;;  %v611_v61 = vmul.f32 %v2115_v33, %v543_v62  ;;  %v612_v13 = vmul.f32 %v2115_v33, %v544_v14 }
 0x182   :  { %v662_v10 = vadd.f32 %v2126_v31, %v594_v57  ;;  %v725_v44 = vmax.f32 %v661_v51, 0.0  ;;  %v712_v56 = vmax.f32 %v648_v35, 0.0  ;;  %v727_v59 = vmax.f32 %v663_v16, 0.0 }
 0x183   :  { %v694_v53 = vadd.f32 %v2126_v31, %v626_v28  ;;  %v709_v23 = vmax.f32 %v645_v36, 0.0 }
 0x184   :  { %v726_v54 = vmax.f32 %v662_v10, 0.0  ;;  %v768_v38 = vpack.c.bf16 %v712_v56, %v711_v0 }
 0x185   :  { %v758_v47 = vmax.f32 %v694_v53, 0.0  ;;  %v767_v29 = vpack.c.bf16 %v710_v30, %v709_v23 }
 0x186   :  { %v775_v19 = vpack.c.bf16 %v726_v54, %v725_v44 }
 0x187   :  { %v791_v5 = vpack.c.bf16 %v758_v47, %v757_v60 }
 0x18f   :  { %1143 = vmatmul.msk.bf16.gmra.mxu0 %vm82_vm0, %v766_v9  ;;  %1151 = vmatmul.msk.bf16.gmra.mxu1 %vm82_vm0, %v774_v27  ;;  %v627_v9 = vmul.f32 %v2115_v33, %v559_v21  ;;  %v628_v27 = vmul.f32 %v2115_v33, %v560_v6  ;;  %v728_v33 = vmax.f32 %v664_v43, 0.0 }
 0x190   :  { %1159 = vmatmul.msk.bf16.gmra.mxu2 %vm82_vm0, %v782_v48  ;;  %1167 = vmatmul.msk.bf16.gmra.mxu3 %vm82_vm0, %v790_v12  ;;  %v679_v48 = vadd.f32 %v2126_v31, %v611_v61  ;;  %v680_v12 = vadd.f32 %v2126_v31, %v612_v13 }
 0x191   :  { %v695_v7 = vadd.f32 %v2126_v31, %v627_v9  ;;  %v696_v11 = vadd.f32 %v2126_v31, %v628_v27  ;;  %v776_v41 = vpack.c.bf16 %v728_v33, %v727_v59 }
 0x192   :  { %v743_v63 = vmax.f32 %v679_v48, 0.0  ;;  %v744_v8 = vmax.f32 %v680_v12, 0.0 }
 0x193   :  { %v759_v57 = vmax.f32 %v695_v7, 0.0  ;;  %v760_v2 = vmax.f32 %v696_v11, 0.0 }
 0x194   :  { %v784_v28 = vpack.c.bf16 %v744_v8, %v743_v63 }
 0x195   :  { %v792_v36 = vpack.c.bf16 %v760_v2, %v759_v57 }
 0x19f   :  { %1144 = vmatmul.msk.bf16.gmra.mxu0 %vm82_vm0, %v767_v29  ;;  %1152 = vmatmul.msk.bf16.gmra.mxu1 %vm82_vm0, %v775_v19 }
 0x1a0   :  { %1160 = vmatmul.msk.bf16.gmra.mxu2 %vm82_vm0, %v783_v26  ;;  %1168 = vmatmul.msk.bf16.gmra.mxu3 %vm82_vm0, %v791_v5 }
 0x1af   :  { %1145 = vmatmul.msk.bf16.gmra.mxu0 %vm82_vm0, %v768_v38  ;;  %1153 = vmatmul.msk.bf16.gmra.mxu1 %vm82_vm0, %v776_v41 }
 0x1b0   :  { %1161 = vmatmul.msk.bf16.gmra.mxu2 %vm82_vm0, %v784_v28  ;;  %1169 = vmatmul.msk.bf16.gmra.mxu3 %vm82_vm0, %v792_v36 }
 0x1bc   :  { %v906_v31 = vpop.f32.mrf.mxu0  ;;  %v946_v40 = vpop.f32.mrf.mxu1 }
 0x1bd   :  { %1066 = vst [vmem:[%s2608_s4] sm:$0xff] %v906_v31 }
 0x1be   :  { %1082 = vst [vmem:[%s2608_s4 + $0x80] sm:$0xff] %v946_v40 }
 0x1c3   :  { %v986_v51 = vpop.f32.mrf.mxu2  ;;  %v1026_v10 = vpop.f32.mrf.mxu3 }
 0x1c4   :  { %1098 = vst [vmem:[%s2608_s4 + $0x100] sm:$0xff] %v986_v51  ;;  %v908_v3 = vpop.f32.mrf.mxu0  ;;  %v948_v50 = vpop.f32.mrf.mxu1 }
 0x1c5   :  { %1114 = vst [vmem:[%s2608_s4 + $0x180] sm:$0xff] %v1026_v10 }
 0x1c6   :  { %1067 = vst [vmem:[%s2608_s4 + $0x8] sm:$0xff] %v908_v3 }
 0x1c7   :  { %1083 = vst [vmem:[%s2608_s4 + $0x88] sm:$0xff] %v948_v50 }
 0x1cb   :  { %v988_v20 = vpop.f32.mrf.mxu2  ;;  %v1028_v53 = vpop.f32.mrf.mxu3 }
 0x1cc   :  { %1099 = vst [vmem:[%s2608_s4 + $0x108] sm:$0xff] %v988_v20  ;;  %v911_v23 = vpop.f32.mrf.mxu0  ;;  %v951_v30 = vpop.f32.mrf.mxu1 }
 0x1cd   :  { %1115 = vst [vmem:[%s2608_s4 + $0x188] sm:$0xff] %v1028_v53 }
 0x1ce   :  { %1068 = vst [vmem:[%s2608_s4 + $0x10] sm:$0xff] %v911_v23 }
 0x1cf   :  { %1084 = vst [vmem:[%s2608_s4 + $0x90] sm:$0xff] %v951_v30 }
 0x1d3   :  { %v991_v44 = vpop.f32.mrf.mxu2  ;;  %v1031_v54 = vpop.f32.mrf.mxu3 }
 0x1d4   :  { %1100 = vst [vmem:[%s2608_s4 + $0x110] sm:$0xff] %v991_v44  ;;  %v913_v58 = vpop.f32.mrf.mxu0  ;;  %v953_v46 = vpop.f32.mrf.mxu1 }
 0x1d5   :  { %1116 = vst [vmem:[%s2608_s4 + $0x190] sm:$0xff] %v1031_v54 }
 0x1d6   :  { %1069 = vst [vmem:[%s2608_s4 + $0x18] sm:$0xff] %v913_v58 }
 0x1d7   :  { %1085 = vst [vmem:[%s2608_s4 + $0x98] sm:$0xff] %v953_v46 }
 0x1db   :  { %v993_v60 = vpop.f32.mrf.mxu2  ;;  %v1033_v47 = vpop.f32.mrf.mxu3 }
 0x1dc   :  { %1101 = vst [vmem:[%s2608_s4 + $0x118] sm:$0xff] %v993_v60  ;;  %v916_v29 = vpop.f32.mrf.mxu0  ;;  %v956_v19 = vpop.f32.mrf.mxu1 }
 0x1dd   :  { %1117 = vst [vmem:[%s2608_s4 + $0x198] sm:$0xff] %v1033_v47 }
 0x1de   :  { %1070 = vst [vmem:[%s2608_s4 + $0x20] sm:$0xff] %v916_v29 }
 0x1df   :  { %1086 = vst [vmem:[%s2608_s4 + $0xa0] sm:$0xff] %v956_v19 }
 0x1e3   :  { %v996_v25 = vpop.f32.mrf.mxu2  ;;  %v1036_v45 = vpop.f32.mrf.mxu3 }
 0x1e4   :  { %1102 = vst [vmem:[%s2608_s4 + $0x120] sm:$0xff] %v996_v25  ;;  %v918_v42 = vpop.f32.mrf.mxu0  ;;  %v958_v37 = vpop.f32.mrf.mxu1 }
 0x1e5   :  { %1118 = vst [vmem:[%s2608_s4 + $0x1a0] sm:$0xff] %v1036_v45 }
 0x1e6   :  { %1071 = vst [vmem:[%s2608_s4 + $0x28] sm:$0xff] %v918_v42 }
 0x1e7   :  { %1087 = vst [vmem:[%s2608_s4 + $0xa8] sm:$0xff] %v958_v37 }
 0x1eb   :  { %v998_v26 = vpop.f32.mrf.mxu2  ;;  %v1038_v22 = vpop.f32.mrf.mxu3 }
 0x1ec   :  { %1103 = vst [vmem:[%s2608_s4 + $0x128] sm:$0xff] %v998_v26  ;;  %v921_v49 = vpop.f32.mrf.mxu0  ;;  %v961_v55 = vpop.f32.mrf.mxu1 }
 0x1ed   :  { %1119 = vst [vmem:[%s2608_s4 + $0x1a8] sm:$0xff] %v1038_v22 }
 0x1ee   :  { %1072 = vst [vmem:[%s2608_s4 + $0x30] sm:$0xff] %v921_v49 }
 0x1ef   :  { %1088 = vst [vmem:[%s2608_s4 + $0xb0] sm:$0xff] %v961_v55 }
 0x1f3   :  { %v1001_v24 = vpop.f32.mrf.mxu2  ;;  %v1041_v17 = vpop.f32.mrf.mxu3 }
 0x1f4   :  { %1104 = vst [vmem:[%s2608_s4 + $0x130] sm:$0xff] %v1001_v24  ;;  %v923_v62 = vpop.f32.mrf.mxu0  ;;  %v963_v5 = vpop.f32.mrf.mxu1 }
 0x1f5   :  { %1120 = vst [vmem:[%s2608_s4 + $0x1b0] sm:$0xff] %v1041_v17 }
 0x1f6   :  { %1073 = vst [vmem:[%s2608_s4 + $0x38] sm:$0xff] %v923_v62 }
 0x1f7   :  { %1089 = vst [vmem:[%s2608_s4 + $0xb8] sm:$0xff] %v963_v5 }
 0x1fb   :  { %v1003_v4 = vpop.f32.mrf.mxu2  ;;  %v1043_v14 = vpop.f32.mrf.mxu3 }
 0x1fc   :  { %1105 = vst [vmem:[%s2608_s4 + $0x138] sm:$0xff] %v1003_v4  ;;  %v926_v15 = vpop.f32.mrf.mxu0  ;;  %v966_v21 = vpop.f32.mrf.mxu1 }
 0x1fd   :  { %1121 = vst [vmem:[%s2608_s4 + $0x1b8] sm:$0xff] %v1043_v14 }
 0x1fe   :  { %1074 = vst [vmem:[%s2608_s4 + $0x40] sm:$0xff] %v926_v15 }
 0x1ff   :  { %1090 = vst [vmem:[%s2608_s4 + $0xc0] sm:$0xff] %v966_v21 }
 0x203   :  { %v1006_v39 = vpop.f32.mrf.mxu2  ;;  %v1046_v6 = vpop.f32.mrf.mxu3 }
 0x204   :  { %1106 = vst [vmem:[%s2608_s4 + $0x140] sm:$0xff] %v1006_v39  ;;  %v928_v52 = vpop.f32.mrf.mxu0  ;;  %v968_v32 = vpop.f32.mrf.mxu1 }
 0x205   :  { %1122 = vst [vmem:[%s2608_s4 + $0x1c0] sm:$0xff] %v1046_v6 }
 0x206   :  { %1075 = vst [vmem:[%s2608_s4 + $0x48] sm:$0xff] %v928_v52 }
 0x207   :  { %1091 = vst [vmem:[%s2608_s4 + $0xc8] sm:$0xff] %v968_v32 }
 0x20b   :  { %v1008_v34 = vpop.f32.mrf.mxu2  ;;  %v1048_v1 = vpop.f32.mrf.mxu3 }
 0x20c   :  { %1107 = vst [vmem:[%s2608_s4 + $0x148] sm:$0xff] %v1008_v34  ;;  %v931_v61 = vpop.f32.mrf.mxu0  ;;  %v971_v13 = vpop.f32.mrf.mxu1 }
 0x20d   :  { %1123 = vst [vmem:[%s2608_s4 + $0x1c8] sm:$0xff] %v1048_v1 }
 0x20e   :  { %1076 = vst [vmem:[%s2608_s4 + $0x50] sm:$0xff] %v931_v61 }
 0x20f   :  { %1092 = vst [vmem:[%s2608_s4 + $0xd0] sm:$0xff] %v971_v13 }
 0x213   :  { %v1011_v9 = vpop.f32.mrf.mxu2  ;;  %v1051_v27 = vpop.f32.mrf.mxu3 }
 0x214   :  { %1108 = vst [vmem:[%s2608_s4 + $0x150] sm:$0xff] %v1011_v9  ;;  %v933_v18 = vpop.f32.mrf.mxu0  ;;  %v973_v35 = vpop.f32.mrf.mxu1 }
 0x215   :  { %1124 = vst [vmem:[%s2608_s4 + $0x1d0] sm:$0xff] %v1051_v27 }
 0x216   :  { %1077 = vst [vmem:[%s2608_s4 + $0x58] sm:$0xff] %v933_v18 }
 0x217   :  { %1093 = vst [vmem:[%s2608_s4 + $0xd8] sm:$0xff] %v973_v35 }
 0x21b   :  { %v1013_v16 = vpop.f32.mrf.mxu2  ;;  %v1053_v43 = vpop.f32.mrf.mxu3 }
 0x21c   :  { %1109 = vst [vmem:[%s2608_s4 + $0x158] sm:$0xff] %v1013_v16  ;;  %v936_v48 = vpop.f32.mrf.mxu0  ;;  %v976_v12 = vpop.f32.mrf.mxu1 }
 0x21d   :  { %1125 = vst [vmem:[%s2608_s4 + $0x1d8] sm:$0xff] %v1053_v43 }
 0x21e   :  { %1078 = vst [vmem:[%s2608_s4 + $0x60] sm:$0xff] %v936_v48 }
 0x21f   :  { %1094 = vst [vmem:[%s2608_s4 + $0xe0] sm:$0xff] %v976_v12 }
 0x223   :  { %v1016_v7 = vpop.f32.mrf.mxu2  ;;  %v1056_v11 = vpop.f32.mrf.mxu3 }
 0x224   :  { %1110 = vst [vmem:[%s2608_s4 + $0x160] sm:$0xff] %v1016_v7  ;;  %v938_v0 = vpop.f32.mrf.mxu0  ;;  %v978_v56 = vpop.f32.mrf.mxu1 }
 0x225   :  { %1126 = vst [vmem:[%s2608_s4 + $0x1e0] sm:$0xff] %v1056_v11 }
 0x226   :  { %1079 = vst [vmem:[%s2608_s4 + $0x68] sm:$0xff] %v938_v0 }
 0x227   :  { %1095 = vst [vmem:[%s2608_s4 + $0xe8] sm:$0xff] %v978_v56 }
 0x22b   :  { %v1018_v59 = vpop.f32.mrf.mxu2  ;;  %v1058_v33 = vpop.f32.mrf.mxu3 }
 0x22c   :  { %1111 = vst [vmem:[%s2608_s4 + $0x168] sm:$0xff] %v1018_v59  ;;  %v941_v63 = vpop.f32.mrf.mxu0  ;;  %v981_v8 = vpop.f32.mrf.mxu1 }
 0x22d   :  { %1127 = vst [vmem:[%s2608_s4 + $0x1e8] sm:$0xff] %v1058_v33 }
 0x22e   :  { %1080 = vst [vmem:[%s2608_s4 + $0x70] sm:$0xff] %v941_v63 }
 0x22f   :  { %1096 = vst [vmem:[%s2608_s4 + $0xf0] sm:$0xff] %v981_v8 }
 0x233   :  { %v1021_v57 = vpop.f32.mrf.mxu2  ;;  %v1061_v2 = vpop.f32.mrf.mxu3 }
 0x234   :  { %1112 = vst [vmem:[%s2608_s4 + $0x170] sm:$0xff] %v1021_v57  ;;  %v943_v38 = vpop.f32.mrf.mxu0  ;;  %v983_v41 = vpop.f32.mrf.mxu1 }
 0x235   :  { %1128 = vst [vmem:[%s2608_s4 + $0x1f0] sm:$0xff] %v1061_v2 }
 0x236   :  { %1081 = vst [vmem:[%s2608_s4 + $0x78] sm:$0xff] %v943_v38 }
 0x237   :  { %1097 = vst [vmem:[%s2608_s4 + $0xf8] sm:$0xff] %v983_v41 }
 0x23b   :  { %v1023_v28 = vpop.f32.mrf.mxu2  ;;  %v1063_v36 = vpop.f32.mrf.mxu3 }
 0x23c   :  { %1113 = vst [vmem:[%s2608_s4 + $0x178] sm:$0xff] %v1023_v28 }
 0x23d   :  { %1129 = vst [vmem:[%s2608_s4 + $0x1f8] sm:$0xff] %v1063_v36 }

// kernel: generator_forward.10
= control target key start
LH: loop header
LB: loop body
LE: loop exit
PB: predicated region body
PF: predicated region fallthrough
CT: control target
= control target key end

     0   :  { %vm3386_vm0 = vcmask 1043456   ;;  %vm274_vm1 = vcmask 64512   ;;  %vm4039_vm6 = vcmask 392192   ;;  %s10261_s3 = inlined_call_operand.vmem [shape: bf16[8,48], index: 3, kind: input, shape index: {}]   ;;  %s10262_s0 = inlined_call_operand.vmem [shape: f32[2048,8], index: 0, kind: input, shape index: {}]   ;;  %s10263_s1 = inlined_call_operand.vmem [shape: f32[1,8], index: 1, kind: input, shape index: {}]   ;;  %s10264_s2 = inlined_call_operand.vmem [shape: f32[1,8], index: 2, kind: input, shape index: {}]   ;;  %s10265_s4 = inlined_call_operand.vmem [shape: f32[2048,48], index: 4, kind: output, shape index: {}]  }
   0x1   :  { %v3001_v0 = vld [vmem:[%s10261_s3] sm:$0xf]  ;;  %v19_v2 = vld [vmem:[%s10262_s0 + $0x8] sm:$0xff]  ;;  %v20_v4 = vld [vmem:[%s10262_s0 + $0x10] sm:$0xff] }
   0x2   :  { %v18_v1 = vld [vmem:[%s10262_s0] sm:$0xff]  ;;  %v3388_v3 = vsel %vm3386_vm0, %v3001_v0, 0  ;;  %v21_v5 = vld [vmem:[%s10262_s0 + $0x18] sm:$0xff]  ;;  %v276_v7 = vsel %vm274_vm1, %v19_v2, 0.0  ;;  %v278_v10 = vsel %vm274_vm1, %v20_v4, 0.0  ;;  %v23_v12 = vld [vmem:[%s10262_s0 + $0x28] sm:$0xff] }
   0x3   :  { %v275_v6 = vsel %vm274_vm1, %v18_v1, 0.0  ;;  %3397 = vmatpush.bf16.msra.mxu0 %v3388_v3  ;;  %4428 = vmatpush.bf16.msra.mxu1 %v3388_v3  ;;  %v22_v8 = vld [vmem:[%s10262_s0 + $0x20] sm:$0xff]  ;;  %v280_v11 = vsel %vm274_vm1, %v21_v5, 0.0  ;;  %v24_v15 = vld [vmem:[%s10262_s0 + $0x30] sm:$0xff]  ;;  %v284_v17 = vsel %vm274_vm1, %v23_v12, 0.0  ;;  %v25_v18 = vld [vmem:[%s10262_s0 + $0x38] sm:$0xff] }
   0x4   :  { %v277_v9 = vadd.f32 %v276_v7, %v275_v6  ;;  %4429 = vmatpush.bf16.msra.mxu2 %v3388_v3  ;;  %4430 = vmatpush.bf16.msra.mxu3 %v3388_v3  ;;  %v282_v14 = vsel %vm274_vm1, %v22_v8, 0.0  ;;  %v286_v20 = vsel %vm274_vm1, %v24_v15, 0.0  ;;  %v26_v21 = vld [vmem:[%s10262_s0 + $0x40] sm:$0xff]  ;;  %v288_v23 = vsel %vm274_vm1, %v25_v18, 0.0  ;;  %v27_v24 = vld [vmem:[%s10262_s0 + $0x48] sm:$0xff]  ;;  %v28_v27 = vld [vmem:[%s10262_s0 + $0x50] sm:$0xff] }
   0x5   :  { %v290_v26 = vsel %vm274_vm1, %v26_v21, 0.0  ;;  %v292_v29 = vsel %vm274_vm1, %v27_v24, 0.0  ;;  %v29_v30 = vld [vmem:[%s10262_s0 + $0x58] sm:$0xff]  ;;  %v294_v32 = vsel %vm274_vm1, %v28_v27, 0.0  ;;  %v30_v33 = vld [vmem:[%s10262_s0 + $0x60] sm:$0xff]  ;;  %v31_v36 = vld [vmem:[%s10262_s0 + $0x68] sm:$0xff] }
   0x6   :  { %v279_v13 = vadd.f32 %v278_v10, %v277_v9  ;;  %v296_v35 = vsel %vm274_vm1, %v29_v30, 0.0  ;;  %v298_v38 = vsel %vm274_vm1, %v30_v33, 0.0  ;;  %v32_v39 = vld [vmem:[%s10262_s0 + $0x70] sm:$0xff]  ;;  %v300_v41 = vsel %vm274_vm1, %v31_v36, 0.0  ;;  %v33_v42 = vld [vmem:[%s10262_s0 + $0x78] sm:$0xff]  ;;  %v34_v45 = vld [vmem:[%s10262_s0 + $0x80] sm:$0xff] }
   0x7   :  { %v302_v44 = vsel %vm274_vm1, %v32_v39, 0.0  ;;  %v304_v47 = vsel %vm274_vm1, %v33_v42, 0.0  ;;  %v35_v48 = vld [vmem:[%s10262_s0 + $0x88] sm:$0xff]  ;;  %v306_v50 = vsel %vm274_vm1, %v34_v45, 0.0  ;;  %v36_v51 = vld [vmem:[%s10262_s0 + $0x90] sm:$0xff]  ;;  %v37_v54 = vld [vmem:[%s10262_s0 + $0x98] sm:$0xff] }
   0x8   :  { %v281_v16 = vadd.f32 %v280_v11, %v279_v13  ;;  %v308_v53 = vsel %vm274_vm1, %v35_v48, 0.0  ;;  %v310_v56 = vsel %vm274_vm1, %v36_v51, 0.0  ;;  %v38_v57 = vld [vmem:[%s10262_s0 + $0xa0] sm:$0xff]  ;;  %v312_v59 = vsel %vm274_vm1, %v37_v54, 0.0  ;;  %v39_v60 = vld [vmem:[%s10262_s0 + $0xa8] sm:$0xff]  ;;  %v40_v63 = vld [vmem:[%s10262_s0 + $0xb0] sm:$0xff] }
   0x9   :  { %v314_v62 = vsel %vm274_vm1, %v38_v57, 0.0  ;;  %v316_v1 = vsel %vm274_vm1, %v39_v60, 0.0  ;;  %v41_v2 = vld [vmem:[%s10262_s0 + $0xb8] sm:$0xff]  ;;  %v318_v4 = vsel %vm274_vm1, %v40_v63, 0.0  ;;  %v42_v5 = vld [vmem:[%s10262_s0 + $0xc0] sm:$0xff]  ;;  %v43_v8 = vld [vmem:[%s10262_s0 + $0xc8] sm:$0xff] }
   0xa   :  { %v283_v19 = vadd.f32 %v282_v14, %v281_v16  ;;  %v320_v7 = vsel %vm274_vm1, %v41_v2, 0.0  ;;  %v322_v10 = vsel %vm274_vm1, %v42_v5, 0.0  ;;  %v44_v11 = vld [vmem:[%s10262_s0 + $0xd0] sm:$0xff]  ;;  %v324_v13 = vsel %vm274_vm1, %v43_v8, 0.0  ;;  %v45_v14 = vld [vmem:[%s10262_s0 + $0xd8] sm:$0xff] }
   0xb   :  { %v326_v16 = vsel %vm274_vm1, %v44_v11, 0.0 }
   0xc   :  { %v285_v22 = vadd.f32 %v284_v17, %v283_v19  ;;  %v46_v17 = vld [vmem:[%s10262_s0 + $0xe0] sm:$0xff]  ;;  %v328_v19 = vsel %vm274_vm1, %v45_v14, 0.0 }
   0xe   :  { %v287_v25 = vadd.f32 %v286_v20, %v285_v22  ;;  %v47_v20 = vld [vmem:[%s10262_s0 + $0xe8] sm:$0xff]  ;;  %v330_v22 = vsel %vm274_vm1, %v46_v17, 0.0 }
  0x10   :  { %v289_v28 = vadd.f32 %v288_v23, %v287_v25  ;;  %v48_v23 = vld [vmem:[%s10262_s0 + $0xf0] sm:$0xff]  ;;  %v332_v25 = vsel %vm274_vm1, %v47_v20, 0.0 }
  0x12   :  { %v291_v31 = vadd.f32 %v290_v26, %v289_v28  ;;  %v49_v26 = vld [vmem:[%s10262_s0 + $0xf8] sm:$0xff]  ;;  %v334_v28 = vsel %vm274_vm1, %v48_v23, 0.0 }
  0x14   :  { %v293_v34 = vadd.f32 %v292_v29, %v291_v31  ;;  %v50_v29 = vld [vmem:[%s10262_s0 + $0x100] sm:$0xff]  ;;  %v336_v31 = vsel %vm274_vm1, %v49_v26, 0.0 }
  0x16   :  { %v295_v37 = vadd.f32 %v294_v32, %v293_v34  ;;  %v51_v32 = vld [vmem:[%s10262_s0 + $0x108] sm:$0xff]  ;;  %v338_v34 = vsel %vm274_vm1, %v50_v29, 0.0 }
  0x18   :  { %v297_v40 = vadd.f32 %v296_v35, %v295_v37  ;;  %v52_v35 = vld [vmem:[%s10262_s0 + $0x110] sm:$0xff]  ;;  %v340_v37 = vsel %vm274_vm1, %v51_v32, 0.0 }
  0x1a   :  { %v299_v43 = vadd.f32 %v298_v38, %v297_v40  ;;  %v53_v38 = vld [vmem:[%s10262_s0 + $0x118] sm:$0xff]  ;;  %v342_v40 = vsel %vm274_vm1, %v52_v35, 0.0 }
  0x1c   :  { %v301_v46 = vadd.f32 %v300_v41, %v299_v43  ;;  %v54_v41 = vld [vmem:[%s10262_s0 + $0x120] sm:$0xff]  ;;  %v344_v43 = vsel %vm274_vm1, %v53_v38, 0.0 }
  0x1e   :  { %v303_v49 = vadd.f32 %v302_v44, %v301_v46  ;;  %v55_v44 = vld [vmem:[%s10262_s0 + $0x128] sm:$0xff]  ;;  %v346_v46 = vsel %vm274_vm1, %v54_v41, 0.0 }
  0x20   :  { %v305_v52 = vadd.f32 %v304_v47, %v303_v49  ;;  %v56_v47 = vld [vmem:[%s10262_s0 + $0x130] sm:$0xff]  ;;  %v348_v49 = vsel %vm274_vm1, %v55_v44, 0.0 }
  0x22   :  { %v307_v55 = vadd.f32 %v306_v50, %v305_v52  ;;  %v57_v50 = vld [vmem:[%s10262_s0 + $0x138] sm:$0xff]  ;;  %v350_v52 = vsel %vm274_vm1, %v56_v47, 0.0 }
  0x24   :  { %v309_v58 = vadd.f32 %v308_v53, %v307_v55  ;;  %v58_v53 = vld [vmem:[%s10262_s0 + $0x140] sm:$0xff]  ;;  %v352_v55 = vsel %vm274_vm1, %v57_v50, 0.0 }
  0x26   :  { %v311_v61 = vadd.f32 %v310_v56, %v309_v58  ;;  %v59_v56 = vld [vmem:[%s10262_s0 + $0x148] sm:$0xff]  ;;  %v354_v58 = vsel %vm274_vm1, %v58_v53, 0.0 }
  0x28   :  { %v313_v0 = vadd.f32 %v312_v59, %v311_v61  ;;  %v60_v59 = vld [vmem:[%s10262_s0 + $0x150] sm:$0xff]  ;;  %v356_v61 = vsel %vm274_vm1, %v59_v56, 0.0 }
  0x2a   :  { %v315_v3 = vadd.f32 %v314_v62, %v313_v0  ;;  %v61_v62 = vld [vmem:[%s10262_s0 + $0x158] sm:$0xff]  ;;  %v358_v0 = vsel %vm274_vm1, %v60_v59, 0.0 }
  0x2c   :  { %v317_v6 = vadd.f32 %v316_v1, %v315_v3  ;;  %v62_v1 = vld [vmem:[%s10262_s0 + $0x160] sm:$0xff]  ;;  %v360_v3 = vsel %vm274_vm1, %v61_v62, 0.0 }
  0x2e   :  { %v319_v9 = vadd.f32 %v318_v4, %v317_v6  ;;  %v63_v4 = vld [vmem:[%s10262_s0 + $0x168] sm:$0xff]  ;;  %v362_v6 = vsel %vm274_vm1, %v62_v1, 0.0 }
  0x30   :  { %v321_v12 = vadd.f32 %v320_v7, %v319_v9  ;;  %v64_v7 = vld [vmem:[%s10262_s0 + $0x170] sm:$0xff]  ;;  %v364_v9 = vsel %vm274_vm1, %v63_v4, 0.0 }
  0x32   :  { %v323_v15 = vadd.f32 %v322_v10, %v321_v12  ;;  %v65_v10 = vld [vmem:[%s10262_s0 + $0x178] sm:$0xff]  ;;  %v366_v12 = vsel %vm274_vm1, %v64_v7, 0.0 }
  0x34   :  { %v325_v18 = vadd.f32 %v324_v13, %v323_v15  ;;  %v66_v13 = vld [vmem:[%s10262_s0 + $0x180] sm:$0xff]  ;;  %v368_v15 = vsel %vm274_vm1, %v65_v10, 0.0 }
  0x36   :  { %v327_v21 = vadd.f32 %v326_v16, %v325_v18  ;;  %v67_v16 = vld [vmem:[%s10262_s0 + $0x188] sm:$0xff]  ;;  %v370_v18 = vsel %vm274_vm1, %v66_v13, 0.0 }
  0x38   :  { %v329_v24 = vadd.f32 %v328_v19, %v327_v21  ;;  %v68_v19 = vld [vmem:[%s10262_s0 + $0x190] sm:$0xff]  ;;  %v372_v21 = vsel %vm274_vm1, %v67_v16, 0.0 }
  0x3a   :  { %v331_v27 = vadd.f32 %v330_v22, %v329_v24  ;;  %v69_v22 = vld [vmem:[%s10262_s0 + $0x198] sm:$0xff]  ;;  %v374_v24 = vsel %vm274_vm1, %v68_v19, 0.0 }
  0x3c   :  { %v333_v30 = vadd.f32 %v332_v25, %v331_v27  ;;  %v70_v25 = vld [vmem:[%s10262_s0 + $0x1a0] sm:$0xff]  ;;  %v376_v27 = vsel %vm274_vm1, %v69_v22, 0.0 }
  0x3e   :  { %v335_v33 = vadd.f32 %v334_v28, %v333_v30  ;;  %v71_v28 = vld [vmem:[%s10262_s0 + $0x1a8] sm:$0xff]  ;;  %v378_v30 = vsel %vm274_vm1, %v70_v25, 0.0 }
  0x40   :  { %v337_v36 = vadd.f32 %v336_v31, %v335_v33  ;;  %v72_v31 = vld [vmem:[%s10262_s0 + $0x1b0] sm:$0xff]  ;;  %v380_v33 = vsel %vm274_vm1, %v71_v28, 0.0 }
  0x42   :  { %v339_v39 = vadd.f32 %v338_v34, %v337_v36  ;;  %v73_v34 = vld [vmem:[%s10262_s0 + $0x1b8] sm:$0xff]  ;;  %v382_v36 = vsel %vm274_vm1, %v72_v31, 0.0 }
  0x44   :  { %v341_v42 = vadd.f32 %v340_v37, %v339_v39  ;;  %v74_v37 = vld [vmem:[%s10262_s0 + $0x1c0] sm:$0xff]  ;;  %v384_v39 = vsel %vm274_vm1, %v73_v34, 0.0 }
  0x46   :  { %v343_v45 = vadd.f32 %v342_v40, %v341_v42  ;;  %v75_v40 = vld [vmem:[%s10262_s0 + $0x1c8] sm:$0xff]  ;;  %v386_v42 = vsel %vm274_vm1, %v74_v37, 0.0 }
  0x48   :  { %v345_v48 = vadd.f32 %v344_v43, %v343_v45  ;;  %v76_v43 = vld [vmem:[%s10262_s0 + $0x1d0] sm:$0xff]  ;;  %v388_v45 = vsel %vm274_vm1, %v75_v40, 0.0 }
  0x4a   :  { %v347_v51 = vadd.f32 %v346_v46, %v345_v48  ;;  %v77_v46 = vld [vmem:[%s10262_s0 + $0x1d8] sm:$0xff]  ;;  %v390_v48 = vsel %vm274_vm1, %v76_v43, 0.0 }
  0x4c   :  { %v349_v54 = vadd.f32 %v348_v49, %v347_v51  ;;  %v78_v49 = vld [vmem:[%s10262_s0 + $0x1e0] sm:$0xff]  ;;  %v392_v51 = vsel %vm274_vm1, %v77_v46, 0.0 }
  0x4e   :  { %v351_v57 = vadd.f32 %v350_v52, %v349_v54  ;;  %v79_v52 = vld [vmem:[%s10262_s0 + $0x1e8] sm:$0xff]  ;;  %v394_v54 = vsel %vm274_vm1, %v78_v49, 0.0 }
  0x50   :  { %v353_v60 = vadd.f32 %v352_v55, %v351_v57  ;;  %v80_v55 = vld [vmem:[%s10262_s0 + $0x1f0] sm:$0xff]  ;;  %v396_v57 = vsel %vm274_vm1, %v79_v52, 0.0 }
  0x52   :  { %v355_v63 = vadd.f32 %v354_v58, %v353_v60  ;;  %v81_v58 = vld [vmem:[%s10262_s0 + $0x1f8] sm:$0xff]  ;;  %v398_v60 = vsel %vm274_vm1, %v80_v55, 0.0 }
  0x54   :  { %v357_v2 = vadd.f32 %v356_v61, %v355_v63  ;;  %v82_v61 = vld [vmem:[%s10262_s0 + $0x200] sm:$0xff]  ;;  %v400_v63 = vsel %vm274_vm1, %v81_v58, 0.0 }
  0x56   :  { %v359_v5 = vadd.f32 %v358_v0, %v357_v2  ;;  %v83_v0 = vld [vmem:[%s10262_s0 + $0x208] sm:$0xff]  ;;  %v402_v2 = vsel %vm274_vm1, %v82_v61, 0.0 }
  0x58   :  { %v361_v8 = vadd.f32 %v360_v3, %v359_v5  ;;  %v84_v3 = vld [vmem:[%s10262_s0 + $0x210] sm:$0xff]  ;;  %v404_v5 = vsel %vm274_vm1, %v83_v0, 0.0 }
  0x5a   :  { %v363_v11 = vadd.f32 %v362_v6, %v361_v8  ;;  %v85_v6 = vld [vmem:[%s10262_s0 + $0x218] sm:$0xff]  ;;  %v406_v8 = vsel %vm274_vm1, %v84_v3, 0.0 }
  0x5c   :  { %v365_v14 = vadd.f32 %v364_v9, %v363_v11  ;;  %v86_v9 = vld [vmem:[%s10262_s0 + $0x220] sm:$0xff]  ;;  %v408_v11 = vsel %vm274_vm1, %v85_v6, 0.0 }
  0x5e   :  { %v367_v17 = vadd.f32 %v366_v12, %v365_v14  ;;  %v87_v12 = vld [vmem:[%s10262_s0 + $0x228] sm:$0xff]  ;;  %v410_v14 = vsel %vm274_vm1, %v86_v9, 0.0 }
  0x60   :  { %v369_v20 = vadd.f32 %v368_v15, %v367_v17  ;;  %v88_v15 = vld [vmem:[%s10262_s0 + $0x230] sm:$0xff]  ;;  %v412_v17 = vsel %vm274_vm1, %v87_v12, 0.0 }
  0x62   :  { %v371_v23 = vadd.f32 %v370_v18, %v369_v20  ;;  %v89_v18 = vld [vmem:[%s10262_s0 + $0x238] sm:$0xff]  ;;  %v414_v20 = vsel %vm274_vm1, %v88_v15, 0.0 }
  0x64   :  { %v373_v26 = vadd.f32 %v372_v21, %v371_v23  ;;  %v90_v21 = vld [vmem:[%s10262_s0 + $0x240] sm:$0xff]  ;;  %v416_v23 = vsel %vm274_vm1, %v89_v18, 0.0 }
  0x66   :  { %v375_v29 = vadd.f32 %v374_v24, %v373_v26  ;;  %v91_v24 = vld [vmem:[%s10262_s0 + $0x248] sm:$0xff]  ;;  %v418_v26 = vsel %vm274_vm1, %v90_v21, 0.0 }
  0x68   :  { %v377_v32 = vadd.f32 %v376_v27, %v375_v29  ;;  %v92_v27 = vld [vmem:[%s10262_s0 + $0x250] sm:$0xff]  ;;  %v420_v29 = vsel %vm274_vm1, %v91_v24, 0.0 }
  0x6a   :  { %v379_v35 = vadd.f32 %v378_v30, %v377_v32  ;;  %v93_v30 = vld [vmem:[%s10262_s0 + $0x258] sm:$0xff]  ;;  %v422_v32 = vsel %vm274_vm1, %v92_v27, 0.0 }
  0x6c   :  { %v381_v38 = vadd.f32 %v380_v33, %v379_v35  ;;  %v94_v33 = vld [vmem:[%s10262_s0 + $0x260] sm:$0xff]  ;;  %v424_v35 = vsel %vm274_vm1, %v93_v30, 0.0 }
  0x6e   :  { %v383_v41 = vadd.f32 %v382_v36, %v381_v38  ;;  %v95_v36 = vld [vmem:[%s10262_s0 + $0x268] sm:$0xff]  ;;  %v426_v38 = vsel %vm274_vm1, %v94_v33, 0.0 }
  0x70   :  { %v385_v44 = vadd.f32 %v384_v39, %v383_v41  ;;  %v96_v39 = vld [vmem:[%s10262_s0 + $0x270] sm:$0xff]  ;;  %v428_v41 = vsel %vm274_vm1, %v95_v36, 0.0 }
  0x72   :  { %v387_v47 = vadd.f32 %v386_v42, %v385_v44  ;;  %v97_v42 = vld [vmem:[%s10262_s0 + $0x278] sm:$0xff]  ;;  %v430_v44 = vsel %vm274_vm1, %v96_v39, 0.0 }
  0x74   :  { %v389_v50 = vadd.f32 %v388_v45, %v387_v47  ;;  %v98_v45 = vld [vmem:[%s10262_s0 + $0x280] sm:$0xff]  ;;  %v432_v47 = vsel %vm274_vm1, %v97_v42, 0.0 }
  0x76   :  { %v391_v53 = vadd.f32 %v390_v48, %v389_v50  ;;  %v99_v48 = vld [vmem:[%s10262_s0 + $0x288] sm:$0xff]  ;;  %v434_v50 = vsel %vm274_vm1, %v98_v45, 0.0 }
  0x78   :  { %v393_v56 = vadd.f32 %v392_v51, %v391_v53  ;;  %v100_v51 = vld [vmem:[%s10262_s0 + $0x290] sm:$0xff]  ;;  %v436_v53 = vsel %vm274_vm1, %v99_v48, 0.0 }
  0x7a   :  { %v395_v59 = vadd.f32 %v394_v54, %v393_v56  ;;  %v101_v54 = vld [vmem:[%s10262_s0 + $0x298] sm:$0xff]  ;;  %v438_v56 = vsel %vm274_vm1, %v100_v51, 0.0 }
  0x7c   :  { %v397_v62 = vadd.f32 %v396_v57, %v395_v59  ;;  %v102_v57 = vld [vmem:[%s10262_s0 + $0x2a0] sm:$0xff]  ;;  %v440_v59 = vsel %vm274_vm1, %v101_v54, 0.0 }
  0x7e   :  { %v399_v1 = vadd.f32 %v398_v60, %v397_v62  ;;  %v103_v60 = vld [vmem:[%s10262_s0 + $0x2a8] sm:$0xff]  ;;  %v442_v62 = vsel %vm274_vm1, %v102_v57, 0.0 }
  0x80   :  { %v401_v4 = vadd.f32 %v400_v63, %v399_v1  ;;  %v104_v63 = vld [vmem:[%s10262_s0 + $0x2b0] sm:$0xff]  ;;  %v444_v1 = vsel %vm274_vm1, %v103_v60, 0.0 }
  0x82   :  { %v403_v7 = vadd.f32 %v402_v2, %v401_v4  ;;  %v105_v2 = vld [vmem:[%s10262_s0 + $0x2b8] sm:$0xff]  ;;  %v446_v4 = vsel %vm274_vm1, %v104_v63, 0.0 }
  0x84   :  { %v405_v10 = vadd.f32 %v404_v5, %v403_v7  ;;  %v106_v5 = vld [vmem:[%s10262_s0 + $0x2c0] sm:$0xff]  ;;  %v448_v7 = vsel %vm274_vm1, %v105_v2, 0.0 }
  0x86   :  { %v407_v13 = vadd.f32 %v406_v8, %v405_v10  ;;  %v107_v8 = vld [vmem:[%s10262_s0 + $0x2c8] sm:$0xff]  ;;  %v450_v10 = vsel %vm274_vm1, %v106_v5, 0.0 }
  0x88   :  { %v409_v16 = vadd.f32 %v408_v11, %v407_v13  ;;  %v108_v11 = vld [vmem:[%s10262_s0 + $0x2d0] sm:$0xff]  ;;  %v452_v13 = vsel %vm274_vm1, %v107_v8, 0.0 }
  0x8a   :  { %v411_v19 = vadd.f32 %v410_v14, %v409_v16  ;;  %v109_v14 = vld [vmem:[%s10262_s0 + $0x2d8] sm:$0xff]  ;;  %v454_v16 = vsel %vm274_vm1, %v108_v11, 0.0 }
  0x8c   :  { %v413_v22 = vadd.f32 %v412_v17, %v411_v19  ;;  %v110_v17 = vld [vmem:[%s10262_s0 + $0x2e0] sm:$0xff]  ;;  %v456_v19 = vsel %vm274_vm1, %v109_v14, 0.0 }
  0x8e   :  { %v415_v25 = vadd.f32 %v414_v20, %v413_v22  ;;  %v111_v20 = vld [vmem:[%s10262_s0 + $0x2e8] sm:$0xff]  ;;  %v458_v22 = vsel %vm274_vm1, %v110_v17, 0.0 }
  0x90   :  { %v417_v28 = vadd.f32 %v416_v23, %v415_v25  ;;  %v112_v23 = vld [vmem:[%s10262_s0 + $0x2f0] sm:$0xff]  ;;  %v460_v25 = vsel %vm274_vm1, %v111_v20, 0.0 }
  0x92   :  { %v419_v31 = vadd.f32 %v418_v26, %v417_v28  ;;  %v113_v26 = vld [vmem:[%s10262_s0 + $0x2f8] sm:$0xff]  ;;  %v462_v28 = vsel %vm274_vm1, %v112_v23, 0.0 }
  0x94   :  { %v421_v34 = vadd.f32 %v420_v29, %v419_v31  ;;  %v114_v29 = vld [vmem:[%s10262_s0 + $0x300] sm:$0xff]  ;;  %v464_v31 = vsel %vm274_vm1, %v113_v26, 0.0 }
  0x96   :  { %v423_v37 = vadd.f32 %v422_v32, %v421_v34  ;;  %v115_v32 = vld [vmem:[%s10262_s0 + $0x308] sm:$0xff]  ;;  %v466_v34 = vsel %vm274_vm1, %v114_v29, 0.0 }
  0x98   :  { %v425_v40 = vadd.f32 %v424_v35, %v423_v37  ;;  %v116_v35 = vld [vmem:[%s10262_s0 + $0x310] sm:$0xff]  ;;  %v468_v37 = vsel %vm274_vm1, %v115_v32, 0.0 }
  0x9a   :  { %v427_v43 = vadd.f32 %v426_v38, %v425_v40  ;;  %v117_v38 = vld [vmem:[%s10262_s0 + $0x318] sm:$0xff]  ;;  %v470_v40 = vsel %vm274_vm1, %v116_v35, 0.0 }
  0x9c   :  { %v429_v46 = vadd.f32 %v428_v41, %v427_v43  ;;  %v118_v41 = vld [vmem:[%s10262_s0 + $0x320] sm:$0xff]  ;;  %v472_v43 = vsel %vm274_vm1, %v117_v38, 0.0 }
  0x9e   :  { %v431_v49 = vadd.f32 %v430_v44, %v429_v46  ;;  %v119_v44 = vld [vmem:[%s10262_s0 + $0x328] sm:$0xff]  ;;  %v474_v46 = vsel %vm274_vm1, %v118_v41, 0.0 }
  0xa0   :  { %v433_v52 = vadd.f32 %v432_v47, %v431_v49  ;;  %v120_v47 = vld [vmem:[%s10262_s0 + $0x330] sm:$0xff]  ;;  %v476_v49 = vsel %vm274_vm1, %v119_v44, 0.0 }
  0xa2   :  { %v435_v55 = vadd.f32 %v434_v50, %v433_v52  ;;  %v121_v50 = vld [vmem:[%s10262_s0 + $0x338] sm:$0xff]  ;;  %v478_v52 = vsel %vm274_vm1, %v120_v47, 0.0 }
  0xa4   :  { %v437_v58 = vadd.f32 %v436_v53, %v435_v55  ;;  %v122_v53 = vld [vmem:[%s10262_s0 + $0x340] sm:$0xff]  ;;  %v480_v55 = vsel %vm274_vm1, %v121_v50, 0.0 }
  0xa6   :  { %v439_v61 = vadd.f32 %v438_v56, %v437_v58  ;;  %v123_v56 = vld [vmem:[%s10262_s0 + $0x348] sm:$0xff]  ;;  %v482_v58 = vsel %vm274_vm1, %v122_v53, 0.0 }
  0xa8   :  { %v441_v0 = vadd.f32 %v440_v59, %v439_v61  ;;  %v124_v59 = vld [vmem:[%s10262_s0 + $0x350] sm:$0xff]  ;;  %v484_v61 = vsel %vm274_vm1, %v123_v56, 0.0 }
  0xaa   :  { %v443_v3 = vadd.f32 %v442_v62, %v441_v0  ;;  %v125_v62 = vld [vmem:[%s10262_s0 + $0x358] sm:$0xff]  ;;  %v486_v0 = vsel %vm274_vm1, %v124_v59, 0.0 }
  0xac   :  { %v445_v6 = vadd.f32 %v444_v1, %v443_v3  ;;  %v126_v1 = vld [vmem:[%s10262_s0 + $0x360] sm:$0xff]  ;;  %v488_v3 = vsel %vm274_vm1, %v125_v62, 0.0 }
  0xae   :  { %v447_v9 = vadd.f32 %v446_v4, %v445_v6  ;;  %v127_v4 = vld [vmem:[%s10262_s0 + $0x368] sm:$0xff]  ;;  %v490_v6 = vsel %vm274_vm1, %v126_v1, 0.0 }
  0xb0   :  { %v449_v12 = vadd.f32 %v448_v7, %v447_v9  ;;  %v128_v7 = vld [vmem:[%s10262_s0 + $0x370] sm:$0xff]  ;;  %v492_v9 = vsel %vm274_vm1, %v127_v4, 0.0 }
  0xb2   :  { %v451_v15 = vadd.f32 %v450_v10, %v449_v12  ;;  %v129_v10 = vld [vmem:[%s10262_s0 + $0x378] sm:$0xff]  ;;  %v494_v12 = vsel %vm274_vm1, %v128_v7, 0.0 }
  0xb4   :  { %v453_v18 = vadd.f32 %v452_v13, %v451_v15  ;;  %v130_v13 = vld [vmem:[%s10262_s0 + $0x380] sm:$0xff]  ;;  %v496_v15 = vsel %vm274_vm1, %v129_v10, 0.0 }
  0xb6   :  { %v455_v21 = vadd.f32 %v454_v16, %v453_v18  ;;  %v131_v16 = vld [vmem:[%s10262_s0 + $0x388] sm:$0xff]  ;;  %v498_v18 = vsel %vm274_vm1, %v130_v13, 0.0 }
  0xb8   :  { %v457_v24 = vadd.f32 %v456_v19, %v455_v21  ;;  %v132_v19 = vld [vmem:[%s10262_s0 + $0x390] sm:$0xff]  ;;  %v500_v21 = vsel %vm274_vm1, %v131_v16, 0.0 }
  0xba   :  { %v459_v27 = vadd.f32 %v458_v22, %v457_v24  ;;  %v133_v22 = vld [vmem:[%s10262_s0 + $0x398] sm:$0xff]  ;;  %v502_v24 = vsel %vm274_vm1, %v132_v19, 0.0 }
  0xbc   :  { %v461_v30 = vadd.f32 %v460_v25, %v459_v27  ;;  %v134_v25 = vld [vmem:[%s10262_s0 + $0x3a0] sm:$0xff]  ;;  %v504_v27 = vsel %vm274_vm1, %v133_v22, 0.0 }
  0xbe   :  { %v463_v33 = vadd.f32 %v462_v28, %v461_v30  ;;  %v135_v28 = vld [vmem:[%s10262_s0 + $0x3a8] sm:$0xff]  ;;  %v506_v30 = vsel %vm274_vm1, %v134_v25, 0.0 }
  0xc0   :  { %v465_v36 = vadd.f32 %v464_v31, %v463_v33  ;;  %v136_v31 = vld [vmem:[%s10262_s0 + $0x3b0] sm:$0xff]  ;;  %v508_v33 = vsel %vm274_vm1, %v135_v28, 0.0 }
  0xc2   :  { %v467_v39 = vadd.f32 %v466_v34, %v465_v36  ;;  %v137_v34 = vld [vmem:[%s10262_s0 + $0x3b8] sm:$0xff]  ;;  %v510_v36 = vsel %vm274_vm1, %v136_v31, 0.0 }
  0xc4   :  { %v469_v42 = vadd.f32 %v468_v37, %v467_v39  ;;  %v138_v37 = vld [vmem:[%s10262_s0 + $0x3c0] sm:$0xff]  ;;  %v512_v39 = vsel %vm274_vm1, %v137_v34, 0.0 }
  0xc6   :  { %v471_v45 = vadd.f32 %v470_v40, %v469_v42  ;;  %v139_v40 = vld [vmem:[%s10262_s0 + $0x3c8] sm:$0xff]  ;;  %v514_v42 = vsel %vm274_vm1, %v138_v37, 0.0 }
  0xc8   :  { %v473_v48 = vadd.f32 %v472_v43, %v471_v45  ;;  %v140_v43 = vld [vmem:[%s10262_s0 + $0x3d0] sm:$0xff]  ;;  %v516_v45 = vsel %vm274_vm1, %v139_v40, 0.0 }
  0xca   :  { %v475_v51 = vadd.f32 %v474_v46, %v473_v48  ;;  %v141_v46 = vld [vmem:[%s10262_s0 + $0x3d8] sm:$0xff]  ;;  %v518_v48 = vsel %vm274_vm1, %v140_v43, 0.0 }
  0xcc   :  { %v477_v54 = vadd.f32 %v476_v49, %v475_v51  ;;  %v142_v49 = vld [vmem:[%s10262_s0 + $0x3e0] sm:$0xff]  ;;  %v520_v51 = vsel %vm274_vm1, %v141_v46, 0.0 }
  0xce   :  { %v479_v57 = vadd.f32 %v478_v52, %v477_v54  ;;  %v143_v52 = vld [vmem:[%s10262_s0 + $0x3e8] sm:$0xff]  ;;  %v522_v54 = vsel %vm274_vm1, %v142_v49, 0.0 }
  0xd0   :  { %v481_v60 = vadd.f32 %v480_v55, %v479_v57  ;;  %v144_v55 = vld [vmem:[%s10262_s0 + $0x3f0] sm:$0xff]  ;;  %v524_v57 = vsel %vm274_vm1, %v143_v52, 0.0 }
  0xd2   :  { %v483_v63 = vadd.f32 %v482_v58, %v481_v60  ;;  %v145_v58 = vld [vmem:[%s10262_s0 + $0x3f8] sm:$0xff]  ;;  %v526_v60 = vsel %vm274_vm1, %v144_v55, 0.0 }
  0xd4   :  { %v485_v2 = vadd.f32 %v484_v61, %v483_v63  ;;  %v146_v61 = vld [vmem:[%s10262_s0 + $0x400] sm:$0xff]  ;;  %v528_v63 = vsel %vm274_vm1, %v145_v58, 0.0 }
  0xd6   :  { %v487_v5 = vadd.f32 %v486_v0, %v485_v2  ;;  %v147_v0 = vld [vmem:[%s10262_s0 + $0x408] sm:$0xff]  ;;  %v530_v2 = vsel %vm274_vm1, %v146_v61, 0.0 }
  0xd8   :  { %v489_v8 = vadd.f32 %v488_v3, %v487_v5  ;;  %v148_v3 = vld [vmem:[%s10262_s0 + $0x410] sm:$0xff]  ;;  %v532_v5 = vsel %vm274_vm1, %v147_v0, 0.0 }
  0xda   :  { %v491_v11 = vadd.f32 %v490_v6, %v489_v8  ;;  %v149_v6 = vld [vmem:[%s10262_s0 + $0x418] sm:$0xff]  ;;  %v534_v8 = vsel %vm274_vm1, %v148_v3, 0.0 }
  0xdc   :  { %v493_v14 = vadd.f32 %v492_v9, %v491_v11  ;;  %v150_v9 = vld [vmem:[%s10262_s0 + $0x420] sm:$0xff]  ;;  %v536_v11 = vsel %vm274_vm1, %v149_v6, 0.0 }
  0xde   :  { %v495_v17 = vadd.f32 %v494_v12, %v493_v14  ;;  %v151_v12 = vld [vmem:[%s10262_s0 + $0x428] sm:$0xff]  ;;  %v538_v14 = vsel %vm274_vm1, %v150_v9, 0.0 }
  0xe0   :  { %v497_v20 = vadd.f32 %v496_v15, %v495_v17  ;;  %v152_v15 = vld [vmem:[%s10262_s0 + $0x430] sm:$0xff]  ;;  %v540_v17 = vsel %vm274_vm1, %v151_v12, 0.0 }
  0xe2   :  { %v499_v23 = vadd.f32 %v498_v18, %v497_v20  ;;  %v153_v18 = vld [vmem:[%s10262_s0 + $0x438] sm:$0xff]  ;;  %v542_v20 = vsel %vm274_vm1, %v152_v15, 0.0 }
  0xe4   :  { %v501_v26 = vadd.f32 %v500_v21, %v499_v23  ;;  %v154_v21 = vld [vmem:[%s10262_s0 + $0x440] sm:$0xff]  ;;  %v544_v23 = vsel %vm274_vm1, %v153_v18, 0.0 }
  0xe6   :  { %v503_v29 = vadd.f32 %v502_v24, %v501_v26  ;;  %v155_v24 = vld [vmem:[%s10262_s0 + $0x448] sm:$0xff]  ;;  %v546_v26 = vsel %vm274_vm1, %v154_v21, 0.0 }
  0xe8   :  { %v505_v32 = vadd.f32 %v504_v27, %v503_v29  ;;  %v156_v27 = vld [vmem:[%s10262_s0 + $0x450] sm:$0xff]  ;;  %v548_v29 = vsel %vm274_vm1, %v155_v24, 0.0 }
  0xea   :  { %v507_v35 = vadd.f32 %v506_v30, %v505_v32  ;;  %v157_v30 = vld [vmem:[%s10262_s0 + $0x458] sm:$0xff]  ;;  %v550_v32 = vsel %vm274_vm1, %v156_v27, 0.0 }
  0xec   :  { %v509_v38 = vadd.f32 %v508_v33, %v507_v35  ;;  %v158_v33 = vld [vmem:[%s10262_s0 + $0x460] sm:$0xff]  ;;  %v552_v35 = vsel %vm274_vm1, %v157_v30, 0.0 }
  0xee   :  { %v511_v41 = vadd.f32 %v510_v36, %v509_v38  ;;  %v159_v36 = vld [vmem:[%s10262_s0 + $0x468] sm:$0xff]  ;;  %v554_v38 = vsel %vm274_vm1, %v158_v33, 0.0 }
  0xf0   :  { %v513_v44 = vadd.f32 %v512_v39, %v511_v41  ;;  %v160_v39 = vld [vmem:[%s10262_s0 + $0x470] sm:$0xff]  ;;  %v556_v41 = vsel %vm274_vm1, %v159_v36, 0.0 }
  0xf2   :  { %v515_v47 = vadd.f32 %v514_v42, %v513_v44  ;;  %v161_v42 = vld [vmem:[%s10262_s0 + $0x478] sm:$0xff]  ;;  %v558_v44 = vsel %vm274_vm1, %v160_v39, 0.0 }
  0xf4   :  { %v517_v50 = vadd.f32 %v516_v45, %v515_v47  ;;  %v162_v45 = vld [vmem:[%s10262_s0 + $0x480] sm:$0xff]  ;;  %v560_v47 = vsel %vm274_vm1, %v161_v42, 0.0 }
  0xf6   :  { %v519_v53 = vadd.f32 %v518_v48, %v517_v50  ;;  %v163_v48 = vld [vmem:[%s10262_s0 + $0x488] sm:$0xff]  ;;  %v562_v50 = vsel %vm274_vm1, %v162_v45, 0.0 }
  0xf8   :  { %v521_v56 = vadd.f32 %v520_v51, %v519_v53  ;;  %v164_v51 = vld [vmem:[%s10262_s0 + $0x490] sm:$0xff]  ;;  %v564_v53 = vsel %vm274_vm1, %v163_v48, 0.0 }
  0xfa   :  { %v523_v59 = vadd.f32 %v522_v54, %v521_v56  ;;  %v165_v54 = vld [vmem:[%s10262_s0 + $0x498] sm:$0xff]  ;;  %v566_v56 = vsel %vm274_vm1, %v164_v51, 0.0 }
  0xfc   :  { %v525_v62 = vadd.f32 %v524_v57, %v523_v59  ;;  %v166_v57 = vld [vmem:[%s10262_s0 + $0x4a0] sm:$0xff]  ;;  %v568_v59 = vsel %vm274_vm1, %v165_v54, 0.0 }
  0xfe   :  { %v527_v1 = vadd.f32 %v526_v60, %v525_v62  ;;  %v167_v60 = vld [vmem:[%s10262_s0 + $0x4a8] sm:$0xff]  ;;  %v570_v62 = vsel %vm274_vm1, %v166_v57, 0.0 }
 0x100   :  { %v529_v4 = vadd.f32 %v528_v63, %v527_v1  ;;  %v168_v63 = vld [vmem:[%s10262_s0 + $0x4b0] sm:$0xff]  ;;  %v572_v1 = vsel %vm274_vm1, %v167_v60, 0.0 }
 0x102   :  { %v531_v7 = vadd.f32 %v530_v2, %v529_v4  ;;  %v169_v2 = vld [vmem:[%s10262_s0 + $0x4b8] sm:$0xff]  ;;  %v574_v4 = vsel %vm274_vm1, %v168_v63, 0.0 }
 0x104   :  { %v533_v10 = vadd.f32 %v532_v5, %v531_v7  ;;  %v170_v5 = vld [vmem:[%s10262_s0 + $0x4c0] sm:$0xff]  ;;  %v576_v7 = vsel %vm274_vm1, %v169_v2, 0.0 }
 0x106   :  { %v535_v13 = vadd.f32 %v534_v8, %v533_v10  ;;  %v171_v8 = vld [vmem:[%s10262_s0 + $0x4c8] sm:$0xff]  ;;  %v578_v10 = vsel %vm274_vm1, %v170_v5, 0.0 }
 0x108   :  { %v537_v16 = vadd.f32 %v536_v11, %v535_v13  ;;  %v172_v11 = vld [vmem:[%s10262_s0 + $0x4d0] sm:$0xff]  ;;  %v580_v13 = vsel %vm274_vm1, %v171_v8, 0.0 }
 0x10a   :  { %v539_v19 = vadd.f32 %v538_v14, %v537_v16  ;;  %v173_v14 = vld [vmem:[%s10262_s0 + $0x4d8] sm:$0xff]  ;;  %v582_v16 = vsel %vm274_vm1, %v172_v11, 0.0 }
 0x10c   :  { %v541_v22 = vadd.f32 %v540_v17, %v539_v19  ;;  %v174_v17 = vld [vmem:[%s10262_s0 + $0x4e0] sm:$0xff]  ;;  %v584_v19 = vsel %vm274_vm1, %v173_v14, 0.0 }
 0x10e   :  { %v543_v25 = vadd.f32 %v542_v20, %v541_v22  ;;  %v175_v20 = vld [vmem:[%s10262_s0 + $0x4e8] sm:$0xff]  ;;  %v586_v22 = vsel %vm274_vm1, %v174_v17, 0.0 }
 0x110   :  { %v545_v28 = vadd.f32 %v544_v23, %v543_v25  ;;  %v176_v23 = vld [vmem:[%s10262_s0 + $0x4f0] sm:$0xff]  ;;  %v588_v25 = vsel %vm274_vm1, %v175_v20, 0.0 }
 0x112   :  { %v547_v31 = vadd.f32 %v546_v26, %v545_v28  ;;  %v177_v26 = vld [vmem:[%s10262_s0 + $0x4f8] sm:$0xff]  ;;  %v590_v28 = vsel %vm274_vm1, %v176_v23, 0.0 }
 0x114   :  { %v549_v34 = vadd.f32 %v548_v29, %v547_v31  ;;  %v178_v29 = vld [vmem:[%s10262_s0 + $0x500] sm:$0xff]  ;;  %v592_v31 = vsel %vm274_vm1, %v177_v26, 0.0 }
 0x116   :  { %v551_v37 = vadd.f32 %v550_v32, %v549_v34  ;;  %v179_v32 = vld [vmem:[%s10262_s0 + $0x508] sm:$0xff]  ;;  %v594_v34 = vsel %vm274_vm1, %v178_v29, 0.0 }
 0x118   :  { %v553_v40 = vadd.f32 %v552_v35, %v551_v37  ;;  %v180_v35 = vld [vmem:[%s10262_s0 + $0x510] sm:$0xff]  ;;  %v596_v37 = vsel %vm274_vm1, %v179_v32, 0.0 }
 0x11a   :  { %v555_v43 = vadd.f32 %v554_v38, %v553_v40  ;;  %v181_v38 = vld [vmem:[%s10262_s0 + $0x518] sm:$0xff]  ;;  %v598_v40 = vsel %vm274_vm1, %v180_v35, 0.0 }
 0x11c   :  { %v557_v46 = vadd.f32 %v556_v41, %v555_v43  ;;  %v182_v41 = vld [vmem:[%s10262_s0 + $0x520] sm:$0xff]  ;;  %v600_v43 = vsel %vm274_vm1, %v181_v38, 0.0 }
 0x11e   :  { %v559_v49 = vadd.f32 %v558_v44, %v557_v46  ;;  %v183_v44 = vld [vmem:[%s10262_s0 + $0x528] sm:$0xff]  ;;  %v602_v46 = vsel %vm274_vm1, %v182_v41, 0.0 }
 0x120   :  { %v561_v52 = vadd.f32 %v560_v47, %v559_v49  ;;  %v184_v47 = vld [vmem:[%s10262_s0 + $0x530] sm:$0xff]  ;;  %v604_v49 = vsel %vm274_vm1, %v183_v44, 0.0 }
 0x122   :  { %v563_v55 = vadd.f32 %v562_v50, %v561_v52  ;;  %v185_v50 = vld [vmem:[%s10262_s0 + $0x538] sm:$0xff]  ;;  %v606_v52 = vsel %vm274_vm1, %v184_v47, 0.0 }
 0x124   :  { %v565_v58 = vadd.f32 %v564_v53, %v563_v55  ;;  %v186_v53 = vld [vmem:[%s10262_s0 + $0x540] sm:$0xff]  ;;  %v608_v55 = vsel %vm274_vm1, %v185_v50, 0.0 }
 0x126   :  { %v567_v61 = vadd.f32 %v566_v56, %v565_v58  ;;  %v187_v56 = vld [vmem:[%s10262_s0 + $0x548] sm:$0xff]  ;;  %v610_v58 = vsel %vm274_vm1, %v186_v53, 0.0 }
 0x128   :  { %v569_v0 = vadd.f32 %v568_v59, %v567_v61  ;;  %v188_v59 = vld [vmem:[%s10262_s0 + $0x550] sm:$0xff]  ;;  %v612_v61 = vsel %vm274_vm1, %v187_v56, 0.0 }
 0x12a   :  { %v571_v3 = vadd.f32 %v570_v62, %v569_v0  ;;  %v189_v62 = vld [vmem:[%s10262_s0 + $0x558] sm:$0xff]  ;;  %v614_v0 = vsel %vm274_vm1, %v188_v59, 0.0 }
 0x12c   :  { %v573_v6 = vadd.f32 %v572_v1, %v571_v3  ;;  %v190_v1 = vld [vmem:[%s10262_s0 + $0x560] sm:$0xff]  ;;  %v616_v3 = vsel %vm274_vm1, %v189_v62, 0.0 }
 0x12e   :  { %v575_v9 = vadd.f32 %v574_v4, %v573_v6  ;;  %v191_v4 = vld [vmem:[%s10262_s0 + $0x568] sm:$0xff]  ;;  %v618_v6 = vsel %vm274_vm1, %v190_v1, 0.0 }
 0x130   :  { %v577_v12 = vadd.f32 %v576_v7, %v575_v9  ;;  %v192_v7 = vld [vmem:[%s10262_s0 + $0x570] sm:$0xff]  ;;  %v620_v9 = vsel %vm274_vm1, %v191_v4, 0.0 }
 0x132   :  { %v579_v15 = vadd.f32 %v578_v10, %v577_v12  ;;  %v193_v10 = vld [vmem:[%s10262_s0 + $0x578] sm:$0xff]  ;;  %v622_v12 = vsel %vm274_vm1, %v192_v7, 0.0 }
 0x134   :  { %v581_v18 = vadd.f32 %v580_v13, %v579_v15  ;;  %v194_v13 = vld [vmem:[%s10262_s0 + $0x580] sm:$0xff]  ;;  %v624_v15 = vsel %vm274_vm1, %v193_v10, 0.0 }
 0x136   :  { %v583_v21 = vadd.f32 %v582_v16, %v581_v18  ;;  %v195_v16 = vld [vmem:[%s10262_s0 + $0x588] sm:$0xff]  ;;  %v626_v18 = vsel %vm274_vm1, %v194_v13, 0.0 }
 0x138   :  { %v585_v24 = vadd.f32 %v584_v19, %v583_v21  ;;  %v196_v19 = vld [vmem:[%s10262_s0 + $0x590] sm:$0xff]  ;;  %v628_v21 = vsel %vm274_vm1, %v195_v16, 0.0 }
 0x13a   :  { %v587_v27 = vadd.f32 %v586_v22, %v585_v24  ;;  %v197_v22 = vld [vmem:[%s10262_s0 + $0x598] sm:$0xff]  ;;  %v630_v24 = vsel %vm274_vm1, %v196_v19, 0.0 }
 0x13c   :  { %v589_v30 = vadd.f32 %v588_v25, %v587_v27  ;;  %v198_v25 = vld [vmem:[%s10262_s0 + $0x5a0] sm:$0xff]  ;;  %v632_v27 = vsel %vm274_vm1, %v197_v22, 0.0 }
 0x13e   :  { %v591_v33 = vadd.f32 %v590_v28, %v589_v30  ;;  %v199_v28 = vld [vmem:[%s10262_s0 + $0x5a8] sm:$0xff]  ;;  %v634_v30 = vsel %vm274_vm1, %v198_v25, 0.0 }
 0x140   :  { %v593_v36 = vadd.f32 %v592_v31, %v591_v33  ;;  %v200_v31 = vld [vmem:[%s10262_s0 + $0x5b0] sm:$0xff]  ;;  %v636_v33 = vsel %vm274_vm1, %v199_v28, 0.0 }
 0x142   :  { %v595_v39 = vadd.f32 %v594_v34, %v593_v36  ;;  %v201_v34 = vld [vmem:[%s10262_s0 + $0x5b8] sm:$0xff]  ;;  %v638_v36 = vsel %vm274_vm1, %v200_v31, 0.0 }
 0x144   :  { %v597_v42 = vadd.f32 %v596_v37, %v595_v39  ;;  %v202_v37 = vld [vmem:[%s10262_s0 + $0x5c0] sm:$0xff]  ;;  %v640_v39 = vsel %vm274_vm1, %v201_v34, 0.0 }
 0x146   :  { %v599_v45 = vadd.f32 %v598_v40, %v597_v42  ;;  %v203_v40 = vld [vmem:[%s10262_s0 + $0x5c8] sm:$0xff]  ;;  %v642_v42 = vsel %vm274_vm1, %v202_v37, 0.0 }
 0x148   :  { %v601_v48 = vadd.f32 %v600_v43, %v599_v45  ;;  %v204_v43 = vld [vmem:[%s10262_s0 + $0x5d0] sm:$0xff]  ;;  %v644_v45 = vsel %vm274_vm1, %v203_v40, 0.0 }
 0x14a   :  { %v603_v51 = vadd.f32 %v602_v46, %v601_v48  ;;  %v205_v46 = vld [vmem:[%s10262_s0 + $0x5d8] sm:$0xff]  ;;  %v646_v48 = vsel %vm274_vm1, %v204_v43, 0.0 }
 0x14c   :  { %v605_v54 = vadd.f32 %v604_v49, %v603_v51  ;;  %v206_v49 = vld [vmem:[%s10262_s0 + $0x5e0] sm:$0xff]  ;;  %v648_v51 = vsel %vm274_vm1, %v205_v46, 0.0 }
 0x14e   :  { %v607_v57 = vadd.f32 %v606_v52, %v605_v54  ;;  %v207_v52 = vld [vmem:[%s10262_s0 + $0x5e8] sm:$0xff]  ;;  %v650_v54 = vsel %vm274_vm1, %v206_v49, 0.0 }
 0x150   :  { %v609_v60 = vadd.f32 %v608_v55, %v607_v57  ;;  %v208_v55 = vld [vmem:[%s10262_s0 + $0x5f0] sm:$0xff]  ;;  %v652_v57 = vsel %vm274_vm1, %v207_v52, 0.0 }
 0x152   :  { %v611_v63 = vadd.f32 %v610_v58, %v609_v60  ;;  %v209_v58 = vld [vmem:[%s10262_s0 + $0x5f8] sm:$0xff]  ;;  %v654_v60 = vsel %vm274_vm1, %v208_v55, 0.0 }
 0x154   :  { %v613_v2 = vadd.f32 %v612_v61, %v611_v63  ;;  %v210_v61 = vld [vmem:[%s10262_s0 + $0x600] sm:$0xff]  ;;  %v656_v63 = vsel %vm274_vm1, %v209_v58, 0.0 }
 0x156   :  { %v615_v5 = vadd.f32 %v614_v0, %v613_v2  ;;  %v211_v0 = vld [vmem:[%s10262_s0 + $0x608] sm:$0xff]  ;;  %v658_v2 = vsel %vm274_vm1, %v210_v61, 0.0 }
 0x158   :  { %v617_v8 = vadd.f32 %v616_v3, %v615_v5  ;;  %v212_v3 = vld [vmem:[%s10262_s0 + $0x610] sm:$0xff]  ;;  %v660_v5 = vsel %vm274_vm1, %v211_v0, 0.0 }
 0x15a   :  { %v619_v11 = vadd.f32 %v618_v6, %v617_v8  ;;  %v213_v6 = vld [vmem:[%s10262_s0 + $0x618] sm:$0xff]  ;;  %v662_v8 = vsel %vm274_vm1, %v212_v3, 0.0 }
 0x15c   :  { %v621_v14 = vadd.f32 %v620_v9, %v619_v11  ;;  %v214_v9 = vld [vmem:[%s10262_s0 + $0x620] sm:$0xff]  ;;  %v664_v11 = vsel %vm274_vm1, %v213_v6, 0.0 }
 0x15e   :  { %v623_v17 = vadd.f32 %v622_v12, %v621_v14  ;;  %v215_v12 = vld [vmem:[%s10262_s0 + $0x628] sm:$0xff]  ;;  %v666_v14 = vsel %vm274_vm1, %v214_v9, 0.0 }
 0x160   :  { %v625_v20 = vadd.f32 %v624_v15, %v623_v17  ;;  %v216_v15 = vld [vmem:[%s10262_s0 + $0x630] sm:$0xff]  ;;  %v668_v17 = vsel %vm274_vm1, %v215_v12, 0.0 }
 0x162   :  { %v627_v23 = vadd.f32 %v626_v18, %v625_v20  ;;  %v217_v18 = vld [vmem:[%s10262_s0 + $0x638] sm:$0xff]  ;;  %v670_v20 = vsel %vm274_vm1, %v216_v15, 0.0 }
 0x164   :  { %v629_v26 = vadd.f32 %v628_v21, %v627_v23  ;;  %v218_v21 = vld [vmem:[%s10262_s0 + $0x640] sm:$0xff]  ;;  %v672_v23 = vsel %vm274_vm1, %v217_v18, 0.0 }
 0x166   :  { %v631_v29 = vadd.f32 %v630_v24, %v629_v26  ;;  %v219_v24 = vld [vmem:[%s10262_s0 + $0x648] sm:$0xff]  ;;  %v674_v26 = vsel %vm274_vm1, %v218_v21, 0.0 }
 0x168   :  { %v633_v32 = vadd.f32 %v632_v27, %v631_v29  ;;  %v220_v27 = vld [vmem:[%s10262_s0 + $0x650] sm:$0xff]  ;;  %v676_v29 = vsel %vm274_vm1, %v219_v24, 0.0 }
 0x16a   :  { %v635_v35 = vadd.f32 %v634_v30, %v633_v32  ;;  %v221_v30 = vld [vmem:[%s10262_s0 + $0x658] sm:$0xff]  ;;  %v678_v32 = vsel %vm274_vm1, %v220_v27, 0.0 }
 0x16b   :  { %v680_v34 = vsel %vm274_vm1, %v221_v30, 0.0 }
 0x16c   :  { %v637_v38 = vadd.f32 %v636_v33, %v635_v35  ;;  %v222_v35 = vld [vmem:[%s10262_s0 + $0x660] sm:$0xff] }
 0x16e   :  { %v639_v41 = vadd.f32 %v638_v36, %v637_v38  ;;  %v682_v38 = vsel %vm274_vm1, %v222_v35, 0.0  ;;  %v243_v35 = vld [vmem:[%s10262_s0 + $0x708] sm:$0xff] }
 0x170   :  { %v641_v44 = vadd.f32 %v640_v39, %v639_v41  ;;  %v223_v39 = vld [vmem:[%s10262_s0 + $0x668] sm:$0xff] }
 0x171   :  { %v684_v41 = vsel %vm274_vm1, %v223_v39, 0.0 }
 0x172   :  { %v643_v47 = vadd.f32 %v642_v42, %v641_v44  ;;  %v224_v42 = vld [vmem:[%s10262_s0 + $0x670] sm:$0xff] }
 0x173   :  { %v686_v44 = vsel %vm274_vm1, %v224_v42, 0.0 }
 0x174   :  { %v645_v50 = vadd.f32 %v644_v45, %v643_v47  ;;  %v225_v45 = vld [vmem:[%s10262_s0 + $0x678] sm:$0xff] }
 0x175   :  { %v688_v47 = vsel %vm274_vm1, %v225_v45, 0.0 }
 0x176   :  { %v647_v53 = vadd.f32 %v646_v48, %v645_v50  ;;  %v226_v48 = vld [vmem:[%s10262_s0 + $0x680] sm:$0xff] }
 0x177   :  { %v690_v50 = vsel %vm274_vm1, %v226_v48, 0.0 }
 0x178   :  { %v649_v56 = vadd.f32 %v648_v51, %v647_v53  ;;  %v227_v51 = vld [vmem:[%s10262_s0 + $0x688] sm:$0xff] }
 0x179   :  { %v692_v53 = vsel %vm274_vm1, %v227_v51, 0.0 }
 0x17a   :  { %v651_v59 = vadd.f32 %v650_v54, %v649_v56  ;;  %v228_v54 = vld [vmem:[%s10262_s0 + $0x690] sm:$0xff] }
 0x17b   :  { %v694_v56 = vsel %vm274_vm1, %v228_v54, 0.0 }
 0x17c   :  { %v653_v62 = vadd.f32 %v652_v57, %v651_v59  ;;  %v229_v57 = vld [vmem:[%s10262_s0 + $0x698] sm:$0xff] }
 0x17d   :  { %v696_v59 = vsel %vm274_vm1, %v229_v57, 0.0 }
 0x17e   :  { %v655_v1 = vadd.f32 %v654_v60, %v653_v62  ;;  %v230_v60 = vld [vmem:[%s10262_s0 + $0x6a0] sm:$0xff] }
 0x17f   :  { %v698_v62 = vsel %vm274_vm1, %v230_v60, 0.0 }
 0x180   :  { %v657_v4 = vadd.f32 %v656_v63, %v655_v1  ;;  %v231_v63 = vld [vmem:[%s10262_s0 + $0x6a8] sm:$0xff] }
 0x181   :  { %v700_v1 = vsel %vm274_vm1, %v231_v63, 0.0 }
 0x182   :  { %v659_v7 = vadd.f32 %v658_v2, %v657_v4  ;;  %v232_v2 = vld [vmem:[%s10262_s0 + $0x6b0] sm:$0xff] }
 0x183   :  { %v702_v4 = vsel %vm274_vm1, %v232_v2, 0.0 }
 0x184   :  { %v661_v10 = vadd.f32 %v660_v5, %v659_v7  ;;  %v233_v5 = vld [vmem:[%s10262_s0 + $0x6b8] sm:$0xff] }
 0x185   :  { %v704_v7 = vsel %vm274_vm1, %v233_v5, 0.0 }
 0x186   :  { %v663_v13 = vadd.f32 %v662_v8, %v661_v10  ;;  %v234_v8 = vld [vmem:[%s10262_s0 + $0x6c0] sm:$0xff] }
 0x187   :  { %v706_v10 = vsel %vm274_vm1, %v234_v8, 0.0 }
 0x188   :  { %v665_v16 = vadd.f32 %v664_v11, %v663_v13  ;;  %v235_v11 = vld [vmem:[%s10262_s0 + $0x6c8] sm:$0xff] }
 0x189   :  { %v708_v13 = vsel %vm274_vm1, %v235_v11, 0.0 }
 0x18a   :  { %v667_v19 = vadd.f32 %v666_v14, %v665_v16  ;;  %v236_v14 = vld [vmem:[%s10262_s0 + $0x6d0] sm:$0xff] }
 0x18b   :  { %v710_v16 = vsel %vm274_vm1, %v236_v14, 0.0 }
 0x18c   :  { %v669_v22 = vadd.f32 %v668_v17, %v667_v19  ;;  %v237_v17 = vld [vmem:[%s10262_s0 + $0x6d8] sm:$0xff] }
 0x18d   :  { %v712_v19 = vsel %vm274_vm1, %v237_v17, 0.0 }
 0x18e   :  { %v671_v25 = vadd.f32 %v670_v20, %v669_v22  ;;  %v238_v20 = vld [vmem:[%s10262_s0 + $0x6e0] sm:$0xff] }
 0x18f   :  { %v714_v22 = vsel %vm274_vm1, %v238_v20, 0.0 }
 0x190   :  { %v673_v28 = vadd.f32 %v672_v23, %v671_v25  ;;  %v239_v23 = vld [vmem:[%s10262_s0 + $0x6e8] sm:$0xff] }
 0x191   :  { %v716_v25 = vsel %vm274_vm1, %v239_v23, 0.0 }
 0x192   :  { %v675_v31 = vadd.f32 %v674_v26, %v673_v28  ;;  %v240_v26 = vld [vmem:[%s10262_s0 + $0x6f0] sm:$0xff] }
 0x193   :  { %v718_v28 = vsel %vm274_vm1, %v240_v26, 0.0 }
 0x194   :  { %v677_v33 = vadd.f32 %v676_v29, %v675_v31  ;;  %v241_v29 = vld [vmem:[%s10262_s0 + $0x6f8] sm:$0xff] }
 0x195   :  { %v720_v31 = vsel %vm274_vm1, %v241_v29, 0.0 }
 0x196   :  { %v679_v36 = vadd.f32 %v678_v32, %v677_v33  ;;  %v242_v32 = vld [vmem:[%s10262_s0 + $0x700] sm:$0xff] }
 0x198   :  { %v681_v37 = vadd.f32 %v680_v34, %v679_v36  ;;  %v722_v34 = vsel %vm274_vm1, %v242_v32, 0.0 }
 0x19a   :  { %v683_v40 = vadd.f32 %v682_v38, %v681_v37  ;;  %v724_v37 = vsel %vm274_vm1, %v243_v35, 0.0  ;;  %v244_v38 = vld [vmem:[%s10262_s0 + $0x710] sm:$0xff] }
 0x19c   :  { %v685_v43 = vadd.f32 %v684_v41, %v683_v40  ;;  %v726_v40 = vsel %vm274_vm1, %v244_v38, 0.0  ;;  %v245_v41 = vld [vmem:[%s10262_s0 + $0x718] sm:$0xff] }
 0x19e   :  { %v687_v46 = vadd.f32 %v686_v44, %v685_v43  ;;  %v728_v43 = vsel %vm274_vm1, %v245_v41, 0.0  ;;  %v246_v44 = vld [vmem:[%s10262_s0 + $0x720] sm:$0xff] }
 0x1a0   :  { %v689_v49 = vadd.f32 %v688_v47, %v687_v46  ;;  %v730_v46 = vsel %vm274_vm1, %v246_v44, 0.0  ;;  %v247_v47 = vld [vmem:[%s10262_s0 + $0x728] sm:$0xff] }
 0x1a2   :  { %v691_v52 = vadd.f32 %v690_v50, %v689_v49  ;;  %v732_v49 = vsel %vm274_vm1, %v247_v47, 0.0  ;;  %v248_v50 = vld [vmem:[%s10262_s0 + $0x730] sm:$0xff] }
 0x1a4   :  { %v693_v55 = vadd.f32 %v692_v53, %v691_v52  ;;  %v734_v52 = vsel %vm274_vm1, %v248_v50, 0.0  ;;  %v249_v53 = vld [vmem:[%s10262_s0 + $0x738] sm:$0xff] }
 0x1a6   :  { %v695_v58 = vadd.f32 %v694_v56, %v693_v55  ;;  %v736_v55 = vsel %vm274_vm1, %v249_v53, 0.0  ;;  %v250_v56 = vld [vmem:[%s10262_s0 + $0x740] sm:$0xff] }
 0x1a8   :  { %v697_v61 = vadd.f32 %v696_v59, %v695_v58  ;;  %v738_v58 = vsel %vm274_vm1, %v250_v56, 0.0  ;;  %v251_v59 = vld [vmem:[%s10262_s0 + $0x748] sm:$0xff] }
 0x1aa   :  { %v699_v0 = vadd.f32 %v698_v62, %v697_v61  ;;  %v740_v61 = vsel %vm274_vm1, %v251_v59, 0.0  ;;  %v252_v62 = vld [vmem:[%s10262_s0 + $0x750] sm:$0xff] }
 0x1ac   :  { %v701_v3 = vadd.f32 %v700_v1, %v699_v0  ;;  %v742_v0 = vsel %vm274_vm1, %v252_v62, 0.0  ;;  %v253_v1 = vld [vmem:[%s10262_s0 + $0x758] sm:$0xff] }
 0x1ae   :  { %v703_v6 = vadd.f32 %v702_v4, %v701_v3  ;;  %v744_v3 = vsel %vm274_vm1, %v253_v1, 0.0  ;;  %v254_v4 = vld [vmem:[%s10262_s0 + $0x760] sm:$0xff]  ;;  %v4700_v1 = vmov 2048.0  }
 0x1af   :  { %4434 = vrcp.f32 %v4700_v1 }
 0x1b0   :  { %v705_v9 = vadd.f32 %v704_v7, %v703_v6  ;;  %v746_v6 = vsel %vm274_vm1, %v254_v4, 0.0  ;;  %v255_v7 = vld [vmem:[%s10262_s0 + $0x768] sm:$0xff] }
 0x1b2   :  { %v707_v12 = vadd.f32 %v706_v10, %v705_v9  ;;  %v748_v9 = vsel %vm274_vm1, %v255_v7, 0.0  ;;  %v256_v10 = vld [vmem:[%s10262_s0 + $0x770] sm:$0xff] }
 0x1b4   :  { %v709_v15 = vadd.f32 %v708_v13, %v707_v12  ;;  %v750_v12 = vsel %vm274_vm1, %v256_v10, 0.0  ;;  %v257_v13 = vld [vmem:[%s10262_s0 + $0x778] sm:$0xff] }
 0x1b6   :  { %v711_v18 = vadd.f32 %v710_v16, %v709_v15  ;;  %v752_v15 = vsel %vm274_vm1, %v257_v13, 0.0  ;;  %v258_v16 = vld [vmem:[%s10262_s0 + $0x780] sm:$0xff] }
 0x1b8   :  { %v713_v21 = vadd.f32 %v712_v19, %v711_v18  ;;  %v754_v18 = vsel %vm274_vm1, %v258_v16, 0.0  ;;  %v259_v19 = vld [vmem:[%s10262_s0 + $0x788] sm:$0xff] }
 0x1ba   :  { %v715_v24 = vadd.f32 %v714_v22, %v713_v21  ;;  %v756_v21 = vsel %vm274_vm1, %v259_v19, 0.0  ;;  %v260_v22 = vld [vmem:[%s10262_s0 + $0x790] sm:$0xff] }
 0x1bb   :  { %v4440_v19 = vld [vmem:[%s10262_s0 + $0x10] sm:$0xff] }
 0x1bc   :  { %v717_v27 = vadd.f32 %v716_v25, %v715_v24  ;;  %v758_v24 = vsel %vm274_vm1, %v260_v22, 0.0  ;;  %v261_v25 = vld [vmem:[%s10262_s0 + $0x798] sm:$0xff] }
 0x1be   :  { %v719_v30 = vadd.f32 %v718_v28, %v717_v27  ;;  %v760_v27 = vsel %vm274_vm1, %v261_v25, 0.0  ;;  %v262_v28 = vld [vmem:[%s10262_s0 + $0x7a0] sm:$0xff] }
 0x1c0   :  { %v721_v33 = vadd.f32 %v720_v31, %v719_v30  ;;  %v762_v30 = vsel %vm274_vm1, %v262_v28, 0.0  ;;  %v263_v31 = vld [vmem:[%s10262_s0 + $0x7a8] sm:$0xff] }
 0x1c1   :  { %v4443_v28 = vld [vmem:[%s10262_s0 + $0x28] sm:$0xff] }
 0x1c2   :  { %v723_v36 = vadd.f32 %v722_v34, %v721_v33  ;;  %v764_v33 = vsel %vm274_vm1, %v263_v31, 0.0  ;;  %v264_v34 = vld [vmem:[%s10262_s0 + $0x7b0] sm:$0xff] }
 0x1c3   :  { %v4444_v31 = vld [vmem:[%s10262_s0 + $0x30] sm:$0xff] }
 0x1c4   :  { %v725_v39 = vadd.f32 %v724_v37, %v723_v36  ;;  %v766_v36 = vsel %vm274_vm1, %v264_v34, 0.0  ;;  %v265_v37 = vld [vmem:[%s10262_s0 + $0x7b8] sm:$0xff] }
 0x1c6   :  { %v727_v42 = vadd.f32 %v726_v40, %v725_v39  ;;  %v768_v39 = vsel %vm274_vm1, %v265_v37, 0.0  ;;  %v266_v40 = vld [vmem:[%s10262_s0 + $0x7c0] sm:$0xff] }
 0x1c8   :  { %v729_v45 = vadd.f32 %v728_v43, %v727_v42  ;;  %v770_v42 = vsel %vm274_vm1, %v266_v40, 0.0  ;;  %v267_v43 = vld [vmem:[%s10262_s0 + $0x7c8] sm:$0xff] }
 0x1ca   :  { %v731_v48 = vadd.f32 %v730_v46, %v729_v45  ;;  %v772_v45 = vsel %vm274_vm1, %v267_v43, 0.0  ;;  %v268_v46 = vld [vmem:[%s10262_s0 + $0x7d0] sm:$0xff]  ;;  %v4446_v43 = vld [vmem:[%s10262_s0 + $0x40] sm:$0xff] }
 0x1cc   :  { %v733_v51 = vadd.f32 %v732_v49, %v731_v48  ;;  %v774_v48 = vsel %vm274_vm1, %v268_v46, 0.0  ;;  %v269_v49 = vld [vmem:[%s10262_s0 + $0x7d8] sm:$0xff] }
 0x1ce   :  { %v735_v54 = vadd.f32 %v734_v52, %v733_v51  ;;  %v776_v51 = vsel %vm274_vm1, %v269_v49, 0.0  ;;  %v270_v52 = vld [vmem:[%s10262_s0 + $0x7e0] sm:$0xff] }
 0x1d0   :  { %v737_v57 = vadd.f32 %v736_v55, %v735_v54  ;;  %v778_v54 = vsel %vm274_vm1, %v270_v52, 0.0  ;;  %v271_v55 = vld [vmem:[%s10262_s0 + $0x7e8] sm:$0xff] }
 0x1d2   :  { %v739_v60 = vadd.f32 %v738_v58, %v737_v57  ;;  %v780_v57 = vsel %vm274_vm1, %v271_v55, 0.0  ;;  %v272_v58 = vld [vmem:[%s10262_s0 + $0x7f0] sm:$0xff] }
 0x1d4   :  { %v741_v63 = vadd.f32 %v740_v61, %v739_v60  ;;  %v782_v60 = vsel %vm274_vm1, %v272_v58, 0.0  ;;  %v273_v61 = vld [vmem:[%s10262_s0 + $0x7f8] sm:$0xff] }
 0x1d5   :  { %v4449_v58 = vld [vmem:[%s10262_s0 + $0x58] sm:$0xff] }
 0x1d6   :  { %v743_v2 = vadd.f32 %v742_v0, %v741_v63  ;;  %v784_v63 = vsel %vm274_vm1, %v273_v61, 0.0 }
 0x1d8   :  { %v745_v5 = vadd.f32 %v744_v3, %v743_v2  ;;  %v4435_v3 = vpop.eup %4434 }
 0x1d9   :  { %vm797_vm2 = vweird.f32 %v4435_v3 }
 0x1da   :  { %v747_v8 = vadd.f32 %v746_v6, %v745_v5  ;;  %v793_v5 = vmul.f32 2048.0, %v4435_v3 }
 0x1dc   :  { %v749_v11 = vadd.f32 %v748_v9, %v747_v8  ;;  %v794_v7 = vsub.f32 1.0, %v793_v5 }
 0x1de   :  { %v751_v14 = vadd.f32 %v750_v12, %v749_v11  ;;  %v795_v9 = vmul.f32 %v4435_v3, %v794_v7 }
 0x1e0   :  { %v753_v17 = vadd.f32 %v752_v15, %v751_v14  ;;  %v796_v11 = vadd.f32 %v4435_v3, %v795_v9  ;;  %v4438_v15 = vld [vmem:[%s10262_s0] sm:$0xff]  ;;  %v4452_v9 = vld [vmem:[%s10262_s0 + $0x70] sm:$0xff] }
 0x1e2   :  { %v755_v20 = vadd.f32 %v754_v18, %v753_v17  ;;  %v5753_v13 = vsel %vm797_vm2, %v4435_v3, %v796_v11  ;;  %v4439_v17 = vld [vmem:[%s10262_s0 + $0x8] sm:$0xff] }
 0x1e4   :  { %v757_v23 = vadd.f32 %v756_v21, %v755_v20  ;;  %v4441_v21 = vld [vmem:[%s10262_s0 + $0x18] sm:$0xff] }
 0x1e6   :  { %v759_v26 = vadd.f32 %v758_v24, %v757_v23  ;;  %v4442_v23 = vld [vmem:[%s10262_s0 + $0x20] sm:$0xff] }
 0x1e8   :  { %v761_v29 = vadd.f32 %v760_v27, %v759_v26 }
 0x1ea   :  { %v763_v32 = vadd.f32 %v762_v30, %v761_v29 }
 0x1ec   :  { %v765_v35 = vadd.f32 %v764_v33, %v763_v32 }
 0x1ee   :  { %v767_v38 = vadd.f32 %v766_v36, %v765_v35 }
 0x1f0   :  { %v769_v41 = vadd.f32 %v768_v39, %v767_v38  ;;  %v4445_v38 = vld [vmem:[%s10262_s0 + $0x38] sm:$0xff] }
 0x1f2   :  { %v771_v44 = vadd.f32 %v770_v42, %v769_v41 }
 0x1f4   :  { %v773_v47 = vadd.f32 %v772_v45, %v771_v44 }
 0x1f6   :  { %v775_v50 = vadd.f32 %v774_v48, %v773_v47  ;;  %v4447_v48 = vld [vmem:[%s10262_s0 + $0x48] sm:$0xff] }
 0x1f8   :  { %v777_v53 = vadd.f32 %v776_v51, %v775_v50 }
 0x1fa   :  { %v779_v56 = vadd.f32 %v778_v54, %v777_v53  ;;  %v4448_v53 = vld [vmem:[%s10262_s0 + $0x50] sm:$0xff] }
 0x1fc   :  { %v781_v59 = vadd.f32 %v780_v57, %v779_v56 }
 0x1fe   :  { %v783_v62 = vadd.f32 %v782_v60, %v781_v59 }
 0x200   :  { %v785_v0 = vadd.f32 %v784_v63, %v783_v62  ;;  %v4450_v63 = vld [vmem:[%s10262_s0 + $0x60] sm:$0xff] }
 0x202   :  { %v786_v2 = vrot.slane %v785_v0, 4 }
 0x204   :  { %v787_v4 = vadd.f32 %v786_v2, %v785_v0 }
 0x206   :  { %v788_v6 = vrot.slane %v787_v4, 2 }
 0x208   :  { %v789_v8 = vadd.f32 %v788_v6, %v787_v4  ;;  %v4451_v4 = vld [vmem:[%s10262_s0 + $0x68] sm:$0xff] }
 0x20a   :  { %v790_v10 = vrot.slane %v789_v8, 1 }
 0x20c   :  { %v791_v12 = vadd.f32 %v790_v10, %v789_v8 }
 0x20e   :  { %v5756_v14 = vmul.f32 %v5753_v13, %v791_v12 }
 0x210   :  { %v5762_v16 = vsub.f32 %v4438_v15, %v5756_v14  ;;  %v5768_v18 = vsub.f32 %v4439_v17, %v5756_v14  ;;  %v5774_v20 = vsub.f32 %v4440_v19, %v5756_v14  ;;  %v5780_v22 = vsub.f32 %v4441_v21, %v5756_v14  ;;  %v4453_v17 = vld [vmem:[%s10262_s0 + $0x78] sm:$0xff] }
 0x211   :  { %v5786_v24 = vsub.f32 %v4442_v23, %v5756_v14  ;;  %v5798_v29 = vsub.f32 %v4443_v28, %v5756_v14  ;;  %v5806_v32 = vsub.f32 %v4444_v31, %v5756_v14  ;;  %v5817_v39 = vsub.f32 %v4445_v38, %v5756_v14  ;;  %v4456_v38 = vld [vmem:[%s10262_s0 + $0x90] sm:$0xff] }
 0x212   :  { %v1056_v25 = vmul.f32 %v5762_v16, %v5762_v16  ;;  %v1057_v26 = vmul.f32 %v5768_v18, %v5768_v18  ;;  %v1058_v27 = vmul.f32 %v5774_v20, %v5774_v20  ;;  %v1059_v30 = vmul.f32 %v5780_v22, %v5780_v22 }
 0x213   :  { %v1060_v33 = vmul.f32 %v5786_v24, %v5786_v24  ;;  %v1061_v40 = vmul.f32 %v5798_v29, %v5798_v29  ;;  %v5826_v44 = vsub.f32 %v4446_v43, %v5756_v14  ;;  %v1062_v45 = vmul.f32 %v5806_v32, %v5806_v32 }
 0x214   :  { %v1312_v34 = vsel %vm274_vm1, %v1056_v25, 0.0  ;;  %v1313_v35 = vsel %vm274_vm1, %v1057_v26, 0.0  ;;  %v1315_v36 = vsel %vm274_vm1, %v1058_v27, 0.0  ;;  %v1317_v41 = vsel %vm274_vm1, %v1059_v30, 0.0  ;;  %v4454_v26 = vld [vmem:[%s10262_s0 + $0x80] sm:$0xff] }
 0x215   :  { %v1314_v37 = vadd.f32 %v1313_v35, %v1312_v34  ;;  %v1319_v46 = vsel %vm274_vm1, %v1060_v33, 0.0  ;;  %v5835_v49 = vsub.f32 %v4447_v48, %v5756_v14  ;;  %v1063_v50 = vmul.f32 %v5817_v39, %v5817_v39  ;;  %v4455_v33 = vld [vmem:[%s10262_s0 + $0x88] sm:$0xff] }
 0x216   :  { %v1321_v51 = vsel %vm274_vm1, %v1061_v40, 0.0  ;;  %v5844_v54 = vsub.f32 %v4448_v53, %v5756_v14  ;;  %v1064_v55 = vmul.f32 %v5826_v44, %v5826_v44  ;;  %v1323_v56 = vsel %vm274_vm1, %v1062_v45, 0.0  ;;  %v4457_v45 = vld [vmem:[%s10262_s0 + $0x98] sm:$0xff] }
 0x217   :  { %v1316_v42 = vadd.f32 %v1315_v36, %v1314_v37  ;;  %v5853_v59 = vsub.f32 %v4449_v58, %v5756_v14  ;;  %v1065_v60 = vmul.f32 %v5835_v49, %v5835_v49  ;;  %v1325_v61 = vsel %vm274_vm1, %v1063_v50, 0.0 }
 0x218   :  { %v5862_v0 = vsub.f32 %v4450_v63, %v5756_v14  ;;  %v1066_v1 = vmul.f32 %v5844_v54, %v5844_v54  ;;  %v1327_v2 = vsel %vm274_vm1, %v1064_v55, 0.0  ;;  %v5871_v5 = vsub.f32 %v4451_v4, %v5756_v14  ;;  %v4460_v63 = vld [vmem:[%s10262_s0 + $0xb0] sm:$0xff] }
 0x219   :  { %v1318_v47 = vadd.f32 %v1317_v41, %v1316_v42  ;;  %v1067_v6 = vmul.f32 %v5853_v59, %v5853_v59  ;;  %v1329_v7 = vsel %vm274_vm1, %v1065_v60, 0.0  ;;  %v5880_v10 = vsub.f32 %v4452_v9, %v5756_v14 }
 0x21a   :  { %10480 = vst [vmem:[#allocation2_spill] sm:$0xff] %v5862_v0  ;;  %v1068_v11 = vmul.f32 %v5862_v0, %v5862_v0  ;;  %v1331_v12 = vsel %vm274_vm1, %v1066_v1, 0.0  ;;  %v5889_v19 = vsub.f32 %v4453_v17, %v5756_v14  ;;  %v1069_v21 = vmul.f32 %v5871_v5, %v5871_v5  ;;  %v4644_v0 = vld [vmem:[%s10262_s0 + $0x670] sm:$0xff] }
 0x21b   :  { %v1320_v52 = vadd.f32 %v1319_v46, %v1318_v47  ;;  %10481 = vst [vmem:[#allocation3_spill] sm:$0xff] %v5871_v5  ;;  %v1333_v23 = vsel %vm274_vm1, %v1067_v6, 0.0  ;;  %v5898_v27 = vsub.f32 %v4454_v26, %v5756_v14  ;;  %v1070_v28 = vmul.f32 %v5880_v10, %v5880_v10  ;;  %v4461_v6 = vld [vmem:[%s10262_s0 + $0xb8] sm:$0xff]  ;;  %v4643_v5 = vld [vmem:[%s10262_s0 + $0x668] sm:$0xff] }
 0x21c   :  { %10482 = vst [vmem:[#allocation4_spill] sm:$0xff] %v5880_v10  ;;  %v1335_v30 = vsel %vm274_vm1, %v1068_v11, 0.0  ;;  %v5907_v34 = vsub.f32 %v4455_v33, %v5756_v14  ;;  %v1071_v35 = vmul.f32 %v5889_v19, %v5889_v19  ;;  %v1337_v36 = vsel %vm274_vm1, %v1069_v21, 0.0  ;;  %v4464_v33 = vld [vmem:[%s10262_s0 + $0xd0] sm:$0xff]  ;;  %v4638_v10 = vld [vmem:[%s10262_s0 + $0x640] sm:$0xff] }
 0x21d   :  { %v1322_v57 = vadd.f32 %v1321_v51, %v1320_v52  ;;  %10483 = vst [vmem:[#allocation5_spill] sm:$0xff] %v5889_v19  ;;  %v5916_v40 = vsub.f32 %v4456_v38, %v5756_v14  ;;  %v1072_v41 = vmul.f32 %v5898_v27, %v5898_v27  ;;  %v1339_v42 = vsel %vm274_vm1, %v1070_v28, 0.0  ;;  %v4458_v51 = vld [vmem:[%s10262_s0 + $0xa0] sm:$0xff]  ;;  %v4637_v19 = vld [vmem:[%s10262_s0 + $0x638] sm:$0xff] }
 0x21e   :  { %10484 = vst [vmem:[#allocation6_spill] sm:$0xff] %v5898_v27  ;;  %v5925_v46 = vsub.f32 %v4457_v45, %v5756_v14  ;;  %v1073_v47 = vmul.f32 %v5907_v34, %v5907_v34  ;;  %v1341_v48 = vsel %vm274_vm1, %v1071_v35, 0.0  ;;  %v5934_v52 = vsub.f32 %v4458_v51, %v5756_v14  ;;  %v4584_v27 = vld [vmem:[%s10262_s0 + $0x490] sm:$0xff] }
 0x21f   :  { %v1324_v62 = vadd.f32 %v1323_v56, %v1322_v57  ;;  %10485 = vst [vmem:[#allocation7_spill] sm:$0xff] %v5907_v34  ;;  %v1074_v53 = vmul.f32 %v5916_v40, %v5916_v40  ;;  %v1343_v55 = vsel %vm274_vm1, %v1072_v41, 0.0  ;;  %v4459_v57 = vld [vmem:[%s10262_s0 + $0xa8] sm:$0xff]  ;;  %v5952_v1 = vsub.f32 %v4460_v63, %v5756_v14  ;;  %v4465_v41 = vld [vmem:[%s10262_s0 + $0xd8] sm:$0xff]  ;;  %v4468_v63 = vld [vmem:[%s10262_s0 + $0xf0] sm:$0xff] }
 0x220   :  { %10486 = vst [vmem:[#allocation8_spill] sm:$0xff] %v5916_v40  ;;  %v5943_v58 = vsub.f32 %v4459_v57, %v5756_v14  ;;  %v1075_v60 = vmul.f32 %v5925_v46, %v5925_v46  ;;  %v5988_v35 = vsub.f32 %v4464_v33, %v5756_v14  ;;  %v4580_v40 = vld [vmem:[%s10262_s0 + $0x470] sm:$0xff]  ;;  %v4583_v34 = vld [vmem:[%s10262_s0 + $0x488] sm:$0xff] }
 0x221   :  { %v1326_v3 = vadd.f32 %v1325_v61, %v1324_v62  ;;  %10487 = vst [vmem:[#allocation9_spill] sm:$0xff] %v5925_v46  ;;  %v1345_v61 = vsel %vm274_vm1, %v1073_v47, 0.0  ;;  %v1078_v17 = vmul.f32 %v5952_v1, %v5952_v1  ;;  %v4579_v46 = vld [vmem:[%s10262_s0 + $0x468] sm:$0xff] }
 0x222   :  { %10488 = vst [vmem:[#allocation10_spill] sm:$0xff] %v5934_v52  ;;  %v1349_v9 = vsel %vm274_vm1, %v1075_v60, 0.0  ;;  %v1082_v51 = vmul.f32 %v5988_v35, %v5988_v35 }
 0x223   :  { %v1328_v8 = vadd.f32 %v1327_v2, %v1326_v3  ;;  %10489 = vst [vmem:[#allocation11_spill] sm:$0xff] %v5943_v58  ;;  %v1076_v2 = vmul.f32 %v5934_v52, %v5934_v52  ;;  %v1347_v3 = vsel %vm274_vm1, %v1074_v53, 0.0  ;;  %v4576_v52 = vld [vmem:[%s10262_s0 + $0x450] sm:$0xff] }
 0x224   :  { %10490 = vst [vmem:[#allocation12_spill] sm:$0xff] %v5952_v1  ;;  %v4572_v1 = vld [vmem:[%s10262_s0 + $0x430] sm:$0xff] }
 0x225   :  { %v1330_v15 = vadd.f32 %v1329_v7, %v1328_v8  ;;  %v5961_v7 = vsub.f32 %v4461_v6, %v5756_v14  ;;  %v1077_v8 = vmul.f32 %v5943_v58, %v5943_v58  ;;  %v1351_v21 = vsel %vm274_vm1, %v1076_v2, 0.0  ;;  %10494 = vst [vmem:[#allocation16_spill] sm:$0xff] %v5988_v35  ;;  %v4526_v35 = vld [vmem:[%s10262_s0 + $0x2c0] sm:$0xff]  ;;  %v4575_v58 = vld [vmem:[%s10262_s0 + $0x448] sm:$0xff] }
 0x226   :  { %v6024_v2 = vsub.f32 %v4468_v63, %v5756_v14 }
 0x227   :  { %v1332_v25 = vadd.f32 %v1331_v12, %v1330_v15  ;;  %10491 = vst [vmem:[#allocation13_spill] sm:$0xff] %v5961_v7  ;;  %v4462_v12 = vld [vmem:[%s10262_s0 + $0xc0] sm:$0xff]  ;;  %v1079_v28 = vmul.f32 %v5961_v7, %v5961_v7  ;;  %v4571_v7 = vld [vmem:[%s10262_s0 + $0x428] sm:$0xff] }
 0x228   :  { %v5970_v15 = vsub.f32 %v4462_v12, %v5756_v14  ;;  %10498 = vst [vmem:[#allocation20_spill] sm:$0xff] %v6024_v2 }
 0x229   :  { %v1334_v31 = vadd.f32 %v1333_v23, %v1332_v25  ;;  %v4463_v25 = vld [vmem:[%s10262_s0 + $0xc8] sm:$0xff]  ;;  %v1357_v45 = vsel %vm274_vm1, %v1079_v28, 0.0 }
 0x22a   :  { %10492 = vst [vmem:[#allocation14_spill] sm:$0xff] %v5970_v15  ;;  %v5979_v26 = vsub.f32 %v4463_v25, %v5756_v14  ;;  %v1086_v25 = vmul.f32 %v6024_v2, %v6024_v2  ;;  %v4522_v2 = vld [vmem:[%s10262_s0 + $0x2a0] sm:$0xff] }
 0x22b   :  { %v1336_v37 = vadd.f32 %v1335_v30, %v1334_v31  ;;  %v1353_v30 = vsel %vm274_vm1, %v1077_v8, 0.0  ;;  %v4469_v8 = vld [vmem:[%s10262_s0 + $0xf8] sm:$0xff] }
 0x22c   :  { %10493 = vst [vmem:[#allocation15_spill] sm:$0xff] %v5979_v26 }
 0x22d   :  { %v1338_v43 = vadd.f32 %v1337_v36, %v1336_v37  ;;  %v1080_v36 = vmul.f32 %v5970_v15, %v5970_v15  ;;  %v1355_v37 = vsel %vm274_vm1, %v1078_v17, 0.0  ;;  %v4528_v15 = vld [vmem:[%s10262_s0 + $0x2d0] sm:$0xff] }
 0x22f   :  { %v1340_v50 = vadd.f32 %v1339_v42, %v1338_v43  ;;  %v5997_v42 = vsub.f32 %v4465_v41, %v5756_v14  ;;  %v1081_v43 = vmul.f32 %v5979_v26, %v5979_v26  ;;  %v1359_v53 = vsel %vm274_vm1, %v1080_v36, 0.0  ;;  %v4472_v41 = vld [vmem:[%s10262_s0 + $0x110] sm:$0xff]  ;;  %v4527_v26 = vld [vmem:[%s10262_s0 + $0x2c8] sm:$0xff] }
 0x231   :  { %v1342_v56 = vadd.f32 %v1341_v48, %v1340_v50  ;;  %10495 = vst [vmem:[#allocation17_spill] sm:$0xff] %v5997_v42  ;;  %v4466_v48 = vld [vmem:[%s10262_s0 + $0xe0] sm:$0xff]  ;;  %v1083_v60 = vmul.f32 %v5997_v42, %v5997_v42  ;;  %v4525_v42 = vld [vmem:[%s10262_s0 + $0x2b8] sm:$0xff] }
 0x232   :  { %v6006_v50 = vsub.f32 %v4466_v48, %v5756_v14 }
 0x233   :  { %v1344_v62 = vadd.f32 %v1343_v55, %v1342_v56  ;;  %v4467_v56 = vld [vmem:[%s10262_s0 + $0xe8] sm:$0xff]  ;;  %v1365_v12 = vsel %vm274_vm1, %v1083_v60, 0.0 }
 0x234   :  { %10496 = vst [vmem:[#allocation18_spill] sm:$0xff] %v6006_v50  ;;  %v6015_v57 = vsub.f32 %v4467_v56, %v5756_v14 }
 0x235   :  { %v1346_v4 = vadd.f32 %v1345_v61, %v1344_v62  ;;  %v1361_v61 = vsel %vm274_vm1, %v1081_v43, 0.0  ;;  %v6060_v43 = vsub.f32 %v4472_v41, %v5756_v14 }
 0x236   :  { %10497 = vst [vmem:[#allocation19_spill] sm:$0xff] %v6015_v57 }
 0x237   :  { %v1348_v11 = vadd.f32 %v1347_v3, %v1346_v4  ;;  %v1084_v3 = vmul.f32 %v6006_v50, %v6006_v50  ;;  %v1363_v4 = vsel %vm274_vm1, %v1082_v51, 0.0  ;;  %10502 = vst [vmem:[#allocation24_spill] sm:$0xff] %v6060_v43  ;;  %v4473_v51 = vld [vmem:[%s10262_s0 + $0x118] sm:$0xff]  ;;  %v1090_v63 = vmul.f32 %v6060_v43, %v6060_v43  ;;  %v4518_v43 = vld [vmem:[%s10262_s0 + $0x280] sm:$0xff]  ;;  %v4524_v50 = vld [vmem:[%s10262_s0 + $0x2b0] sm:$0xff] }
 0x239   :  { %v1350_v23 = vadd.f32 %v1349_v9, %v1348_v11  ;;  %v6033_v9 = vsub.f32 %v4469_v8, %v5756_v14  ;;  %v1085_v11 = vmul.f32 %v6015_v57, %v6015_v57  ;;  %v1367_v28 = vsel %vm274_vm1, %v1084_v3, 0.0  ;;  %v4523_v57 = vld [vmem:[%s10262_s0 + $0x2a8] sm:$0xff] }
 0x23b   :  { %v1352_v31 = vadd.f32 %v1351_v21, %v1350_v23  ;;  %10499 = vst [vmem:[#allocation21_spill] sm:$0xff] %v6033_v9  ;;  %v4470_v21 = vld [vmem:[%s10262_s0 + $0x100] sm:$0xff]  ;;  %v1087_v36 = vmul.f32 %v6033_v9, %v6033_v9  ;;  %v4521_v9 = vld [vmem:[%s10262_s0 + $0x298] sm:$0xff] }
 0x23c   :  { %v6042_v23 = vsub.f32 %v4470_v21, %v5756_v14  ;;  %v4476_v21 = vld [vmem:[%s10262_s0 + $0x130] sm:$0xff] }
 0x23d   :  { %v1354_v38 = vadd.f32 %v1353_v30, %v1352_v31  ;;  %v4471_v31 = vld [vmem:[%s10262_s0 + $0x108] sm:$0xff]  ;;  %v1373_v56 = vsel %vm274_vm1, %v1087_v36, 0.0  ;;  %v4477_v36 = vld [vmem:[%s10262_s0 + $0x138] sm:$0xff] }
 0x23e   :  { %10500 = vst [vmem:[#allocation22_spill] sm:$0xff] %v6042_v23  ;;  %v6051_v33 = vsub.f32 %v4471_v31, %v5756_v14 }
 0x23f   :  { %v1356_v47 = vadd.f32 %v1355_v37, %v1354_v38  ;;  %v1369_v37 = vsel %vm274_vm1, %v1085_v11, 0.0 }
 0x240   :  { %10501 = vst [vmem:[#allocation23_spill] sm:$0xff] %v6051_v33 }
 0x241   :  { %v1358_v55 = vadd.f32 %v1357_v45, %v1356_v47  ;;  %v1088_v45 = vmul.f32 %v6042_v23, %v6042_v23  ;;  %v1371_v47 = vsel %vm274_vm1, %v1086_v25, 0.0  ;;  %v6096_v25 = vsub.f32 %v4476_v21, %v5756_v14  ;;  %v4520_v23 = vld [vmem:[%s10262_s0 + $0x290] sm:$0xff] }
 0x243   :  { %v1360_v62 = vadd.f32 %v1359_v53, %v1358_v55  ;;  %v6069_v53 = vsub.f32 %v4473_v51, %v5756_v14  ;;  %v1089_v55 = vmul.f32 %v6051_v33, %v6051_v33  ;;  %v1375_v3 = vsel %vm274_vm1, %v1088_v45, 0.0  ;;  %10506 = vst [vmem:[#allocation28_spill] sm:$0xff] %v6096_v25  ;;  %v4519_v33 = vld [vmem:[%s10262_s0 + $0x288] sm:$0xff] }
 0x244   :  { %v1094_v51 = vmul.f32 %v6096_v25, %v6096_v25  ;;  %v4514_v25 = vld [vmem:[%s10262_s0 + $0x260] sm:$0xff] }
 0x245   :  { %v1362_v6 = vadd.f32 %v1361_v61, %v1360_v62  ;;  %10503 = vst [vmem:[#allocation25_spill] sm:$0xff] %v6069_v53  ;;  %v4474_v61 = vld [vmem:[%s10262_s0 + $0x120] sm:$0xff]  ;;  %v1091_v11 = vmul.f32 %v6069_v53, %v6069_v53  ;;  %v4517_v53 = vld [vmem:[%s10262_s0 + $0x278] sm:$0xff] }
 0x246   :  { %v6078_v62 = vsub.f32 %v4474_v61, %v5756_v14 }
 0x247   :  { %v1364_v17 = vadd.f32 %v1363_v4, %v1362_v6  ;;  %v4475_v6 = vld [vmem:[%s10262_s0 + $0x128] sm:$0xff]  ;;  %v1381_v41 = vsel %vm274_vm1, %v1091_v11, 0.0 }
 0x248   :  { %10504 = vst [vmem:[#allocation26_spill] sm:$0xff] %v6078_v62  ;;  %v6087_v8 = vsub.f32 %v4475_v6, %v5756_v14  ;;  %v4480_v6 = vld [vmem:[%s10262_s0 + $0x150] sm:$0xff] }
 0x249   :  { %v1366_v30 = vadd.f32 %v1365_v12, %v1364_v17  ;;  %v1377_v12 = vsel %vm274_vm1, %v1089_v55, 0.0  ;;  %v6132_v11 = vsub.f32 %v4480_v6, %v5756_v14  ;;  %v4484_v6 = vld [vmem:[%s10262_s0 + $0x170] sm:$0xff] }
 0x24a   :  { %10505 = vst [vmem:[#allocation27_spill] sm:$0xff] %v6087_v8 }
 0x24b   :  { %v1368_v38 = vadd.f32 %v1367_v28, %v1366_v30  ;;  %v1092_v28 = vmul.f32 %v6078_v62, %v6078_v62  ;;  %v1379_v30 = vsel %vm274_vm1, %v1090_v63, 0.0  ;;  %10510 = vst [vmem:[#allocation32_spill] sm:$0xff] %v6132_v11  ;;  %v4516_v62 = vld [vmem:[%s10262_s0 + $0x270] sm:$0xff] }
 0x24d   :  { %v1370_v48 = vadd.f32 %v1369_v37, %v1368_v38  ;;  %v6105_v37 = vsub.f32 %v4477_v36, %v5756_v14  ;;  %v1093_v38 = vmul.f32 %v6087_v8, %v6087_v8  ;;  %v1383_v55 = vsel %vm274_vm1, %v1092_v28, 0.0  ;;  %v4481_v28 = vld [vmem:[%s10262_s0 + $0x158] sm:$0xff]  ;;  %v4515_v8 = vld [vmem:[%s10262_s0 + $0x268] sm:$0xff] }
 0x24f   :  { %v1372_v60 = vadd.f32 %v1371_v47, %v1370_v48  ;;  %10507 = vst [vmem:[#allocation29_spill] sm:$0xff] %v6105_v37  ;;  %v4478_v47 = vld [vmem:[%s10262_s0 + $0x140] sm:$0xff]  ;;  %v1095_v63 = vmul.f32 %v6105_v37, %v6105_v37  ;;  %v4513_v37 = vld [vmem:[%s10262_s0 + $0x258] sm:$0xff] }
 0x250   :  { %v6114_v48 = vsub.f32 %v4478_v47, %v5756_v14  ;;  %v1098_v47 = vmul.f32 %v6132_v11, %v6132_v11  ;;  %v4510_v11 = vld [vmem:[%s10262_s0 + $0x240] sm:$0xff] }
 0x251   :  { %v1374_v4 = vadd.f32 %v1373_v56, %v1372_v60  ;;  %v4479_v60 = vld [vmem:[%s10262_s0 + $0x148] sm:$0xff]  ;;  %v1389_v36 = vsel %vm274_vm1, %v1095_v63, 0.0 }
 0x252   :  { %10508 = vst [vmem:[#allocation30_spill] sm:$0xff] %v6114_v48  ;;  %v6123_v61 = vsub.f32 %v4479_v60, %v5756_v14 }
 0x253   :  { %v1376_v17 = vadd.f32 %v1375_v3, %v1374_v4  ;;  %v1385_v3 = vsel %vm274_vm1, %v1093_v38, 0.0 }
 0x254   :  { %10509 = vst [vmem:[#allocation31_spill] sm:$0xff] %v6123_v61 }
 0x255   :  { %v1378_v31 = vadd.f32 %v1377_v12, %v1376_v17  ;;  %v1096_v12 = vmul.f32 %v6114_v48, %v6114_v48  ;;  %v1387_v17 = vsel %vm274_vm1, %v1094_v51, 0.0  ;;  %v4512_v48 = vld [vmem:[%s10262_s0 + $0x250] sm:$0xff] }
 0x257   :  { %v1380_v45 = vadd.f32 %v1379_v30, %v1378_v31  ;;  %v6141_v30 = vsub.f32 %v4481_v28, %v5756_v14  ;;  %v1097_v31 = vmul.f32 %v6123_v61, %v6123_v61  ;;  %v1391_v51 = vsel %vm274_vm1, %v1096_v12, 0.0  ;;  %v4511_v61 = vld [vmem:[%s10262_s0 + $0x248] sm:$0xff] }
 0x258   :  { %v6168_v12 = vsub.f32 %v4484_v6, %v5756_v14  ;;  %v4487_v6 = vld [vmem:[%s10262_s0 + $0x188] sm:$0xff] }
 0x259   :  { %v1382_v56 = vadd.f32 %v1381_v41, %v1380_v45  ;;  %10511 = vst [vmem:[#allocation33_spill] sm:$0xff] %v6141_v30  ;;  %v4482_v41 = vld [vmem:[%s10262_s0 + $0x160] sm:$0xff]  ;;  %v1099_v63 = vmul.f32 %v6141_v30, %v6141_v30  ;;  %v4509_v30 = vld [vmem:[%s10262_s0 + $0x238] sm:$0xff] }
 0x25a   :  { %v6150_v45 = vsub.f32 %v4482_v41, %v5756_v14  ;;  %10514 = vst [vmem:[#allocation36_spill] sm:$0xff] %v6168_v12 }
 0x25b   :  { %v1384_v4 = vadd.f32 %v1383_v55, %v1382_v56  ;;  %v4483_v56 = vld [vmem:[%s10262_s0 + $0x168] sm:$0xff]  ;;  %v1397_v41 = vsel %vm274_vm1, %v1099_v63, 0.0  ;;  %v6195_v63 = vsub.f32 %v4487_v6, %v5756_v14 }
 0x25c   :  { %10512 = vst [vmem:[#allocation34_spill] sm:$0xff] %v6150_v45  ;;  %v6159_v60 = vsub.f32 %v4483_v56, %v5756_v14  ;;  %v1102_v56 = vmul.f32 %v6168_v12, %v6168_v12  ;;  %v4506_v12 = vld [vmem:[%s10262_s0 + $0x220] sm:$0xff] }
 0x25d   :  { %v1386_v21 = vadd.f32 %v1385_v3, %v1384_v4  ;;  %v1393_v3 = vsel %vm274_vm1, %v1097_v31, 0.0  ;;  %10517 = vst [vmem:[#allocation39_spill] sm:$0xff] %v6195_v63 }
 0x25e   :  { %10513 = vst [vmem:[#allocation35_spill] sm:$0xff] %v6159_v60 }
 0x25f   :  { %v1388_v38 = vadd.f32 %v1387_v17, %v1386_v21  ;;  %v1100_v17 = vmul.f32 %v6150_v45, %v6150_v45  ;;  %v1395_v21 = vsel %vm274_vm1, %v1098_v47, 0.0  ;;  %v4508_v45 = vld [vmem:[%s10262_s0 + $0x230] sm:$0xff] }
 0x261   :  { %v1390_v55 = vadd.f32 %v1389_v36, %v1388_v38  ;;  %v4485_v36 = vld [vmem:[%s10262_s0 + $0x178] sm:$0xff]  ;;  %v1101_v38 = vmul.f32 %v6159_v60, %v6159_v60  ;;  %v4507_v60 = vld [vmem:[%s10262_s0 + $0x228] sm:$0xff] }
 0x262   :  { %v6177_v31 = vsub.f32 %v4485_v36, %v5756_v14 }
 0x263   :  { %v1392_v4 = vadd.f32 %v1391_v51, %v1390_v55  ;;  %v4486_v55 = vld [vmem:[%s10262_s0 + $0x180] sm:$0xff] }
 0x264   :  { %10515 = vst [vmem:[#allocation37_spill] sm:$0xff] %v6177_v31  ;;  %v6186_v47 = vsub.f32 %v4486_v55, %v5756_v14  ;;  %v4488_v55 = vld [vmem:[%s10262_s0 + $0x190] sm:$0xff] }
 0x265   :  { %v1394_v28 = vadd.f32 %v1393_v3, %v1392_v4  ;;  %v1399_v3 = vsel %vm274_vm1, %v1100_v17, 0.0  ;;  %v6204_v17 = vsub.f32 %v4488_v55, %v5756_v14 }
 0x266   :  { %10516 = vst [vmem:[#allocation38_spill] sm:$0xff] %v6186_v47 }
 0x267   :  { %v1396_v51 = vadd.f32 %v1395_v21, %v1394_v28  ;;  %v1103_v21 = vmul.f32 %v6177_v31, %v6177_v31  ;;  %v1401_v28 = vsel %vm274_vm1, %v1101_v38, 0.0  ;;  %10518 = vst [vmem:[#allocation40_spill] sm:$0xff] %v6204_v17  ;;  %v4489_v31 = vld [vmem:[%s10262_s0 + $0x198] sm:$0xff] }
 0x268   :  { %v6213_v38 = vsub.f32 %v4489_v31, %v5756_v14 }
 0x269   :  { %v1398_v4 = vadd.f32 %v1397_v41, %v1396_v51  ;;  %v1104_v41 = vmul.f32 %v6186_v47, %v6186_v47  ;;  %v1403_v51 = vsel %vm274_vm1, %v1102_v56, 0.0  ;;  %v4490_v47 = vld [vmem:[%s10262_s0 + $0x1a0] sm:$0xff] }
 0x26a   :  { %10519 = vst [vmem:[#allocation41_spill] sm:$0xff] %v6213_v38  ;;  %v6222_v56 = vsub.f32 %v4490_v47, %v5756_v14 }
 0x26b   :  { %v1400_v36 = vadd.f32 %v1399_v3, %v1398_v4  ;;  %v1105_v3 = vmul.f32 %v6195_v63, %v6195_v63  ;;  %v1405_v4 = vsel %vm274_vm1, %v1103_v21, 0.0  ;;  %v4491_v63 = vld [vmem:[%s10262_s0 + $0x1a8] sm:$0xff] }
 0x26c   :  { %10520 = vst [vmem:[#allocation42_spill] sm:$0xff] %v6222_v56  ;;  %v6231_v21 = vsub.f32 %v4491_v63, %v5756_v14 }
 0x26d   :  { %v1402_v6 = vadd.f32 %v1401_v28, %v1400_v36  ;;  %v1106_v28 = vmul.f32 %v6204_v17, %v6204_v17  ;;  %v1407_v36 = vsel %vm274_vm1, %v1104_v41, 0.0  ;;  %v4492_v17 = vld [vmem:[%s10262_s0 + $0x1b0] sm:$0xff] }
 0x26e   :  { %10521 = vst [vmem:[#allocation43_spill] sm:$0xff] %v6231_v21  ;;  %v6240_v41 = vsub.f32 %v4492_v17, %v5756_v14 }
 0x26f   :  { %v1404_v55 = vadd.f32 %v1403_v51, %v1402_v6  ;;  %v1107_v51 = vmul.f32 %v6213_v38, %v6213_v38  ;;  %v1409_v6 = vsel %vm274_vm1, %v1105_v3, 0.0  ;;  %v4493_v38 = vld [vmem:[%s10262_s0 + $0x1b8] sm:$0xff] }
 0x270   :  { %10522 = vst [vmem:[#allocation44_spill] sm:$0xff] %v6240_v41  ;;  %v6249_v3 = vsub.f32 %v4493_v38, %v5756_v14 }
 0x271   :  { %v1406_v31 = vadd.f32 %v1405_v4, %v1404_v55  ;;  %v1108_v4 = vmul.f32 %v6222_v56, %v6222_v56  ;;  %v1411_v55 = vsel %vm274_vm1, %v1106_v28, 0.0  ;;  %v4494_v56 = vld [vmem:[%s10262_s0 + $0x1c0] sm:$0xff] }
 0x272   :  { %10523 = vst [vmem:[#allocation45_spill] sm:$0xff] %v6249_v3  ;;  %v6258_v28 = vsub.f32 %v4494_v56, %v5756_v14 }
 0x273   :  { %v1408_v47 = vadd.f32 %v1407_v36, %v1406_v31  ;;  %v1109_v36 = vmul.f32 %v6231_v21, %v6231_v21  ;;  %v1413_v31 = vsel %vm274_vm1, %v1107_v51, 0.0  ;;  %v4495_v21 = vld [vmem:[%s10262_s0 + $0x1c8] sm:$0xff] }
 0x274   :  { %10524 = vst [vmem:[#allocation46_spill] sm:$0xff] %v6258_v28  ;;  %v6267_v51 = vsub.f32 %v4495_v21, %v5756_v14 }
 0x275   :  { %v1410_v63 = vadd.f32 %v1409_v6, %v1408_v47  ;;  %v1110_v6 = vmul.f32 %v6240_v41, %v6240_v41  ;;  %v1415_v47 = vsel %vm274_vm1, %v1108_v4, 0.0  ;;  %v4496_v41 = vld [vmem:[%s10262_s0 + $0x1d0] sm:$0xff] }
 0x276   :  { %10525 = vst [vmem:[#allocation47_spill] sm:$0xff] %v6267_v51  ;;  %v6276_v4 = vsub.f32 %v4496_v41, %v5756_v14 }
 0x277   :  { %v1412_v17 = vadd.f32 %v1411_v55, %v1410_v63  ;;  %v1111_v55 = vmul.f32 %v6249_v3, %v6249_v3  ;;  %v1417_v63 = vsel %vm274_vm1, %v1109_v36, 0.0  ;;  %v4497_v3 = vld [vmem:[%s10262_s0 + $0x1d8] sm:$0xff] }
 0x278   :  { %10526 = vst [vmem:[#allocation48_spill] sm:$0xff] %v6276_v4  ;;  %v6285_v36 = vsub.f32 %v4497_v3, %v5756_v14 }
 0x279   :  { %v1414_v38 = vadd.f32 %v1413_v31, %v1412_v17  ;;  %v1112_v31 = vmul.f32 %v6258_v28, %v6258_v28  ;;  %v1419_v17 = vsel %vm274_vm1, %v1110_v6, 0.0  ;;  %v4498_v28 = vld [vmem:[%s10262_s0 + $0x1e0] sm:$0xff] }
 0x27a   :  { %10527 = vst [vmem:[#allocation49_spill] sm:$0xff] %v6285_v36  ;;  %v6294_v6 = vsub.f32 %v4498_v28, %v5756_v14 }
 0x27b   :  { %v1416_v56 = vadd.f32 %v1415_v47, %v1414_v38  ;;  %v1113_v47 = vmul.f32 %v6267_v51, %v6267_v51  ;;  %v1421_v38 = vsel %vm274_vm1, %v1111_v55, 0.0  ;;  %v4499_v51 = vld [vmem:[%s10262_s0 + $0x1e8] sm:$0xff] }
 0x27c   :  { %10528 = vst [vmem:[#allocation50_spill] sm:$0xff] %v6294_v6  ;;  %v6303_v55 = vsub.f32 %v4499_v51, %v5756_v14 }
 0x27d   :  { %v1418_v21 = vadd.f32 %v1417_v63, %v1416_v56  ;;  %v1114_v63 = vmul.f32 %v6276_v4, %v6276_v4  ;;  %v1423_v56 = vsel %vm274_vm1, %v1112_v31, 0.0  ;;  %v4500_v4 = vld [vmem:[%s10262_s0 + $0x1f0] sm:$0xff] }
 0x27e   :  { %10529 = vst [vmem:[#allocation51_spill] sm:$0xff] %v6303_v55  ;;  %v6312_v31 = vsub.f32 %v4500_v4, %v5756_v14 }
 0x27f   :  { %v1420_v41 = vadd.f32 %v1419_v17, %v1418_v21  ;;  %v1115_v17 = vmul.f32 %v6285_v36, %v6285_v36  ;;  %v1425_v21 = vsel %vm274_vm1, %v1113_v47, 0.0  ;;  %v4501_v36 = vld [vmem:[%s10262_s0 + $0x1f8] sm:$0xff] }
 0x280   :  { %10530 = vst [vmem:[#allocation52_spill] sm:$0xff] %v6312_v31  ;;  %v6321_v47 = vsub.f32 %v4501_v36, %v5756_v14 }
 0x281   :  { %v1422_v3 = vadd.f32 %v1421_v38, %v1420_v41  ;;  %v1116_v38 = vmul.f32 %v6294_v6, %v6294_v6  ;;  %v1427_v41 = vsel %vm274_vm1, %v1114_v63, 0.0  ;;  %v4502_v6 = vld [vmem:[%s10262_s0 + $0x200] sm:$0xff] }
 0x282   :  { %10531 = vst [vmem:[#allocation53_spill] sm:$0xff] %v6321_v47  ;;  %v6330_v63 = vsub.f32 %v4502_v6, %v5756_v14 }
 0x283   :  { %v1424_v28 = vadd.f32 %v1423_v56, %v1422_v3  ;;  %v1117_v56 = vmul.f32 %v6303_v55, %v6303_v55  ;;  %v1429_v3 = vsel %vm274_vm1, %v1115_v17, 0.0  ;;  %v4503_v55 = vld [vmem:[%s10262_s0 + $0x208] sm:$0xff] }
 0x284   :  { %v6339_v17 = vsub.f32 %v4503_v55, %v5756_v14 }
 0x285   :  { %v1426_v51 = vadd.f32 %v1425_v21, %v1424_v28  ;;  %v1118_v21 = vmul.f32 %v6312_v31, %v6312_v31  ;;  %v1431_v28 = vsel %vm274_vm1, %v1116_v38, 0.0  ;;  %v4504_v31 = vld [vmem:[%s10262_s0 + $0x210] sm:$0xff] }
 0x286   :  { %v6348_v38 = vsub.f32 %v4504_v31, %v5756_v14 }
 0x287   :  { %v1428_v4 = vadd.f32 %v1427_v41, %v1426_v51  ;;  %v1119_v41 = vmul.f32 %v6321_v47, %v6321_v47  ;;  %v1433_v51 = vsel %vm274_vm1, %v1117_v56, 0.0  ;;  %v4505_v47 = vld [vmem:[%s10262_s0 + $0x218] sm:$0xff] }
 0x288   :  { %v6357_v56 = vsub.f32 %v4505_v47, %v5756_v14 }
 0x289   :  { %v1430_v36 = vadd.f32 %v1429_v3, %v1428_v4  ;;  %v1120_v3 = vmul.f32 %v6330_v63, %v6330_v63  ;;  %v1435_v4 = vsel %vm274_vm1, %v1118_v21, 0.0  ;;  %v6366_v21 = vsub.f32 %v4506_v12, %v5756_v14 }
 0x28b   :  { %v1432_v6 = vadd.f32 %v1431_v28, %v1430_v36  ;;  %v1121_v28 = vmul.f32 %v6339_v17, %v6339_v17  ;;  %v1437_v36 = vsel %vm274_vm1, %v1119_v41, 0.0  ;;  %v6375_v41 = vsub.f32 %v4507_v60, %v5756_v14 }
 0x28d   :  { %v1434_v55 = vadd.f32 %v1433_v51, %v1432_v6  ;;  %v1122_v51 = vmul.f32 %v6348_v38, %v6348_v38  ;;  %v1439_v6 = vsel %vm274_vm1, %v1120_v3, 0.0  ;;  %v6384_v3 = vsub.f32 %v4508_v45, %v5756_v14 }
 0x28f   :  { %v1436_v31 = vadd.f32 %v1435_v4, %v1434_v55  ;;  %v1123_v4 = vmul.f32 %v6357_v56, %v6357_v56  ;;  %v1441_v55 = vsel %vm274_vm1, %v1121_v28, 0.0  ;;  %v6393_v28 = vsub.f32 %v4509_v30, %v5756_v14 }
 0x291   :  { %v1438_v47 = vadd.f32 %v1437_v36, %v1436_v31  ;;  %v1124_v36 = vmul.f32 %v6366_v21, %v6366_v21  ;;  %v1443_v31 = vsel %vm274_vm1, %v1122_v51, 0.0  ;;  %v6402_v51 = vsub.f32 %v4510_v11, %v5756_v14 }
 0x293   :  { %v1440_v12 = vadd.f32 %v1439_v6, %v1438_v47  ;;  %v1125_v6 = vmul.f32 %v6375_v41, %v6375_v41  ;;  %v1445_v47 = vsel %vm274_vm1, %v1123_v4, 0.0  ;;  %v6411_v4 = vsub.f32 %v4511_v61, %v5756_v14 }
 0x295   :  { %v1442_v60 = vadd.f32 %v1441_v55, %v1440_v12  ;;  %v1126_v55 = vmul.f32 %v6384_v3, %v6384_v3  ;;  %v1447_v12 = vsel %vm274_vm1, %v1124_v36, 0.0  ;;  %v6420_v36 = vsub.f32 %v4512_v48, %v5756_v14 }
 0x297   :  { %v1444_v45 = vadd.f32 %v1443_v31, %v1442_v60  ;;  %v1127_v31 = vmul.f32 %v6393_v28, %v6393_v28  ;;  %v1449_v60 = vsel %vm274_vm1, %v1125_v6, 0.0  ;;  %10532 = vst [vmem:[#allocation54_spill] sm:$0xff] %v6420_v36  ;;  %v6429_v6 = vsub.f32 %v4513_v37, %v5756_v14 }
 0x299   :  { %v1446_v30 = vadd.f32 %v1445_v47, %v1444_v45  ;;  %v1128_v47 = vmul.f32 %v6402_v51, %v6402_v51  ;;  %v1451_v45 = vsel %vm274_vm1, %v1126_v55, 0.0  ;;  %10533 = vst [vmem:[#allocation55_spill] sm:$0xff] %v6429_v6  ;;  %v6438_v55 = vsub.f32 %v4514_v25, %v5756_v14 }
 0x29b   :  { %v1448_v11 = vadd.f32 %v1447_v12, %v1446_v30  ;;  %v1129_v12 = vmul.f32 %v6411_v4, %v6411_v4  ;;  %v1453_v30 = vsel %vm274_vm1, %v1127_v31, 0.0  ;;  %10534 = vst [vmem:[#allocation56_spill] sm:$0xff] %v6438_v55  ;;  %v6447_v31 = vsub.f32 %v4515_v8, %v5756_v14 }
 0x29d   :  { %v1450_v61 = vadd.f32 %v1449_v60, %v1448_v11  ;;  %v1130_v60 = vmul.f32 %v6420_v36, %v6420_v36  ;;  %v1455_v11 = vsel %vm274_vm1, %v1128_v47, 0.0  ;;  %10535 = vst [vmem:[#allocation57_spill] sm:$0xff] %v6447_v31  ;;  %v6456_v47 = vsub.f32 %v4516_v62, %v5756_v14 }
 0x29f   :  { %v1452_v48 = vadd.f32 %v1451_v45, %v1450_v61  ;;  %v1131_v45 = vmul.f32 %v6429_v6, %v6429_v6  ;;  %v1457_v61 = vsel %vm274_vm1, %v1129_v12, 0.0  ;;  %10536 = vst [vmem:[#allocation58_spill] sm:$0xff] %v6456_v47  ;;  %v6465_v12 = vsub.f32 %v4517_v53, %v5756_v14 }
 0x2a1   :  { %v1454_v37 = vadd.f32 %v1453_v30, %v1452_v48  ;;  %v1132_v30 = vmul.f32 %v6438_v55, %v6438_v55  ;;  %v1459_v48 = vsel %vm274_vm1, %v1130_v60, 0.0  ;;  %10537 = vst [vmem:[#allocation59_spill] sm:$0xff] %v6465_v12  ;;  %v6474_v60 = vsub.f32 %v4518_v43, %v5756_v14  ;;  %v4642_v55 = vld [vmem:[%s10262_s0 + $0x660] sm:$0xff] }
 0x2a3   :  { %v1456_v25 = vadd.f32 %v1455_v11, %v1454_v37  ;;  %v1133_v11 = vmul.f32 %v6447_v31, %v6447_v31  ;;  %v1461_v37 = vsel %vm274_vm1, %v1131_v45, 0.0  ;;  %10538 = vst [vmem:[#allocation60_spill] sm:$0xff] %v6474_v60  ;;  %v6483_v45 = vsub.f32 %v4519_v33, %v5756_v14  ;;  %v4641_v31 = vld [vmem:[%s10262_s0 + $0x658] sm:$0xff] }
 0x2a5   :  { %v1458_v8 = vadd.f32 %v1457_v61, %v1456_v25  ;;  %v1134_v61 = vmul.f32 %v6456_v47, %v6456_v47  ;;  %v1463_v25 = vsel %vm274_vm1, %v1132_v30, 0.0  ;;  %10539 = vst [vmem:[#allocation61_spill] sm:$0xff] %v6483_v45  ;;  %v6492_v30 = vsub.f32 %v4520_v23, %v5756_v14  ;;  %v4636_v47 = vld [vmem:[%s10262_s0 + $0x630] sm:$0xff] }
 0x2a7   :  { %v1460_v62 = vadd.f32 %v1459_v48, %v1458_v8  ;;  %v1135_v48 = vmul.f32 %v6465_v12, %v6465_v12  ;;  %v1465_v8 = vsel %vm274_vm1, %v1133_v11, 0.0  ;;  %10540 = vst [vmem:[#allocation62_spill] sm:$0xff] %v6492_v30  ;;  %v6501_v11 = vsub.f32 %v4521_v9, %v5756_v14  ;;  %v4635_v12 = vld [vmem:[%s10262_s0 + $0x628] sm:$0xff] }
 0x2a9   :  { %v1462_v53 = vadd.f32 %v1461_v37, %v1460_v62  ;;  %v1136_v37 = vmul.f32 %v6474_v60, %v6474_v60  ;;  %v1467_v62 = vsel %vm274_vm1, %v1134_v61, 0.0  ;;  %10541 = vst [vmem:[#allocation63_spill] sm:$0xff] %v6501_v11  ;;  %v6510_v61 = vsub.f32 %v4522_v2, %v5756_v14  ;;  %v4582_v60 = vld [vmem:[%s10262_s0 + $0x480] sm:$0xff] }
 0x2ab   :  { %v1464_v43 = vadd.f32 %v1463_v25, %v1462_v53  ;;  %v1137_v25 = vmul.f32 %v6483_v45, %v6483_v45  ;;  %v1469_v53 = vsel %vm274_vm1, %v1135_v48, 0.0  ;;  %10542 = vst [vmem:[#allocation64_spill] sm:$0xff] %v6510_v61  ;;  %v6519_v48 = vsub.f32 %v4523_v57, %v5756_v14  ;;  %v4581_v45 = vld [vmem:[%s10262_s0 + $0x478] sm:$0xff] }
 0x2ad   :  { %v1466_v33 = vadd.f32 %v1465_v8, %v1464_v43  ;;  %v1138_v8 = vmul.f32 %v6492_v30, %v6492_v30  ;;  %v1471_v43 = vsel %vm274_vm1, %v1136_v37, 0.0  ;;  %10543 = vst [vmem:[#allocation65_spill] sm:$0xff] %v6519_v48  ;;  %v6528_v37 = vsub.f32 %v4524_v50, %v5756_v14  ;;  %v4578_v30 = vld [vmem:[%s10262_s0 + $0x460] sm:$0xff] }
 0x2af   :  { %v1468_v23 = vadd.f32 %v1467_v62, %v1466_v33  ;;  %v1139_v62 = vmul.f32 %v6501_v11, %v6501_v11  ;;  %v1473_v33 = vsel %vm274_vm1, %v1137_v25, 0.0  ;;  %10544 = vst [vmem:[#allocation66_spill] sm:$0xff] %v6528_v37  ;;  %v6537_v25 = vsub.f32 %v4525_v42, %v5756_v14  ;;  %v4577_v11 = vld [vmem:[%s10262_s0 + $0x458] sm:$0xff] }
 0x2b1   :  { %v1470_v9 = vadd.f32 %v1469_v53, %v1468_v23  ;;  %v1140_v53 = vmul.f32 %v6510_v61, %v6510_v61  ;;  %v1475_v23 = vsel %vm274_vm1, %v1138_v8, 0.0  ;;  %10545 = vst [vmem:[#allocation67_spill] sm:$0xff] %v6537_v25  ;;  %v6546_v8 = vsub.f32 %v4526_v35, %v5756_v14  ;;  %v4574_v61 = vld [vmem:[%s10262_s0 + $0x440] sm:$0xff] }
 0x2b3   :  { %v1472_v2 = vadd.f32 %v1471_v43, %v1470_v9  ;;  %v1141_v43 = vmul.f32 %v6519_v48, %v6519_v48  ;;  %v1477_v9 = vsel %vm274_vm1, %v1139_v62, 0.0  ;;  %10546 = vst [vmem:[#allocation68_spill] sm:$0xff] %v6546_v8  ;;  %v6555_v62 = vsub.f32 %v4527_v26, %v5756_v14  ;;  %v4573_v48 = vld [vmem:[%s10262_s0 + $0x438] sm:$0xff] }
 0x2b5   :  { %v1474_v57 = vadd.f32 %v1473_v33, %v1472_v2  ;;  %v1142_v33 = vmul.f32 %v6528_v37, %v6528_v37  ;;  %v1479_v2 = vsel %vm274_vm1, %v1140_v53, 0.0  ;;  %10547 = vst [vmem:[#allocation69_spill] sm:$0xff] %v6555_v62  ;;  %v6564_v53 = vsub.f32 %v4528_v15, %v5756_v14  ;;  %v4570_v37 = vld [vmem:[%s10262_s0 + $0x420] sm:$0xff] }
 0x2b7   :  { %v1476_v50 = vadd.f32 %v1475_v23, %v1474_v57  ;;  %v1143_v23 = vmul.f32 %v6537_v25, %v6537_v25  ;;  %v1481_v57 = vsel %vm274_vm1, %v1141_v43, 0.0  ;;  %10548 = vst [vmem:[#allocation70_spill] sm:$0xff] %v6564_v53  ;;  %v4529_v25 = vld [vmem:[%s10262_s0 + $0x2d8] sm:$0xff] }
 0x2b8   :  { %v6573_v43 = vsub.f32 %v4529_v25, %v5756_v14 }
 0x2b9   :  { %v1478_v42 = vadd.f32 %v1477_v9, %v1476_v50  ;;  %v1144_v9 = vmul.f32 %v6546_v8, %v6546_v8  ;;  %v1483_v50 = vsel %vm274_vm1, %v1142_v33, 0.0  ;;  %v4530_v8 = vld [vmem:[%s10262_s0 + $0x2e0] sm:$0xff] }
 0x2ba   :  { %10549 = vst [vmem:[#allocation71_spill] sm:$0xff] %v6573_v43  ;;  %v6582_v33 = vsub.f32 %v4530_v8, %v5756_v14 }
 0x2bb   :  { %v1480_v35 = vadd.f32 %v1479_v2, %v1478_v42  ;;  %v1145_v2 = vmul.f32 %v6555_v62, %v6555_v62  ;;  %v1485_v42 = vsel %vm274_vm1, %v1143_v23, 0.0  ;;  %v4531_v62 = vld [vmem:[%s10262_s0 + $0x2e8] sm:$0xff] }
 0x2bc   :  { %10550 = vst [vmem:[#allocation72_spill] sm:$0xff] %v6582_v33  ;;  %v6591_v23 = vsub.f32 %v4531_v62, %v5756_v14 }
 0x2bd   :  { %v1482_v26 = vadd.f32 %v1481_v57, %v1480_v35  ;;  %v1146_v57 = vmul.f32 %v6564_v53, %v6564_v53  ;;  %v1487_v35 = vsel %vm274_vm1, %v1144_v9, 0.0  ;;  %v4532_v53 = vld [vmem:[%s10262_s0 + $0x2f0] sm:$0xff] }
 0x2be   :  { %10551 = vst [vmem:[#allocation73_spill] sm:$0xff] %v6591_v23  ;;  %v6600_v9 = vsub.f32 %v4532_v53, %v5756_v14 }
 0x2bf   :  { %v1484_v15 = vadd.f32 %v1483_v50, %v1482_v26  ;;  %v1147_v50 = vmul.f32 %v6573_v43, %v6573_v43  ;;  %v1489_v26 = vsel %vm274_vm1, %v1145_v2, 0.0  ;;  %v4533_v43 = vld [vmem:[%s10262_s0 + $0x2f8] sm:$0xff] }
 0x2c0   :  { %10552 = vst [vmem:[#allocation74_spill] sm:$0xff] %v6600_v9  ;;  %v6609_v2 = vsub.f32 %v4533_v43, %v5756_v14 }
 0x2c1   :  { %v1486_v25 = vadd.f32 %v1485_v42, %v1484_v15  ;;  %v1148_v42 = vmul.f32 %v6582_v33, %v6582_v33  ;;  %v1491_v15 = vsel %vm274_vm1, %v1146_v57, 0.0  ;;  %v4534_v33 = vld [vmem:[%s10262_s0 + $0x300] sm:$0xff] }
 0x2c2   :  { %10553 = vst [vmem:[#allocation75_spill] sm:$0xff] %v6609_v2  ;;  %v6618_v57 = vsub.f32 %v4534_v33, %v5756_v14 }
 0x2c3   :  { %v1488_v8 = vadd.f32 %v1487_v35, %v1486_v25  ;;  %v1149_v35 = vmul.f32 %v6591_v23, %v6591_v23  ;;  %v1493_v25 = vsel %vm274_vm1, %v1147_v50, 0.0  ;;  %v4535_v23 = vld [vmem:[%s10262_s0 + $0x308] sm:$0xff] }
 0x2c4   :  { %10554 = vst [vmem:[#allocation76_spill] sm:$0xff] %v6618_v57  ;;  %v6627_v50 = vsub.f32 %v4535_v23, %v5756_v14 }
 0x2c5   :  { %v1490_v62 = vadd.f32 %v1489_v26, %v1488_v8  ;;  %v1150_v26 = vmul.f32 %v6600_v9, %v6600_v9  ;;  %v1495_v8 = vsel %vm274_vm1, %v1148_v42, 0.0  ;;  %v4536_v9 = vld [vmem:[%s10262_s0 + $0x310] sm:$0xff] }
 0x2c6   :  { %10555 = vst [vmem:[#allocation77_spill] sm:$0xff] %v6627_v50  ;;  %v6636_v42 = vsub.f32 %v4536_v9, %v5756_v14 }
 0x2c7   :  { %v1492_v53 = vadd.f32 %v1491_v15, %v1490_v62  ;;  %v1151_v15 = vmul.f32 %v6609_v2, %v6609_v2  ;;  %v1497_v62 = vsel %vm274_vm1, %v1149_v35, 0.0  ;;  %v4537_v2 = vld [vmem:[%s10262_s0 + $0x318] sm:$0xff] }
 0x2c8   :  { %10556 = vst [vmem:[#allocation78_spill] sm:$0xff] %v6636_v42  ;;  %v6645_v35 = vsub.f32 %v4537_v2, %v5756_v14 }
 0x2c9   :  { %v1494_v43 = vadd.f32 %v1493_v25, %v1492_v53  ;;  %v1152_v25 = vmul.f32 %v6618_v57, %v6618_v57  ;;  %v1499_v53 = vsel %vm274_vm1, %v1150_v26, 0.0  ;;  %v4538_v57 = vld [vmem:[%s10262_s0 + $0x320] sm:$0xff] }
 0x2ca   :  { %10557 = vst [vmem:[#allocation79_spill] sm:$0xff] %v6645_v35  ;;  %v6654_v26 = vsub.f32 %v4538_v57, %v5756_v14 }
 0x2cb   :  { %v1496_v33 = vadd.f32 %v1495_v8, %v1494_v43  ;;  %v1153_v8 = vmul.f32 %v6627_v50, %v6627_v50  ;;  %v1501_v43 = vsel %vm274_vm1, %v1151_v15, 0.0  ;;  %v4539_v50 = vld [vmem:[%s10262_s0 + $0x328] sm:$0xff] }
 0x2cc   :  { %10558 = vst [vmem:[#allocation80_spill] sm:$0xff] %v6654_v26  ;;  %v6663_v15 = vsub.f32 %v4539_v50, %v5756_v14 }
 0x2cd   :  { %v1498_v23 = vadd.f32 %v1497_v62, %v1496_v33  ;;  %v1154_v62 = vmul.f32 %v6636_v42, %v6636_v42  ;;  %v1503_v33 = vsel %vm274_vm1, %v1152_v25, 0.0  ;;  %v4540_v42 = vld [vmem:[%s10262_s0 + $0x330] sm:$0xff] }
 0x2ce   :  { %10559 = vst [vmem:[#allocation81_spill] sm:$0xff] %v6663_v15  ;;  %v6672_v25 = vsub.f32 %v4540_v42, %v5756_v14 }
 0x2cf   :  { %v1500_v9 = vadd.f32 %v1499_v53, %v1498_v23  ;;  %v1155_v53 = vmul.f32 %v6645_v35, %v6645_v35  ;;  %v1505_v23 = vsel %vm274_vm1, %v1153_v8, 0.0  ;;  %v4541_v35 = vld [vmem:[%s10262_s0 + $0x338] sm:$0xff] }
 0x2d0   :  { %10560 = vst [vmem:[#allocation82_spill] sm:$0xff] %v6672_v25  ;;  %v6681_v8 = vsub.f32 %v4541_v35, %v5756_v14 }
 0x2d1   :  { %v1502_v2 = vadd.f32 %v1501_v43, %v1500_v9  ;;  %v1156_v43 = vmul.f32 %v6654_v26, %v6654_v26  ;;  %v1507_v9 = vsel %vm274_vm1, %v1154_v62, 0.0  ;;  %v4542_v26 = vld [vmem:[%s10262_s0 + $0x340] sm:$0xff] }
 0x2d2   :  { %10561 = vst [vmem:[#allocation83_spill] sm:$0xff] %v6681_v8  ;;  %v6690_v62 = vsub.f32 %v4542_v26, %v5756_v14 }
 0x2d3   :  { %v1504_v57 = vadd.f32 %v1503_v33, %v1502_v2  ;;  %v1157_v33 = vmul.f32 %v6663_v15, %v6663_v15  ;;  %v1509_v2 = vsel %vm274_vm1, %v1155_v53, 0.0  ;;  %v4543_v15 = vld [vmem:[%s10262_s0 + $0x348] sm:$0xff] }
 0x2d4   :  { %10562 = vst [vmem:[#allocation84_spill] sm:$0xff] %v6690_v62  ;;  %v6699_v53 = vsub.f32 %v4543_v15, %v5756_v14 }
 0x2d5   :  { %v1506_v50 = vadd.f32 %v1505_v23, %v1504_v57  ;;  %v1158_v23 = vmul.f32 %v6672_v25, %v6672_v25  ;;  %v1511_v57 = vsel %vm274_vm1, %v1156_v43, 0.0  ;;  %v4544_v25 = vld [vmem:[%s10262_s0 + $0x350] sm:$0xff] }
 0x2d6   :  { %10563 = vst [vmem:[#allocation85_spill] sm:$0xff] %v6699_v53  ;;  %v6708_v43 = vsub.f32 %v4544_v25, %v5756_v14 }
 0x2d7   :  { %v1508_v42 = vadd.f32 %v1507_v9, %v1506_v50  ;;  %v1159_v9 = vmul.f32 %v6681_v8, %v6681_v8  ;;  %v1513_v50 = vsel %vm274_vm1, %v1157_v33, 0.0  ;;  %v4545_v8 = vld [vmem:[%s10262_s0 + $0x358] sm:$0xff] }
 0x2d8   :  { %10564 = vst [vmem:[#allocation86_spill] sm:$0xff] %v6708_v43  ;;  %v6717_v33 = vsub.f32 %v4545_v8, %v5756_v14 }
 0x2d9   :  { %v1510_v35 = vadd.f32 %v1509_v2, %v1508_v42  ;;  %v1160_v2 = vmul.f32 %v6690_v62, %v6690_v62  ;;  %v1515_v42 = vsel %vm274_vm1, %v1158_v23, 0.0  ;;  %v4546_v62 = vld [vmem:[%s10262_s0 + $0x360] sm:$0xff] }
 0x2da   :  { %10565 = vst [vmem:[#allocation87_spill] sm:$0xff] %v6717_v33  ;;  %v6726_v23 = vsub.f32 %v4546_v62, %v5756_v14 }
 0x2db   :  { %v1512_v26 = vadd.f32 %v1511_v57, %v1510_v35  ;;  %v1161_v57 = vmul.f32 %v6699_v53, %v6699_v53  ;;  %v1517_v35 = vsel %vm274_vm1, %v1159_v9, 0.0  ;;  %v4547_v53 = vld [vmem:[%s10262_s0 + $0x368] sm:$0xff] }
 0x2dc   :  { %10566 = vst [vmem:[#allocation88_spill] sm:$0xff] %v6726_v23  ;;  %v6735_v9 = vsub.f32 %v4547_v53, %v5756_v14 }
 0x2dd   :  { %v1514_v15 = vadd.f32 %v1513_v50, %v1512_v26  ;;  %v1162_v50 = vmul.f32 %v6708_v43, %v6708_v43  ;;  %v1519_v26 = vsel %vm274_vm1, %v1160_v2, 0.0  ;;  %v4548_v43 = vld [vmem:[%s10262_s0 + $0x370] sm:$0xff] }
 0x2de   :  { %10567 = vst [vmem:[#allocation89_spill] sm:$0xff] %v6735_v9  ;;  %v6744_v2 = vsub.f32 %v4548_v43, %v5756_v14 }
 0x2df   :  { %v1516_v25 = vadd.f32 %v1515_v42, %v1514_v15  ;;  %v1163_v42 = vmul.f32 %v6717_v33, %v6717_v33  ;;  %v1521_v15 = vsel %vm274_vm1, %v1161_v57, 0.0  ;;  %v4549_v33 = vld [vmem:[%s10262_s0 + $0x378] sm:$0xff] }
 0x2e0   :  { %10568 = vst [vmem:[#allocation90_spill] sm:$0xff] %v6744_v2  ;;  %v6753_v57 = vsub.f32 %v4549_v33, %v5756_v14 }
 0x2e1   :  { %v1518_v8 = vadd.f32 %v1517_v35, %v1516_v25  ;;  %v1164_v35 = vmul.f32 %v6726_v23, %v6726_v23  ;;  %v1523_v25 = vsel %vm274_vm1, %v1162_v50, 0.0  ;;  %v4550_v23 = vld [vmem:[%s10262_s0 + $0x380] sm:$0xff] }
 0x2e2   :  { %10569 = vst [vmem:[#allocation91_spill] sm:$0xff] %v6753_v57  ;;  %v6762_v50 = vsub.f32 %v4550_v23, %v5756_v14 }
 0x2e3   :  { %v1520_v62 = vadd.f32 %v1519_v26, %v1518_v8  ;;  %v1165_v26 = vmul.f32 %v6735_v9, %v6735_v9  ;;  %v1525_v8 = vsel %vm274_vm1, %v1163_v42, 0.0  ;;  %v4551_v9 = vld [vmem:[%s10262_s0 + $0x388] sm:$0xff] }
 0x2e4   :  { %10570 = vst [vmem:[#allocation92_spill] sm:$0xff] %v6762_v50  ;;  %v6771_v42 = vsub.f32 %v4551_v9, %v5756_v14 }
 0x2e5   :  { %v1522_v53 = vadd.f32 %v1521_v15, %v1520_v62  ;;  %v1166_v15 = vmul.f32 %v6744_v2, %v6744_v2  ;;  %v1527_v62 = vsel %vm274_vm1, %v1164_v35, 0.0  ;;  %v4552_v2 = vld [vmem:[%s10262_s0 + $0x390] sm:$0xff] }
 0x2e6   :  { %10571 = vst [vmem:[#allocation93_spill] sm:$0xff] %v6771_v42  ;;  %v6780_v35 = vsub.f32 %v4552_v2, %v5756_v14 }
 0x2e7   :  { %v1524_v43 = vadd.f32 %v1523_v25, %v1522_v53  ;;  %v1167_v25 = vmul.f32 %v6753_v57, %v6753_v57  ;;  %v1529_v53 = vsel %vm274_vm1, %v1165_v26, 0.0  ;;  %v4553_v57 = vld [vmem:[%s10262_s0 + $0x398] sm:$0xff] }
 0x2e8   :  { %10572 = vst [vmem:[#allocation94_spill] sm:$0xff] %v6780_v35  ;;  %v6789_v26 = vsub.f32 %v4553_v57, %v5756_v14 }
 0x2e9   :  { %v1526_v33 = vadd.f32 %v1525_v8, %v1524_v43  ;;  %v1168_v8 = vmul.f32 %v6762_v50, %v6762_v50  ;;  %v1531_v43 = vsel %vm274_vm1, %v1166_v15, 0.0  ;;  %v4554_v50 = vld [vmem:[%s10262_s0 + $0x3a0] sm:$0xff] }
 0x2ea   :  { %10573 = vst [vmem:[#allocation95_spill] sm:$0xff] %v6789_v26  ;;  %v6798_v15 = vsub.f32 %v4554_v50, %v5756_v14 }
 0x2eb   :  { %v1528_v23 = vadd.f32 %v1527_v62, %v1526_v33  ;;  %v1169_v62 = vmul.f32 %v6771_v42, %v6771_v42  ;;  %v1533_v33 = vsel %vm274_vm1, %v1167_v25, 0.0  ;;  %v4555_v42 = vld [vmem:[%s10262_s0 + $0x3a8] sm:$0xff] }
 0x2ec   :  { %10574 = vst [vmem:[#allocation96_spill] sm:$0xff] %v6798_v15  ;;  %v6807_v25 = vsub.f32 %v4555_v42, %v5756_v14 }
 0x2ed   :  { %v1530_v9 = vadd.f32 %v1529_v53, %v1528_v23  ;;  %v1170_v53 = vmul.f32 %v6780_v35, %v6780_v35  ;;  %v1535_v23 = vsel %vm274_vm1, %v1168_v8, 0.0  ;;  %v4556_v35 = vld [vmem:[%s10262_s0 + $0x3b0] sm:$0xff] }
 0x2ee   :  { %10575 = vst [vmem:[#allocation97_spill] sm:$0xff] %v6807_v25  ;;  %v6816_v8 = vsub.f32 %v4556_v35, %v5756_v14 }
 0x2ef   :  { %v1532_v2 = vadd.f32 %v1531_v43, %v1530_v9  ;;  %v1171_v43 = vmul.f32 %v6789_v26, %v6789_v26  ;;  %v1537_v9 = vsel %vm274_vm1, %v1169_v62, 0.0  ;;  %v4557_v26 = vld [vmem:[%s10262_s0 + $0x3b8] sm:$0xff] }
 0x2f0   :  { %10576 = vst [vmem:[#allocation98_spill] sm:$0xff] %v6816_v8  ;;  %v6825_v62 = vsub.f32 %v4557_v26, %v5756_v14 }
 0x2f1   :  { %v1534_v57 = vadd.f32 %v1533_v33, %v1532_v2  ;;  %v1172_v33 = vmul.f32 %v6798_v15, %v6798_v15  ;;  %v1539_v2 = vsel %vm274_vm1, %v1170_v53, 0.0  ;;  %v4558_v15 = vld [vmem:[%s10262_s0 + $0x3c0] sm:$0xff] }
 0x2f2   :  { %10577 = vst [vmem:[#allocation99_spill] sm:$0xff] %v6825_v62  ;;  %v6834_v53 = vsub.f32 %v4558_v15, %v5756_v14 }
 0x2f3   :  { %v1536_v50 = vadd.f32 %v1535_v23, %v1534_v57  ;;  %v1173_v23 = vmul.f32 %v6807_v25, %v6807_v25  ;;  %v1541_v57 = vsel %vm274_vm1, %v1171_v43, 0.0  ;;  %v4559_v25 = vld [vmem:[%s10262_s0 + $0x3c8] sm:$0xff] }
 0x2f4   :  { %10578 = vst [vmem:[#allocation100_spill] sm:$0xff] %v6834_v53  ;;  %v6843_v43 = vsub.f32 %v4559_v25, %v5756_v14 }
 0x2f5   :  { %v1538_v42 = vadd.f32 %v1537_v9, %v1536_v50  ;;  %v1174_v9 = vmul.f32 %v6816_v8, %v6816_v8  ;;  %v1543_v50 = vsel %vm274_vm1, %v1172_v33, 0.0  ;;  %v4560_v8 = vld [vmem:[%s10262_s0 + $0x3d0] sm:$0xff] }
 0x2f6   :  { %10579 = vst [vmem:[#allocation101_spill] sm:$0xff] %v6843_v43  ;;  %v6852_v33 = vsub.f32 %v4560_v8, %v5756_v14 }
 0x2f7   :  { %v1540_v35 = vadd.f32 %v1539_v2, %v1538_v42  ;;  %v1175_v2 = vmul.f32 %v6825_v62, %v6825_v62  ;;  %v1545_v42 = vsel %vm274_vm1, %v1173_v23, 0.0  ;;  %v4561_v62 = vld [vmem:[%s10262_s0 + $0x3d8] sm:$0xff] }
 0x2f8   :  { %10580 = vst [vmem:[#allocation102_spill] sm:$0xff] %v6852_v33  ;;  %v6861_v23 = vsub.f32 %v4561_v62, %v5756_v14 }
 0x2f9   :  { %v1542_v26 = vadd.f32 %v1541_v57, %v1540_v35  ;;  %v1176_v57 = vmul.f32 %v6834_v53, %v6834_v53  ;;  %v1547_v35 = vsel %vm274_vm1, %v1174_v9, 0.0  ;;  %v4562_v53 = vld [vmem:[%s10262_s0 + $0x3e0] sm:$0xff] }
 0x2fa   :  { %10581 = vst [vmem:[#allocation103_spill] sm:$0xff] %v6861_v23  ;;  %v6870_v9 = vsub.f32 %v4562_v53, %v5756_v14 }
 0x2fb   :  { %v1544_v15 = vadd.f32 %v1543_v50, %v1542_v26  ;;  %v1177_v50 = vmul.f32 %v6843_v43, %v6843_v43  ;;  %v1549_v26 = vsel %vm274_vm1, %v1175_v2, 0.0  ;;  %v4563_v43 = vld [vmem:[%s10262_s0 + $0x3e8] sm:$0xff] }
 0x2fc   :  { %10582 = vst [vmem:[#allocation104_spill] sm:$0xff] %v6870_v9  ;;  %v6879_v2 = vsub.f32 %v4563_v43, %v5756_v14 }
 0x2fd   :  { %v1546_v25 = vadd.f32 %v1545_v42, %v1544_v15  ;;  %v1178_v42 = vmul.f32 %v6852_v33, %v6852_v33  ;;  %v1551_v15 = vsel %vm274_vm1, %v1176_v57, 0.0  ;;  %v4564_v33 = vld [vmem:[%s10262_s0 + $0x3f0] sm:$0xff] }
 0x2fe   :  { %10583 = vst [vmem:[#allocation105_spill] sm:$0xff] %v6879_v2  ;;  %v6888_v57 = vsub.f32 %v4564_v33, %v5756_v14 }
 0x2ff   :  { %v1548_v8 = vadd.f32 %v1547_v35, %v1546_v25  ;;  %v1179_v35 = vmul.f32 %v6861_v23, %v6861_v23  ;;  %v1553_v25 = vsel %vm274_vm1, %v1177_v50, 0.0  ;;  %v4565_v23 = vld [vmem:[%s10262_s0 + $0x3f8] sm:$0xff] }
 0x300   :  { %10584 = vst [vmem:[#allocation106_spill] sm:$0xff] %v6888_v57  ;;  %v6897_v50 = vsub.f32 %v4565_v23, %v5756_v14 }
 0x301   :  { %v1550_v62 = vadd.f32 %v1549_v26, %v1548_v8  ;;  %v1180_v26 = vmul.f32 %v6870_v9, %v6870_v9  ;;  %v1555_v8 = vsel %vm274_vm1, %v1178_v42, 0.0  ;;  %v4566_v9 = vld [vmem:[%s10262_s0 + $0x400] sm:$0xff] }
 0x302   :  { %10585 = vst [vmem:[#allocation107_spill] sm:$0xff] %v6897_v50  ;;  %v6906_v42 = vsub.f32 %v4566_v9, %v5756_v14 }
 0x303   :  { %v1552_v53 = vadd.f32 %v1551_v15, %v1550_v62  ;;  %v1181_v15 = vmul.f32 %v6879_v2, %v6879_v2  ;;  %v1557_v62 = vsel %vm274_vm1, %v1179_v35, 0.0  ;;  %v4567_v2 = vld [vmem:[%s10262_s0 + $0x408] sm:$0xff] }
 0x304   :  { %v6915_v35 = vsub.f32 %v4567_v2, %v5756_v14 }
 0x305   :  { %v1554_v43 = vadd.f32 %v1553_v25, %v1552_v53  ;;  %v1182_v25 = vmul.f32 %v6888_v57, %v6888_v57  ;;  %v1559_v53 = vsel %vm274_vm1, %v1180_v26, 0.0  ;;  %v4568_v57 = vld [vmem:[%s10262_s0 + $0x410] sm:$0xff] }
 0x306   :  { %v6924_v26 = vsub.f32 %v4568_v57, %v5756_v14 }
 0x307   :  { %v1556_v33 = vadd.f32 %v1555_v8, %v1554_v43  ;;  %v1183_v8 = vmul.f32 %v6897_v50, %v6897_v50  ;;  %v1561_v43 = vsel %vm274_vm1, %v1181_v15, 0.0  ;;  %v4569_v50 = vld [vmem:[%s10262_s0 + $0x418] sm:$0xff] }
 0x308   :  { %v6933_v15 = vsub.f32 %v4569_v50, %v5756_v14 }
 0x309   :  { %v1558_v23 = vadd.f32 %v1557_v62, %v1556_v33  ;;  %v1184_v62 = vmul.f32 %v6906_v42, %v6906_v42  ;;  %v1563_v33 = vsel %vm274_vm1, %v1182_v25, 0.0  ;;  %v6942_v25 = vsub.f32 %v4570_v37, %v5756_v14 }
 0x30b   :  { %v1560_v9 = vadd.f32 %v1559_v53, %v1558_v23  ;;  %v1185_v53 = vmul.f32 %v6915_v35, %v6915_v35  ;;  %v1565_v23 = vsel %vm274_vm1, %v1183_v8, 0.0  ;;  %v6951_v8 = vsub.f32 %v4571_v7, %v5756_v14 }
 0x30d   :  { %v1562_v2 = vadd.f32 %v1561_v43, %v1560_v9  ;;  %v1186_v43 = vmul.f32 %v6924_v26, %v6924_v26  ;;  %v1567_v9 = vsel %vm274_vm1, %v1184_v62, 0.0  ;;  %v6960_v62 = vsub.f32 %v4572_v1, %v5756_v14 }
 0x30f   :  { %v1564_v57 = vadd.f32 %v1563_v33, %v1562_v2  ;;  %v1187_v33 = vmul.f32 %v6933_v15, %v6933_v15  ;;  %v1569_v2 = vsel %vm274_vm1, %v1185_v53, 0.0  ;;  %v6969_v53 = vsub.f32 %v4573_v48, %v5756_v14 }
 0x311   :  { %v1566_v50 = vadd.f32 %v1565_v23, %v1564_v57  ;;  %v1188_v23 = vmul.f32 %v6942_v25, %v6942_v25  ;;  %v1571_v57 = vsel %vm274_vm1, %v1186_v43, 0.0  ;;  %v6978_v43 = vsub.f32 %v4574_v61, %v5756_v14 }
 0x313   :  { %v1568_v37 = vadd.f32 %v1567_v9, %v1566_v50  ;;  %v1189_v9 = vmul.f32 %v6951_v8, %v6951_v8  ;;  %v1573_v50 = vsel %vm274_vm1, %v1187_v33, 0.0  ;;  %v6987_v33 = vsub.f32 %v4575_v58, %v5756_v14 }
 0x315   :  { %v1570_v7 = vadd.f32 %v1569_v2, %v1568_v37  ;;  %v1190_v2 = vmul.f32 %v6960_v62, %v6960_v62  ;;  %v1575_v37 = vsel %vm274_vm1, %v1188_v23, 0.0  ;;  %v6996_v23 = vsub.f32 %v4576_v52, %v5756_v14 }
 0x317   :  { %v1572_v1 = vadd.f32 %v1571_v57, %v1570_v7  ;;  %v1191_v57 = vmul.f32 %v6969_v53, %v6969_v53  ;;  %v1577_v7 = vsel %vm274_vm1, %v1189_v9, 0.0  ;;  %10586 = vst [vmem:[#allocation108_spill] sm:$0xff] %v6996_v23  ;;  %v7005_v9 = vsub.f32 %v4577_v11, %v5756_v14 }
 0x319   :  { %v1574_v48 = vadd.f32 %v1573_v50, %v1572_v1  ;;  %v1192_v50 = vmul.f32 %v6978_v43, %v6978_v43  ;;  %v1579_v1 = vsel %vm274_vm1, %v1190_v2, 0.0  ;;  %10587 = vst [vmem:[#allocation109_spill] sm:$0xff] %v7005_v9  ;;  %v7014_v2 = vsub.f32 %v4578_v30, %v5756_v14 }
 0x31b   :  { %v1576_v61 = vadd.f32 %v1575_v37, %v1574_v48  ;;  %v1193_v37 = vmul.f32 %v6987_v33, %v6987_v33  ;;  %v1581_v48 = vsel %vm274_vm1, %v1191_v57, 0.0  ;;  %10588 = vst [vmem:[#allocation110_spill] sm:$0xff] %v7014_v2  ;;  %v7023_v57 = vsub.f32 %v4579_v46, %v5756_v14 }
 0x31d   :  { %v1578_v58 = vadd.f32 %v1577_v7, %v1576_v61  ;;  %v1194_v7 = vmul.f32 %v6996_v23, %v6996_v23  ;;  %v1583_v61 = vsel %vm274_vm1, %v1192_v50, 0.0  ;;  %10589 = vst [vmem:[#allocation111_spill] sm:$0xff] %v7023_v57  ;;  %v7032_v50 = vsub.f32 %v4580_v40, %v5756_v14 }
 0x31f   :  { %v1580_v52 = vadd.f32 %v1579_v1, %v1578_v58  ;;  %v1195_v1 = vmul.f32 %v7005_v9, %v7005_v9  ;;  %v1585_v58 = vsel %vm274_vm1, %v1193_v37, 0.0  ;;  %10590 = vst [vmem:[#allocation112_spill] sm:$0xff] %v7032_v50  ;;  %v7041_v37 = vsub.f32 %v4581_v45, %v5756_v14 }
 0x321   :  { %v1582_v11 = vadd.f32 %v1581_v48, %v1580_v52  ;;  %v1196_v48 = vmul.f32 %v7014_v2, %v7014_v2  ;;  %v1587_v52 = vsel %vm274_vm1, %v1194_v7, 0.0  ;;  %10591 = vst [vmem:[#allocation113_spill] sm:$0xff] %v7041_v37  ;;  %v7050_v7 = vsub.f32 %v4582_v60, %v5756_v14  ;;  %v4640_v2 = vld [vmem:[%s10262_s0 + $0x650] sm:$0xff] }
 0x323   :  { %v1584_v30 = vadd.f32 %v1583_v61, %v1582_v11  ;;  %v1197_v61 = vmul.f32 %v7023_v57, %v7023_v57  ;;  %v1589_v11 = vsel %vm274_vm1, %v1195_v1, 0.0  ;;  %10592 = vst [vmem:[#allocation114_spill] sm:$0xff] %v7050_v7  ;;  %v7059_v1 = vsub.f32 %v4583_v34, %v5756_v14  ;;  %v4639_v57 = vld [vmem:[%s10262_s0 + $0x648] sm:$0xff] }
 0x325   :  { %v1586_v46 = vadd.f32 %v1585_v58, %v1584_v30  ;;  %v1198_v58 = vmul.f32 %v7032_v50, %v7032_v50  ;;  %v1591_v30 = vsel %vm274_vm1, %v1196_v48, 0.0  ;;  %10593 = vst [vmem:[#allocation115_spill] sm:$0xff] %v7059_v1  ;;  %v7068_v48 = vsub.f32 %v4584_v27, %v5756_v14  ;;  %v4634_v50 = vld [vmem:[%s10262_s0 + $0x620] sm:$0xff] }
 0x327   :  { %v1588_v40 = vadd.f32 %v1587_v52, %v1586_v46  ;;  %v1199_v52 = vmul.f32 %v7041_v37, %v7041_v37  ;;  %v1593_v46 = vsel %vm274_vm1, %v1197_v61, 0.0  ;;  %10594 = vst [vmem:[#allocation116_spill] sm:$0xff] %v7068_v48  ;;  %v4585_v37 = vld [vmem:[%s10262_s0 + $0x498] sm:$0xff] }
 0x328   :  { %v7077_v61 = vsub.f32 %v4585_v37, %v5756_v14 }
 0x329   :  { %v1590_v45 = vadd.f32 %v1589_v11, %v1588_v40  ;;  %v1200_v11 = vmul.f32 %v7050_v7, %v7050_v7  ;;  %v1595_v40 = vsel %vm274_vm1, %v1198_v58, 0.0  ;;  %v4586_v7 = vld [vmem:[%s10262_s0 + $0x4a0] sm:$0xff] }
 0x32a   :  { %10595 = vst [vmem:[#allocation117_spill] sm:$0xff] %v7077_v61  ;;  %v7086_v58 = vsub.f32 %v4586_v7, %v5756_v14 }
 0x32b   :  { %v1592_v60 = vadd.f32 %v1591_v30, %v1590_v45  ;;  %v1201_v30 = vmul.f32 %v7059_v1, %v7059_v1  ;;  %v1597_v45 = vsel %vm274_vm1, %v1199_v52, 0.0  ;;  %v4587_v1 = vld [vmem:[%s10262_s0 + $0x4a8] sm:$0xff] }
 0x32c   :  { %10596 = vst [vmem:[#allocation118_spill] sm:$0xff] %v7086_v58  ;;  %v7095_v52 = vsub.f32 %v4587_v1, %v5756_v14 }
 0x32d   :  { %v1594_v34 = vadd.f32 %v1593_v46, %v1592_v60  ;;  %v1202_v46 = vmul.f32 %v7068_v48, %v7068_v48  ;;  %v1599_v60 = vsel %vm274_vm1, %v1200_v11, 0.0  ;;  %v4588_v48 = vld [vmem:[%s10262_s0 + $0x4b0] sm:$0xff] }
 0x32e   :  { %10597 = vst [vmem:[#allocation119_spill] sm:$0xff] %v7095_v52  ;;  %v7104_v11 = vsub.f32 %v4588_v48, %v5756_v14 }
 0x32f   :  { %v1596_v27 = vadd.f32 %v1595_v40, %v1594_v34  ;;  %v1203_v40 = vmul.f32 %v7077_v61, %v7077_v61  ;;  %v1601_v34 = vsel %vm274_vm1, %v1201_v30, 0.0  ;;  %v4589_v61 = vld [vmem:[%s10262_s0 + $0x4b8] sm:$0xff] }
 0x330   :  { %10598 = vst [vmem:[#allocation120_spill] sm:$0xff] %v7104_v11  ;;  %v7113_v30 = vsub.f32 %v4589_v61, %v5756_v14 }
 0x331   :  { %v1598_v37 = vadd.f32 %v1597_v45, %v1596_v27  ;;  %v1204_v45 = vmul.f32 %v7086_v58, %v7086_v58  ;;  %v1603_v27 = vsel %vm274_vm1, %v1202_v46, 0.0  ;;  %v4590_v58 = vld [vmem:[%s10262_s0 + $0x4c0] sm:$0xff] }
 0x332   :  { %10599 = vst [vmem:[#allocation121_spill] sm:$0xff] %v7113_v30  ;;  %v7122_v46 = vsub.f32 %v4590_v58, %v5756_v14 }
 0x333   :  { %v1600_v7 = vadd.f32 %v1599_v60, %v1598_v37  ;;  %v1205_v60 = vmul.f32 %v7095_v52, %v7095_v52  ;;  %v1605_v37 = vsel %vm274_vm1, %v1203_v40, 0.0  ;;  %v4591_v52 = vld [vmem:[%s10262_s0 + $0x4c8] sm:$0xff] }
 0x334   :  { %10600 = vst [vmem:[#allocation122_spill] sm:$0xff] %v7122_v46  ;;  %v7131_v40 = vsub.f32 %v4591_v52, %v5756_v14 }
 0x335   :  { %v1602_v1 = vadd.f32 %v1601_v34, %v1600_v7  ;;  %v1206_v34 = vmul.f32 %v7104_v11, %v7104_v11  ;;  %v1607_v7 = vsel %vm274_vm1, %v1204_v45, 0.0  ;;  %v4592_v11 = vld [vmem:[%s10262_s0 + $0x4d0] sm:$0xff] }
 0x336   :  { %10601 = vst [vmem:[#allocation123_spill] sm:$0xff] %v7131_v40  ;;  %v7140_v45 = vsub.f32 %v4592_v11, %v5756_v14 }
 0x337   :  { %v1604_v48 = vadd.f32 %v1603_v27, %v1602_v1  ;;  %v1207_v27 = vmul.f32 %v7113_v30, %v7113_v30  ;;  %v1609_v1 = vsel %vm274_vm1, %v1205_v60, 0.0  ;;  %v4593_v30 = vld [vmem:[%s10262_s0 + $0x4d8] sm:$0xff] }
 0x338   :  { %10602 = vst [vmem:[#allocation124_spill] sm:$0xff] %v7140_v45  ;;  %v7149_v60 = vsub.f32 %v4593_v30, %v5756_v14 }
 0x339   :  { %v1606_v61 = vadd.f32 %v1605_v37, %v1604_v48  ;;  %v1208_v37 = vmul.f32 %v7122_v46, %v7122_v46  ;;  %v1611_v48 = vsel %vm274_vm1, %v1206_v34, 0.0  ;;  %v4594_v46 = vld [vmem:[%s10262_s0 + $0x4e0] sm:$0xff] }
 0x33a   :  { %10603 = vst [vmem:[#allocation125_spill] sm:$0xff] %v7149_v60  ;;  %v7158_v34 = vsub.f32 %v4594_v46, %v5756_v14 }
 0x33b   :  { %v1608_v58 = vadd.f32 %v1607_v7, %v1606_v61  ;;  %v1209_v7 = vmul.f32 %v7131_v40, %v7131_v40  ;;  %v1613_v61 = vsel %vm274_vm1, %v1207_v27, 0.0  ;;  %v4595_v40 = vld [vmem:[%s10262_s0 + $0x4e8] sm:$0xff] }
 0x33c   :  { %10604 = vst [vmem:[#allocation126_spill] sm:$0xff] %v7158_v34  ;;  %v7167_v27 = vsub.f32 %v4595_v40, %v5756_v14 }
 0x33d   :  { %v1610_v52 = vadd.f32 %v1609_v1, %v1608_v58  ;;  %v1210_v1 = vmul.f32 %v7140_v45, %v7140_v45  ;;  %v1615_v58 = vsel %vm274_vm1, %v1208_v37, 0.0  ;;  %v4596_v45 = vld [vmem:[%s10262_s0 + $0x4f0] sm:$0xff] }
 0x33e   :  { %10605 = vst [vmem:[#allocation127_spill] sm:$0xff] %v7167_v27  ;;  %v7176_v37 = vsub.f32 %v4596_v45, %v5756_v14 }
 0x33f   :  { %v1612_v11 = vadd.f32 %v1611_v48, %v1610_v52  ;;  %v1211_v48 = vmul.f32 %v7149_v60, %v7149_v60  ;;  %v1617_v52 = vsel %vm274_vm1, %v1209_v7, 0.0  ;;  %v4597_v60 = vld [vmem:[%s10262_s0 + $0x4f8] sm:$0xff] }
 0x340   :  { %10606 = vst [vmem:[#allocation128_spill] sm:$0xff] %v7176_v37  ;;  %v7185_v7 = vsub.f32 %v4597_v60, %v5756_v14 }
 0x341   :  { %v1614_v30 = vadd.f32 %v1613_v61, %v1612_v11  ;;  %v1212_v61 = vmul.f32 %v7158_v34, %v7158_v34  ;;  %v1619_v11 = vsel %vm274_vm1, %v1210_v1, 0.0  ;;  %v4598_v34 = vld [vmem:[%s10262_s0 + $0x500] sm:$0xff] }
 0x342   :  { %10607 = vst [vmem:[#allocation129_spill] sm:$0xff] %v7185_v7  ;;  %v7194_v1 = vsub.f32 %v4598_v34, %v5756_v14 }
 0x343   :  { %v1616_v46 = vadd.f32 %v1615_v58, %v1614_v30  ;;  %v1213_v58 = vmul.f32 %v7167_v27, %v7167_v27  ;;  %v1621_v30 = vsel %vm274_vm1, %v1211_v48, 0.0  ;;  %v4599_v27 = vld [vmem:[%s10262_s0 + $0x508] sm:$0xff] }
 0x344   :  { %10608 = vst [vmem:[#allocation130_spill] sm:$0xff] %v7194_v1  ;;  %v7203_v48 = vsub.f32 %v4599_v27, %v5756_v14 }
 0x345   :  { %v1618_v40 = vadd.f32 %v1617_v52, %v1616_v46  ;;  %v1214_v52 = vmul.f32 %v7176_v37, %v7176_v37  ;;  %v1623_v46 = vsel %vm274_vm1, %v1212_v61, 0.0  ;;  %v4600_v37 = vld [vmem:[%s10262_s0 + $0x510] sm:$0xff] }
 0x346   :  { %10609 = vst [vmem:[#allocation131_spill] sm:$0xff] %v7203_v48  ;;  %v7212_v61 = vsub.f32 %v4600_v37, %v5756_v14 }
 0x347   :  { %v1620_v45 = vadd.f32 %v1619_v11, %v1618_v40  ;;  %v1215_v11 = vmul.f32 %v7185_v7, %v7185_v7  ;;  %v1625_v40 = vsel %vm274_vm1, %v1213_v58, 0.0  ;;  %v4601_v7 = vld [vmem:[%s10262_s0 + $0x518] sm:$0xff] }
 0x348   :  { %10610 = vst [vmem:[#allocation132_spill] sm:$0xff] %v7212_v61  ;;  %v7221_v58 = vsub.f32 %v4601_v7, %v5756_v14 }
 0x349   :  { %v1622_v60 = vadd.f32 %v1621_v30, %v1620_v45  ;;  %v1216_v30 = vmul.f32 %v7194_v1, %v7194_v1  ;;  %v1627_v45 = vsel %vm274_vm1, %v1214_v52, 0.0  ;;  %v4602_v1 = vld [vmem:[%s10262_s0 + $0x520] sm:$0xff] }
 0x34a   :  { %10611 = vst [vmem:[#allocation133_spill] sm:$0xff] %v7221_v58  ;;  %v7230_v52 = vsub.f32 %v4602_v1, %v5756_v14 }
 0x34b   :  { %v1624_v34 = vadd.f32 %v1623_v46, %v1622_v60  ;;  %v1217_v46 = vmul.f32 %v7203_v48, %v7203_v48  ;;  %v1629_v60 = vsel %vm274_vm1, %v1215_v11, 0.0  ;;  %v4603_v48 = vld [vmem:[%s10262_s0 + $0x528] sm:$0xff] }
 0x34c   :  { %10612 = vst [vmem:[#allocation134_spill] sm:$0xff] %v7230_v52  ;;  %v7239_v11 = vsub.f32 %v4603_v48, %v5756_v14 }
 0x34d   :  { %v1626_v27 = vadd.f32 %v1625_v40, %v1624_v34  ;;  %v1218_v40 = vmul.f32 %v7212_v61, %v7212_v61  ;;  %v1631_v34 = vsel %vm274_vm1, %v1216_v30, 0.0  ;;  %v4604_v61 = vld [vmem:[%s10262_s0 + $0x530] sm:$0xff] }
 0x34e   :  { %10613 = vst [vmem:[#allocation135_spill] sm:$0xff] %v7239_v11  ;;  %v7248_v30 = vsub.f32 %v4604_v61, %v5756_v14 }
 0x34f   :  { %v1628_v37 = vadd.f32 %v1627_v45, %v1626_v27  ;;  %v1219_v45 = vmul.f32 %v7221_v58, %v7221_v58  ;;  %v1633_v27 = vsel %vm274_vm1, %v1217_v46, 0.0  ;;  %v4605_v58 = vld [vmem:[%s10262_s0 + $0x538] sm:$0xff] }
 0x350   :  { %10614 = vst [vmem:[#allocation136_spill] sm:$0xff] %v7248_v30  ;;  %v7257_v46 = vsub.f32 %v4605_v58, %v5756_v14 }
 0x351   :  { %v1630_v7 = vadd.f32 %v1629_v60, %v1628_v37  ;;  %v1220_v60 = vmul.f32 %v7230_v52, %v7230_v52  ;;  %v1635_v37 = vsel %vm274_vm1, %v1218_v40, 0.0  ;;  %v4606_v52 = vld [vmem:[%s10262_s0 + $0x540] sm:$0xff] }
 0x352   :  { %10615 = vst [vmem:[#allocation137_spill] sm:$0xff] %v7257_v46  ;;  %v7266_v40 = vsub.f32 %v4606_v52, %v5756_v14 }
 0x353   :  { %v1632_v1 = vadd.f32 %v1631_v34, %v1630_v7  ;;  %v1221_v34 = vmul.f32 %v7239_v11, %v7239_v11  ;;  %v1637_v7 = vsel %vm274_vm1, %v1219_v45, 0.0  ;;  %v4607_v11 = vld [vmem:[%s10262_s0 + $0x548] sm:$0xff] }
 0x354   :  { %10616 = vst [vmem:[#allocation138_spill] sm:$0xff] %v7266_v40  ;;  %v7275_v45 = vsub.f32 %v4607_v11, %v5756_v14 }
 0x355   :  { %v1634_v48 = vadd.f32 %v1633_v27, %v1632_v1  ;;  %v1222_v27 = vmul.f32 %v7248_v30, %v7248_v30  ;;  %v1639_v1 = vsel %vm274_vm1, %v1220_v60, 0.0  ;;  %v4608_v30 = vld [vmem:[%s10262_s0 + $0x550] sm:$0xff] }
 0x356   :  { %10617 = vst [vmem:[#allocation139_spill] sm:$0xff] %v7275_v45  ;;  %v7284_v60 = vsub.f32 %v4608_v30, %v5756_v14 }
 0x357   :  { %v1636_v61 = vadd.f32 %v1635_v37, %v1634_v48  ;;  %v1223_v37 = vmul.f32 %v7257_v46, %v7257_v46  ;;  %v1641_v48 = vsel %vm274_vm1, %v1221_v34, 0.0  ;;  %v4609_v46 = vld [vmem:[%s10262_s0 + $0x558] sm:$0xff] }
 0x358   :  { %10618 = vst [vmem:[#allocation140_spill] sm:$0xff] %v7284_v60  ;;  %v7293_v34 = vsub.f32 %v4609_v46, %v5756_v14 }
 0x359   :  { %v1638_v58 = vadd.f32 %v1637_v7, %v1636_v61  ;;  %v1224_v7 = vmul.f32 %v7266_v40, %v7266_v40  ;;  %v1643_v61 = vsel %vm274_vm1, %v1222_v27, 0.0  ;;  %v4610_v40 = vld [vmem:[%s10262_s0 + $0x560] sm:$0xff] }
 0x35a   :  { %10619 = vst [vmem:[#allocation141_spill] sm:$0xff] %v7293_v34  ;;  %v7302_v27 = vsub.f32 %v4610_v40, %v5756_v14 }
 0x35b   :  { %v1640_v52 = vadd.f32 %v1639_v1, %v1638_v58  ;;  %v1225_v1 = vmul.f32 %v7275_v45, %v7275_v45  ;;  %v1645_v58 = vsel %vm274_vm1, %v1223_v37, 0.0  ;;  %v4611_v45 = vld [vmem:[%s10262_s0 + $0x568] sm:$0xff] }
 0x35c   :  { %10620 = vst [vmem:[#allocation142_spill] sm:$0xff] %v7302_v27  ;;  %v7311_v37 = vsub.f32 %v4611_v45, %v5756_v14 }
 0x35d   :  { %v1642_v11 = vadd.f32 %v1641_v48, %v1640_v52  ;;  %v1226_v48 = vmul.f32 %v7284_v60, %v7284_v60  ;;  %v1647_v52 = vsel %vm274_vm1, %v1224_v7, 0.0  ;;  %v4612_v60 = vld [vmem:[%s10262_s0 + $0x570] sm:$0xff] }
 0x35e   :  { %10621 = vst [vmem:[#allocation143_spill] sm:$0xff] %v7311_v37  ;;  %v7320_v7 = vsub.f32 %v4612_v60, %v5756_v14 }
 0x35f   :  { %v1644_v30 = vadd.f32 %v1643_v61, %v1642_v11  ;;  %v1227_v61 = vmul.f32 %v7293_v34, %v7293_v34  ;;  %v1649_v11 = vsel %vm274_vm1, %v1225_v1, 0.0  ;;  %v4613_v34 = vld [vmem:[%s10262_s0 + $0x578] sm:$0xff] }
 0x360   :  { %10622 = vst [vmem:[#allocation144_spill] sm:$0xff] %v7320_v7  ;;  %v7329_v1 = vsub.f32 %v4613_v34, %v5756_v14 }
 0x361   :  { %v1646_v46 = vadd.f32 %v1645_v58, %v1644_v30  ;;  %v1228_v58 = vmul.f32 %v7302_v27, %v7302_v27  ;;  %v1651_v30 = vsel %vm274_vm1, %v1226_v48, 0.0  ;;  %v4614_v27 = vld [vmem:[%s10262_s0 + $0x580] sm:$0xff] }
 0x362   :  { %10623 = vst [vmem:[#allocation145_spill] sm:$0xff] %v7329_v1  ;;  %v7338_v48 = vsub.f32 %v4614_v27, %v5756_v14 }
 0x363   :  { %v1648_v40 = vadd.f32 %v1647_v52, %v1646_v46  ;;  %v1229_v52 = vmul.f32 %v7311_v37, %v7311_v37  ;;  %v1653_v46 = vsel %vm274_vm1, %v1227_v61, 0.0  ;;  %v4615_v37 = vld [vmem:[%s10262_s0 + $0x588] sm:$0xff] }
 0x364   :  { %10624 = vst [vmem:[#allocation146_spill] sm:$0xff] %v7338_v48  ;;  %v7347_v61 = vsub.f32 %v4615_v37, %v5756_v14 }
 0x365   :  { %v1650_v45 = vadd.f32 %v1649_v11, %v1648_v40  ;;  %v1230_v11 = vmul.f32 %v7320_v7, %v7320_v7  ;;  %v1655_v40 = vsel %vm274_vm1, %v1228_v58, 0.0  ;;  %v4616_v7 = vld [vmem:[%s10262_s0 + $0x590] sm:$0xff] }
 0x366   :  { %10625 = vst [vmem:[#allocation147_spill] sm:$0xff] %v7347_v61  ;;  %v7356_v58 = vsub.f32 %v4616_v7, %v5756_v14 }
 0x367   :  { %v1652_v60 = vadd.f32 %v1651_v30, %v1650_v45  ;;  %v1231_v30 = vmul.f32 %v7329_v1, %v7329_v1  ;;  %v1657_v45 = vsel %vm274_vm1, %v1229_v52, 0.0  ;;  %v4617_v1 = vld [vmem:[%s10262_s0 + $0x598] sm:$0xff] }
 0x368   :  { %10626 = vst [vmem:[#allocation148_spill] sm:$0xff] %v7356_v58  ;;  %v7365_v52 = vsub.f32 %v4617_v1, %v5756_v14 }
 0x369   :  { %v1654_v34 = vadd.f32 %v1653_v46, %v1652_v60  ;;  %v1232_v46 = vmul.f32 %v7338_v48, %v7338_v48  ;;  %v1659_v60 = vsel %vm274_vm1, %v1230_v11, 0.0  ;;  %v4618_v48 = vld [vmem:[%s10262_s0 + $0x5a0] sm:$0xff] }
 0x36a   :  { %10627 = vst [vmem:[#allocation149_spill] sm:$0xff] %v7365_v52  ;;  %v7374_v11 = vsub.f32 %v4618_v48, %v5756_v14 }
 0x36b   :  { %v1656_v27 = vadd.f32 %v1655_v40, %v1654_v34  ;;  %v1233_v40 = vmul.f32 %v7347_v61, %v7347_v61  ;;  %v1661_v34 = vsel %vm274_vm1, %v1231_v30, 0.0  ;;  %v4619_v61 = vld [vmem:[%s10262_s0 + $0x5a8] sm:$0xff] }
 0x36c   :  { %10628 = vst [vmem:[#allocation150_spill] sm:$0xff] %v7374_v11  ;;  %v7383_v30 = vsub.f32 %v4619_v61, %v5756_v14 }
 0x36d   :  { %v1658_v37 = vadd.f32 %v1657_v45, %v1656_v27  ;;  %v1234_v45 = vmul.f32 %v7356_v58, %v7356_v58  ;;  %v1663_v27 = vsel %vm274_vm1, %v1232_v46, 0.0  ;;  %v4620_v58 = vld [vmem:[%s10262_s0 + $0x5b0] sm:$0xff] }
 0x36e   :  { %10629 = vst [vmem:[#allocation151_spill] sm:$0xff] %v7383_v30  ;;  %v7392_v46 = vsub.f32 %v4620_v58, %v5756_v14 }
 0x36f   :  { %v1660_v7 = vadd.f32 %v1659_v60, %v1658_v37  ;;  %v1235_v60 = vmul.f32 %v7365_v52, %v7365_v52  ;;  %v1665_v37 = vsel %vm274_vm1, %v1233_v40, 0.0  ;;  %v4621_v52 = vld [vmem:[%s10262_s0 + $0x5b8] sm:$0xff] }
 0x370   :  { %10630 = vst [vmem:[#allocation152_spill] sm:$0xff] %v7392_v46  ;;  %v7401_v40 = vsub.f32 %v4621_v52, %v5756_v14 }
 0x371   :  { %v1662_v1 = vadd.f32 %v1661_v34, %v1660_v7  ;;  %v1236_v34 = vmul.f32 %v7374_v11, %v7374_v11  ;;  %v1667_v7 = vsel %vm274_vm1, %v1234_v45, 0.0  ;;  %v4622_v11 = vld [vmem:[%s10262_s0 + $0x5c0] sm:$0xff] }
 0x372   :  { %10631 = vst [vmem:[#allocation153_spill] sm:$0xff] %v7401_v40  ;;  %v7410_v45 = vsub.f32 %v4622_v11, %v5756_v14 }
 0x373   :  { %v1664_v48 = vadd.f32 %v1663_v27, %v1662_v1  ;;  %v1237_v27 = vmul.f32 %v7383_v30, %v7383_v30  ;;  %v1669_v1 = vsel %vm274_vm1, %v1235_v60, 0.0  ;;  %v4623_v30 = vld [vmem:[%s10262_s0 + $0x5c8] sm:$0xff] }
 0x374   :  { %10632 = vst [vmem:[#allocation154_spill] sm:$0xff] %v7410_v45  ;;  %v7419_v60 = vsub.f32 %v4623_v30, %v5756_v14 }
 0x375   :  { %v1666_v61 = vadd.f32 %v1665_v37, %v1664_v48  ;;  %v1238_v37 = vmul.f32 %v7392_v46, %v7392_v46  ;;  %v1671_v48 = vsel %vm274_vm1, %v1236_v34, 0.0  ;;  %v4624_v46 = vld [vmem:[%s10262_s0 + $0x5d0] sm:$0xff] }
 0x376   :  { %10633 = vst [vmem:[#allocation155_spill] sm:$0xff] %v7419_v60  ;;  %v7428_v34 = vsub.f32 %v4624_v46, %v5756_v14 }
 0x377   :  { %v1668_v58 = vadd.f32 %v1667_v7, %v1666_v61  ;;  %v1239_v7 = vmul.f32 %v7401_v40, %v7401_v40  ;;  %v1673_v61 = vsel %vm274_vm1, %v1237_v27, 0.0  ;;  %v4625_v40 = vld [vmem:[%s10262_s0 + $0x5d8] sm:$0xff] }
 0x378   :  { %10634 = vst [vmem:[#allocation156_spill] sm:$0xff] %v7428_v34  ;;  %v7437_v27 = vsub.f32 %v4625_v40, %v5756_v14 }
 0x379   :  { %v1670_v52 = vadd.f32 %v1669_v1, %v1668_v58  ;;  %v1240_v1 = vmul.f32 %v7410_v45, %v7410_v45  ;;  %v1675_v58 = vsel %vm274_vm1, %v1238_v37, 0.0  ;;  %v4626_v45 = vld [vmem:[%s10262_s0 + $0x5e0] sm:$0xff] }
 0x37a   :  { %10635 = vst [vmem:[#allocation157_spill] sm:$0xff] %v7437_v27  ;;  %v7446_v37 = vsub.f32 %v4626_v45, %v5756_v14 }
 0x37b   :  { %v1672_v11 = vadd.f32 %v1671_v48, %v1670_v52  ;;  %v1241_v48 = vmul.f32 %v7419_v60, %v7419_v60  ;;  %v1677_v52 = vsel %vm274_vm1, %v1239_v7, 0.0  ;;  %v4627_v60 = vld [vmem:[%s10262_s0 + $0x5e8] sm:$0xff] }
 0x37c   :  { %10636 = vst [vmem:[#allocation158_spill] sm:$0xff] %v7446_v37  ;;  %v7455_v7 = vsub.f32 %v4627_v60, %v5756_v14 }
 0x37d   :  { %v1674_v30 = vadd.f32 %v1673_v61, %v1672_v11  ;;  %v1242_v61 = vmul.f32 %v7428_v34, %v7428_v34  ;;  %v1679_v11 = vsel %vm274_vm1, %v1240_v1, 0.0  ;;  %v4628_v34 = vld [vmem:[%s10262_s0 + $0x5f0] sm:$0xff] }
 0x37e   :  { %10637 = vst [vmem:[#allocation159_spill] sm:$0xff] %v7455_v7  ;;  %v7464_v1 = vsub.f32 %v4628_v34, %v5756_v14 }
 0x37f   :  { %v1676_v46 = vadd.f32 %v1675_v58, %v1674_v30  ;;  %v1243_v58 = vmul.f32 %v7437_v27, %v7437_v27  ;;  %v1681_v30 = vsel %vm274_vm1, %v1241_v48, 0.0  ;;  %v4629_v27 = vld [vmem:[%s10262_s0 + $0x5f8] sm:$0xff] }
 0x380   :  { %10638 = vst [vmem:[#allocation160_spill] sm:$0xff] %v7464_v1  ;;  %v7473_v48 = vsub.f32 %v4629_v27, %v5756_v14 }
 0x381   :  { %v1678_v40 = vadd.f32 %v1677_v52, %v1676_v46  ;;  %v1244_v52 = vmul.f32 %v7446_v37, %v7446_v37  ;;  %v1683_v46 = vsel %vm274_vm1, %v1242_v61, 0.0  ;;  %v4630_v37 = vld [vmem:[%s10262_s0 + $0x600] sm:$0xff] }
 0x382   :  { %10639 = vst [vmem:[#allocation161_spill] sm:$0xff] %v7473_v48  ;;  %v7482_v61 = vsub.f32 %v4630_v37, %v5756_v14 }
 0x383   :  { %v1680_v45 = vadd.f32 %v1679_v11, %v1678_v40  ;;  %v1245_v11 = vmul.f32 %v7455_v7, %v7455_v7  ;;  %v1685_v40 = vsel %vm274_vm1, %v1243_v58, 0.0  ;;  %v4631_v7 = vld [vmem:[%s10262_s0 + $0x608] sm:$0xff] }
 0x384   :  { %v7491_v58 = vsub.f32 %v4631_v7, %v5756_v14 }
 0x385   :  { %v1682_v60 = vadd.f32 %v1681_v30, %v1680_v45  ;;  %v1246_v30 = vmul.f32 %v7464_v1, %v7464_v1  ;;  %v1687_v45 = vsel %vm274_vm1, %v1244_v52, 0.0  ;;  %v4632_v1 = vld [vmem:[%s10262_s0 + $0x610] sm:$0xff] }
 0x386   :  { %v7500_v52 = vsub.f32 %v4632_v1, %v5756_v14 }
 0x387   :  { %v1684_v34 = vadd.f32 %v1683_v46, %v1682_v60  ;;  %v1247_v46 = vmul.f32 %v7473_v48, %v7473_v48  ;;  %v1689_v60 = vsel %vm274_vm1, %v1245_v11, 0.0  ;;  %v4633_v48 = vld [vmem:[%s10262_s0 + $0x618] sm:$0xff] }
 0x388   :  { %v7509_v11 = vsub.f32 %v4633_v48, %v5756_v14 }
 0x389   :  { %v1686_v27 = vadd.f32 %v1685_v40, %v1684_v34  ;;  %v1248_v40 = vmul.f32 %v7482_v61, %v7482_v61  ;;  %v1691_v34 = vsel %vm274_vm1, %v1246_v30, 0.0  ;;  %v7518_v30 = vsub.f32 %v4634_v50, %v5756_v14 }
 0x38b   :  { %v1688_v37 = vadd.f32 %v1687_v45, %v1686_v27  ;;  %v1249_v45 = vmul.f32 %v7491_v58, %v7491_v58  ;;  %v1693_v27 = vsel %vm274_vm1, %v1247_v46, 0.0  ;;  %v7527_v46 = vsub.f32 %v4635_v12, %v5756_v14 }
 0x38d   :  { %v1690_v7 = vadd.f32 %v1689_v60, %v1688_v37  ;;  %v1250_v60 = vmul.f32 %v7500_v52, %v7500_v52  ;;  %v1695_v37 = vsel %vm274_vm1, %v1248_v40, 0.0  ;;  %v7536_v40 = vsub.f32 %v4636_v47, %v5756_v14 }
 0x38f   :  { %v1692_v1 = vadd.f32 %v1691_v34, %v1690_v7  ;;  %v1251_v34 = vmul.f32 %v7509_v11, %v7509_v11  ;;  %v1697_v7 = vsel %vm274_vm1, %v1249_v45, 0.0  ;;  %v7545_v45 = vsub.f32 %v4637_v19, %v5756_v14 }
 0x391   :  { %v1694_v48 = vadd.f32 %v1693_v27, %v1692_v1  ;;  %v1252_v27 = vmul.f32 %v7518_v30, %v7518_v30  ;;  %v1699_v1 = vsel %vm274_vm1, %v1250_v60, 0.0  ;;  %v7554_v60 = vsub.f32 %v4638_v10, %v5756_v14 }
 0x393   :  { %v1696_v50 = vadd.f32 %v1695_v37, %v1694_v48  ;;  %v1253_v37 = vmul.f32 %v7527_v46, %v7527_v46  ;;  %v1701_v48 = vsel %vm274_vm1, %v1251_v34, 0.0  ;;  %v7563_v34 = vsub.f32 %v4639_v57, %v5756_v14 }
 0x395   :  { %v1698_v12 = vadd.f32 %v1697_v7, %v1696_v50  ;;  %v1254_v7 = vmul.f32 %v7536_v40, %v7536_v40  ;;  %v1703_v50 = vsel %vm274_vm1, %v1252_v27, 0.0  ;;  %v7572_v27 = vsub.f32 %v4640_v2, %v5756_v14 }
 0x397   :  { %v1700_v47 = vadd.f32 %v1699_v1, %v1698_v12  ;;  %v1255_v1 = vmul.f32 %v7545_v45, %v7545_v45  ;;  %v1705_v12 = vsel %vm274_vm1, %v1253_v37, 0.0  ;;  %10640 = vst [vmem:[#allocation162_spill] sm:$0xff] %v7572_v27  ;;  %v7581_v37 = vsub.f32 %v4641_v31, %v5756_v14 }
 0x399   :  { %v1702_v19 = vadd.f32 %v1701_v48, %v1700_v47  ;;  %v1256_v48 = vmul.f32 %v7554_v60, %v7554_v60  ;;  %v1707_v47 = vsel %vm274_vm1, %v1254_v7, 0.0  ;;  %10641 = vst [vmem:[#allocation163_spill] sm:$0xff] %v7581_v37  ;;  %v7590_v7 = vsub.f32 %v4642_v55, %v5756_v14 }
 0x39b   :  { %v1704_v10 = vadd.f32 %v1703_v50, %v1702_v19  ;;  %v1257_v50 = vmul.f32 %v7563_v34, %v7563_v34  ;;  %v1709_v19 = vsel %vm274_vm1, %v1255_v1, 0.0  ;;  %10642 = vst [vmem:[#allocation164_spill] sm:$0xff] %v7590_v7  ;;  %v7599_v1 = vsub.f32 %v4643_v5, %v5756_v14 }
 0x39d   :  { %v1706_v57 = vadd.f32 %v1705_v12, %v1704_v10  ;;  %v1258_v12 = vmul.f32 %v7572_v27, %v7572_v27  ;;  %v1711_v10 = vsel %vm274_vm1, %v1256_v48, 0.0  ;;  %10643 = vst [vmem:[#allocation165_spill] sm:$0xff] %v7599_v1  ;;  %v7608_v48 = vsub.f32 %v4644_v0, %v5756_v14 }
 0x39f   :  { %v1708_v2 = vadd.f32 %v1707_v47, %v1706_v57  ;;  %v1259_v47 = vmul.f32 %v7581_v37, %v7581_v37  ;;  %v1713_v57 = vsel %vm274_vm1, %v1257_v50, 0.0  ;;  %10644 = vst [vmem:[#allocation166_spill] sm:$0xff] %v7608_v48  ;;  %v4645_v37 = vld [vmem:[%s10262_s0 + $0x678] sm:$0xff] }
 0x3a0   :  { %v7617_v50 = vsub.f32 %v4645_v37, %v5756_v14 }
 0x3a1   :  { %v1710_v31 = vadd.f32 %v1709_v19, %v1708_v2  ;;  %v1260_v19 = vmul.f32 %v7590_v7, %v7590_v7  ;;  %v1715_v2 = vsel %vm274_vm1, %v1258_v12, 0.0  ;;  %v4646_v7 = vld [vmem:[%s10262_s0 + $0x680] sm:$0xff] }
 0x3a2   :  { %10645 = vst [vmem:[#allocation167_spill] sm:$0xff] %v7617_v50  ;;  %v7626_v12 = vsub.f32 %v4646_v7, %v5756_v14 }
 0x3a3   :  { %v1712_v55 = vadd.f32 %v1711_v10, %v1710_v31  ;;  %v1261_v10 = vmul.f32 %v7599_v1, %v7599_v1  ;;  %v1717_v31 = vsel %vm274_vm1, %v1259_v47, 0.0  ;;  %v4647_v1 = vld [vmem:[%s10262_s0 + $0x688] sm:$0xff] }
 0x3a4   :  { %10646 = vst [vmem:[#allocation168_spill] sm:$0xff] %v7626_v12  ;;  %v7635_v47 = vsub.f32 %v4647_v1, %v5756_v14 }
 0x3a5   :  { %v1714_v5 = vadd.f32 %v1713_v57, %v1712_v55  ;;  %v1262_v57 = vmul.f32 %v7608_v48, %v7608_v48  ;;  %v1719_v55 = vsel %vm274_vm1, %v1260_v19, 0.0  ;;  %v4648_v48 = vld [vmem:[%s10262_s0 + $0x690] sm:$0xff] }
 0x3a6   :  { %10647 = vst [vmem:[#allocation169_spill] sm:$0xff] %v7635_v47  ;;  %v7644_v19 = vsub.f32 %v4648_v48, %v5756_v14 }
 0x3a7   :  { %v1716_v0 = vadd.f32 %v1715_v2, %v1714_v5  ;;  %v1263_v2 = vmul.f32 %v7617_v50, %v7617_v50  ;;  %v1721_v5 = vsel %vm274_vm1, %v1261_v10, 0.0  ;;  %v4649_v50 = vld [vmem:[%s10262_s0 + $0x698] sm:$0xff] }
 0x3a8   :  { %10648 = vst [vmem:[#allocation170_spill] sm:$0xff] %v7644_v19  ;;  %v7653_v10 = vsub.f32 %v4649_v50, %v5756_v14 }
 0x3a9   :  { %v1718_v37 = vadd.f32 %v1717_v31, %v1716_v0  ;;  %v1264_v31 = vmul.f32 %v7626_v12, %v7626_v12  ;;  %v1723_v0 = vsel %vm274_vm1, %v1262_v57, 0.0  ;;  %v4650_v12 = vld [vmem:[%s10262_s0 + $0x6a0] sm:$0xff] }
 0x3aa   :  { %10649 = vst [vmem:[#allocation171_spill] sm:$0xff] %v7653_v10  ;;  %v7662_v57 = vsub.f32 %v4650_v12, %v5756_v14 }
 0x3ab   :  { %v1720_v7 = vadd.f32 %v1719_v55, %v1718_v37  ;;  %v1265_v55 = vmul.f32 %v7635_v47, %v7635_v47  ;;  %v1725_v37 = vsel %vm274_vm1, %v1263_v2, 0.0  ;;  %v4651_v47 = vld [vmem:[%s10262_s0 + $0x6a8] sm:$0xff] }
 0x3ac   :  { %10650 = vst [vmem:[#allocation172_spill] sm:$0xff] %v7662_v57  ;;  %v7671_v2 = vsub.f32 %v4651_v47, %v5756_v14 }
 0x3ad   :  { %v1722_v1 = vadd.f32 %v1721_v5, %v1720_v7  ;;  %v1266_v5 = vmul.f32 %v7644_v19, %v7644_v19  ;;  %v1727_v7 = vsel %vm274_vm1, %v1264_v31, 0.0  ;;  %v4652_v19 = vld [vmem:[%s10262_s0 + $0x6b0] sm:$0xff] }
 0x3ae   :  { %10651 = vst [vmem:[#allocation173_spill] sm:$0xff] %v7671_v2  ;;  %v7680_v31 = vsub.f32 %v4652_v19, %v5756_v14 }
 0x3af   :  { %v1724_v48 = vadd.f32 %v1723_v0, %v1722_v1  ;;  %v1267_v0 = vmul.f32 %v7653_v10, %v7653_v10  ;;  %v1729_v1 = vsel %vm274_vm1, %v1265_v55, 0.0  ;;  %v4653_v10 = vld [vmem:[%s10262_s0 + $0x6b8] sm:$0xff] }
 0x3b0   :  { %10652 = vst [vmem:[#allocation174_spill] sm:$0xff] %v7680_v31  ;;  %v7689_v55 = vsub.f32 %v4653_v10, %v5756_v14 }
 0x3b1   :  { %v1726_v50 = vadd.f32 %v1725_v37, %v1724_v48  ;;  %v1268_v37 = vmul.f32 %v7662_v57, %v7662_v57  ;;  %v1731_v48 = vsel %vm274_vm1, %v1266_v5, 0.0  ;;  %v4654_v57 = vld [vmem:[%s10262_s0 + $0x6c0] sm:$0xff] }
 0x3b2   :  { %10653 = vst [vmem:[#allocation175_spill] sm:$0xff] %v7689_v55  ;;  %v7698_v5 = vsub.f32 %v4654_v57, %v5756_v14 }
 0x3b3   :  { %v1728_v12 = vadd.f32 %v1727_v7, %v1726_v50  ;;  %v1269_v7 = vmul.f32 %v7671_v2, %v7671_v2  ;;  %v1733_v50 = vsel %vm274_vm1, %v1267_v0, 0.0  ;;  %v4655_v2 = vld [vmem:[%s10262_s0 + $0x6c8] sm:$0xff] }
 0x3b4   :  { %10654 = vst [vmem:[#allocation176_spill] sm:$0xff] %v7698_v5  ;;  %v7707_v0 = vsub.f32 %v4655_v2, %v5756_v14 }
 0x3b5   :  { %v1730_v47 = vadd.f32 %v1729_v1, %v1728_v12  ;;  %v1270_v1 = vmul.f32 %v7680_v31, %v7680_v31  ;;  %v1735_v12 = vsel %vm274_vm1, %v1268_v37, 0.0  ;;  %v4656_v31 = vld [vmem:[%s10262_s0 + $0x6d0] sm:$0xff] }
 0x3b6   :  { %10655 = vst [vmem:[#allocation177_spill] sm:$0xff] %v7707_v0  ;;  %v7716_v37 = vsub.f32 %v4656_v31, %v5756_v14 }
 0x3b7   :  { %v1732_v19 = vadd.f32 %v1731_v48, %v1730_v47  ;;  %v1271_v48 = vmul.f32 %v7689_v55, %v7689_v55  ;;  %v1737_v47 = vsel %vm274_vm1, %v1269_v7, 0.0  ;;  %v4657_v55 = vld [vmem:[%s10262_s0 + $0x6d8] sm:$0xff] }
 0x3b8   :  { %10656 = vst [vmem:[#allocation178_spill] sm:$0xff] %v7716_v37  ;;  %v7725_v7 = vsub.f32 %v4657_v55, %v5756_v14 }
 0x3b9   :  { %v1734_v10 = vadd.f32 %v1733_v50, %v1732_v19  ;;  %v1272_v50 = vmul.f32 %v7698_v5, %v7698_v5  ;;  %v1739_v19 = vsel %vm274_vm1, %v1270_v1, 0.0  ;;  %v4658_v5 = vld [vmem:[%s10262_s0 + $0x6e0] sm:$0xff] }
 0x3ba   :  { %10657 = vst [vmem:[#allocation179_spill] sm:$0xff] %v7725_v7  ;;  %v7734_v1 = vsub.f32 %v4658_v5, %v5756_v14 }
 0x3bb   :  { %v1736_v57 = vadd.f32 %v1735_v12, %v1734_v10  ;;  %v1273_v12 = vmul.f32 %v7707_v0, %v7707_v0  ;;  %v1741_v10 = vsel %vm274_vm1, %v1271_v48, 0.0  ;;  %v4659_v0 = vld [vmem:[%s10262_s0 + $0x6e8] sm:$0xff] }
 0x3bc   :  { %10658 = vst [vmem:[#allocation180_spill] sm:$0xff] %v7734_v1  ;;  %v7743_v48 = vsub.f32 %v4659_v0, %v5756_v14 }
 0x3bd   :  { %v1738_v2 = vadd.f32 %v1737_v47, %v1736_v57  ;;  %v1274_v47 = vmul.f32 %v7716_v37, %v7716_v37  ;;  %v1743_v57 = vsel %vm274_vm1, %v1272_v50, 0.0  ;;  %v4660_v37 = vld [vmem:[%s10262_s0 + $0x6f0] sm:$0xff] }
 0x3be   :  { %10659 = vst [vmem:[#allocation181_spill] sm:$0xff] %v7743_v48  ;;  %v7752_v50 = vsub.f32 %v4660_v37, %v5756_v14 }
 0x3bf   :  { %v1740_v31 = vadd.f32 %v1739_v19, %v1738_v2  ;;  %v1275_v19 = vmul.f32 %v7725_v7, %v7725_v7  ;;  %v1745_v2 = vsel %vm274_vm1, %v1273_v12, 0.0  ;;  %v4661_v7 = vld [vmem:[%s10262_s0 + $0x6f8] sm:$0xff] }
 0x3c0   :  { %10660 = vst [vmem:[#allocation182_spill] sm:$0xff] %v7752_v50  ;;  %v7761_v12 = vsub.f32 %v4661_v7, %v5756_v14 }
 0x3c1   :  { %v1742_v55 = vadd.f32 %v1741_v10, %v1740_v31  ;;  %v1276_v10 = vmul.f32 %v7734_v1, %v7734_v1  ;;  %v1747_v31 = vsel %vm274_vm1, %v1274_v47, 0.0  ;;  %v4662_v1 = vld [vmem:[%s10262_s0 + $0x700] sm:$0xff] }
 0x3c2   :  { %10661 = vst [vmem:[#allocation183_spill] sm:$0xff] %v7761_v12  ;;  %v7770_v47 = vsub.f32 %v4662_v1, %v5756_v14 }
 0x3c3   :  { %v1744_v5 = vadd.f32 %v1743_v57, %v1742_v55  ;;  %v1277_v57 = vmul.f32 %v7743_v48, %v7743_v48  ;;  %v1749_v55 = vsel %vm274_vm1, %v1275_v19, 0.0  ;;  %v4663_v48 = vld [vmem:[%s10262_s0 + $0x708] sm:$0xff] }
 0x3c4   :  { %10662 = vst [vmem:[#allocation184_spill] sm:$0xff] %v7770_v47  ;;  %v7779_v19 = vsub.f32 %v4663_v48, %v5756_v14 }
 0x3c5   :  { %v1746_v0 = vadd.f32 %v1745_v2, %v1744_v5  ;;  %v1278_v2 = vmul.f32 %v7752_v50, %v7752_v50  ;;  %v1751_v5 = vsel %vm274_vm1, %v1276_v10, 0.0  ;;  %v4664_v50 = vld [vmem:[%s10262_s0 + $0x710] sm:$0xff] }
 0x3c6   :  { %10663 = vst [vmem:[#allocation185_spill] sm:$0xff] %v7779_v19  ;;  %v7788_v10 = vsub.f32 %v4664_v50, %v5756_v14 }
 0x3c7   :  { %v1748_v37 = vadd.f32 %v1747_v31, %v1746_v0  ;;  %v1279_v31 = vmul.f32 %v7761_v12, %v7761_v12  ;;  %v1753_v0 = vsel %vm274_vm1, %v1277_v57, 0.0  ;;  %v4665_v12 = vld [vmem:[%s10262_s0 + $0x718] sm:$0xff] }
 0x3c8   :  { %10664 = vst [vmem:[#allocation186_spill] sm:$0xff] %v7788_v10  ;;  %v7797_v57 = vsub.f32 %v4665_v12, %v5756_v14 }
 0x3c9   :  { %v1750_v7 = vadd.f32 %v1749_v55, %v1748_v37  ;;  %v1280_v55 = vmul.f32 %v7770_v47, %v7770_v47  ;;  %v1755_v37 = vsel %vm274_vm1, %v1278_v2, 0.0  ;;  %v4666_v47 = vld [vmem:[%s10262_s0 + $0x720] sm:$0xff] }
 0x3ca   :  { %10665 = vst [vmem:[#allocation187_spill] sm:$0xff] %v7797_v57  ;;  %v7806_v2 = vsub.f32 %v4666_v47, %v5756_v14 }
 0x3cb   :  { %v1752_v1 = vadd.f32 %v1751_v5, %v1750_v7  ;;  %v1281_v5 = vmul.f32 %v7779_v19, %v7779_v19  ;;  %v1757_v7 = vsel %vm274_vm1, %v1279_v31, 0.0  ;;  %v4667_v19 = vld [vmem:[%s10262_s0 + $0x728] sm:$0xff] }
 0x3cc   :  { %10666 = vst [vmem:[#allocation188_spill] sm:$0xff] %v7806_v2  ;;  %v7815_v31 = vsub.f32 %v4667_v19, %v5756_v14 }
 0x3cd   :  { %v1754_v48 = vadd.f32 %v1753_v0, %v1752_v1  ;;  %v1282_v0 = vmul.f32 %v7788_v10, %v7788_v10  ;;  %v1759_v1 = vsel %vm274_vm1, %v1280_v55, 0.0  ;;  %v4668_v10 = vld [vmem:[%s10262_s0 + $0x730] sm:$0xff] }
 0x3ce   :  { %10667 = vst [vmem:[#allocation189_spill] sm:$0xff] %v7815_v31  ;;  %v7824_v55 = vsub.f32 %v4668_v10, %v5756_v14 }
 0x3cf   :  { %v1756_v50 = vadd.f32 %v1755_v37, %v1754_v48  ;;  %v1283_v37 = vmul.f32 %v7797_v57, %v7797_v57  ;;  %v1761_v48 = vsel %vm274_vm1, %v1281_v5, 0.0  ;;  %v4669_v57 = vld [vmem:[%s10262_s0 + $0x738] sm:$0xff] }
 0x3d0   :  { %10668 = vst [vmem:[#allocation190_spill] sm:$0xff] %v7824_v55  ;;  %v7833_v5 = vsub.f32 %v4669_v57, %v5756_v14 }
 0x3d1   :  { %v1758_v12 = vadd.f32 %v1757_v7, %v1756_v50  ;;  %v1284_v7 = vmul.f32 %v7806_v2, %v7806_v2  ;;  %v1763_v50 = vsel %vm274_vm1, %v1282_v0, 0.0  ;;  %v4670_v2 = vld [vmem:[%s10262_s0 + $0x740] sm:$0xff] }
 0x3d2   :  { %10669 = vst [vmem:[#allocation191_spill] sm:$0xff] %v7833_v5  ;;  %v7842_v0 = vsub.f32 %v4670_v2, %v5756_v14 }
 0x3d3   :  { %v1760_v47 = vadd.f32 %v1759_v1, %v1758_v12  ;;  %v1285_v1 = vmul.f32 %v7815_v31, %v7815_v31  ;;  %v1765_v12 = vsel %vm274_vm1, %v1283_v37, 0.0  ;;  %v4671_v31 = vld [vmem:[%s10262_s0 + $0x748] sm:$0xff] }
 0x3d4   :  { %10670 = vst [vmem:[#allocation192_spill] sm:$0xff] %v7842_v0  ;;  %v7851_v37 = vsub.f32 %v4671_v31, %v5756_v14 }
 0x3d5   :  { %v1762_v19 = vadd.f32 %v1761_v48, %v1760_v47  ;;  %v1286_v48 = vmul.f32 %v7824_v55, %v7824_v55  ;;  %v1767_v47 = vsel %vm274_vm1, %v1284_v7, 0.0  ;;  %v4672_v55 = vld [vmem:[%s10262_s0 + $0x750] sm:$0xff] }
 0x3d6   :  { %10671 = vst [vmem:[#allocation193_spill] sm:$0xff] %v7851_v37  ;;  %v7860_v7 = vsub.f32 %v4672_v55, %v5756_v14 }
 0x3d7   :  { %v1764_v10 = vadd.f32 %v1763_v50, %v1762_v19  ;;  %v1287_v50 = vmul.f32 %v7833_v5, %v7833_v5  ;;  %v1769_v19 = vsel %vm274_vm1, %v1285_v1, 0.0  ;;  %v4673_v5 = vld [vmem:[%s10262_s0 + $0x758] sm:$0xff] }
 0x3d8   :  { %10672 = vst [vmem:[#allocation194_spill] sm:$0xff] %v7860_v7  ;;  %v7869_v1 = vsub.f32 %v4673_v5, %v5756_v14 }
 0x3d9   :  { %v1766_v57 = vadd.f32 %v1765_v12, %v1764_v10  ;;  %v1288_v12 = vmul.f32 %v7842_v0, %v7842_v0  ;;  %v1771_v10 = vsel %vm274_vm1, %v1286_v48, 0.0  ;;  %v4674_v0 = vld [vmem:[%s10262_s0 + $0x760] sm:$0xff] }
 0x3da   :  { %10673 = vst [vmem:[#allocation195_spill] sm:$0xff] %v7869_v1  ;;  %v7878_v48 = vsub.f32 %v4674_v0, %v5756_v14 }
 0x3db   :  { %v1768_v2 = vadd.f32 %v1767_v47, %v1766_v57  ;;  %v1289_v47 = vmul.f32 %v7851_v37, %v7851_v37  ;;  %v1773_v57 = vsel %vm274_vm1, %v1287_v50, 0.0  ;;  %v4675_v37 = vld [vmem:[%s10262_s0 + $0x768] sm:$0xff] }
 0x3dc   :  { %10674 = vst [vmem:[#allocation196_spill] sm:$0xff] %v7878_v48  ;;  %v7887_v50 = vsub.f32 %v4675_v37, %v5756_v14 }
 0x3dd   :  { %v1770_v31 = vadd.f32 %v1769_v19, %v1768_v2  ;;  %v1290_v19 = vmul.f32 %v7860_v7, %v7860_v7  ;;  %v1775_v2 = vsel %vm274_vm1, %v1288_v12, 0.0  ;;  %v4676_v7 = vld [vmem:[%s10262_s0 + $0x770] sm:$0xff] }
 0x3de   :  { %10675 = vst [vmem:[#allocation197_spill] sm:$0xff] %v7887_v50  ;;  %v7896_v12 = vsub.f32 %v4676_v7, %v5756_v14 }
 0x3df   :  { %v1772_v55 = vadd.f32 %v1771_v10, %v1770_v31  ;;  %v1291_v10 = vmul.f32 %v7869_v1, %v7869_v1  ;;  %v1777_v31 = vsel %vm274_vm1, %v1289_v47, 0.0  ;;  %v4677_v1 = vld [vmem:[%s10262_s0 + $0x778] sm:$0xff] }
 0x3e0   :  { %10676 = vst [vmem:[#allocation198_spill] sm:$0xff] %v7896_v12  ;;  %v7905_v47 = vsub.f32 %v4677_v1, %v5756_v14 }
 0x3e1   :  { %v1774_v5 = vadd.f32 %v1773_v57, %v1772_v55  ;;  %v1292_v57 = vmul.f32 %v7878_v48, %v7878_v48  ;;  %v1779_v55 = vsel %vm274_vm1, %v1290_v19, 0.0  ;;  %v4678_v48 = vld [vmem:[%s10262_s0 + $0x780] sm:$0xff] }
 0x3e2   :  { %10677 = vst [vmem:[#allocation199_spill] sm:$0xff] %v7905_v47  ;;  %v7914_v19 = vsub.f32 %v4678_v48, %v5756_v14 }
 0x3e3   :  { %v1776_v0 = vadd.f32 %v1775_v2, %v1774_v5  ;;  %v1293_v2 = vmul.f32 %v7887_v50, %v7887_v50  ;;  %v1781_v5 = vsel %vm274_vm1, %v1291_v10, 0.0  ;;  %v4679_v50 = vld [vmem:[%s10262_s0 + $0x788] sm:$0xff] }
 0x3e4   :  { %10678 = vst [vmem:[#allocation200_spill] sm:$0xff] %v7914_v19  ;;  %v7923_v10 = vsub.f32 %v4679_v50, %v5756_v14 }
 0x3e5   :  { %v1778_v37 = vadd.f32 %v1777_v31, %v1776_v0  ;;  %v1294_v31 = vmul.f32 %v7896_v12, %v7896_v12  ;;  %v1783_v0 = vsel %vm274_vm1, %v1292_v57, 0.0  ;;  %v4680_v12 = vld [vmem:[%s10262_s0 + $0x790] sm:$0xff] }
 0x3e6   :  { %10679 = vst [vmem:[#allocation201_spill] sm:$0xff] %v7923_v10  ;;  %v7932_v57 = vsub.f32 %v4680_v12, %v5756_v14 }
 0x3e7   :  { %v1780_v7 = vadd.f32 %v1779_v55, %v1778_v37  ;;  %v1295_v55 = vmul.f32 %v7905_v47, %v7905_v47  ;;  %v1785_v37 = vsel %vm274_vm1, %v1293_v2, 0.0  ;;  %v4681_v47 = vld [vmem:[%s10262_s0 + $0x798] sm:$0xff] }
 0x3e8   :  { %10680 = vst [vmem:[#allocation202_spill] sm:$0xff] %v7932_v57  ;;  %v7941_v2 = vsub.f32 %v4681_v47, %v5756_v14 }
 0x3e9   :  { %v1782_v1 = vadd.f32 %v1781_v5, %v1780_v7  ;;  %v1296_v5 = vmul.f32 %v7914_v19, %v7914_v19  ;;  %v1787_v7 = vsel %vm274_vm1, %v1294_v31, 0.0  ;;  %v4682_v19 = vld [vmem:[%s10262_s0 + $0x7a0] sm:$0xff] }
 0x3ea   :  { %10681 = vst [vmem:[#allocation203_spill] sm:$0xff] %v7941_v2  ;;  %v7950_v31 = vsub.f32 %v4682_v19, %v5756_v14 }
 0x3eb   :  { %v1784_v48 = vadd.f32 %v1783_v0, %v1782_v1  ;;  %v1297_v0 = vmul.f32 %v7923_v10, %v7923_v10  ;;  %v1789_v1 = vsel %vm274_vm1, %v1295_v55, 0.0  ;;  %v4683_v10 = vld [vmem:[%s10262_s0 + $0x7a8] sm:$0xff] }
 0x3ec   :  { %10682 = vst [vmem:[#allocation204_spill] sm:$0xff] %v7950_v31  ;;  %v7959_v55 = vsub.f32 %v4683_v10, %v5756_v14 }
 0x3ed   :  { %v1786_v50 = vadd.f32 %v1785_v37, %v1784_v48  ;;  %v1298_v37 = vmul.f32 %v7932_v57, %v7932_v57  ;;  %v1791_v48 = vsel %vm274_vm1, %v1296_v5, 0.0  ;;  %v4684_v57 = vld [vmem:[%s10262_s0 + $0x7b0] sm:$0xff] }
 0x3ee   :  { %10683 = vst [vmem:[#allocation205_spill] sm:$0xff] %v7959_v55  ;;  %v7968_v5 = vsub.f32 %v4684_v57, %v5756_v14 }
 0x3ef   :  { %v1788_v12 = vadd.f32 %v1787_v7, %v1786_v50  ;;  %v1299_v7 = vmul.f32 %v7941_v2, %v7941_v2  ;;  %v1793_v50 = vsel %vm274_vm1, %v1297_v0, 0.0  ;;  %v4685_v2 = vld [vmem:[%s10262_s0 + $0x7b8] sm:$0xff] }
 0x3f0   :  { %10684 = vst [vmem:[#allocation206_spill] sm:$0xff] %v7968_v5  ;;  %v7977_v0 = vsub.f32 %v4685_v2, %v5756_v14 }
 0x3f1   :  { %v1790_v47 = vadd.f32 %v1789_v1, %v1788_v12  ;;  %v1300_v1 = vmul.f32 %v7950_v31, %v7950_v31  ;;  %v1795_v12 = vsel %vm274_vm1, %v1298_v37, 0.0  ;;  %v4686_v31 = vld [vmem:[%s10262_s0 + $0x7c0] sm:$0xff] }
 0x3f2   :  { %10685 = vst [vmem:[#allocation207_spill] sm:$0xff] %v7977_v0  ;;  %v7986_v37 = vsub.f32 %v4686_v31, %v5756_v14 }
 0x3f3   :  { %v1792_v19 = vadd.f32 %v1791_v48, %v1790_v47  ;;  %v1301_v48 = vmul.f32 %v7959_v55, %v7959_v55  ;;  %v1797_v47 = vsel %vm274_vm1, %v1299_v7, 0.0  ;;  %v4687_v55 = vld [vmem:[%s10262_s0 + $0x7c8] sm:$0xff] }
 0x3f4   :  { %10686 = vst [vmem:[#allocation208_spill] sm:$0xff] %v7986_v37  ;;  %v7995_v7 = vsub.f32 %v4687_v55, %v5756_v14 }
 0x3f5   :  { %v1794_v10 = vadd.f32 %v1793_v50, %v1792_v19  ;;  %v1302_v50 = vmul.f32 %v7968_v5, %v7968_v5  ;;  %v1799_v19 = vsel %vm274_vm1, %v1300_v1, 0.0  ;;  %v4688_v5 = vld [vmem:[%s10262_s0 + $0x7d0] sm:$0xff] }
 0x3f6   :  { %10687 = vst [vmem:[#allocation209_spill] sm:$0xff] %v7995_v7  ;;  %v8004_v1 = vsub.f32 %v4688_v5, %v5756_v14 }
 0x3f7   :  { %v1796_v57 = vadd.f32 %v1795_v12, %v1794_v10  ;;  %v1303_v12 = vmul.f32 %v7977_v0, %v7977_v0  ;;  %v1801_v10 = vsel %vm274_vm1, %v1301_v48, 0.0  ;;  %v4689_v0 = vld [vmem:[%s10262_s0 + $0x7d8] sm:$0xff] }
 0x3f8   :  { %10688 = vst [vmem:[#allocation210_spill] sm:$0xff] %v8004_v1  ;;  %v8013_v48 = vsub.f32 %v4689_v0, %v5756_v14 }
 0x3f9   :  { %v1798_v2 = vadd.f32 %v1797_v47, %v1796_v57  ;;  %v1304_v47 = vmul.f32 %v7986_v37, %v7986_v37  ;;  %v1803_v57 = vsel %vm274_vm1, %v1302_v50, 0.0  ;;  %v4690_v37 = vld [vmem:[%s10262_s0 + $0x7e0] sm:$0xff] }
 0x3fa   :  { %10689 = vst [vmem:[#allocation211_spill] sm:$0xff] %v8013_v48  ;;  %v8022_v50 = vsub.f32 %v4690_v37, %v5756_v14 }
 0x3fb   :  { %v1800_v31 = vadd.f32 %v1799_v19, %v1798_v2  ;;  %v1305_v19 = vmul.f32 %v7995_v7, %v7995_v7  ;;  %v1805_v2 = vsel %vm274_vm1, %v1303_v12, 0.0  ;;  %v4691_v7 = vld [vmem:[%s10262_s0 + $0x7e8] sm:$0xff] }
 0x3fc   :  { %10690 = vst [vmem:[#allocation212_spill] sm:$0xff] %v8022_v50  ;;  %v8031_v12 = vsub.f32 %v4691_v7, %v5756_v14 }
 0x3fd   :  { %v1802_v55 = vadd.f32 %v1801_v10, %v1800_v31  ;;  %v1306_v10 = vmul.f32 %v8004_v1, %v8004_v1  ;;  %v1807_v31 = vsel %vm274_vm1, %v1304_v47, 0.0  ;;  %v4692_v1 = vld [vmem:[%s10262_s0 + $0x7f0] sm:$0xff] }
 0x3fe   :  { %10691 = vst [vmem:[#allocation213_spill] sm:$0xff] %v8031_v12  ;;  %v8040_v47 = vsub.f32 %v4692_v1, %v5756_v14 }
 0x3ff   :  { %v1804_v5 = vadd.f32 %v1803_v57, %v1802_v55  ;;  %v1307_v57 = vmul.f32 %v8013_v48, %v8013_v48  ;;  %v1809_v55 = vsel %vm274_vm1, %v1305_v19, 0.0  ;;  %v4693_v48 = vld [vmem:[%s10262_s0 + $0x7f8] sm:$0xff] }
 0x400   :  { %10692 = vst [vmem:[#allocation214_spill] sm:$0xff] %v8040_v47  ;;  %v8049_v19 = vsub.f32 %v4693_v48, %v5756_v14  ;;  %v1310_v27 = vmul.f32 %v8040_v47, %v8040_v47 }
 0x401   :  { %v1806_v0 = vadd.f32 %v1805_v2, %v1804_v5  ;;  %v1308_v2 = vmul.f32 %v8022_v50, %v8022_v50  ;;  %v1811_v5 = vsel %vm274_vm1, %v1306_v10, 0.0 }
 0x402   :  { %10693 = vst [vmem:[#allocation215_spill] sm:$0xff] %v8049_v19  ;;  %v1819_v14 = vsel %vm274_vm1, %v1310_v27, 0.0 }
 0x403   :  { %v1808_v37 = vadd.f32 %v1807_v31, %v1806_v0  ;;  %v1309_v31 = vmul.f32 %v8031_v12, %v8031_v12  ;;  %v1813_v0 = vsel %vm274_vm1, %v1307_v57, 0.0  ;;  %v1815_v50 = vsel %vm274_vm1, %v1308_v2, 0.0 }
 0x405   :  { %v1810_v7 = vadd.f32 %v1809_v55, %v1808_v37  ;;  %v1311_v55 = vmul.f32 %v8049_v19, %v8049_v19  ;;  %v1817_v37 = vsel %vm274_vm1, %v1309_v31, 0.0 }
 0x407   :  { %v1812_v1 = vadd.f32 %v1811_v5, %v1810_v7  ;;  %v1821_v12 = vsel %vm274_vm1, %v1311_v55, 0.0 }
 0x409   :  { %v1814_v10 = vadd.f32 %v1813_v0, %v1812_v1 }
 0x40b   :  { %v1816_v9 = vadd.f32 %v1815_v50, %v1814_v10 }
 0x40d   :  { %v1818_v48 = vadd.f32 %v1817_v37, %v1816_v9 }
 0x40f   :  { %v1820_v23 = vadd.f32 %v1819_v14, %v1818_v48 }
 0x411   :  { %v1822_v57 = vadd.f32 %v1821_v12, %v1820_v23  ;;  %v8066_v23 = vld [vmem:[%s10263_s1] ss:$0 sm:$0xff] }
 0x412   :  { %v8077_v12 = vld [vmem:[%s10264_s2] ss:$0 sm:$0xff] }
 0x413   :  { %v1823_v5 = vrot.slane %v1822_v57, 4 }
 0x415   :  { %v1824_v7 = vadd.f32 %v1823_v5, %v1822_v57 }
 0x417   :  { %v1825_v6 = vrot.slane %v1824_v7, 2 }
 0x419   :  { %v1826_v47 = vadd.f32 %v1825_v6, %v1824_v7 }
 0x41b   :  { %v1827_v36 = vrot.slane %v1826_v47, 1 }
 0x41d   :  { %v1828_v2 = vadd.f32 %v1827_v36, %v1826_v47 }
 0x41f   :  { %v1829_v0 = vmul.f32 %v1828_v2, %v5753_v13 }
 0x421   :  { %v1830_v1 = vadd.f32 1e-05, %v1829_v0 }
 0x423   :  { %4436 = vrsqrt.f32 %v1830_v1  ;;  %vm1837_vm3 = vweird.f32 %v1830_v1 }
 0x429   :  { %v4437_v19 = vpop.eup %4436 }
 0x42a   :  { %v1832_v31 = vmul.f32 %v4437_v19, %v1830_v1  ;;  %vm1838_vm4 = vweird.f32 %v4437_v19 }
 0x42b   :  { %vm1839_vm5 = vmor %vm1837_vm3, %vm1838_vm4 }
 0x42c   :  { %v1833_v50 = vmul.f32 %v4437_v19, %v1832_v31 }
 0x42e   :  { %v1834_v10 = vmul.f32 0.5, %v1833_v50 }
 0x430   :  { %v1835_v9 = vsub.f32 1.5, %v1834_v10 }
 0x432   :  { %v1836_v27 = vmul.f32 %v4437_v19, %v1835_v9 }
 0x434   :  { %v8068_v6 = vsel %vm1839_vm5, %v4437_v19, %v1836_v27 }
 0x435   :  { %v1841_v13 = vmul.f32 %v8068_v6, %v5762_v16  ;;  %v1842_v36 = vmul.f32 %v8068_v6, %v5768_v18  ;;  %v1905_v47 = vmul.f32 %v8068_v6, %v6330_v63  ;;  %v1906_v55 = vmul.f32 %v8068_v6, %v6339_v17 }
 0x436   :  { %v1969_v19 = vmul.f32 %v8068_v6, %v6906_v42  ;;  %v1970_v16 = vmul.f32 %v8068_v6, %v6915_v35  ;;  %v2033_v18 = vmul.f32 %v8068_v6, %v7482_v61  ;;  %v2034_v37 = vmul.f32 %v8068_v6, %v7491_v58 }
 0x437   :  { %v2101_v14 = vmul.f32 %v8066_v23, %v1841_v13  ;;  %v2102_v48 = vmul.f32 %v8066_v23, %v1842_v36  ;;  %v2165_v63 = vmul.f32 %v8066_v23, %v1905_v47  ;;  %v2166_v17 = vmul.f32 %v8066_v23, %v1906_v55 }
 0x438   :  { %v2229_v57 = vmul.f32 %v8066_v23, %v1969_v19  ;;  %v2230_v42 = vmul.f32 %v8066_v23, %v1970_v16  ;;  %v2293_v35 = vmul.f32 %v8066_v23, %v2033_v18  ;;  %v2294_v5 = vmul.f32 %v8066_v23, %v2034_v37 }
 0x439   :  { %v2361_v61 = vadd.f32 %v8077_v12, %v2101_v14  ;;  %v2362_v58 = vadd.f32 %v8077_v12, %v2102_v48  ;;  %v2425_v7 = vadd.f32 %v8077_v12, %v2165_v63  ;;  %v2426_v2 = vadd.f32 %v8077_v12, %v2166_v17 }
 0x43a   :  { %v2489_v0 = vadd.f32 %v8077_v12, %v2229_v57  ;;  %v2490_v1 = vadd.f32 %v8077_v12, %v2230_v42  ;;  %v2553_v31 = vadd.f32 %v8077_v12, %v2293_v35  ;;  %v2554_v50 = vadd.f32 %v8077_v12, %v2294_v5 }
 0x43b   :  { %v2617_v10 = vmax.f32 %v2361_v61, 0.0  ;;  %v2618_v9 = vmax.f32 %v2362_v58, 0.0  ;;  %v2681_v27 = vmax.f32 %v2425_v7, 0.0  ;;  %v2682_v13 = vmax.f32 %v2426_v2, 0.0 }
 0x43c   :  { %v2745_v36 = vmax.f32 %v2489_v0, 0.0  ;;  %v2746_v47 = vmax.f32 %v2490_v1, 0.0  ;;  %v2809_v55 = vmax.f32 %v2553_v31, 0.0  ;;  %v2810_v19 = vmax.f32 %v2554_v50, 0.0 }
 0x43d   :  { %v2873_v16 = vpack.c.bf16 %v2618_v9, %v2617_v10  ;;  %v2905_v18 = vpack.c.bf16 %v2682_v13, %v2681_v27  ;;  %v1843_v37 = vmul.f32 %v8068_v6, %v5774_v20  ;;  %v1844_v14 = vmul.f32 %v8068_v6, %v5780_v22 }
 0x43e   :  { %v2937_v48 = vpack.c.bf16 %v2746_v47, %v2745_v36  ;;  %v2969_v63 = vpack.c.bf16 %v2810_v19, %v2809_v55  ;;  %v1907_v17 = vmul.f32 %v8068_v6, %v6348_v38  ;;  %v1908_v57 = vmul.f32 %v8068_v6, %v6357_v56 }
 0x43f   :  { %4300 = vmatmul.msk.bf16.vlgmr.msra.gmra.mxu0 %vm274_vm1, %v2873_v16  ;;  %4332 = vmatmul.msk.bf16.vlgmr.msra.gmra.mxu1 %vm274_vm1, %v2905_v18  ;;  %v2103_v42 = vmul.f32 %v8066_v23, %v1843_v37  ;;  %v2104_v35 = vmul.f32 %v8066_v23, %v1844_v14  ;;  %v1971_v20 = vmul.f32 %v8068_v6, %v6924_v26 }
 0x440   :  { %4364 = vmatmul.msk.bf16.vlgmr.msra.gmra.mxu2 %vm274_vm1, %v2937_v48  ;;  %4396 = vmatmul.msk.bf16.vlgmr.msra.gmra.mxu3 %vm274_vm1, %v2969_v63  ;;  %v2167_v22 = vmul.f32 %v8066_v23, %v1907_v17  ;;  %v2168_v38 = vmul.f32 %v8066_v23, %v1908_v57  ;;  %v1972_v56 = vmul.f32 %v8068_v6, %v6933_v15 }
 0x441   :  { %v2231_v5 = vmul.f32 %v8066_v23, %v1971_v20  ;;  %v2035_v61 = vmul.f32 %v8068_v6, %v7500_v52  ;;  %v2363_v58 = vadd.f32 %v8077_v12, %v2103_v42  ;;  %v2036_v7 = vmul.f32 %v8068_v6, %v7509_v11 }
 0x442   :  { %v2232_v26 = vmul.f32 %v8066_v23, %v1972_v56  ;;  %v2364_v2 = vadd.f32 %v8077_v12, %v2104_v35  ;;  %v2427_v0 = vadd.f32 %v8077_v12, %v2167_v22  ;;  %v2428_v1 = vadd.f32 %v8077_v12, %v2168_v38 }
 0x443   :  { %v2295_v15 = vmul.f32 %v8066_v23, %v2035_v61  ;;  %v2491_v31 = vadd.f32 %v8077_v12, %v2231_v5  ;;  %v2296_v52 = vmul.f32 %v8066_v23, %v2036_v7  ;;  %v2619_v27 = vmax.f32 %v2363_v58, 0.0 }
 0x444   :  { %v2492_v50 = vadd.f32 %v8077_v12, %v2232_v26  ;;  %v2620_v11 = vmax.f32 %v2364_v2, 0.0  ;;  %v2683_v13 = vmax.f32 %v2427_v0, 0.0  ;;  %v2684_v36 = vmax.f32 %v2428_v1, 0.0 }
 0x445   :  { %v2555_v10 = vadd.f32 %v8077_v12, %v2295_v15  ;;  %v2556_v9 = vadd.f32 %v8077_v12, %v2296_v52  ;;  %v2747_v47 = vmax.f32 %v2491_v31, 0.0  ;;  %v1845_v18 = vmul.f32 %v8068_v6, %v5786_v24 }
 0x446   :  { %v2748_v55 = vmax.f32 %v2492_v50, 0.0  ;;  %v1846_v37 = vmul.f32 %v8068_v6, %v5798_v29  ;;  %v1909_v14 = vmul.f32 %v8068_v6, %v6366_v21  ;;  %v1910_v48 = vmul.f32 %v8068_v6, %v6375_v41 }
 0x447   :  { %v2811_v19 = vmax.f32 %v2555_v10, 0.0  ;;  %v2812_v16 = vmax.f32 %v2556_v9, 0.0  ;;  %v2874_v63 = vpack.c.bf16 %v2620_v11, %v2619_v27  ;;  %v2906_v17 = vpack.c.bf16 %v2684_v36, %v2683_v13 }
 0x448   :  { %v1973_v57 = vmul.f32 %v8068_v6, %v6942_v25  ;;  %v1974_v42 = vmul.f32 %v8068_v6, %v6951_v8  ;;  %v2938_v35 = vpack.c.bf16 %v2748_v55, %v2747_v47  ;;  %v2037_v24 = vmul.f32 %v8068_v6, %v7518_v30 }
 0x449   :  { %v2970_v20 = vpack.c.bf16 %v2812_v16, %v2811_v19  ;;  %v2038_v29 = vmul.f32 %v8068_v6, %v7527_v46  ;;  %v2105_v21 = vmul.f32 %v8066_v23, %v1845_v18  ;;  %v2106_v41 = vmul.f32 %v8066_v23, %v1846_v37 }
 0x44a   :  { %v2169_v22 = vmul.f32 %v8066_v23, %v1909_v14  ;;  %v2170_v38 = vmul.f32 %v8066_v23, %v1910_v48  ;;  %v2233_v25 = vmul.f32 %v8066_v23, %v1973_v57  ;;  %v2234_v8 = vmul.f32 %v8066_v23, %v1974_v42 }
 0x44b   :  { %v2297_v30 = vmul.f32 %v8066_v23, %v2037_v24  ;;  %v2298_v46 = vmul.f32 %v8066_v23, %v2038_v29  ;;  %v2365_v56 = vadd.f32 %v8077_v12, %v2105_v21  ;;  %v2366_v5 = vadd.f32 %v8077_v12, %v2106_v41 }
 0x44c   :  { %v2429_v61 = vadd.f32 %v8077_v12, %v2169_v22  ;;  %v2430_v58 = vadd.f32 %v8077_v12, %v2170_v38  ;;  %v2493_v26 = vadd.f32 %v8077_v12, %v2233_v25  ;;  %v2494_v7 = vadd.f32 %v8077_v12, %v2234_v8 }
 0x44d   :  { %v2557_v2 = vadd.f32 %v8077_v12, %v2297_v30  ;;  %v2558_v0 = vadd.f32 %v8077_v12, %v2298_v46  ;;  %v2621_v1 = vmax.f32 %v2365_v56, 0.0  ;;  %v2622_v15 = vmax.f32 %v2366_v5, 0.0 }
 0x44e   :  { %v2685_v31 = vmax.f32 %v2429_v61, 0.0  ;;  %v2686_v50 = vmax.f32 %v2430_v58, 0.0  ;;  %v2749_v52 = vmax.f32 %v2493_v26, 0.0  ;;  %v2750_v10 = vmax.f32 %v2494_v7, 0.0 }
 0x44f   :  { %4301 = vmatmul.msk.bf16.gmra.mxu0 %vm274_vm1, %v2874_v63  ;;  %4333 = vmatmul.msk.bf16.gmra.mxu1 %vm274_vm1, %v2906_v17  ;;  %v2813_v9 = vmax.f32 %v2557_v2, 0.0  ;;  %v2814_v27 = vmax.f32 %v2558_v0, 0.0  ;;  %v2875_v11 = vpack.c.bf16 %v2622_v15, %v2621_v1  ;;  %v1847_v36 = vmul.f32 %v8068_v6, %v5806_v32 }
 0x450   :  { %4365 = vmatmul.msk.bf16.gmra.mxu2 %vm274_vm1, %v2938_v35  ;;  %4397 = vmatmul.msk.bf16.gmra.mxu3 %vm274_vm1, %v2970_v20  ;;  %v2907_v13 = vpack.c.bf16 %v2686_v50, %v2685_v31  ;;  %v1848_v47 = vmul.f32 %v8068_v6, %v5817_v39  ;;  %v2939_v55 = vpack.c.bf16 %v2750_v10, %v2749_v52 }
 0x451   :  { %v1911_v19 = vmul.f32 %v8068_v6, %v6384_v3  ;;  %v1912_v16 = vmul.f32 %v8068_v6, %v6393_v28  ;;  %v1975_v18 = vmul.f32 %v8068_v6, %v6960_v62  ;;  %v2971_v37 = vpack.c.bf16 %v2814_v27, %v2813_v9 }
 0x452   :  { %v1976_v14 = vmul.f32 %v8068_v6, %v6969_v53  ;;  %v2039_v32 = vmul.f32 %v8068_v6, %v7536_v40  ;;  %v2040_v39 = vmul.f32 %v8068_v6, %v7545_v45  ;;  %v2107_v48 = vmul.f32 %v8066_v23, %v1847_v36 }
 0x453   :  { %v2108_v3 = vmul.f32 %v8066_v23, %v1848_v47  ;;  %v2171_v28 = vmul.f32 %v8066_v23, %v1911_v19  ;;  %v2172_v62 = vmul.f32 %v8066_v23, %v1912_v16  ;;  %v2235_v53 = vmul.f32 %v8066_v23, %v1975_v18 }
 0x454   :  { %v2236_v40 = vmul.f32 %v8066_v23, %v1976_v14  ;;  %v2299_v45 = vmul.f32 %v8066_v23, %v2039_v32  ;;  %v2300_v63 = vmul.f32 %v8066_v23, %v2040_v39  ;;  %v2367_v17 = vadd.f32 %v8077_v12, %v2107_v48 }
 0x455   :  { %v2368_v57 = vadd.f32 %v8077_v12, %v2108_v3  ;;  %v2431_v42 = vadd.f32 %v8077_v12, %v2171_v28  ;;  %v2432_v35 = vadd.f32 %v8077_v12, %v2172_v62  ;;  %v2495_v20 = vadd.f32 %v8077_v12, %v2235_v53 }
 0x456   :  { %v2496_v24 = vadd.f32 %v8077_v12, %v2236_v40  ;;  %v2559_v29 = vadd.f32 %v8077_v12, %v2299_v45  ;;  %v2560_v21 = vadd.f32 %v8077_v12, %v2300_v63  ;;  %v2623_v41 = vmax.f32 %v2367_v17, 0.0  ;;  %v10694_v45 = vld [vmem:[#allocation54_spill] sm:$0xff]  ;;  %v10695_v17 = vld [vmem:[#allocation55_spill] sm:$0xff] }
 0x457   :  { %v2624_v22 = vmax.f32 %v2368_v57, 0.0  ;;  %v2687_v38 = vmax.f32 %v2431_v42, 0.0  ;;  %v2688_v25 = vmax.f32 %v2432_v35, 0.0  ;;  %v2751_v8 = vmax.f32 %v2495_v20, 0.0  ;;  %v10696_v42 = vld [vmem:[#allocation108_spill] sm:$0xff] }
 0x458   :  { %v2752_v30 = vmax.f32 %v2496_v24, 0.0  ;;  %v2815_v46 = vmax.f32 %v2559_v29, 0.0  ;;  %v2816_v56 = vmax.f32 %v2560_v21, 0.0  ;;  %v1849_v5 = vmul.f32 %v8068_v6, %v5826_v44  ;;  %v10697_v24 = vld [vmem:[#allocation109_spill] sm:$0xff]  ;;  %v10698_v21 = vld [vmem:[#allocation162_spill] sm:$0xff] }
 0x459   :  { %v1850_v61 = vmul.f32 %v8068_v6, %v5835_v49  ;;  %v1913_v58 = vmul.f32 %v8068_v6, %v6402_v51  ;;  %v1914_v26 = vmul.f32 %v8068_v6, %v6411_v4  ;;  %v2876_v7 = vpack.c.bf16 %v2624_v22, %v2623_v41  ;;  %v10699_v41 = vld [vmem:[#allocation163_spill] sm:$0xff] }
 0x45a   :  { %v2908_v2 = vpack.c.bf16 %v2688_v25, %v2687_v38  ;;  %v1977_v0 = vmul.f32 %v8068_v6, %v6978_v43  ;;  %v1978_v1 = vmul.f32 %v8068_v6, %v6987_v33  ;;  %v2940_v15 = vpack.c.bf16 %v2752_v30, %v2751_v8 }
 0x45b   :  { %v2972_v31 = vpack.c.bf16 %v2816_v56, %v2815_v46  ;;  %v2041_v44 = vmul.f32 %v8068_v6, %v7554_v60  ;;  %v2042_v49 = vmul.f32 %v8068_v6, %v7563_v34  ;;  %v2109_v51 = vmul.f32 %v8066_v23, %v1849_v5 }
 0x45c   :  { %v2110_v4 = vmul.f32 %v8066_v23, %v1850_v61  ;;  %v2173_v50 = vmul.f32 %v8066_v23, %v1913_v58  ;;  %v2174_v52 = vmul.f32 %v8066_v23, %v1914_v26  ;;  %v2237_v43 = vmul.f32 %v8066_v23, %v1977_v0 }
 0x45d   :  { %v2238_v33 = vmul.f32 %v8066_v23, %v1978_v1  ;;  %v2301_v60 = vmul.f32 %v8066_v23, %v2041_v44  ;;  %v2302_v34 = vmul.f32 %v8066_v23, %v2042_v49  ;;  %v2369_v10 = vadd.f32 %v8077_v12, %v2109_v51 }
 0x45e   :  { %v2370_v9 = vadd.f32 %v8077_v12, %v2110_v4  ;;  %v2433_v27 = vadd.f32 %v8077_v12, %v2173_v50  ;;  %v1851_v62 = vmul.f32 %v8068_v6, %v5844_v54  ;;  %v1852_v53 = vmul.f32 %v8068_v6, %v5853_v59 }
 0x45f   :  { %4302 = vmatmul.msk.bf16.gmra.mxu0 %vm274_vm1, %v2875_v11  ;;  %4334 = vmatmul.msk.bf16.gmra.mxu1 %vm274_vm1, %v2907_v13  ;;  %v2434_v11 = vadd.f32 %v8077_v12, %v2174_v52  ;;  %v2497_v13 = vadd.f32 %v8077_v12, %v2237_v43  ;;  %v2498_v36 = vadd.f32 %v8077_v12, %v2238_v33  ;;  %v2625_v19 = vmax.f32 %v2369_v10, 0.0  ;;  %v10700_v33 = vld [vmem:[#allocation2_spill] sm:$0xff] }
 0x460   :  { %4366 = vmatmul.msk.bf16.gmra.mxu2 %vm274_vm1, %v2939_v55  ;;  %4398 = vmatmul.msk.bf16.gmra.mxu3 %vm274_vm1, %v2971_v37  ;;  %v2561_v47 = vadd.f32 %v8077_v12, %v2301_v60  ;;  %v2562_v55 = vadd.f32 %v8077_v12, %v2302_v34  ;;  %v2626_v16 = vmax.f32 %v2370_v9, 0.0  ;;  %v2689_v18 = vmax.f32 %v2433_v27, 0.0  ;;  %v10701_v34 = vld [vmem:[#allocation3_spill] sm:$0xff]  ;;  %v10702_v9 = vld [vmem:[#allocation56_spill] sm:$0xff] }
 0x461   :  { %v2690_v37 = vmax.f32 %v2434_v11, 0.0  ;;  %v2753_v14 = vmax.f32 %v2497_v13, 0.0  ;;  %v2754_v32 = vmax.f32 %v2498_v36, 0.0  ;;  %v1915_v63 = vmul.f32 %v8068_v6, %v10694_v45  ;;  %v10703_v11 = vld [vmem:[#allocation57_spill] sm:$0xff] }
 0x462   :  { %v2817_v39 = vmax.f32 %v2561_v47, 0.0  ;;  %v2818_v48 = vmax.f32 %v2562_v55, 0.0  ;;  %v2877_v3 = vpack.c.bf16 %v2626_v16, %v2625_v19  ;;  %v1916_v57 = vmul.f32 %v8068_v6, %v10695_v17  ;;  %v10704_v55 = vld [vmem:[#allocation110_spill] sm:$0xff]  ;;  %v10705_v16 = vld [vmem:[#allocation111_spill] sm:$0xff] }
 0x463   :  { %v2909_v28 = vpack.c.bf16 %v2690_v37, %v2689_v18  ;;  %v2941_v40 = vpack.c.bf16 %v2754_v32, %v2753_v14  ;;  %v1979_v35 = vmul.f32 %v8068_v6, %v10696_v42  ;;  %v1980_v29 = vmul.f32 %v8068_v6, %v10697_v24  ;;  %v10706_v32 = vld [vmem:[#allocation164_spill] sm:$0xff] }
 0x464   :  { %v2973_v20 = vpack.c.bf16 %v2818_v48, %v2817_v39  ;;  %v2043_v54 = vmul.f32 %v8068_v6, %v10698_v21  ;;  %v2044_v59 = vmul.f32 %v8068_v6, %v10699_v41  ;;  %v2111_v22 = vmul.f32 %v8066_v23, %v1851_v62  ;;  %v10707_v48 = vld [vmem:[#allocation165_spill] sm:$0xff] }
 0x465   :  { %v2112_v38 = vmul.f32 %v8066_v23, %v1852_v53  ;;  %v2175_v25 = vmul.f32 %v8066_v23, %v1915_v63  ;;  %v2176_v8 = vmul.f32 %v8066_v23, %v1916_v57  ;;  %v2239_v30 = vmul.f32 %v8066_v23, %v1979_v35 }
 0x466   :  { %v2240_v46 = vmul.f32 %v8066_v23, %v1980_v29  ;;  %v2303_v56 = vmul.f32 %v8066_v23, %v2043_v54  ;;  %v2304_v5 = vmul.f32 %v8066_v23, %v2044_v59  ;;  %v2371_v61 = vadd.f32 %v8077_v12, %v2111_v22 }
 0x467   :  { %v2372_v58 = vadd.f32 %v8077_v12, %v2112_v38  ;;  %v2435_v26 = vadd.f32 %v8077_v12, %v2175_v25  ;;  %v1853_v60 = vmul.f32 %v8068_v6, %v10700_v33  ;;  %v1854_v10 = vmul.f32 %v8068_v6, %v10701_v34 }
 0x468   :  { %v2500_v0 = vadd.f32 %v8077_v12, %v2240_v46  ;;  %v2563_v1 = vadd.f32 %v8077_v12, %v2303_v56  ;;  %v1917_v27 = vmul.f32 %v8068_v6, %v10702_v9  ;;  %v1918_v13 = vmul.f32 %v8068_v6, %v10703_v11 }
 0x469   :  { %v2628_v44 = vmax.f32 %v2372_v58, 0.0  ;;  %v2691_v49 = vmax.f32 %v2435_v26, 0.0  ;;  %v1981_v19 = vmul.f32 %v8068_v6, %v10704_v55  ;;  %v1982_v18 = vmul.f32 %v8068_v6, %v10705_v16  ;;  %v10708_v58 = vld [vmem:[#allocation4_spill] sm:$0xff] }
 0x46a   :  { %v2756_v50 = vmax.f32 %v2500_v0, 0.0  ;;  %v2819_v52 = vmax.f32 %v2563_v1, 0.0  ;;  %v2045_v39 = vmul.f32 %v8068_v6, %v10706_v32  ;;  %v2114_v62 = vmul.f32 %v8066_v23, %v1854_v10  ;;  %v10710_v1 = vld [vmem:[#allocation58_spill] sm:$0xff] }
 0x46b   :  { %v2177_v53 = vmul.f32 %v8066_v23, %v1917_v27  ;;  %v2241_v45 = vmul.f32 %v8066_v23, %v1981_v19  ;;  %v2242_v63 = vmul.f32 %v8066_v23, %v1982_v18  ;;  %v1855_v26 = vmul.f32 %v8068_v6, %v10708_v58 }
 0x46c   :  { %v2305_v17 = vmul.f32 %v8066_v23, %v2045_v39  ;;  %v2374_v35 = vadd.f32 %v8077_v12, %v2114_v62 }
 0x46d   :  { %v2501_v29 = vadd.f32 %v8077_v12, %v2241_v45  ;;  %v2502_v21 = vadd.f32 %v8077_v12, %v2242_v63  ;;  %v2115_v10 = vmul.f32 %v8066_v23, %v1855_v26 }
 0x46e   :  { %v2565_v54 = vadd.f32 %v8077_v12, %v2305_v17  ;;  %v2630_v22 = vmax.f32 %v2374_v35, 0.0  ;;  %v10717_v35 = vld [vmem:[#allocation7_spill] sm:$0xff] }
 0x46f   :  { %4303 = vmatmul.msk.bf16.gmra.mxu0 %vm274_vm1, %v2876_v7  ;;  %4335 = vmatmul.msk.bf16.gmra.mxu1 %vm274_vm1, %v2908_v2  ;;  %v2436_v7 = vadd.f32 %v8077_v12, %v2176_v8  ;;  %v2499_v2 = vadd.f32 %v8077_v12, %v2239_v30  ;;  %v2757_v8 = vmax.f32 %v2501_v29, 0.0  ;;  %v2758_v30 = vmax.f32 %v2502_v21, 0.0  ;;  %v10719_v21 = vld [vmem:[#allocation61_spill] sm:$0xff] }
 0x470   :  { %4367 = vmatmul.msk.bf16.gmra.mxu2 %vm274_vm1, %v2940_v15  ;;  %4399 = vmatmul.msk.bf16.gmra.mxu3 %vm274_vm1, %v2972_v31  ;;  %v2564_v15 = vadd.f32 %v8077_v12, %v2304_v5  ;;  %v2627_v31 = vmax.f32 %v2371_v61, 0.0  ;;  %v2821_v46 = vmax.f32 %v2565_v54, 0.0  ;;  %v2375_v19 = vadd.f32 %v8077_v12, %v2115_v10 }
 0x471   :  { %v2692_v51 = vmax.f32 %v2436_v7, 0.0  ;;  %v2755_v4 = vmax.f32 %v2499_v2, 0.0  ;;  %v10709_v7 = vld [vmem:[#allocation5_spill] sm:$0xff]  ;;  %v2943_v0 = vpack.c.bf16 %v2758_v30, %v2757_v8  ;;  %v1922_v54 = vmul.f32 %v8068_v6, %v10719_v21 }
 0x472   :  { %v2820_v43 = vmax.f32 %v2564_v15, 0.0  ;;  %v2878_v36 = vpack.c.bf16 %v2628_v44, %v2627_v31  ;;  %v1856_v2 = vmul.f32 %v8068_v6, %v10709_v7  ;;  %v1919_v15 = vmul.f32 %v8068_v6, %v10710_v1  ;;  %v10711_v31 = vld [vmem:[#allocation59_spill] sm:$0xff] }
 0x473   :  { %v2910_v47 = vpack.c.bf16 %v2692_v51, %v2691_v49  ;;  %v2942_v37 = vpack.c.bf16 %v2756_v50, %v2755_v4  ;;  %v1920_v44 = vmul.f32 %v8068_v6, %v10711_v31  ;;  %v10712_v49 = vld [vmem:[#allocation112_spill] sm:$0xff]  ;;  %v10713_v50 = vld [vmem:[#allocation113_spill] sm:$0xff] }
 0x474   :  { %v2974_v14 = vpack.c.bf16 %v2820_v43, %v2819_v52  ;;  %v1983_v51 = vmul.f32 %v8068_v6, %v10712_v49  ;;  %v1984_v52 = vmul.f32 %v8068_v6, %v10713_v50  ;;  %v10714_v43 = vld [vmem:[#allocation166_spill] sm:$0xff]  ;;  %v2116_v9 = vmul.f32 %v8066_v23, %v1856_v2 }
 0x475   :  { %v2047_v33 = vmul.f32 %v8068_v6, %v10714_v43  ;;  %v2179_v27 = vmul.f32 %v8066_v23, %v1919_v15  ;;  %v2180_v11 = vmul.f32 %v8066_v23, %v1920_v44 }
 0x476   :  { %v2376_v16 = vadd.f32 %v8077_v12, %v2116_v9 }
 0x477   :  { %v2439_v18 = vadd.f32 %v8077_v12, %v2179_v27 }
 0x479   :  { %v2695_v62 = vmax.f32 %v2439_v18, 0.0 }
 0x47f   :  { %4304 = vmatmul.msk.bf16.gmra.mxu0 %vm274_vm1, %v2877_v3  ;;  %4336 = vmatmul.msk.bf16.gmra.mxu1 %vm274_vm1, %v2909_v28  ;;  %v2046_v3 = vmul.f32 %v8068_v6, %v10707_v48  ;;  %v2113_v28 = vmul.f32 %v8066_v23, %v1853_v60  ;;  %v10715_v60 = vld [vmem:[#allocation167_spill] sm:$0xff] }
 0x480   :  { %4368 = vmatmul.msk.bf16.gmra.mxu2 %vm274_vm1, %v2941_v40  ;;  %4400 = vmatmul.msk.bf16.gmra.mxu3 %vm274_vm1, %v2973_v20  ;;  %v2178_v40 = vmul.f32 %v8066_v23, %v1918_v13  ;;  %v2437_v20 = vadd.f32 %v8077_v12, %v2177_v53  ;;  %v2048_v34 = vmul.f32 %v8068_v6, %v10715_v60 }
 0x481   :  { %v2306_v57 = vmul.f32 %v8066_v23, %v2046_v3  ;;  %v2373_v42 = vadd.f32 %v8077_v12, %v2113_v28  ;;  %v2243_v13 = vmul.f32 %v8066_v23, %v1983_v51  ;;  %v2631_v3 = vmax.f32 %v2375_v19, 0.0 }
 0x482   :  { %v2438_v24 = vadd.f32 %v8077_v12, %v2178_v40  ;;  %v2693_v38 = vmax.f32 %v2437_v20, 0.0  ;;  %v2308_v55 = vmul.f32 %v8066_v23, %v2048_v34  ;;  %v2632_v28 = vmax.f32 %v2376_v16, 0.0  ;;  %v10724_v16 = vld [vmem:[#allocation8_spill] sm:$0xff] }
 0x483   :  { %v2566_v41 = vadd.f32 %v8077_v12, %v2306_v57  ;;  %v2629_v59 = vmax.f32 %v2373_v42, 0.0  ;;  %v10716_v57 = vld [vmem:[#allocation6_spill] sm:$0xff]  ;;  %v1858_v20 = vmul.f32 %v8068_v6, %v10717_v35  ;;  %v1859_v18 = vmul.f32 %v8068_v6, %v10724_v16 }
 0x484   :  { %v2694_v25 = vmax.f32 %v2438_v24, 0.0  ;;  %v2568_v48 = vadd.f32 %v8077_v12, %v2308_v55  ;;  %v1857_v42 = vmul.f32 %v8068_v6, %v10716_v57  ;;  %v10718_v24 = vld [vmem:[#allocation60_spill] sm:$0xff] }
 0x485   :  { %v2822_v56 = vmax.f32 %v2566_v41, 0.0  ;;  %v2879_v5 = vpack.c.bf16 %v2630_v22, %v2629_v59  ;;  %v1921_v29 = vmul.f32 %v8068_v6, %v10718_v24  ;;  %v2880_v41 = vpack.c.bf16 %v2632_v28, %v2631_v3  ;;  %v10720_v22 = vld [vmem:[#allocation114_spill] sm:$0xff]  ;;  %v10727_v3 = vld [vmem:[#allocation63_spill] sm:$0xff] }
 0x486   :  { %v2911_v61 = vpack.c.bf16 %v2694_v25, %v2693_v38  ;;  %v2824_v17 = vmax.f32 %v2568_v48, 0.0  ;;  %v1985_v38 = vmul.f32 %v8068_v6, %v10720_v22  ;;  %v10721_v25 = vld [vmem:[#allocation115_spill] sm:$0xff]  ;;  %v2117_v26 = vmul.f32 %v8066_v23, %v1857_v42  ;;  %v10730_v42 = vld [vmem:[#allocation170_spill] sm:$0xff] }
 0x487   :  { %v2975_v4 = vpack.c.bf16 %v2822_v56, %v2821_v46  ;;  %v1986_v8 = vmul.f32 %v8068_v6, %v10721_v25  ;;  %v10722_v56 = vld [vmem:[#allocation168_spill] sm:$0xff]  ;;  %v2118_v7 = vmul.f32 %v8066_v23, %v1858_v20  ;;  %v2181_v2 = vmul.f32 %v8066_v23, %v1921_v29  ;;  %v10731_v20 = vld [vmem:[#allocation171_spill] sm:$0xff] }
 0x488   :  { %v2245_v1 = vmul.f32 %v8066_v23, %v1985_v38  ;;  %v2377_v49 = vadd.f32 %v8077_v12, %v2117_v26  ;;  %v1924_v28 = vmul.f32 %v8068_v6, %v10727_v3  ;;  %v2051_v35 = vmul.f32 %v8068_v6, %v10730_v42  ;;  %v10738_v3 = vld [vmem:[#allocation172_spill] sm:$0xff] }
 0x489   :  { %v2246_v15 = vmul.f32 %v8066_v23, %v1986_v8  ;;  %v2378_v51 = vadd.f32 %v8077_v12, %v2118_v7  ;;  %v2052_v24 = vmul.f32 %v8068_v6, %v10731_v20  ;;  %v2119_v29 = vmul.f32 %v8066_v23, %v1859_v18  ;;  %v10737_v18 = vld [vmem:[#allocation119_spill] sm:$0xff] }
 0x48a   :  { %v2633_v34 = vmax.f32 %v2377_v49, 0.0  ;;  %v2311_v38 = vmul.f32 %v8066_v23, %v2051_v35 }
 0x48b   :  { %v2506_v43 = vadd.f32 %v8077_v12, %v2246_v15  ;;  %v2634_v10 = vmax.f32 %v2378_v51, 0.0  ;;  %v2312_v25 = vmul.f32 %v8066_v23, %v2052_v24 }
 0x48d   :  { %v2881_v55 = vpack.c.bf16 %v2634_v10, %v2633_v34  ;;  %v10734_v10 = vld [vmem:[#allocation64_spill] sm:$0xff] }
 0x48f   :  { %4305 = vmatmul.msk.bf16.gmra.mxu0 %vm274_vm1, %v2878_v36  ;;  %4337 = vmatmul.msk.bf16.gmra.mxu1 %vm274_vm1, %v2910_v47  ;;  %v2244_v36 = vmul.f32 %v8066_v23, %v1984_v52  ;;  %v2307_v47 = vmul.f32 %v8066_v23, %v2047_v33  ;;  %v2505_v52 = vadd.f32 %v8077_v12, %v2245_v1 }
 0x490   :  { %4369 = vmatmul.msk.bf16.gmra.mxu2 %vm274_vm1, %v2942_v37  ;;  %4401 = vmatmul.msk.bf16.gmra.mxu3 %vm274_vm1, %v2974_v14  ;;  %v2440_v37 = vadd.f32 %v8077_v12, %v2180_v11  ;;  %v2503_v14 = vadd.f32 %v8077_v12, %v2243_v13  ;;  %v2762_v13 = vmax.f32 %v2506_v43, 0.0  ;;  %v2572_v1 = vadd.f32 %v8077_v12, %v2312_v25  ;;  %v10732_v43 = vld [vmem:[#allocation10_spill] sm:$0xff] }
 0x491   :  { %v2504_v32 = vadd.f32 %v8077_v12, %v2244_v36  ;;  %v2567_v39 = vadd.f32 %v8077_v12, %v2307_v47  ;;  %v2761_v11 = vmax.f32 %v2505_v52, 0.0 }
 0x492   :  { %v2696_v53 = vmax.f32 %v2440_v37, 0.0  ;;  %v2759_v40 = vmax.f32 %v2503_v14, 0.0  ;;  %v10725_v37 = vld [vmem:[#allocation9_spill] sm:$0xff]  ;;  %v2828_v52 = vmax.f32 %v2572_v1, 0.0 }
 0x493   :  { %v2760_v45 = vmax.f32 %v2504_v32, 0.0  ;;  %v2823_v63 = vmax.f32 %v2567_v39, 0.0  ;;  %v1860_v14 = vmul.f32 %v8068_v6, %v10725_v37  ;;  %v2945_v32 = vpack.c.bf16 %v2762_v13, %v2761_v11  ;;  %v10726_v39 = vld [vmem:[#allocation62_spill] sm:$0xff] }
 0x494   :  { %v2912_v59 = vpack.c.bf16 %v2696_v53, %v2695_v62  ;;  %v1923_v48 = vmul.f32 %v8068_v6, %v10726_v39  ;;  %v10728_v62 = vld [vmem:[#allocation116_spill] sm:$0xff]  ;;  %v1990_v37 = vmul.f32 %v8068_v6, %v10737_v18 }
 0x495   :  { %v2944_v30 = vpack.c.bf16 %v2760_v45, %v2759_v40  ;;  %v2976_v46 = vpack.c.bf16 %v2824_v17, %v2823_v63  ;;  %v1987_v53 = vmul.f32 %v8068_v6, %v10728_v62  ;;  %v10729_v17 = vld [vmem:[#allocation117_spill] sm:$0xff]  ;;  %v2120_v21 = vmul.f32 %v8066_v23, %v1860_v14 }
 0x496   :  { %v1988_v57 = vmul.f32 %v8068_v6, %v10729_v17  ;;  %v10739_v62 = vld [vmem:[#allocation173_spill] sm:$0xff]  ;;  %v2250_v42 = vmul.f32 %v8066_v23, %v1990_v37 }
 0x498   :  { %v2248_v22 = vmul.f32 %v8066_v23, %v1988_v57 }
 0x49f   :  { %4306 = vmatmul.msk.bf16.gmra.mxu0 %vm274_vm1, %v2879_v5  ;;  %4338 = vmatmul.msk.bf16.gmra.mxu1 %vm274_vm1, %v2911_v61  ;;  %v2049_v5 = vmul.f32 %v8068_v6, %v10722_v56  ;;  %v10723_v61 = vld [vmem:[#allocation169_spill] sm:$0xff]  ;;  %v2380_v56 = vadd.f32 %v8077_v12, %v2120_v21 }
 0x4a0   :  { %4370 = vmatmul.msk.bf16.gmra.mxu2 %vm274_vm1, %v2943_v0  ;;  %4402 = vmatmul.msk.bf16.gmra.mxu3 %vm274_vm1, %v2975_v4  ;;  %v2050_v58 = vmul.f32 %v8068_v6, %v10723_v61  ;;  %v2182_v0 = vmul.f32 %v8066_v23, %v1922_v54  ;;  %v2441_v4 = vadd.f32 %v8077_v12, %v2181_v2 }
 0x4a1   :  { %v2309_v31 = vmul.f32 %v8066_v23, %v2049_v5  ;;  %v2183_v54 = vmul.f32 %v8066_v23, %v1923_v48  ;;  %v2508_v2 = vadd.f32 %v8077_v12, %v2248_v22 }
 0x4a2   :  { %v2310_v44 = vmul.f32 %v8066_v23, %v2050_v58  ;;  %v2442_v50 = vadd.f32 %v8077_v12, %v2182_v0  ;;  %v2697_v9 = vmax.f32 %v2441_v4, 0.0  ;;  %v2571_v0 = vadd.f32 %v8077_v12, %v2311_v38 }
 0x4a3   :  { %v2569_v33 = vadd.f32 %v8077_v12, %v2309_v31  ;;  %v2443_v5 = vadd.f32 %v8077_v12, %v2183_v54  ;;  %v2636_v31 = vmax.f32 %v2380_v56, 0.0  ;;  %v2764_v4 = vmax.f32 %v2508_v2, 0.0 }
 0x4a4   :  { %v2570_v60 = vadd.f32 %v8077_v12, %v2310_v44  ;;  %v2698_v27 = vmax.f32 %v2442_v50, 0.0  ;;  %v2827_v50 = vmax.f32 %v2571_v0, 0.0  ;;  %v2510_v38 = vadd.f32 %v8077_v12, %v2250_v42 }
 0x4a5   :  { %v2825_v36 = vmax.f32 %v2569_v33, 0.0  ;;  %v2699_v44 = vmax.f32 %v2443_v5, 0.0  ;;  %v1861_v33 = vmul.f32 %v8068_v6, %v10732_v43  ;;  %v10742_v43 = vld [vmem:[#allocation66_spill] sm:$0xff] }
 0x4a6   :  { %v2826_v47 = vmax.f32 %v2570_v60, 0.0  ;;  %v2913_v19 = vpack.c.bf16 %v2698_v27, %v2697_v9  ;;  %v10733_v60 = vld [vmem:[#allocation11_spill] sm:$0xff]  ;;  %v1925_v9 = vmul.f32 %v8068_v6, %v10734_v10  ;;  %v10735_v27 = vld [vmem:[#allocation65_spill] sm:$0xff]  ;;  %v2978_v48 = vpack.c.bf16 %v2828_v52, %v2827_v50  ;;  %v10744_v10 = vld [vmem:[#allocation120_spill] sm:$0xff] }
 0x4a7   :  { %v1862_v34 = vmul.f32 %v8068_v6, %v10733_v60  ;;  %v1926_v11 = vmul.f32 %v8068_v6, %v10735_v27  ;;  %v10743_v60 = vld [vmem:[#allocation67_spill] sm:$0xff] }
 0x4a8   :  { %v2977_v63 = vpack.c.bf16 %v2826_v47, %v2825_v36 }
 0x4a9   :  { %v2186_v17 = vmul.f32 %v8066_v23, %v1926_v11 }
 0x4ab   :  { %v2446_v54 = vadd.f32 %v8077_v12, %v2186_v17 }
 0x4af   :  { %4307 = vmatmul.msk.bf16.gmra.mxu0 %vm274_vm1, %v2880_v41  ;;  %4339 = vmatmul.msk.bf16.gmra.mxu1 %vm274_vm1, %v2912_v59  ;;  %v2184_v41 = vmul.f32 %v8066_v23, %v1924_v28  ;;  %v2247_v59 = vmul.f32 %v8066_v23, %v1987_v53  ;;  %v2053_v28 = vmul.f32 %v8068_v6, %v10738_v3 }
 0x4b0   :  { %4371 = vmatmul.msk.bf16.gmra.mxu2 %vm274_vm1, %v2944_v30  ;;  %4403 = vmatmul.msk.bf16.gmra.mxu3 %vm274_vm1, %v2976_v46  ;;  %v2379_v46 = vadd.f32 %v8077_v12, %v2119_v29  ;;  %v2054_v53 = vmul.f32 %v8068_v6, %v10739_v62 }
 0x4b1   :  { %v2444_v61 = vadd.f32 %v8077_v12, %v2184_v41  ;;  %v2507_v7 = vadd.f32 %v8077_v12, %v2247_v59  ;;  %v2313_v35 = vmul.f32 %v8066_v23, %v2053_v28 }
 0x4b2   :  { %v2635_v15 = vmax.f32 %v2379_v46, 0.0  ;;  %v2314_v20 = vmul.f32 %v8066_v23, %v2054_v53 }
 0x4b3   :  { %v2700_v49 = vmax.f32 %v2444_v61, 0.0  ;;  %v2763_v51 = vmax.f32 %v2507_v7, 0.0  ;;  %v2766_v7 = vmax.f32 %v2510_v38, 0.0 }
 0x4b4   :  { %v2882_v47 = vpack.c.bf16 %v2636_v31, %v2635_v15  ;;  %v2574_v46 = vadd.f32 %v8077_v12, %v2314_v20  ;;  %v10740_v31 = vld [vmem:[#allocation12_spill] sm:$0xff] }
 0x4b5   :  { %v2946_v39 = vpack.c.bf16 %v2764_v4, %v2763_v51 }
 0x4b6   :  { %v2830_v0 = vmax.f32 %v2574_v46, 0.0  ;;  %v10749_v46 = vld [vmem:[#allocation15_spill] sm:$0xff] }
 0x4bc   :  { %v3399_v40 = vpop.f32.mrf.mxu0  ;;  %v3559_v45 = vpop.f32.mrf.mxu1 }
 0x4bd   :  { %4040 = vst.msk [vmem:[%s10265_s4] sm:$0xff] %vm4039_vm6, %v3399_v40  ;;  %v2121_v40 = vmul.f32 %v8066_v23, %v1861_v33  ;;  %v1927_v33 = vmul.f32 %v8068_v6, %v10742_v43  ;;  %v10754_v43 = vld [vmem:[#allocation176_spill] sm:$0xff] }
 0x4be   :  { %4104 = vst.msk [vmem:[%s10265_s4 + $0x200] sm:$0xff] %vm4039_vm6, %v3559_v45  ;;  %v2122_v45 = vmul.f32 %v8066_v23, %v1862_v34  ;;  %v1928_v34 = vmul.f32 %v8068_v6, %v10743_v60  ;;  %v10755_v60 = vld [vmem:[#allocation177_spill] sm:$0xff] }
 0x4bf   :  { %4308 = vmatmul.msk.bf16.gmra.mxu0 %vm274_vm1, %v2881_v55  ;;  %4340 = vmatmul.msk.bf16.gmra.mxu1 %vm274_vm1, %v2913_v19  ;;  %v2914_v55 = vpack.c.bf16 %v2700_v49, %v2699_v44  ;;  %v10736_v19 = vld [vmem:[#allocation118_spill] sm:$0xff]  ;;  %v2381_v24 = vadd.f32 %v8077_v12, %v2121_v40  ;;  %v1863_v44 = vmul.f32 %v8068_v6, %v10740_v31  ;;  %v10741_v49 = vld [vmem:[#allocation13_spill] sm:$0xff] }
 0x4c0   :  { %4372 = vmatmul.msk.bf16.gmra.mxu2 %vm274_vm1, %v2945_v32  ;;  %4404 = vmatmul.msk.bf16.gmra.mxu3 %vm274_vm1, %v2977_v63  ;;  %v1989_v16 = vmul.f32 %v8068_v6, %v10736_v19  ;;  %v2185_v63 = vmul.f32 %v8066_v23, %v1925_v9  ;;  %v2382_v29 = vadd.f32 %v8077_v12, %v2122_v45 }
 0x4c1   :  { %v2637_v56 = vmax.f32 %v2381_v24, 0.0  ;;  %v1864_v51 = vmul.f32 %v8068_v6, %v10741_v49  ;;  %v1991_v9 = vmul.f32 %v8068_v6, %v10744_v10  ;;  %v2123_v37 = vmul.f32 %v8066_v23, %v1863_v44  ;;  %v10753_v44 = vld [vmem:[#allocation123_spill] sm:$0xff]  ;;  %v8622_v10 = vld [vmem:[%s10263_s1] ss:$0 sm:$0xff] }
 0x4c2   :  { %v2249_v57 = vmul.f32 %v8066_v23, %v1989_v16  ;;  %v2445_v21 = vadd.f32 %v8077_v12, %v2185_v63  ;;  %v2638_v5 = vmax.f32 %v2382_v29, 0.0  ;;  %v10747_v16 = vld [vmem:[#allocation175_spill] sm:$0xff]  ;;  %v1994_v49 = vmul.f32 %v8068_v6, %v10753_v44 }
 0x4c3   :  { %v3719_v8 = vpop.f32.mrf.mxu2  ;;  %v3879_v30 = vpop.f32.mrf.mxu3  ;;  %v2056_v18 = vmul.f32 %v8068_v6, %v10747_v16  ;;  %v2383_v45 = vadd.f32 %v8077_v12, %v2123_v37  ;;  %v8643_v16 = vld [vmem:[%s10264_s2] ss:$0 sm:$0xff] }
 0x4c4   :  { %4168 = vst.msk [vmem:[%s10265_s4 + $0x400] sm:$0xff] %vm4039_vm6, %v3719_v8  ;;  %v3401_v58 = vpop.f32.mrf.mxu0  ;;  %v3561_v26 = vpop.f32.mrf.mxu1  ;;  %v2509_v22 = vadd.f32 %v8077_v12, %v2249_v57  ;;  %v2701_v61 = vmax.f32 %v2445_v21, 0.0  ;;  %v2883_v1 = vpack.c.bf16 %v2638_v5, %v2637_v56  ;;  %v1866_v56 = vmul.f32 %v8068_v6, %v10749_v46  ;;  %v10750_v5 = vld [vmem:[#allocation68_spill] sm:$0xff]  ;;  %v10759_v46 = vld [vmem:[#allocation71_spill] sm:$0xff] }
 0x4c5   :  { %4232 = vst.msk [vmem:[%s10265_s4 + $0x600] sm:$0xff] %vm4039_vm6, %v3879_v30  ;;  %v2573_v30 = vadd.f32 %v8077_v12, %v2313_v35  ;;  %v2316_v62 = vmul.f32 %v8066_v23, %v2056_v18  ;;  %v2639_v21 = vmax.f32 %v2383_v45, 0.0 }
 0x4c6   :  { %4041 = vst.msk [vmem:[%s10265_s4 + $0x8] sm:$0xff] %vm4039_vm6, %v3401_v58  ;;  %v2702_v58 = vmax.f32 %v2446_v54, 0.0 }
 0x4c7   :  { %4105 = vst.msk [vmem:[%s10265_s4 + $0x208] sm:$0xff] %vm4039_vm6, %v3561_v26  ;;  %v2765_v26 = vmax.f32 %v2509_v22, 0.0  ;;  %v2829_v2 = vmax.f32 %v2573_v30, 0.0  ;;  %v2576_v29 = vadd.f32 %v8077_v12, %v2316_v62 }
 0x4c8   :  { %v2915_v15 = vpack.c.bf16 %v2702_v58, %v2701_v61  ;;  %v1929_v61 = vmul.f32 %v8068_v6, %v10750_v5  ;;  %v10751_v58 = vld [vmem:[#allocation69_spill] sm:$0xff]  ;;  %v10760_v5 = vld [vmem:[#allocation124_spill] sm:$0xff] }
 0x4c9   :  { %v2947_v52 = vpack.c.bf16 %v2766_v7, %v2765_v26  ;;  %v1930_v26 = vmul.f32 %v8068_v6, %v10751_v58 }
 0x4cb   :  { %v3721_v13 = vpop.f32.mrf.mxu2  ;;  %v3881_v36 = vpop.f32.mrf.mxu3 }
 0x4cc   :  { %4169 = vst.msk [vmem:[%s10265_s4 + $0x408] sm:$0xff] %vm4039_vm6, %v3721_v13  ;;  %v3404_v14 = vpop.f32.mrf.mxu0  ;;  %v3564_v32 = vpop.f32.mrf.mxu1  ;;  %v2979_v13 = vpack.c.bf16 %v2830_v0, %v2829_v2 }
 0x4cd   :  { %4233 = vst.msk [vmem:[%s10265_s4 + $0x608] sm:$0xff] %vm4039_vm6, %v3881_v36  ;;  %v10745_v36 = vld [vmem:[#allocation121_spill] sm:$0xff] }
 0x4ce   :  { %4042 = vst.msk [vmem:[%s10265_s4 + $0x10] sm:$0xff] %vm4039_vm6, %v3404_v14  ;;  %v2124_v14 = vmul.f32 %v8066_v23, %v1864_v51 }
 0x4cf   :  { %4106 = vst.msk [vmem:[%s10265_s4 + $0x210] sm:$0xff] %vm4039_vm6, %v3564_v32  ;;  %4309 = vmatmul.msk.bf16.gmra.mxu0 %vm274_vm1, %v2882_v47  ;;  %4341 = vmatmul.msk.bf16.gmra.mxu1 %vm274_vm1, %v2914_v55  ;;  %v1992_v47 = vmul.f32 %v8068_v6, %v10745_v36  ;;  %v10746_v55 = vld [vmem:[#allocation174_spill] sm:$0xff]  ;;  %v2187_v32 = vmul.f32 %v8066_v23, %v1927_v33 }
 0x4d0   :  { %4373 = vmatmul.msk.bf16.gmra.mxu2 %vm274_vm1, %v2946_v39  ;;  %4405 = vmatmul.msk.bf16.gmra.mxu3 %vm274_vm1, %v2978_v48  ;;  %v2055_v19 = vmul.f32 %v8068_v6, %v10746_v55  ;;  %v2188_v39 = vmul.f32 %v8066_v23, %v1928_v34  ;;  %v2251_v48 = vmul.f32 %v8066_v23, %v1991_v9 }
 0x4d1   :  { %v2252_v3 = vmul.f32 %v8066_v23, %v1992_v47  ;;  %v2384_v63 = vadd.f32 %v8077_v12, %v2124_v14  ;;  %v2447_v17 = vadd.f32 %v8077_v12, %v2187_v32  ;;  %v2057_v33 = vmul.f32 %v8068_v6, %v10754_v43 }
 0x4d2   :  { %v2315_v28 = vmul.f32 %v8066_v23, %v2055_v19  ;;  %v2448_v57 = vadd.f32 %v8077_v12, %v2188_v39  ;;  %v2511_v20 = vadd.f32 %v8077_v12, %v2251_v48  ;;  %v2058_v34 = vmul.f32 %v8068_v6, %v10755_v60 }
 0x4d3   :  { %v3724_v41 = vpop.f32.mrf.mxu2  ;;  %v3884_v59 = vpop.f32.mrf.mxu3  ;;  %v2512_v23 = vadd.f32 %v8077_v12, %v2252_v3  ;;  %v2640_v54 = vmax.f32 %v2384_v63, 0.0  ;;  %v2254_v47 = vmul.f32 %v8622_v10, %v1994_v49  ;;  %v2317_v55 = vmul.f32 %v8622_v10, %v2057_v33 }
 0x4d4   :  { %4170 = vst.msk [vmem:[%s10265_s4 + $0x410] sm:$0xff] %vm4039_vm6, %v3724_v41  ;;  %v3406_v25 = vpop.f32.mrf.mxu0  ;;  %v3566_v8 = vpop.f32.mrf.mxu1  ;;  %v2575_v24 = vadd.f32 %v8077_v12, %v2315_v28  ;;  %v2703_v41 = vmax.f32 %v2447_v17, 0.0  ;;  %v2767_v12 = vmax.f32 %v2511_v20, 0.0  ;;  %v2318_v19 = vmul.f32 %v8622_v10, %v2058_v34 }
 0x4d5   :  { %4234 = vst.msk [vmem:[%s10265_s4 + $0x610] sm:$0xff] %vm4039_vm6, %v3884_v59  ;;  %v2704_v59 = vmax.f32 %v2448_v57, 0.0  ;;  %v2768_v22 = vmax.f32 %v2512_v23, 0.0  ;;  %v2884_v0 = vpack.c.bf16 %v2640_v54, %v2639_v21  ;;  %v2514_v28 = vadd.f32 %v8643_v16, %v2254_v47  ;;  %v10756_v54 = vld [vmem:[#allocation16_spill] sm:$0xff] }
 0x4d6   :  { %4043 = vst.msk [vmem:[%s10265_s4 + $0x18] sm:$0xff] %vm4039_vm6, %v3406_v25  ;;  %v2831_v38 = vmax.f32 %v2575_v24, 0.0  ;;  %v2832_v25 = vmax.f32 %v2576_v29, 0.0  ;;  %v2578_v45 = vadd.f32 %v8643_v16, %v2318_v19 }
 0x4d7   :  { %4107 = vst.msk [vmem:[%s10265_s4 + $0x218] sm:$0xff] %vm4039_vm6, %v3566_v8  ;;  %v10748_v8 = vld [vmem:[#allocation14_spill] sm:$0xff]  ;;  %v2770_v20 = vmax.f32 %v2514_v28, 0.0 }
 0x4d8   :  { %v1865_v30 = vmul.f32 %v8068_v6, %v10748_v8  ;;  %v2834_v24 = vmax.f32 %v2578_v45, 0.0  ;;  %v10758_v8 = vld [vmem:[#allocation70_spill] sm:$0xff] }
 0x4d9   :  { %v10764_v45 = vld [vmem:[#allocation18_spill] sm:$0xff] }
 0x4da   :  { %v2125_v9 = vmul.f32 %v8622_v10, %v1865_v30  ;;  %v1931_v30 = vmul.f32 %v8068_v6, %v10758_v8 }
 0x4db   :  { %v3726_v4 = vpop.f32.mrf.mxu2  ;;  %v3886_v50 = vpop.f32.mrf.mxu3 }
 0x4dc   :  { %4171 = vst.msk [vmem:[%s10265_s4 + $0x418] sm:$0xff] %vm4039_vm6, %v3726_v4  ;;  %v3409_v27 = vpop.f32.mrf.mxu0  ;;  %v3569_v11 = vpop.f32.mrf.mxu1  ;;  %v2385_v18 = vadd.f32 %v8643_v16, %v2125_v9 }
 0x4dd   :  { %4235 = vst.msk [vmem:[%s10265_s4 + $0x618] sm:$0xff] %vm4039_vm6, %v3886_v50  ;;  %v2948_v50 = vpack.c.bf16 %v2768_v22, %v2767_v12 }
 0x4de   :  { %4044 = vst.msk [vmem:[%s10265_s4 + $0x20] sm:$0xff] %vm4039_vm6, %v3409_v27  ;;  %v2126_v27 = vmul.f32 %v8622_v10, %v1866_v56  ;;  %v2641_v63 = vmax.f32 %v2385_v18, 0.0  ;;  %v1932_v56 = vmul.f32 %v8068_v6, %v10759_v46  ;;  %v10770_v46 = vld [vmem:[#allocation180_spill] sm:$0xff] }
 0x4df   :  { %4108 = vst.msk [vmem:[%s10265_s4 + $0x220] sm:$0xff] %vm4039_vm6, %v3569_v11  ;;  %4310 = vmatmul.msk.bf16.gmra.mxu0 %vm274_vm1, %v2883_v1  ;;  %4342 = vmatmul.msk.bf16.gmra.mxu1 %vm274_vm1, %v2915_v15  ;;  %v2916_v1 = vpack.c.bf16 %v2704_v59, %v2703_v41  ;;  %v10752_v15 = vld [vmem:[#allocation122_spill] sm:$0xff]  ;;  %v2189_v11 = vmul.f32 %v8622_v10, %v1929_v61  ;;  %v10757_v59 = vld [vmem:[#allocation17_spill] sm:$0xff] }
 0x4e0   :  { %4374 = vmatmul.msk.bf16.gmra.mxu2 %vm274_vm1, %v2947_v52  ;;  %4406 = vmatmul.msk.bf16.gmra.mxu3 %vm274_vm1, %v2979_v13  ;;  %v1993_v31 = vmul.f32 %v8068_v6, %v10752_v15  ;;  %v2980_v52 = vpack.c.bf16 %v2832_v25, %v2831_v38  ;;  %v2190_v13 = vmul.f32 %v8622_v10, %v1930_v26 }
 0x4e1   :  { %v2386_v37 = vadd.f32 %v8643_v16, %v2126_v27  ;;  %v2449_v14 = vadd.f32 %v8643_v16, %v2189_v11  ;;  %v1867_v41 = vmul.f32 %v8068_v6, %v10756_v54  ;;  %v1868_v12 = vmul.f32 %v8068_v6, %v10757_v59 }
 0x4e2   :  { %v2253_v36 = vmul.f32 %v8622_v10, %v1993_v31  ;;  %v2450_v32 = vadd.f32 %v8643_v16, %v2190_v13  ;;  %v1995_v61 = vmul.f32 %v8068_v6, %v10760_v5  ;;  %v10763_v31 = vld [vmem:[#allocation179_spill] sm:$0xff]  ;;  %v10771_v5 = vld [vmem:[#allocation181_spill] sm:$0xff] }
 0x4e3   :  { %v3729_v53 = vpop.f32.mrf.mxu2  ;;  %v3889_v40 = vpop.f32.mrf.mxu3  ;;  %v2642_v17 = vmax.f32 %v2386_v37, 0.0  ;;  %v2705_v57 = vmax.f32 %v2449_v14, 0.0  ;;  %v2060_v44 = vmul.f32 %v8068_v6, %v10763_v31  ;;  %v2127_v49 = vmul.f32 %v8622_v10, %v1867_v41  ;;  %v10768_v41 = vld [vmem:[#allocation126_spill] sm:$0xff] }
 0x4e4   :  { %4172 = vst.msk [vmem:[%s10265_s4 + $0x420] sm:$0xff] %vm4039_vm6, %v3729_v53  ;;  %v3411_v42 = vpop.f32.mrf.mxu0  ;;  %v3571_v35 = vpop.f32.mrf.mxu1  ;;  %v2513_v3 = vadd.f32 %v8643_v16, %v2253_v36  ;;  %v1997_v59 = vmul.f32 %v8068_v6, %v10768_v41 }
 0x4e5   :  { %4236 = vst.msk [vmem:[%s10265_s4 + $0x620] sm:$0xff] %vm4039_vm6, %v3889_v40  ;;  %v2577_v40 = vadd.f32 %v8643_v16, %v2317_v55  ;;  %v2885_v29 = vpack.c.bf16 %v2642_v17, %v2641_v63  ;;  %v2320_v60 = vmul.f32 %v8622_v10, %v2060_v44  ;;  %v2387_v27 = vadd.f32 %v8643_v16, %v2127_v49  ;;  %v10765_v17 = vld [vmem:[#allocation19_spill] sm:$0xff] }
 0x4e6   :  { %4045 = vst.msk [vmem:[%s10265_s4 + $0x28] sm:$0xff] %vm4039_vm6, %v3411_v42  ;;  %v2706_v42 = vmax.f32 %v2450_v32, 0.0  ;;  %v1869_v63 = vmul.f32 %v8068_v6, %v10764_v45  ;;  %v10774_v45 = vld [vmem:[#allocation74_spill] sm:$0xff] }
 0x4e7   :  { %4109 = vst.msk [vmem:[%s10265_s4 + $0x228] sm:$0xff] %vm4039_vm6, %v3571_v35  ;;  %v2769_v35 = vmax.f32 %v2513_v3, 0.0  ;;  %v2833_v23 = vmax.f32 %v2577_v40, 0.0  ;;  %v2580_v14 = vadd.f32 %v8643_v16, %v2320_v60  ;;  %v2643_v32 = vmax.f32 %v2387_v27, 0.0 }
 0x4e8   :  { %v2917_v21 = vpack.c.bf16 %v2706_v42, %v2705_v57  ;;  %v1870_v57 = vmul.f32 %v8068_v6, %v10765_v17  ;;  %v10766_v42 = vld [vmem:[#allocation72_spill] sm:$0xff]  ;;  %v10775_v17 = vld [vmem:[#allocation75_spill] sm:$0xff] }
 0x4e9   :  { %v2949_v25 = vpack.c.bf16 %v2770_v20, %v2769_v35  ;;  %v2836_v40 = vmax.f32 %v2580_v14, 0.0  ;;  %v1933_v35 = vmul.f32 %v8068_v6, %v10766_v42  ;;  %v10767_v20 = vld [vmem:[#allocation73_spill] sm:$0xff]  ;;  %v10776_v42 = vld [vmem:[#allocation128_spill] sm:$0xff] }
 0x4eb   :  { %v3731_v7 = vpop.f32.mrf.mxu2  ;;  %v3891_v2 = vpop.f32.mrf.mxu3 }
 0x4ec   :  { %4173 = vst.msk [vmem:[%s10265_s4 + $0x428] sm:$0xff] %vm4039_vm6, %v3731_v7  ;;  %v3414_v51 = vpop.f32.mrf.mxu0  ;;  %v3574_v4 = vpop.f32.mrf.mxu1  ;;  %v2981_v7 = vpack.c.bf16 %v2834_v24, %v2833_v23  ;;  %v1934_v23 = vmul.f32 %v8068_v6, %v10767_v20 }
 0x4ed   :  { %4237 = vst.msk [vmem:[%s10265_s4 + $0x628] sm:$0xff] %vm4039_vm6, %v3891_v2  ;;  %v10761_v2 = vld [vmem:[#allocation125_spill] sm:$0xff] }
 0x4ee   :  { %4046 = vst.msk [vmem:[%s10265_s4 + $0x30] sm:$0xff] %vm4039_vm6, %v3414_v51  ;;  %v2128_v51 = vmul.f32 %v8622_v10, %v1868_v12  ;;  %v10769_v12 = vld [vmem:[#allocation127_spill] sm:$0xff] }
 0x4ef   :  { %4110 = vst.msk [vmem:[%s10265_s4 + $0x230] sm:$0xff] %vm4039_vm6, %v3574_v4  ;;  %4311 = vmatmul.msk.bf16.gmra.mxu0 %vm274_vm1, %v2884_v0  ;;  %4343 = vmatmul.msk.bf16.gmra.mxu1 %vm274_vm1, %v2916_v1  ;;  %v1996_v0 = vmul.f32 %v8068_v6, %v10761_v2  ;;  %v10762_v1 = vld [vmem:[#allocation178_spill] sm:$0xff]  ;;  %v2191_v4 = vmul.f32 %v8622_v10, %v1931_v30 }
 0x4f0   :  { %4375 = vmatmul.msk.bf16.gmra.mxu2 %vm274_vm1, %v2948_v50  ;;  %4407 = vmatmul.msk.bf16.gmra.mxu3 %vm274_vm1, %v2980_v52  ;;  %v2059_v15 = vmul.f32 %v8068_v6, %v10762_v1  ;;  %v2192_v50 = vmul.f32 %v8622_v10, %v1932_v56  ;;  %v2255_v52 = vmul.f32 %v8622_v10, %v1995_v61 }
 0x4f1   :  { %v2256_v43 = vmul.f32 %v8622_v10, %v1996_v0  ;;  %v2388_v11 = vadd.f32 %v8643_v16, %v2128_v51  ;;  %v2451_v13 = vadd.f32 %v8643_v16, %v2191_v4  ;;  %v2061_v56 = vmul.f32 %v8068_v6, %v10770_v46 }
 0x4f2   :  { %v2319_v33 = vmul.f32 %v8622_v10, %v2059_v15  ;;  %v2452_v36 = vadd.f32 %v8643_v16, %v2192_v50  ;;  %v2515_v19 = vadd.f32 %v8643_v16, %v2255_v52  ;;  %v2062_v61 = vmul.f32 %v8068_v6, %v10771_v5 }
 0x4f3   :  { %v3734_v39 = vpop.f32.mrf.mxu2  ;;  %v3894_v48 = vpop.f32.mrf.mxu3  ;;  %v2516_v18 = vadd.f32 %v8643_v16, %v2256_v43  ;;  %v2194_v2 = vmul.f32 %v8622_v10, %v1934_v23  ;;  %v2257_v0 = vmul.f32 %v8622_v10, %v1997_v59  ;;  %v2321_v15 = vmul.f32 %v8622_v10, %v2061_v56  ;;  %v10779_v59 = vld [vmem:[#allocation183_spill] sm:$0xff] }
 0x4f4   :  { %4174 = vst.msk [vmem:[%s10265_s4 + $0x430] sm:$0xff] %vm4039_vm6, %v3734_v39  ;;  %v3416_v62 = vpop.f32.mrf.mxu0  ;;  %v3576_v53 = vpop.f32.mrf.mxu1  ;;  %v2579_v37 = vadd.f32 %v8643_v16, %v2319_v33  ;;  %v2644_v39 = vmax.f32 %v2388_v11, 0.0  ;;  %v2708_v3 = vmax.f32 %v2452_v36, 0.0  ;;  %v2771_v28 = vmax.f32 %v2515_v19, 0.0 }
 0x4f5   :  { %4238 = vst.msk [vmem:[%s10265_s4 + $0x630] sm:$0xff] %vm4039_vm6, %v3894_v48  ;;  %v2707_v48 = vmax.f32 %v2451_v13, 0.0  ;;  %v2322_v31 = vmul.f32 %v8622_v10, %v2062_v61  ;;  %v2454_v4 = vadd.f32 %v8643_v16, %v2194_v2  ;;  %v2517_v43 = vadd.f32 %v8643_v16, %v2257_v0 }
 0x4f6   :  { %4047 = vst.msk [vmem:[%s10265_s4 + $0x38] sm:$0xff] %vm4039_vm6, %v3416_v62  ;;  %v2772_v62 = vmax.f32 %v2516_v18, 0.0 }
 0x4f7   :  { %4111 = vst.msk [vmem:[%s10265_s4 + $0x238] sm:$0xff] %vm4039_vm6, %v3576_v53  ;;  %v2835_v53 = vmax.f32 %v2579_v37, 0.0  ;;  %v2918_v54 = vpack.c.bf16 %v2708_v3, %v2707_v48  ;;  %v2582_v27 = vadd.f32 %v8643_v16, %v2322_v31  ;;  %v10773_v3 = vld [vmem:[#allocation21_spill] sm:$0xff] }
 0x4f8   :  { %v2950_v8 = vpack.c.bf16 %v2772_v62, %v2771_v28  ;;  %v1872_v28 = vmul.f32 %v8068_v6, %v10773_v3 }
 0x4f9   :  { %v2982_v30 = vpack.c.bf16 %v2836_v40, %v2835_v53  ;;  %v2838_v37 = vmax.f32 %v2582_v27, 0.0  ;;  %v10780_v27 = vld [vmem:[#allocation22_spill] sm:$0xff] }
 0x4fb   :  { %v3736_v22 = vpop.f32.mrf.mxu2  ;;  %v3896_v38 = vpop.f32.mrf.mxu3 }
 0x4fc   :  { %4175 = vst.msk [vmem:[%s10265_s4 + $0x438] sm:$0xff] %vm4039_vm6, %v3736_v22  ;;  %v3419_v58 = vpop.f32.mrf.mxu0  ;;  %v3579_v26 = vpop.f32.mrf.mxu1  ;;  %v1998_v22 = vmul.f32 %v8068_v6, %v10769_v12  ;;  %v2064_v12 = vmul.f32 %v8068_v6, %v10779_v59 }
 0x4fd   :  { %4239 = vst.msk [vmem:[%s10265_s4 + $0x638] sm:$0xff] %vm4039_vm6, %v3896_v38 }
 0x4fe   :  { %4048 = vst.msk [vmem:[%s10265_s4 + $0x40] sm:$0xff] %vm4039_vm6, %v3419_v58  ;;  %v2129_v58 = vmul.f32 %v8622_v10, %v1869_v63  ;;  %v2258_v1 = vmul.f32 %v8622_v10, %v1998_v22  ;;  %v1935_v63 = vmul.f32 %v8068_v6, %v10774_v45  ;;  %v2324_v5 = vmul.f32 %v8622_v10, %v2064_v12 }
 0x4ff   :  { %4112 = vst.msk [vmem:[%s10265_s4 + $0x240] sm:$0xff] %vm4039_vm6, %v3579_v26  ;;  %4312 = vmatmul.msk.bf16.gmra.mxu0 %vm274_vm1, %v2885_v29  ;;  %4344 = vmatmul.msk.bf16.gmra.mxu1 %vm274_vm1, %v2917_v21  ;;  %v2886_v21 = vpack.c.bf16 %v2644_v39, %v2643_v32  ;;  %v2130_v26 = vmul.f32 %v8622_v10, %v1870_v57  ;;  %v10772_v39 = vld [vmem:[#allocation20_spill] sm:$0xff] }
 0x500   :  { %4376 = vmatmul.msk.bf16.gmra.mxu2 %vm274_vm1, %v2949_v25  ;;  %4408 = vmatmul.msk.bf16.gmra.mxu3 %vm274_vm1, %v2981_v7  ;;  %v2193_v7 = vmul.f32 %v8622_v10, %v1933_v35  ;;  %v2389_v44 = vadd.f32 %v8643_v16, %v2129_v58  ;;  %v2518_v33 = vadd.f32 %v8643_v16, %v2258_v1 }
 0x501   :  { %v2390_v49 = vadd.f32 %v8643_v16, %v2130_v26  ;;  %v1871_v48 = vmul.f32 %v8068_v6, %v10772_v39  ;;  %v1936_v57 = vmul.f32 %v8068_v6, %v10775_v17  ;;  %v1999_v35 = vmul.f32 %v8068_v6, %v10776_v42  ;;  %v10786_v17 = vld [vmem:[#allocation184_spill] sm:$0xff]  ;;  %v10787_v42 = vld [vmem:[#allocation185_spill] sm:$0xff] }
 0x502   :  { %v2453_v51 = vadd.f32 %v8643_v16, %v2193_v7  ;;  %v2645_v11 = vmax.f32 %v2389_v44, 0.0  ;;  %v2774_v19 = vmax.f32 %v2518_v33, 0.0 }
 0x503   :  { %v3739_v34 = vpop.f32.mrf.mxu2  ;;  %v3899_v9 = vpop.f32.mrf.mxu3  ;;  %v2646_v13 = vmax.f32 %v2390_v49, 0.0  ;;  %v2131_v22 = vmul.f32 %v8622_v10, %v1871_v48  ;;  %v10784_v48 = vld [vmem:[#allocation130_spill] sm:$0xff] }
 0x504   :  { %4176 = vst.msk [vmem:[%s10265_s4 + $0x440] sm:$0xff] %vm4039_vm6, %v3739_v34  ;;  %v3421_v47 = vpop.f32.mrf.mxu0  ;;  %v3581_v55 = vpop.f32.mrf.mxu1  ;;  %v2709_v36 = vmax.f32 %v2453_v51, 0.0  ;;  %v2584_v51 = vadd.f32 %v8643_v16, %v2324_v5  ;;  %v2001_v3 = vmul.f32 %v8068_v6, %v10784_v48 }
 0x505   :  { %4240 = vst.msk [vmem:[%s10265_s4 + $0x640] sm:$0xff] %vm4039_vm6, %v3899_v9  ;;  %v2581_v9 = vadd.f32 %v8643_v16, %v2321_v15  ;;  %v2887_v14 = vpack.c.bf16 %v2646_v13, %v2645_v11  ;;  %v2391_v26 = vadd.f32 %v8643_v16, %v2131_v22  ;;  %v1873_v11 = vmul.f32 %v8068_v6, %v10780_v27  ;;  %v10781_v13 = vld [vmem:[#allocation23_spill] sm:$0xff]  ;;  %v10790_v27 = vld [vmem:[#allocation78_spill] sm:$0xff] }
 0x506   :  { %4049 = vst.msk [vmem:[%s10265_s4 + $0x48] sm:$0xff] %vm4039_vm6, %v3421_v47  ;;  %v2710_v47 = vmax.f32 %v2454_v4, 0.0 }
 0x507   :  { %4113 = vst.msk [vmem:[%s10265_s4 + $0x248] sm:$0xff] %vm4039_vm6, %v3581_v55  ;;  %v2773_v55 = vmax.f32 %v2517_v43, 0.0  ;;  %v2837_v18 = vmax.f32 %v2581_v9, 0.0  ;;  %v2647_v4 = vmax.f32 %v2391_v26, 0.0  ;;  %v2840_v9 = vmax.f32 %v2584_v51, 0.0 }
 0x508   :  { %v2919_v32 = vpack.c.bf16 %v2710_v47, %v2709_v36  ;;  %v1874_v36 = vmul.f32 %v8068_v6, %v10781_v13  ;;  %v10782_v47 = vld [vmem:[#allocation76_spill] sm:$0xff]  ;;  %v10791_v13 = vld [vmem:[#allocation79_spill] sm:$0xff] }
 0x509   :  { %v2951_v40 = vpack.c.bf16 %v2774_v19, %v2773_v55  ;;  %v1937_v55 = vmul.f32 %v8068_v6, %v10782_v47  ;;  %v10783_v19 = vld [vmem:[#allocation77_spill] sm:$0xff]  ;;  %v10792_v47 = vld [vmem:[#allocation132_spill] sm:$0xff] }
 0x50b   :  { %v3741_v24 = vpop.f32.mrf.mxu2  ;;  %v3901_v29 = vpop.f32.mrf.mxu3 }
 0x50c   :  { %4177 = vst.msk [vmem:[%s10265_s4 + $0x448] sm:$0xff] %vm4039_vm6, %v3741_v24  ;;  %v3424_v38 = vpop.f32.mrf.mxu0  ;;  %v3584_v25 = vpop.f32.mrf.mxu1  ;;  %v2983_v24 = vpack.c.bf16 %v2838_v37, %v2837_v18  ;;  %v1938_v18 = vmul.f32 %v8068_v6, %v10783_v19 }
 0x50d   :  { %4241 = vst.msk [vmem:[%s10265_s4 + $0x648] sm:$0xff] %vm4039_vm6, %v3901_v29  ;;  %v10777_v29 = vld [vmem:[#allocation129_spill] sm:$0xff] }
 0x50e   :  { %4050 = vst.msk [vmem:[%s10265_s4 + $0x50] sm:$0xff] %vm4039_vm6, %v3424_v38  ;;  %v2132_v38 = vmul.f32 %v8622_v10, %v1872_v28  ;;  %v10785_v28 = vld [vmem:[#allocation131_spill] sm:$0xff] }
 0x50f   :  { %4114 = vst.msk [vmem:[%s10265_s4 + $0x250] sm:$0xff] %vm4039_vm6, %v3584_v25  ;;  %4313 = vmatmul.msk.bf16.gmra.mxu0 %vm274_vm1, %v2886_v21  ;;  %4345 = vmatmul.msk.bf16.gmra.mxu1 %vm274_vm1, %v2918_v54  ;;  %v2000_v21 = vmul.f32 %v8068_v6, %v10777_v29  ;;  %v10778_v54 = vld [vmem:[#allocation182_spill] sm:$0xff]  ;;  %v2195_v25 = vmul.f32 %v8622_v10, %v1935_v63 }
 0x510   :  { %4377 = vmatmul.msk.bf16.gmra.mxu2 %vm274_vm1, %v2950_v8  ;;  %4409 = vmatmul.msk.bf16.gmra.mxu3 %vm274_vm1, %v2982_v30  ;;  %v2063_v41 = vmul.f32 %v8068_v6, %v10778_v54  ;;  %v2196_v8 = vmul.f32 %v8622_v10, %v1936_v57  ;;  %v2259_v30 = vmul.f32 %v8622_v10, %v1999_v35 }
 0x511   :  { %v2260_v46 = vmul.f32 %v8622_v10, %v2000_v21  ;;  %v2392_v7 = vadd.f32 %v8643_v16, %v2132_v38  ;;  %v2455_v2 = vadd.f32 %v8643_v16, %v2195_v25  ;;  %v2065_v57 = vmul.f32 %v8068_v6, %v10786_v17 }
 0x512   :  { %v2323_v56 = vmul.f32 %v8622_v10, %v2063_v41  ;;  %v2456_v0 = vadd.f32 %v8643_v16, %v2196_v8  ;;  %v2519_v31 = vadd.f32 %v8643_v16, %v2259_v30  ;;  %v2066_v35 = vmul.f32 %v8068_v6, %v10787_v42 }
 0x513   :  { %v3744_v50 = vpop.f32.mrf.mxu2  ;;  %v3904_v52 = vpop.f32.mrf.mxu3  ;;  %v2520_v44 = vadd.f32 %v8643_v16, %v2260_v46  ;;  %v2198_v29 = vmul.f32 %v8622_v10, %v1938_v18  ;;  %v2261_v21 = vmul.f32 %v8622_v10, %v2001_v3  ;;  %v2325_v41 = vmul.f32 %v8622_v10, %v2065_v57  ;;  %v10795_v3 = vld [vmem:[#allocation187_spill] sm:$0xff] }
 0x514   :  { %4178 = vst.msk [vmem:[%s10265_s4 + $0x450] sm:$0xff] %vm4039_vm6, %v3744_v50  ;;  %v3426_v60 = vpop.f32.mrf.mxu0  ;;  %v3586_v34 = vpop.f32.mrf.mxu1  ;;  %v2583_v49 = vadd.f32 %v8643_v16, %v2323_v56  ;;  %v2648_v50 = vmax.f32 %v2392_v7, 0.0  ;;  %v2712_v43 = vmax.f32 %v2456_v0, 0.0  ;;  %v2775_v33 = vmax.f32 %v2519_v31, 0.0 }
 0x515   :  { %4242 = vst.msk [vmem:[%s10265_s4 + $0x650] sm:$0xff] %vm4039_vm6, %v3904_v52  ;;  %v2711_v52 = vmax.f32 %v2455_v2, 0.0  ;;  %v2326_v59 = vmul.f32 %v8622_v10, %v2066_v35  ;;  %v2458_v25 = vadd.f32 %v8643_v16, %v2198_v29  ;;  %v2521_v46 = vadd.f32 %v8643_v16, %v2261_v21 }
 0x516   :  { %4051 = vst.msk [vmem:[%s10265_s4 + $0x58] sm:$0xff] %vm4039_vm6, %v3426_v60  ;;  %v2776_v60 = vmax.f32 %v2520_v44, 0.0 }
 0x517   :  { %4115 = vst.msk [vmem:[%s10265_s4 + $0x258] sm:$0xff] %vm4039_vm6, %v3586_v34  ;;  %v2839_v34 = vmax.f32 %v2583_v49, 0.0  ;;  %v2920_v39 = vpack.c.bf16 %v2712_v43, %v2711_v52  ;;  %v2586_v26 = vadd.f32 %v8643_v16, %v2326_v59  ;;  %v10789_v43 = vld [vmem:[#allocation25_spill] sm:$0xff] }
 0x518   :  { %v2952_v45 = vpack.c.bf16 %v2776_v60, %v2775_v33  ;;  %v1876_v33 = vmul.f32 %v8068_v6, %v10789_v43 }
 0x519   :  { %v2984_v63 = vpack.c.bf16 %v2840_v9, %v2839_v34  ;;  %v2842_v49 = vmax.f32 %v2586_v26, 0.0  ;;  %v10796_v26 = vld [vmem:[#allocation26_spill] sm:$0xff] }
 0x51b   :  { %v3746_v62 = vpop.f32.mrf.mxu2  ;;  %v3906_v53 = vpop.f32.mrf.mxu3 }
 0x51c   :  { %4179 = vst.msk [vmem:[%s10265_s4 + $0x458] sm:$0xff] %vm4039_vm6, %v3746_v62  ;;  %v3429_v20 = vpop.f32.mrf.mxu0  ;;  %v3589_v23 = vpop.f32.mrf.mxu1  ;;  %v2002_v62 = vmul.f32 %v8068_v6, %v10785_v28  ;;  %v2068_v28 = vmul.f32 %v8068_v6, %v10795_v3 }
 0x51d   :  { %4243 = vst.msk [vmem:[%s10265_s4 + $0x658] sm:$0xff] %vm4039_vm6, %v3906_v53 }
 0x51e   :  { %4052 = vst.msk [vmem:[%s10265_s4 + $0x60] sm:$0xff] %vm4039_vm6, %v3429_v20  ;;  %v2133_v20 = vmul.f32 %v8622_v10, %v1873_v11  ;;  %v2262_v54 = vmul.f32 %v8622_v10, %v2002_v62  ;;  %v1939_v11 = vmul.f32 %v8068_v6, %v10790_v27  ;;  %v2328_v42 = vmul.f32 %v8622_v10, %v2068_v28 }
 0x51f   :  { %4116 = vst.msk [vmem:[%s10265_s4 + $0x260] sm:$0xff] %vm4039_vm6, %v3589_v23  ;;  %4314 = vmatmul.msk.bf16.gmra.mxu0 %vm274_vm1, %v2887_v14  ;;  %4346 = vmatmul.msk.bf16.gmra.mxu1 %vm274_vm1, %v2919_v32  ;;  %v2888_v32 = vpack.c.bf16 %v2648_v50, %v2647_v4  ;;  %v2134_v23 = vmul.f32 %v8622_v10, %v1874_v36  ;;  %v10788_v50 = vld [vmem:[#allocation24_spill] sm:$0xff] }
 0x520   :  { %4378 = vmatmul.msk.bf16.gmra.mxu2 %vm274_vm1, %v2951_v40  ;;  %4410 = vmatmul.msk.bf16.gmra.mxu3 %vm274_vm1, %v2983_v24  ;;  %v2197_v24 = vmul.f32 %v8622_v10, %v1937_v55  ;;  %v2393_v12 = vadd.f32 %v8643_v16, %v2133_v20  ;;  %v2522_v56 = vadd.f32 %v8643_v16, %v2262_v54 }
 0x521   :  { %v2394_v22 = vadd.f32 %v8643_v16, %v2134_v23  ;;  %v1875_v52 = vmul.f32 %v8068_v6, %v10788_v50  ;;  %v1940_v36 = vmul.f32 %v8068_v6, %v10791_v13  ;;  %v2003_v55 = vmul.f32 %v8068_v6, %v10792_v47  ;;  %v10802_v13 = vld [vmem:[#allocation188_spill] sm:$0xff]  ;;  %v10803_v47 = vld [vmem:[#allocation189_spill] sm:$0xff] }
 0x522   :  { %v2457_v38 = vadd.f32 %v8643_v16, %v2197_v24  ;;  %v2649_v7 = vmax.f32 %v2393_v12, 0.0  ;;  %v2778_v31 = vmax.f32 %v2522_v56, 0.0 }
 0x523   :  { %v3749_v61 = vpop.f32.mrf.mxu2  ;;  %v3909_v58 = vpop.f32.mrf.mxu3  ;;  %v2650_v2 = vmax.f32 %v2394_v22, 0.0  ;;  %v2135_v62 = vmul.f32 %v8622_v10, %v1875_v52  ;;  %v10800_v52 = vld [vmem:[#allocation134_spill] sm:$0xff] }
 0x524   :  { %4180 = vst.msk [vmem:[%s10265_s4 + $0x460] sm:$0xff] %vm4039_vm6, %v3749_v61  ;;  %v3431_v1 = vpop.f32.mrf.mxu0  ;;  %v3591_v15 = vpop.f32.mrf.mxu1  ;;  %v2713_v0 = vmax.f32 %v2457_v38, 0.0  ;;  %v2588_v38 = vadd.f32 %v8643_v16, %v2328_v42  ;;  %v2005_v43 = vmul.f32 %v8068_v6, %v10800_v52 }
 0x525   :  { %4244 = vst.msk [vmem:[%s10265_s4 + $0x660] sm:$0xff] %vm4039_vm6, %v3909_v58  ;;  %v2585_v58 = vadd.f32 %v8643_v16, %v2325_v41  ;;  %v2889_v51 = vpack.c.bf16 %v2650_v2, %v2649_v7  ;;  %v2395_v23 = vadd.f32 %v8643_v16, %v2135_v62  ;;  %v1877_v7 = vmul.f32 %v8068_v6, %v10796_v26  ;;  %v10797_v2 = vld [vmem:[#allocation27_spill] sm:$0xff]  ;;  %v10806_v26 = vld [vmem:[#allocation82_spill] sm:$0xff] }
 0x526   :  { %4053 = vst.msk [vmem:[%s10265_s4 + $0x68] sm:$0xff] %vm4039_vm6, %v3431_v1  ;;  %v2714_v1 = vmax.f32 %v2458_v25, 0.0 }
 0x527   :  { %4117 = vst.msk [vmem:[%s10265_s4 + $0x268] sm:$0xff] %vm4039_vm6, %v3591_v15  ;;  %v2777_v15 = vmax.f32 %v2521_v46, 0.0  ;;  %v2841_v44 = vmax.f32 %v2585_v58, 0.0  ;;  %v2651_v25 = vmax.f32 %v2395_v23, 0.0  ;;  %v2844_v58 = vmax.f32 %v2588_v38, 0.0 }
 0x528   :  { %v2921_v4 = vpack.c.bf16 %v2714_v1, %v2713_v0  ;;  %v1878_v0 = vmul.f32 %v8068_v6, %v10797_v2  ;;  %v10798_v1 = vld [vmem:[#allocation80_spill] sm:$0xff]  ;;  %v10807_v2 = vld [vmem:[#allocation83_spill] sm:$0xff] }
 0x529   :  { %v2953_v9 = vpack.c.bf16 %v2778_v31, %v2777_v15  ;;  %v1941_v15 = vmul.f32 %v8068_v6, %v10798_v1  ;;  %v10799_v31 = vld [vmem:[#allocation81_spill] sm:$0xff]  ;;  %v10808_v1 = vld [vmem:[#allocation136_spill] sm:$0xff] }
 0x52b   :  { %v3751_v37 = vpop.f32.mrf.mxu2  ;;  %v3911_v14 = vpop.f32.mrf.mxu3 }
 0x52c   :  { %4181 = vst.msk [vmem:[%s10265_s4 + $0x468] sm:$0xff] %vm4039_vm6, %v3751_v37  ;;  %v3434_v53 = vpop.f32.mrf.mxu0  ;;  %v3594_v40 = vpop.f32.mrf.mxu1  ;;  %v2985_v37 = vpack.c.bf16 %v2842_v49, %v2841_v44  ;;  %v1942_v44 = vmul.f32 %v8068_v6, %v10799_v31 }
 0x52d   :  { %4245 = vst.msk [vmem:[%s10265_s4 + $0x668] sm:$0xff] %vm4039_vm6, %v3911_v14  ;;  %v10793_v14 = vld [vmem:[#allocation133_spill] sm:$0xff] }
 0x52e   :  { %4054 = vst.msk [vmem:[%s10265_s4 + $0x70] sm:$0xff] %vm4039_vm6, %v3434_v53  ;;  %v2136_v53 = vmul.f32 %v8622_v10, %v1876_v33  ;;  %v10801_v33 = vld [vmem:[#allocation135_spill] sm:$0xff] }
 0x52f   :  { %4118 = vst.msk [vmem:[%s10265_s4 + $0x270] sm:$0xff] %vm4039_vm6, %v3594_v40  ;;  %4315 = vmatmul.msk.bf16.gmra.mxu0 %vm274_vm1, %v2888_v32  ;;  %4347 = vmatmul.msk.bf16.gmra.mxu1 %vm274_vm1, %v2920_v39  ;;  %v2004_v32 = vmul.f32 %v8068_v6, %v10793_v14  ;;  %v10794_v39 = vld [vmem:[#allocation186_spill] sm:$0xff]  ;;  %v2199_v40 = vmul.f32 %v8622_v10, %v1939_v11 }
 0x530   :  { %4379 = vmatmul.msk.bf16.gmra.mxu2 %vm274_vm1, %v2952_v45  ;;  %4411 = vmatmul.msk.bf16.gmra.mxu3 %vm274_vm1, %v2984_v63  ;;  %v2067_v48 = vmul.f32 %v8068_v6, %v10794_v39  ;;  %v2200_v45 = vmul.f32 %v8622_v10, %v1940_v36  ;;  %v2263_v63 = vmul.f32 %v8622_v10, %v2003_v55 }
 0x531   :  { %v2264_v17 = vmul.f32 %v8622_v10, %v2004_v32  ;;  %v2396_v24 = vadd.f32 %v8643_v16, %v2136_v53  ;;  %v2459_v29 = vadd.f32 %v8643_v16, %v2199_v40  ;;  %v2069_v36 = vmul.f32 %v8068_v6, %v10802_v13 }
 0x532   :  { %v2327_v57 = vmul.f32 %v8622_v10, %v2067_v48  ;;  %v2460_v21 = vadd.f32 %v8643_v16, %v2200_v45  ;;  %v2523_v59 = vadd.f32 %v8643_v16, %v2263_v63  ;;  %v2070_v55 = vmul.f32 %v8068_v6, %v10803_v47 }
 0x533   :  { %v3754_v8 = vpop.f32.mrf.mxu2  ;;  %v3914_v30 = vpop.f32.mrf.mxu3  ;;  %v2524_v12 = vadd.f32 %v8643_v16, %v2264_v17  ;;  %v2202_v14 = vmul.f32 %v8622_v10, %v1942_v44  ;;  %v2265_v32 = vmul.f32 %v8622_v10, %v2005_v43  ;;  %v2329_v48 = vmul.f32 %v8622_v10, %v2069_v36  ;;  %v10811_v43 = vld [vmem:[#allocation191_spill] sm:$0xff] }
 0x534   :  { %4182 = vst.msk [vmem:[%s10265_s4 + $0x470] sm:$0xff] %vm4039_vm6, %v3754_v8  ;;  %v3436_v5 = vpop.f32.mrf.mxu0  ;;  %v3596_v61 = vpop.f32.mrf.mxu1  ;;  %v2587_v22 = vadd.f32 %v8643_v16, %v2327_v57  ;;  %v2652_v8 = vmax.f32 %v2396_v24, 0.0  ;;  %v2716_v46 = vmax.f32 %v2460_v21, 0.0  ;;  %v2779_v56 = vmax.f32 %v2523_v59, 0.0 }
 0x535   :  { %4246 = vst.msk [vmem:[%s10265_s4 + $0x670] sm:$0xff] %vm4039_vm6, %v3914_v30  ;;  %v2715_v30 = vmax.f32 %v2459_v29, 0.0  ;;  %v2330_v3 = vmul.f32 %v8622_v10, %v2070_v55  ;;  %v2462_v40 = vadd.f32 %v8643_v16, %v2202_v14  ;;  %v2525_v17 = vadd.f32 %v8643_v16, %v2265_v32 }
 0x536   :  { %4055 = vst.msk [vmem:[%s10265_s4 + $0x78] sm:$0xff] %vm4039_vm6, %v3436_v5  ;;  %v2780_v5 = vmax.f32 %v2524_v12, 0.0 }
 0x537   :  { %4119 = vst.msk [vmem:[%s10265_s4 + $0x278] sm:$0xff] %vm4039_vm6, %v3596_v61  ;;  %v2843_v61 = vmax.f32 %v2587_v22, 0.0  ;;  %v2922_v50 = vpack.c.bf16 %v2716_v46, %v2715_v30  ;;  %v2590_v23 = vadd.f32 %v8643_v16, %v2330_v3  ;;  %v10805_v46 = vld [vmem:[#allocation29_spill] sm:$0xff] }
 0x538   :  { %v2954_v27 = vpack.c.bf16 %v2780_v5, %v2779_v56  ;;  %v1880_v56 = vmul.f32 %v8068_v6, %v10805_v46 }
 0x539   :  { %v2986_v11 = vpack.c.bf16 %v2844_v58, %v2843_v61  ;;  %v2846_v22 = vmax.f32 %v2590_v23, 0.0  ;;  %v10812_v23 = vld [vmem:[#allocation30_spill] sm:$0xff] }
 0x53b   :  { %v3756_v60 = vpop.f32.mrf.mxu2  ;;  %v3916_v34 = vpop.f32.mrf.mxu3 }
 0x53c   :  { %4183 = vst.msk [vmem:[%s10265_s4 + $0x478] sm:$0xff] %vm4039_vm6, %v3756_v60  ;;  %v3439_v19 = vpop.f32.mrf.mxu0  ;;  %v3599_v18 = vpop.f32.mrf.mxu1  ;;  %v2006_v60 = vmul.f32 %v8068_v6, %v10801_v33  ;;  %v2072_v33 = vmul.f32 %v8068_v6, %v10811_v43 }
 0x53d   :  { %4247 = vst.msk [vmem:[%s10265_s4 + $0x678] sm:$0xff] %vm4039_vm6, %v3916_v34 }
 0x53e   :  { %4056 = vst.msk [vmem:[%s10265_s4 + $0x80] sm:$0xff] %vm4039_vm6, %v3439_v19  ;;  %v2137_v19 = vmul.f32 %v8622_v10, %v1877_v7  ;;  %v2266_v39 = vmul.f32 %v8622_v10, %v2006_v60  ;;  %v1943_v7 = vmul.f32 %v8068_v6, %v10806_v26  ;;  %v2332_v47 = vmul.f32 %v8622_v10, %v2072_v33 }
 0x53f   :  { %4120 = vst.msk [vmem:[%s10265_s4 + $0x280] sm:$0xff] %vm4039_vm6, %v3599_v18  ;;  %4316 = vmatmul.msk.bf16.gmra.mxu0 %vm274_vm1, %v2889_v51  ;;  %4348 = vmatmul.msk.bf16.gmra.mxu1 %vm274_vm1, %v2921_v4  ;;  %v2890_v4 = vpack.c.bf16 %v2652_v8, %v2651_v25  ;;  %v2138_v18 = vmul.f32 %v8622_v10, %v1878_v0  ;;  %v10804_v8 = vld [vmem:[#allocation28_spill] sm:$0xff] }
 0x540   :  { %4380 = vmatmul.msk.bf16.gmra.mxu2 %vm274_vm1, %v2953_v9  ;;  %4412 = vmatmul.msk.bf16.gmra.mxu3 %vm274_vm1, %v2985_v37  ;;  %v2201_v37 = vmul.f32 %v8622_v10, %v1941_v15  ;;  %v2397_v28 = vadd.f32 %v8643_v16, %v2137_v19  ;;  %v2526_v57 = vadd.f32 %v8643_v16, %v2266_v39 }
 0x541   :  { %v2398_v62 = vadd.f32 %v8643_v16, %v2138_v18  ;;  %v1879_v30 = vmul.f32 %v8068_v6, %v10804_v8  ;;  %v1944_v0 = vmul.f32 %v8068_v6, %v10807_v2  ;;  %v2007_v15 = vmul.f32 %v8068_v6, %v10808_v1  ;;  %v10818_v2 = vld [vmem:[#allocation192_spill] sm:$0xff]  ;;  %v10819_v1 = vld [vmem:[#allocation193_spill] sm:$0xff] }
 0x542   :  { %v2461_v53 = vadd.f32 %v8643_v16, %v2201_v37  ;;  %v2653_v24 = vmax.f32 %v2397_v28, 0.0  ;;  %v2782_v59 = vmax.f32 %v2526_v57, 0.0 }
 0x543   :  { %v3759_v35 = vpop.f32.mrf.mxu2  ;;  %v3919_v20 = vpop.f32.mrf.mxu3  ;;  %v2654_v29 = vmax.f32 %v2398_v62, 0.0  ;;  %v2139_v60 = vmul.f32 %v8622_v10, %v1879_v30  ;;  %v10816_v30 = vld [vmem:[#allocation138_spill] sm:$0xff] }
 0x544   :  { %4184 = vst.msk [vmem:[%s10265_s4 + $0x480] sm:$0xff] %vm4039_vm6, %v3759_v35  ;;  %v3441_v54 = vpop.f32.mrf.mxu0  ;;  %v3601_v41 = vpop.f32.mrf.mxu1  ;;  %v2717_v21 = vmax.f32 %v2461_v53, 0.0  ;;  %v2592_v53 = vadd.f32 %v8643_v16, %v2332_v47  ;;  %v2009_v46 = vmul.f32 %v8068_v6, %v10816_v30 }
 0x545   :  { %4248 = vst.msk [vmem:[%s10265_s4 + $0x680] sm:$0xff] %vm4039_vm6, %v3919_v20  ;;  %v2589_v20 = vadd.f32 %v8643_v16, %v2329_v48  ;;  %v2891_v38 = vpack.c.bf16 %v2654_v29, %v2653_v24  ;;  %v2399_v18 = vadd.f32 %v8643_v16, %v2139_v60  ;;  %v1881_v24 = vmul.f32 %v8068_v6, %v10812_v23  ;;  %v10813_v29 = vld [vmem:[#allocation31_spill] sm:$0xff]  ;;  %v10822_v23 = vld [vmem:[#allocation86_spill] sm:$0xff] }
 0x546   :  { %4057 = vst.msk [vmem:[%s10265_s4 + $0x88] sm:$0xff] %vm4039_vm6, %v3441_v54  ;;  %v2718_v54 = vmax.f32 %v2462_v40, 0.0 }
 0x547   :  { %4121 = vst.msk [vmem:[%s10265_s4 + $0x288] sm:$0xff] %vm4039_vm6, %v3601_v41  ;;  %v2781_v41 = vmax.f32 %v2525_v17, 0.0  ;;  %v2845_v12 = vmax.f32 %v2589_v20, 0.0  ;;  %v2655_v40 = vmax.f32 %v2399_v18, 0.0  ;;  %v2848_v20 = vmax.f32 %v2592_v53, 0.0 }
 0x548   :  { %v2923_v25 = vpack.c.bf16 %v2718_v54, %v2717_v21  ;;  %v1882_v21 = vmul.f32 %v8068_v6, %v10813_v29  ;;  %v10814_v54 = vld [vmem:[#allocation84_spill] sm:$0xff]  ;;  %v10823_v29 = vld [vmem:[#allocation87_spill] sm:$0xff] }
 0x549   :  { %v2955_v58 = vpack.c.bf16 %v2782_v59, %v2781_v41  ;;  %v1945_v41 = vmul.f32 %v8068_v6, %v10814_v54  ;;  %v10815_v59 = vld [vmem:[#allocation85_spill] sm:$0xff]  ;;  %v10824_v54 = vld [vmem:[#allocation140_spill] sm:$0xff] }
 0x54b   :  { %v3761_v49 = vpop.f32.mrf.mxu2  ;;  %v3921_v51 = vpop.f32.mrf.mxu3 }
 0x54c   :  { %4185 = vst.msk [vmem:[%s10265_s4 + $0x488] sm:$0xff] %vm4039_vm6, %v3761_v49  ;;  %v3444_v34 = vpop.f32.mrf.mxu0  ;;  %v3604_v9 = vpop.f32.mrf.mxu1  ;;  %v2987_v49 = vpack.c.bf16 %v2846_v22, %v2845_v12  ;;  %v1946_v12 = vmul.f32 %v8068_v6, %v10815_v59 }
 0x54d   :  { %4249 = vst.msk [vmem:[%s10265_s4 + $0x688] sm:$0xff] %vm4039_vm6, %v3921_v51  ;;  %v10809_v51 = vld [vmem:[#allocation137_spill] sm:$0xff] }
 0x54e   :  { %4058 = vst.msk [vmem:[%s10265_s4 + $0x90] sm:$0xff] %vm4039_vm6, %v3444_v34  ;;  %v2140_v34 = vmul.f32 %v8622_v10, %v1880_v56  ;;  %v10817_v56 = vld [vmem:[#allocation139_spill] sm:$0xff] }
 0x54f   :  { %4122 = vst.msk [vmem:[%s10265_s4 + $0x290] sm:$0xff] %vm4039_vm6, %v3604_v9  ;;  %4317 = vmatmul.msk.bf16.gmra.mxu0 %vm274_vm1, %v2890_v4  ;;  %4349 = vmatmul.msk.bf16.gmra.mxu1 %vm274_vm1, %v2922_v50  ;;  %v2008_v4 = vmul.f32 %v8068_v6, %v10809_v51  ;;  %v10810_v50 = vld [vmem:[#allocation190_spill] sm:$0xff]  ;;  %v2203_v9 = vmul.f32 %v8622_v10, %v1943_v7 }
 0x550   :  { %4381 = vmatmul.msk.bf16.gmra.mxu2 %vm274_vm1, %v2954_v27  ;;  %4413 = vmatmul.msk.bf16.gmra.mxu3 %vm274_vm1, %v2986_v11  ;;  %v2071_v52 = vmul.f32 %v8068_v6, %v10810_v50  ;;  %v2204_v27 = vmul.f32 %v8622_v10, %v1944_v0  ;;  %v2267_v11 = vmul.f32 %v8622_v10, %v2007_v15 }
 0x551   :  { %v2268_v13 = vmul.f32 %v8622_v10, %v2008_v4  ;;  %v2400_v37 = vadd.f32 %v8643_v16, %v2140_v34  ;;  %v2463_v14 = vadd.f32 %v8643_v16, %v2203_v9  ;;  %v2073_v0 = vmul.f32 %v8068_v6, %v10818_v2  ;;  %v9257_v2 = vld [vmem:[%s10263_s1] ss:$0 sm:$0xff] }
 0x552   :  { %v2331_v36 = vmul.f32 %v8622_v10, %v2071_v52  ;;  %v2464_v32 = vadd.f32 %v8643_v16, %v2204_v27  ;;  %v2527_v3 = vadd.f32 %v8643_v16, %v2267_v11  ;;  %v2074_v15 = vmul.f32 %v8068_v6, %v10819_v1 }
 0x553   :  { %v3764_v45 = vpop.f32.mrf.mxu2  ;;  %v3924_v63 = vpop.f32.mrf.mxu3  ;;  %v2528_v28 = vadd.f32 %v8643_v16, %v2268_v13  ;;  %v2206_v51 = vmul.f32 %v8622_v10, %v1946_v12  ;;  %v2269_v4 = vmul.f32 %v8622_v10, %v2009_v46  ;;  %v2333_v52 = vmul.f32 %v8622_v10, %v2073_v0  ;;  %v10827_v46 = vld [vmem:[#allocation195_spill] sm:$0xff] }
 0x554   :  { %4186 = vst.msk [vmem:[%s10265_s4 + $0x490] sm:$0xff] %vm4039_vm6, %v3764_v45  ;;  %v3446_v42 = vpop.f32.mrf.mxu0  ;;  %v3606_v35 = vpop.f32.mrf.mxu1  ;;  %v2591_v62 = vadd.f32 %v8643_v16, %v2331_v36  ;;  %v2656_v45 = vmax.f32 %v2400_v37, 0.0  ;;  %v2720_v17 = vmax.f32 %v2464_v32, 0.0  ;;  %v2783_v57 = vmax.f32 %v2527_v3, 0.0 }
 0x555   :  { %4250 = vst.msk [vmem:[%s10265_s4 + $0x690] sm:$0xff] %vm4039_vm6, %v3924_v63  ;;  %v2719_v63 = vmax.f32 %v2463_v14, 0.0  ;;  %v2334_v43 = vmul.f32 %v8622_v10, %v2074_v15  ;;  %v2466_v9 = vadd.f32 %v8643_v16, %v2206_v51  ;;  %v2529_v13 = vadd.f32 %v8643_v16, %v2269_v4 }
 0x556   :  { %4059 = vst.msk [vmem:[%s10265_s4 + $0x98] sm:$0xff] %vm4039_vm6, %v3446_v42  ;;  %v2784_v42 = vmax.f32 %v2528_v28, 0.0 }
 0x557   :  { %4123 = vst.msk [vmem:[%s10265_s4 + $0x298] sm:$0xff] %vm4039_vm6, %v3606_v35  ;;  %v2847_v35 = vmax.f32 %v2591_v62, 0.0  ;;  %v2924_v8 = vpack.c.bf16 %v2720_v17, %v2719_v63  ;;  %v2594_v18 = vadd.f32 %v8643_v16, %v2334_v43  ;;  %v10821_v17 = vld [vmem:[#allocation33_spill] sm:$0xff]  ;;  %v9273_v43 = vld [vmem:[%s10264_s2] ss:$0 sm:$0xff] }
 0x558   :  { %v2956_v26 = vpack.c.bf16 %v2784_v42, %v2783_v57  ;;  %v1884_v57 = vmul.f32 %v8068_v6, %v10821_v17 }
 0x559   :  { %v2988_v7 = vpack.c.bf16 %v2848_v20, %v2847_v35  ;;  %v2850_v62 = vmax.f32 %v2594_v18, 0.0  ;;  %v10828_v18 = vld [vmem:[#allocation34_spill] sm:$0xff] }
 0x55b   :  { %v3766_v5 = vpop.f32.mrf.mxu2  ;;  %v3926_v61 = vpop.f32.mrf.mxu3 }
 0x55c   :  { %4187 = vst.msk [vmem:[%s10265_s4 + $0x498] sm:$0xff] %vm4039_vm6, %v3766_v5  ;;  %v3449_v31 = vpop.f32.mrf.mxu0  ;;  %v3609_v44 = vpop.f32.mrf.mxu1  ;;  %v2010_v5 = vmul.f32 %v8068_v6, %v10817_v56  ;;  %v2076_v56 = vmul.f32 %v8068_v6, %v10827_v46 }
 0x55d   :  { %4251 = vst.msk [vmem:[%s10265_s4 + $0x698] sm:$0xff] %vm4039_vm6, %v3926_v61 }
 0x55e   :  { %4060 = vst.msk [vmem:[%s10265_s4 + $0xa0] sm:$0xff] %vm4039_vm6, %v3449_v31  ;;  %v2141_v31 = vmul.f32 %v8622_v10, %v1881_v24  ;;  %v2270_v50 = vmul.f32 %v8622_v10, %v2010_v5  ;;  %v1947_v24 = vmul.f32 %v8068_v6, %v10822_v23  ;;  %v2336_v15 = vmul.f32 %v9257_v2, %v2076_v56 }
 0x55f   :  { %4124 = vst.msk [vmem:[%s10265_s4 + $0x2a0] sm:$0xff] %vm4039_vm6, %v3609_v44  ;;  %4318 = vmatmul.msk.bf16.gmra.mxu0 %vm274_vm1, %v2891_v38  ;;  %4350 = vmatmul.msk.bf16.gmra.mxu1 %vm274_vm1, %v2923_v25  ;;  %v2892_v25 = vpack.c.bf16 %v2656_v45, %v2655_v40  ;;  %v2142_v44 = vmul.f32 %v8622_v10, %v1882_v21  ;;  %v10820_v45 = vld [vmem:[#allocation32_spill] sm:$0xff] }
 0x560   :  { %4382 = vmatmul.msk.bf16.gmra.mxu2 %vm274_vm1, %v2955_v58  ;;  %4414 = vmatmul.msk.bf16.gmra.mxu3 %vm274_vm1, %v2987_v49  ;;  %v2205_v49 = vmul.f32 %v8622_v10, %v1945_v41  ;;  %v2401_v33 = vadd.f32 %v8643_v16, %v2141_v31  ;;  %v2530_v36 = vadd.f32 %v8643_v16, %v2270_v50 }
 0x561   :  { %v2402_v60 = vadd.f32 %v8643_v16, %v2142_v44  ;;  %v1883_v63 = vmul.f32 %v8068_v6, %v10820_v45  ;;  %v1948_v21 = vmul.f32 %v8068_v6, %v10823_v29  ;;  %v2011_v41 = vmul.f32 %v8068_v6, %v10824_v54  ;;  %v10834_v29 = vld [vmem:[#allocation196_spill] sm:$0xff]  ;;  %v10835_v54 = vld [vmem:[#allocation197_spill] sm:$0xff] }
 0x562   :  { %v2465_v34 = vadd.f32 %v8643_v16, %v2205_v49  ;;  %v2657_v37 = vmax.f32 %v2401_v33, 0.0  ;;  %v2786_v3 = vmax.f32 %v2530_v36, 0.0 }
 0x563   :  { %v3769_v55 = vpop.f32.mrf.mxu2  ;;  %v3929_v19 = vpop.f32.mrf.mxu3  ;;  %v2658_v14 = vmax.f32 %v2402_v60, 0.0  ;;  %v2143_v5 = vmul.f32 %v8622_v10, %v1883_v63  ;;  %v10832_v63 = vld [vmem:[#allocation142_spill] sm:$0xff] }
 0x564   :  { %4188 = vst.msk [vmem:[%s10265_s4 + $0x4a0] sm:$0xff] %vm4039_vm6, %v3769_v55  ;;  %v3451_v39 = vpop.f32.mrf.mxu0  ;;  %v3611_v48 = vpop.f32.mrf.mxu1  ;;  %v2721_v32 = vmax.f32 %v2465_v34, 0.0  ;;  %v2013_v17 = vmul.f32 %v8068_v6, %v10832_v63 }
 0x565   :  { %4252 = vst.msk [vmem:[%s10265_s4 + $0x6a0] sm:$0xff] %vm4039_vm6, %v3929_v19  ;;  %v2593_v19 = vadd.f32 %v8643_v16, %v2333_v52  ;;  %v2893_v53 = vpack.c.bf16 %v2658_v14, %v2657_v37  ;;  %v2403_v49 = vadd.f32 %v8643_v16, %v2143_v5  ;;  %v1885_v37 = vmul.f32 %v8068_v6, %v10828_v18  ;;  %v10829_v14 = vld [vmem:[#allocation35_spill] sm:$0xff]  ;;  %v10838_v18 = vld [vmem:[#allocation90_spill] sm:$0xff] }
 0x566   :  { %4061 = vst.msk [vmem:[%s10265_s4 + $0xa8] sm:$0xff] %vm4039_vm6, %v3451_v39  ;;  %v2722_v39 = vmax.f32 %v2466_v9, 0.0 }
 0x567   :  { %4125 = vst.msk [vmem:[%s10265_s4 + $0x2a8] sm:$0xff] %vm4039_vm6, %v3611_v48  ;;  %v2785_v48 = vmax.f32 %v2529_v13, 0.0  ;;  %v2849_v28 = vmax.f32 %v2593_v19, 0.0  ;;  %v2659_v9 = vmax.f32 %v2403_v49, 0.0 }
 0x568   :  { %v2925_v40 = vpack.c.bf16 %v2722_v39, %v2721_v32  ;;  %v1886_v32 = vmul.f32 %v8068_v6, %v10829_v14  ;;  %v10830_v39 = vld [vmem:[#allocation88_spill] sm:$0xff]  ;;  %v10839_v14 = vld [vmem:[#allocation91_spill] sm:$0xff] }
 0x569   :  { %v2957_v20 = vpack.c.bf16 %v2786_v3, %v2785_v48  ;;  %v1949_v48 = vmul.f32 %v8068_v6, %v10830_v39  ;;  %v10831_v3 = vld [vmem:[#allocation89_spill] sm:$0xff]  ;;  %v10840_v39 = vld [vmem:[#allocation144_spill] sm:$0xff] }
 0x56b   :  { %v3771_v22 = vpop.f32.mrf.mxu2  ;;  %v3931_v38 = vpop.f32.mrf.mxu3 }
 0x56c   :  { %4189 = vst.msk [vmem:[%s10265_s4 + $0x4a8] sm:$0xff] %vm4039_vm6, %v3771_v22  ;;  %v3454_v61 = vpop.f32.mrf.mxu0  ;;  %v3614_v58 = vpop.f32.mrf.mxu1  ;;  %v2989_v22 = vpack.c.bf16 %v2850_v62, %v2849_v28  ;;  %v1950_v28 = vmul.f32 %v8068_v6, %v10831_v3 }
 0x56d   :  { %4253 = vst.msk [vmem:[%s10265_s4 + $0x6a8] sm:$0xff] %vm4039_vm6, %v3931_v38  ;;  %v10825_v38 = vld [vmem:[#allocation141_spill] sm:$0xff] }
 0x56e   :  { %4062 = vst.msk [vmem:[%s10265_s4 + $0xb0] sm:$0xff] %vm4039_vm6, %v3454_v61  ;;  %v2144_v61 = vmul.f32 %v8622_v10, %v1884_v57  ;;  %v10833_v57 = vld [vmem:[#allocation143_spill] sm:$0xff] }
 0x56f   :  { %4126 = vst.msk [vmem:[%s10265_s4 + $0x2b0] sm:$0xff] %vm4039_vm6, %v3614_v58  ;;  %4319 = vmatmul.msk.bf16.gmra.mxu0 %vm274_vm1, %v2892_v25  ;;  %4351 = vmatmul.msk.bf16.gmra.mxu1 %vm274_vm1, %v2924_v8  ;;  %v2012_v25 = vmul.f32 %v8068_v6, %v10825_v38  ;;  %v10826_v8 = vld [vmem:[#allocation194_spill] sm:$0xff]  ;;  %v2207_v58 = vmul.f32 %v8622_v10, %v1947_v24 }
 0x570   :  { %4383 = vmatmul.msk.bf16.gmra.mxu2 %vm274_vm1, %v2956_v26  ;;  %4415 = vmatmul.msk.bf16.gmra.mxu3 %vm274_vm1, %v2988_v7  ;;  %v2075_v30 = vmul.f32 %v8068_v6, %v10826_v8  ;;  %v2208_v26 = vmul.f32 %v8622_v10, %v1948_v21  ;;  %v2271_v7 = vmul.f32 %v8622_v10, %v2011_v41 }
 0x571   :  { %v2272_v0 = vmul.f32 %v9257_v2, %v2012_v25  ;;  %v2404_v10 = vadd.f32 %v8643_v16, %v2144_v61  ;;  %v2467_v51 = vadd.f32 %v8643_v16, %v2207_v58  ;;  %v2077_v21 = vmul.f32 %v8068_v6, %v10834_v29 }
 0x572   :  { %v2335_v1 = vmul.f32 %v9257_v2, %v2075_v30  ;;  %v2468_v4 = vadd.f32 %v8643_v16, %v2208_v26  ;;  %v2531_v33 = vadd.f32 %v9273_v43, %v2271_v7  ;;  %v2596_v16 = vadd.f32 %v9273_v43, %v2336_v15 }
 0x573   :  { %v3774_v27 = vpop.f32.mrf.mxu2  ;;  %v3934_v11 = vpop.f32.mrf.mxu3  ;;  %v2532_v60 = vadd.f32 %v9273_v43, %v2272_v0  ;;  %v2078_v41 = vmul.f32 %v8068_v6, %v10835_v54  ;;  %v2210_v38 = vmul.f32 %v9257_v2, %v1950_v28  ;;  %v2273_v25 = vmul.f32 %v9257_v2, %v2013_v17  ;;  %v10843_v17 = vld [vmem:[#allocation199_spill] sm:$0xff] }
 0x574   :  { %4190 = vst.msk [vmem:[%s10265_s4 + $0x4b0] sm:$0xff] %vm4039_vm6, %v3774_v27  ;;  %v3456_v47 = vpop.f32.mrf.mxu0  ;;  %v3616_v55 = vpop.f32.mrf.mxu1  ;;  %v2595_v34 = vadd.f32 %v9273_v43, %v2335_v1  ;;  %v2660_v27 = vmax.f32 %v2404_v10, 0.0  ;;  %v2724_v13 = vmax.f32 %v2468_v4, 0.0  ;;  %v2787_v36 = vmax.f32 %v2531_v33, 0.0 }
 0x575   :  { %4254 = vst.msk [vmem:[%s10265_s4 + $0x6b0] sm:$0xff] %vm4039_vm6, %v3934_v11  ;;  %v2723_v11 = vmax.f32 %v2467_v51, 0.0  ;;  %v2852_v19 = vmax.f32 %v2596_v16, 0.0  ;;  %v2337_v30 = vmul.f32 %v9257_v2, %v2077_v21  ;;  %v2338_v46 = vmul.f32 %v9257_v2, %v2078_v41 }
 0x576   :  { %4063 = vst.msk [vmem:[%s10265_s4 + $0xb8] sm:$0xff] %vm4039_vm6, %v3456_v47  ;;  %v2788_v47 = vmax.f32 %v2532_v60, 0.0  ;;  %v2470_v58 = vadd.f32 %v9273_v43, %v2210_v38  ;;  %v2533_v0 = vadd.f32 %v9273_v43, %v2273_v25 }
 0x577   :  { %4127 = vst.msk [vmem:[%s10265_s4 + $0x2b8] sm:$0xff] %vm4039_vm6, %v3616_v55  ;;  %v2851_v55 = vmax.f32 %v2595_v34, 0.0  ;;  %v2926_v45 = vpack.c.bf16 %v2724_v13, %v2723_v11  ;;  %v2598_v49 = vadd.f32 %v9273_v43, %v2338_v46  ;;  %v10837_v13 = vld [vmem:[#allocation37_spill] sm:$0xff] }
 0x578   :  { %v2958_v23 = vpack.c.bf16 %v2788_v47, %v2787_v36  ;;  %v1888_v36 = vmul.f32 %v8068_v6, %v10837_v13 }
 0x579   :  { %v2990_v24 = vpack.c.bf16 %v2852_v19, %v2851_v55  ;;  %v2854_v34 = vmax.f32 %v2598_v49, 0.0  ;;  %v10844_v49 = vld [vmem:[#allocation38_spill] sm:$0xff] }
 0x57b   :  { %v3776_v42 = vpop.f32.mrf.mxu2  ;;  %v3936_v35 = vpop.f32.mrf.mxu3 }
 0x57c   :  { %4191 = vst.msk [vmem:[%s10265_s4 + $0x4b8] sm:$0xff] %vm4039_vm6, %v3776_v42  ;;  %v3459_v59 = vpop.f32.mrf.mxu0  ;;  %v3619_v12 = vpop.f32.mrf.mxu1  ;;  %v2014_v42 = vmul.f32 %v8068_v6, %v10833_v57  ;;  %v2080_v57 = vmul.f32 %v8068_v6, %v10843_v17 }
 0x57d   :  { %4255 = vst.msk [vmem:[%s10265_s4 + $0x6b8] sm:$0xff] %vm4039_vm6, %v3936_v35 }
 0x57e   :  { %4064 = vst.msk [vmem:[%s10265_s4 + $0xc0] sm:$0xff] %vm4039_vm6, %v3459_v59  ;;  %v2145_v59 = vmul.f32 %v9257_v2, %v1885_v37  ;;  %v2274_v8 = vmul.f32 %v9257_v2, %v2014_v42  ;;  %v1951_v37 = vmul.f32 %v8068_v6, %v10838_v18  ;;  %v2340_v54 = vmul.f32 %v9257_v2, %v2080_v57 }
 0x57f   :  { %4128 = vst.msk [vmem:[%s10265_s4 + $0x2c0] sm:$0xff] %vm4039_vm6, %v3619_v12  ;;  %4320 = vmatmul.msk.bf16.gmra.mxu0 %vm274_vm1, %v2893_v53  ;;  %4352 = vmatmul.msk.bf16.gmra.mxu1 %vm274_vm1, %v2925_v40  ;;  %v2894_v40 = vpack.c.bf16 %v2660_v27, %v2659_v9  ;;  %v2146_v12 = vmul.f32 %v9257_v2, %v1886_v32  ;;  %v10836_v27 = vld [vmem:[#allocation36_spill] sm:$0xff] }
 0x580   :  { %4384 = vmatmul.msk.bf16.gmra.mxu2 %vm274_vm1, %v2957_v20  ;;  %4416 = vmatmul.msk.bf16.gmra.mxu3 %vm274_vm1, %v2989_v22  ;;  %v2209_v22 = vmul.f32 %v9257_v2, %v1949_v48  ;;  %v2405_v56 = vadd.f32 %v9273_v43, %v2145_v59  ;;  %v2534_v1 = vadd.f32 %v9273_v43, %v2274_v8 }
 0x581   :  { %v2406_v5 = vadd.f32 %v9273_v43, %v2146_v12  ;;  %v1887_v11 = vmul.f32 %v8068_v6, %v10836_v27  ;;  %v1952_v32 = vmul.f32 %v8068_v6, %v10839_v14  ;;  %v2015_v48 = vmul.f32 %v8068_v6, %v10840_v39  ;;  %v10850_v14 = vld [vmem:[#allocation200_spill] sm:$0xff]  ;;  %v10851_v39 = vld [vmem:[#allocation201_spill] sm:$0xff] }
 0x582   :  { %v2469_v61 = vadd.f32 %v9273_v43, %v2209_v22  ;;  %v2661_v10 = vmax.f32 %v2405_v56, 0.0  ;;  %v2790_v33 = vmax.f32 %v2534_v1, 0.0 }
 0x583   :  { %v3779_v31 = vpop.f32.mrf.mxu2  ;;  %v3939_v44 = vpop.f32.mrf.mxu3  ;;  %v2662_v51 = vmax.f32 %v2406_v5, 0.0  ;;  %v2147_v42 = vmul.f32 %v9257_v2, %v1887_v11  ;;  %v10848_v11 = vld [vmem:[#allocation146_spill] sm:$0xff] }
 0x584   :  { %4192 = vst.msk [vmem:[%s10265_s4 + $0x4c0] sm:$0xff] %vm4039_vm6, %v3779_v31  ;;  %v3461_v50 = vpop.f32.mrf.mxu0  ;;  %v3621_v52 = vpop.f32.mrf.mxu1  ;;  %v2725_v4 = vmax.f32 %v2469_v61, 0.0  ;;  %v2600_v61 = vadd.f32 %v9273_v43, %v2340_v54  ;;  %v2017_v13 = vmul.f32 %v8068_v6, %v10848_v11 }
 0x585   :  { %4256 = vst.msk [vmem:[%s10265_s4 + $0x6c0] sm:$0xff] %vm4039_vm6, %v3939_v44  ;;  %v2597_v44 = vadd.f32 %v9273_v43, %v2337_v30  ;;  %v2895_v16 = vpack.c.bf16 %v2662_v51, %v2661_v10  ;;  %v2407_v12 = vadd.f32 %v9273_v43, %v2147_v42  ;;  %v1889_v10 = vmul.f32 %v8068_v6, %v10844_v49  ;;  %v10845_v51 = vld [vmem:[#allocation39_spill] sm:$0xff]  ;;  %v10854_v49 = vld [vmem:[#allocation94_spill] sm:$0xff] }
 0x586   :  { %4065 = vst.msk [vmem:[%s10265_s4 + $0xc8] sm:$0xff] %vm4039_vm6, %v3461_v50  ;;  %v2726_v50 = vmax.f32 %v2470_v58, 0.0 }
 0x587   :  { %4129 = vst.msk [vmem:[%s10265_s4 + $0x2c8] sm:$0xff] %vm4039_vm6, %v3621_v52  ;;  %v2789_v52 = vmax.f32 %v2533_v0, 0.0  ;;  %v2853_v60 = vmax.f32 %v2597_v44, 0.0  ;;  %v2663_v58 = vmax.f32 %v2407_v12, 0.0  ;;  %v2856_v44 = vmax.f32 %v2600_v61, 0.0 }
 0x588   :  { %v2927_v9 = vpack.c.bf16 %v2726_v50, %v2725_v4  ;;  %v1890_v4 = vmul.f32 %v8068_v6, %v10845_v51  ;;  %v10846_v50 = vld [vmem:[#allocation92_spill] sm:$0xff]  ;;  %v10855_v51 = vld [vmem:[#allocation95_spill] sm:$0xff] }
 0x589   :  { %v2959_v19 = vpack.c.bf16 %v2790_v33, %v2789_v52  ;;  %v1953_v52 = vmul.f32 %v8068_v6, %v10846_v50  ;;  %v10847_v33 = vld [vmem:[#allocation93_spill] sm:$0xff]  ;;  %v10856_v50 = vld [vmem:[#allocation148_spill] sm:$0xff] }
 0x58b   :  { %v3781_v62 = vpop.f32.mrf.mxu2  ;;  %v3941_v53 = vpop.f32.mrf.mxu3 }
 0x58c   :  { %4193 = vst.msk [vmem:[%s10265_s4 + $0x4c8] sm:$0xff] %vm4039_vm6, %v3781_v62  ;;  %v3464_v35 = vpop.f32.mrf.mxu0  ;;  %v3624_v20 = vpop.f32.mrf.mxu1  ;;  %v2991_v62 = vpack.c.bf16 %v2854_v34, %v2853_v60  ;;  %v1954_v60 = vmul.f32 %v8068_v6, %v10847_v33 }
 0x58d   :  { %4257 = vst.msk [vmem:[%s10265_s4 + $0x6c8] sm:$0xff] %vm4039_vm6, %v3941_v53  ;;  %v10841_v53 = vld [vmem:[#allocation145_spill] sm:$0xff] }
 0x58e   :  { %4066 = vst.msk [vmem:[%s10265_s4 + $0xd0] sm:$0xff] %vm4039_vm6, %v3464_v35  ;;  %v2148_v35 = vmul.f32 %v9257_v2, %v1888_v36  ;;  %v10849_v36 = vld [vmem:[#allocation147_spill] sm:$0xff] }
 0x58f   :  { %4130 = vst.msk [vmem:[%s10265_s4 + $0x2d0] sm:$0xff] %vm4039_vm6, %v3624_v20  ;;  %4321 = vmatmul.msk.bf16.gmra.mxu0 %vm274_vm1, %v2894_v40  ;;  %4353 = vmatmul.msk.bf16.gmra.mxu1 %vm274_vm1, %v2926_v45  ;;  %v2016_v40 = vmul.f32 %v8068_v6, %v10841_v53  ;;  %v10842_v45 = vld [vmem:[#allocation198_spill] sm:$0xff]  ;;  %v2211_v20 = vmul.f32 %v9257_v2, %v1951_v37 }
 0x590   :  { %4385 = vmatmul.msk.bf16.gmra.mxu2 %vm274_vm1, %v2958_v23  ;;  %4417 = vmatmul.msk.bf16.gmra.mxu3 %vm274_vm1, %v2990_v24  ;;  %v2079_v63 = vmul.f32 %v8068_v6, %v10842_v45  ;;  %v2212_v23 = vmul.f32 %v9257_v2, %v1952_v32  ;;  %v2275_v24 = vmul.f32 %v9257_v2, %v2015_v48 }
 0x591   :  { %v2276_v29 = vmul.f32 %v9257_v2, %v2016_v40  ;;  %v2408_v22 = vadd.f32 %v9273_v43, %v2148_v35  ;;  %v2471_v38 = vadd.f32 %v9273_v43, %v2211_v20  ;;  %v2081_v32 = vmul.f32 %v8068_v6, %v10850_v14 }
 0x592   :  { %v2339_v21 = vmul.f32 %v9257_v2, %v2079_v63  ;;  %v2472_v25 = vadd.f32 %v9273_v43, %v2212_v23  ;;  %v2535_v46 = vadd.f32 %v9273_v43, %v2275_v24  ;;  %v2082_v48 = vmul.f32 %v8068_v6, %v10851_v39 }
 0x593   :  { %v3784_v26 = vpop.f32.mrf.mxu2  ;;  %v3944_v7 = vpop.f32.mrf.mxu3  ;;  %v2536_v56 = vadd.f32 %v9273_v43, %v2276_v29  ;;  %v2214_v53 = vmul.f32 %v9257_v2, %v1954_v60  ;;  %v2277_v40 = vmul.f32 %v9257_v2, %v2017_v13  ;;  %v2341_v63 = vmul.f32 %v9257_v2, %v2081_v32  ;;  %v10859_v13 = vld [vmem:[#allocation203_spill] sm:$0xff] }
 0x594   :  { %4194 = vst.msk [vmem:[%s10265_s4 + $0x4d0] sm:$0xff] %vm4039_vm6, %v3784_v26  ;;  %v3466_v15 = vpop.f32.mrf.mxu0  ;;  %v3626_v31 = vpop.f32.mrf.mxu1  ;;  %v2599_v5 = vadd.f32 %v9273_v43, %v2339_v21  ;;  %v2664_v26 = vmax.f32 %v2408_v22, 0.0  ;;  %v2728_v0 = vmax.f32 %v2472_v25, 0.0  ;;  %v2791_v1 = vmax.f32 %v2535_v46, 0.0 }
 0x595   :  { %4258 = vst.msk [vmem:[%s10265_s4 + $0x6d0] sm:$0xff] %vm4039_vm6, %v3944_v7  ;;  %v2727_v7 = vmax.f32 %v2471_v38, 0.0  ;;  %v2342_v17 = vmul.f32 %v9257_v2, %v2082_v48  ;;  %v2474_v20 = vadd.f32 %v9273_v43, %v2214_v53  ;;  %v2537_v29 = vadd.f32 %v9273_v43, %v2277_v40 }
 0x596   :  { %4067 = vst.msk [vmem:[%s10265_s4 + $0xd8] sm:$0xff] %vm4039_vm6, %v3466_v15  ;;  %v2792_v15 = vmax.f32 %v2536_v56, 0.0 }
 0x597   :  { %4131 = vst.msk [vmem:[%s10265_s4 + $0x2d8] sm:$0xff] %vm4039_vm6, %v3626_v31  ;;  %v2855_v31 = vmax.f32 %v2599_v5, 0.0  ;;  %v2928_v27 = vpack.c.bf16 %v2728_v0, %v2727_v7  ;;  %v2602_v12 = vadd.f32 %v9273_v43, %v2342_v17  ;;  %v10853_v0 = vld [vmem:[#allocation41_spill] sm:$0xff] }
 0x598   :  { %v2960_v18 = vpack.c.bf16 %v2792_v15, %v2791_v1  ;;  %v1892_v1 = vmul.f32 %v8068_v6, %v10853_v0 }
 0x599   :  { %v2992_v37 = vpack.c.bf16 %v2856_v44, %v2855_v31  ;;  %v2858_v5 = vmax.f32 %v2602_v12, 0.0  ;;  %v10860_v12 = vld [vmem:[#allocation42_spill] sm:$0xff] }
 0x59b   :  { %v3786_v47 = vpop.f32.mrf.mxu2  ;;  %v3946_v55 = vpop.f32.mrf.mxu3 }
 0x59c   :  { %4195 = vst.msk [vmem:[%s10265_s4 + $0x4d8] sm:$0xff] %vm4039_vm6, %v3786_v47  ;;  %v3469_v3 = vpop.f32.mrf.mxu0  ;;  %v3629_v28 = vpop.f32.mrf.mxu1  ;;  %v2018_v47 = vmul.f32 %v8068_v6, %v10849_v36  ;;  %v2084_v36 = vmul.f32 %v8068_v6, %v10859_v13 }
 0x59d   :  { %4259 = vst.msk [vmem:[%s10265_s4 + $0x6d8] sm:$0xff] %vm4039_vm6, %v3946_v55 }
 0x59e   :  { %4068 = vst.msk [vmem:[%s10265_s4 + $0xe0] sm:$0xff] %vm4039_vm6, %v3469_v3  ;;  %v2149_v3 = vmul.f32 %v9257_v2, %v1889_v10  ;;  %v2278_v45 = vmul.f32 %v9257_v2, %v2018_v47  ;;  %v1955_v10 = vmul.f32 %v8068_v6, %v10854_v49  ;;  %v2344_v39 = vmul.f32 %v9257_v2, %v2084_v36 }
 0x59f   :  { %4132 = vst.msk [vmem:[%s10265_s4 + $0x2e0] sm:$0xff] %vm4039_vm6, %v3629_v28  ;;  %4322 = vmatmul.msk.bf16.gmra.mxu0 %vm274_vm1, %v2895_v16  ;;  %4354 = vmatmul.msk.bf16.gmra.mxu1 %vm274_vm1, %v2927_v9  ;;  %v2896_v9 = vpack.c.bf16 %v2664_v26, %v2663_v58  ;;  %v2150_v28 = vmul.f32 %v9257_v2, %v1890_v4  ;;  %v10852_v26 = vld [vmem:[#allocation40_spill] sm:$0xff] }
 0x5a0   :  { %4386 = vmatmul.msk.bf16.gmra.mxu2 %vm274_vm1, %v2959_v19  ;;  %4418 = vmatmul.msk.bf16.gmra.mxu3 %vm274_vm1, %v2991_v62  ;;  %v2213_v62 = vmul.f32 %v9257_v2, %v1953_v52  ;;  %v2409_v57 = vadd.f32 %v9273_v43, %v2149_v3  ;;  %v2538_v21 = vadd.f32 %v9273_v43, %v2278_v45 }
 0x5a1   :  { %v2410_v42 = vadd.f32 %v9273_v43, %v2150_v28  ;;  %v1891_v7 = vmul.f32 %v8068_v6, %v10852_v26  ;;  %v1956_v4 = vmul.f32 %v8068_v6, %v10855_v51  ;;  %v2019_v52 = vmul.f32 %v8068_v6, %v10856_v50  ;;  %v10866_v51 = vld [vmem:[#allocation204_spill] sm:$0xff]  ;;  %v10867_v50 = vld [vmem:[#allocation205_spill] sm:$0xff] }
 0x5a2   :  { %v2473_v35 = vadd.f32 %v9273_v43, %v2213_v62  ;;  %v2665_v22 = vmax.f32 %v2409_v57, 0.0  ;;  %v2794_v46 = vmax.f32 %v2538_v21, 0.0 }
 0x5a3   :  { %v3789_v41 = vpop.f32.mrf.mxu2  ;;  %v3949_v59 = vpop.f32.mrf.mxu3  ;;  %v2666_v38 = vmax.f32 %v2410_v42, 0.0  ;;  %v2151_v47 = vmul.f32 %v9257_v2, %v1891_v7  ;;  %v10864_v7 = vld [vmem:[#allocation150_spill] sm:$0xff] }
 0x5a4   :  { %4196 = vst.msk [vmem:[%s10265_s4 + $0x4e0] sm:$0xff] %vm4039_vm6, %v3789_v41  ;;  %v3471_v8 = vpop.f32.mrf.mxu0  ;;  %v3631_v30 = vpop.f32.mrf.mxu1  ;;  %v2729_v25 = vmax.f32 %v2473_v35, 0.0  ;;  %v2604_v35 = vadd.f32 %v9273_v43, %v2344_v39  ;;  %v2021_v0 = vmul.f32 %v8068_v6, %v10864_v7 }
 0x5a5   :  { %4260 = vst.msk [vmem:[%s10265_s4 + $0x6e0] sm:$0xff] %vm4039_vm6, %v3949_v59  ;;  %v2601_v59 = vadd.f32 %v9273_v43, %v2341_v63  ;;  %v2897_v61 = vpack.c.bf16 %v2666_v38, %v2665_v22  ;;  %v2411_v28 = vadd.f32 %v9273_v43, %v2151_v47  ;;  %v1893_v22 = vmul.f32 %v8068_v6, %v10860_v12  ;;  %v10861_v38 = vld [vmem:[#allocation43_spill] sm:$0xff]  ;;  %v10870_v12 = vld [vmem:[#allocation98_spill] sm:$0xff] }
 0x5a6   :  { %4069 = vst.msk [vmem:[%s10265_s4 + $0xe8] sm:$0xff] %vm4039_vm6, %v3471_v8  ;;  %v2730_v8 = vmax.f32 %v2474_v20, 0.0 }
 0x5a7   :  { %4133 = vst.msk [vmem:[%s10265_s4 + $0x2e8] sm:$0xff] %vm4039_vm6, %v3631_v30  ;;  %v2793_v30 = vmax.f32 %v2537_v29, 0.0  ;;  %v2857_v56 = vmax.f32 %v2601_v59, 0.0  ;;  %v2667_v20 = vmax.f32 %v2411_v28, 0.0  ;;  %v2860_v59 = vmax.f32 %v2604_v35, 0.0 }
 0x5a8   :  { %v2929_v58 = vpack.c.bf16 %v2730_v8, %v2729_v25  ;;  %v1894_v25 = vmul.f32 %v8068_v6, %v10861_v38  ;;  %v10862_v8 = vld [vmem:[#allocation96_spill] sm:$0xff]  ;;  %v10871_v38 = vld [vmem:[#allocation99_spill] sm:$0xff] }
 0x5a9   :  { %v2961_v44 = vpack.c.bf16 %v2794_v46, %v2793_v30  ;;  %v1957_v30 = vmul.f32 %v8068_v6, %v10862_v8  ;;  %v10863_v46 = vld [vmem:[#allocation97_spill] sm:$0xff]  ;;  %v10872_v8 = vld [vmem:[#allocation152_spill] sm:$0xff] }
 0x5ab   :  { %v3791_v34 = vpop.f32.mrf.mxu2  ;;  %v3951_v16 = vpop.f32.mrf.mxu3 }
 0x5ac   :  { %4197 = vst.msk [vmem:[%s10265_s4 + $0x4e8] sm:$0xff] %vm4039_vm6, %v3791_v34  ;;  %v3474_v55 = vpop.f32.mrf.mxu0  ;;  %v3634_v19 = vpop.f32.mrf.mxu1  ;;  %v2993_v34 = vpack.c.bf16 %v2858_v5, %v2857_v56  ;;  %v1958_v56 = vmul.f32 %v8068_v6, %v10863_v46 }
 0x5ad   :  { %4261 = vst.msk [vmem:[%s10265_s4 + $0x6e8] sm:$0xff] %vm4039_vm6, %v3951_v16  ;;  %v10857_v16 = vld [vmem:[#allocation149_spill] sm:$0xff] }
 0x5ae   :  { %4070 = vst.msk [vmem:[%s10265_s4 + $0xf0] sm:$0xff] %vm4039_vm6, %v3474_v55  ;;  %v2152_v55 = vmul.f32 %v9257_v2, %v1892_v1  ;;  %v10865_v1 = vld [vmem:[#allocation151_spill] sm:$0xff] }
 0x5af   :  { %4134 = vst.msk [vmem:[%s10265_s4 + $0x2f0] sm:$0xff] %vm4039_vm6, %v3634_v19  ;;  %4323 = vmatmul.msk.bf16.gmra.mxu0 %vm274_vm1, %v2896_v9  ;;  %4355 = vmatmul.msk.bf16.gmra.mxu1 %vm274_vm1, %v2928_v27  ;;  %v2020_v9 = vmul.f32 %v8068_v6, %v10857_v16  ;;  %v10858_v27 = vld [vmem:[#allocation202_spill] sm:$0xff]  ;;  %v2215_v19 = vmul.f32 %v9257_v2, %v1955_v10 }
 0x5b0   :  { %4387 = vmatmul.msk.bf16.gmra.mxu2 %vm274_vm1, %v2960_v18  ;;  %4419 = vmatmul.msk.bf16.gmra.mxu3 %vm274_vm1, %v2992_v37  ;;  %v2083_v11 = vmul.f32 %v8068_v6, %v10858_v27  ;;  %v2216_v18 = vmul.f32 %v9257_v2, %v1956_v4  ;;  %v2279_v37 = vmul.f32 %v9257_v2, %v2019_v52 }
 0x5b1   :  { %v2280_v14 = vmul.f32 %v9257_v2, %v2020_v9  ;;  %v2412_v62 = vadd.f32 %v9273_v43, %v2152_v55  ;;  %v2475_v53 = vadd.f32 %v9273_v43, %v2215_v19  ;;  %v2085_v4 = vmul.f32 %v8068_v6, %v10866_v51 }
 0x5b2   :  { %v2343_v32 = vmul.f32 %v9257_v2, %v2083_v11  ;;  %v2476_v40 = vadd.f32 %v9273_v43, %v2216_v18  ;;  %v2539_v17 = vadd.f32 %v9273_v43, %v2279_v37  ;;  %v2086_v52 = vmul.f32 %v8068_v6, %v10867_v50 }
 0x5b3   :  { %v3794_v23 = vpop.f32.mrf.mxu2  ;;  %v3954_v24 = vpop.f32.mrf.mxu3  ;;  %v2540_v57 = vadd.f32 %v9273_v43, %v2280_v14  ;;  %v2218_v16 = vmul.f32 %v9257_v2, %v1958_v56  ;;  %v2281_v9 = vmul.f32 %v9257_v2, %v2021_v0  ;;  %v2345_v11 = vmul.f32 %v9257_v2, %v2085_v4  ;;  %v10875_v0 = vld [vmem:[#allocation207_spill] sm:$0xff] }
 0x5b4   :  { %4198 = vst.msk [vmem:[%s10265_s4 + $0x4f0] sm:$0xff] %vm4039_vm6, %v3794_v23  ;;  %v3476_v54 = vpop.f32.mrf.mxu0  ;;  %v3636_v41 = vpop.f32.mrf.mxu1  ;;  %v2603_v42 = vadd.f32 %v9273_v43, %v2343_v32  ;;  %v2668_v23 = vmax.f32 %v2412_v62, 0.0  ;;  %v2732_v29 = vmax.f32 %v2476_v40, 0.0  ;;  %v2795_v21 = vmax.f32 %v2539_v17, 0.0 }
 0x5b5   :  { %4262 = vst.msk [vmem:[%s10265_s4 + $0x6f0] sm:$0xff] %vm4039_vm6, %v3954_v24  ;;  %v2731_v24 = vmax.f32 %v2475_v53, 0.0  ;;  %v2346_v13 = vmul.f32 %v9257_v2, %v2086_v52  ;;  %v2478_v19 = vadd.f32 %v9273_v43, %v2218_v16  ;;  %v2541_v14 = vadd.f32 %v9273_v43, %v2281_v9 }
 0x5b6   :  { %4071 = vst.msk [vmem:[%s10265_s4 + $0xf8] sm:$0xff] %vm4039_vm6, %v3476_v54  ;;  %v2796_v54 = vmax.f32 %v2540_v57, 0.0 }
 0x5b7   :  { %4135 = vst.msk [vmem:[%s10265_s4 + $0x2f8] sm:$0xff] %vm4039_vm6, %v3636_v41  ;;  %v2859_v41 = vmax.f32 %v2603_v42, 0.0  ;;  %v2930_v26 = vpack.c.bf16 %v2732_v29, %v2731_v24  ;;  %v2606_v28 = vadd.f32 %v9273_v43, %v2346_v13  ;;  %v10869_v29 = vld [vmem:[#allocation45_spill] sm:$0xff] }
 0x5b8   :  { %v2962_v49 = vpack.c.bf16 %v2796_v54, %v2795_v21  ;;  %v1896_v21 = vmul.f32 %v8068_v6, %v10869_v29 }
 0x5b9   :  { %v2994_v10 = vpack.c.bf16 %v2860_v59, %v2859_v41  ;;  %v2862_v42 = vmax.f32 %v2606_v28, 0.0  ;;  %v10876_v28 = vld [vmem:[#allocation46_spill] sm:$0xff] }
 0x5bb   :  { %v3796_v15 = vpop.f32.mrf.mxu2  ;;  %v3956_v31 = vpop.f32.mrf.mxu3 }
 0x5bc   :  { %4199 = vst.msk [vmem:[%s10265_s4 + $0x4f8] sm:$0xff] %vm4039_vm6, %v3796_v15  ;;  %v3479_v33 = vpop.f32.mrf.mxu0  ;;  %v3639_v60 = vpop.f32.mrf.mxu1  ;;  %v2022_v15 = vmul.f32 %v8068_v6, %v10865_v1  ;;  %v2088_v1 = vmul.f32 %v8068_v6, %v10875_v0 }
 0x5bd   :  { %4263 = vst.msk [vmem:[%s10265_s4 + $0x6f8] sm:$0xff] %vm4039_vm6, %v3956_v31 }
 0x5be   :  { %4072 = vst.msk [vmem:[%s10265_s4 + $0x100] sm:$0xff] %vm4039_vm6, %v3479_v33  ;;  %v2153_v33 = vmul.f32 %v9257_v2, %v1893_v22  ;;  %v2282_v27 = vmul.f32 %v9257_v2, %v2022_v15  ;;  %v1959_v22 = vmul.f32 %v8068_v6, %v10870_v12  ;;  %v2348_v50 = vmul.f32 %v9257_v2, %v2088_v1 }
 0x5bf   :  { %4136 = vst.msk [vmem:[%s10265_s4 + $0x300] sm:$0xff] %vm4039_vm6, %v3639_v60  ;;  %4324 = vmatmul.msk.bf16.gmra.mxu0 %vm274_vm1, %v2897_v61  ;;  %4356 = vmatmul.msk.bf16.gmra.mxu1 %vm274_vm1, %v2929_v58  ;;  %v2898_v58 = vpack.c.bf16 %v2668_v23, %v2667_v20  ;;  %v2154_v60 = vmul.f32 %v9257_v2, %v1894_v25  ;;  %v10868_v23 = vld [vmem:[#allocation44_spill] sm:$0xff] }
 0x5c0   :  { %4388 = vmatmul.msk.bf16.gmra.mxu2 %vm274_vm1, %v2961_v44  ;;  %4420 = vmatmul.msk.bf16.gmra.mxu3 %vm274_vm1, %v2993_v34  ;;  %v2217_v34 = vmul.f32 %v9257_v2, %v1957_v30  ;;  %v2413_v36 = vadd.f32 %v9273_v43, %v2153_v33  ;;  %v2542_v32 = vadd.f32 %v9273_v43, %v2282_v27 }
 0x5c1   :  { %v2414_v47 = vadd.f32 %v9273_v43, %v2154_v60  ;;  %v1895_v24 = vmul.f32 %v8068_v6, %v10868_v23  ;;  %v1960_v25 = vmul.f32 %v8068_v6, %v10871_v38  ;;  %v2023_v30 = vmul.f32 %v8068_v6, %v10872_v8  ;;  %v10882_v38 = vld [vmem:[#allocation208_spill] sm:$0xff]  ;;  %v10883_v8 = vld [vmem:[#allocation209_spill] sm:$0xff] }
 0x5c2   :  { %v2477_v55 = vadd.f32 %v9273_v43, %v2217_v34  ;;  %v2669_v62 = vmax.f32 %v2413_v36, 0.0  ;;  %v2798_v17 = vmax.f32 %v2542_v32, 0.0 }
 0x5c3   :  { %v3799_v48 = vpop.f32.mrf.mxu2  ;;  %v3959_v3 = vpop.f32.mrf.mxu3  ;;  %v2670_v53 = vmax.f32 %v2414_v47, 0.0  ;;  %v2155_v15 = vmul.f32 %v9257_v2, %v1895_v24  ;;  %v10880_v24 = vld [vmem:[#allocation154_spill] sm:$0xff] }
 0x5c4   :  { %4200 = vst.msk [vmem:[%s10265_s4 + $0x500] sm:$0xff] %vm4039_vm6, %v3799_v48  ;;  %v3481_v45 = vpop.f32.mrf.mxu0  ;;  %v3641_v63 = vpop.f32.mrf.mxu1  ;;  %v2733_v40 = vmax.f32 %v2477_v55, 0.0  ;;  %v2608_v55 = vadd.f32 %v9273_v43, %v2348_v50  ;;  %v2025_v29 = vmul.f32 %v8068_v6, %v10880_v24 }
 0x5c5   :  { %4264 = vst.msk [vmem:[%s10265_s4 + $0x700] sm:$0xff] %vm4039_vm6, %v3959_v3  ;;  %v2605_v3 = vadd.f32 %v9273_v43, %v2345_v11  ;;  %v2899_v35 = vpack.c.bf16 %v2670_v53, %v2669_v62  ;;  %v2415_v60 = vadd.f32 %v9273_v43, %v2155_v15  ;;  %v1897_v62 = vmul.f32 %v8068_v6, %v10876_v28  ;;  %v10877_v53 = vld [vmem:[#allocation47_spill] sm:$0xff]  ;;  %v10886_v28 = vld [vmem:[#allocation102_spill] sm:$0xff] }
 0x5c6   :  { %4073 = vst.msk [vmem:[%s10265_s4 + $0x108] sm:$0xff] %vm4039_vm6, %v3481_v45  ;;  %v2734_v45 = vmax.f32 %v2478_v19, 0.0 }
 0x5c7   :  { %4137 = vst.msk [vmem:[%s10265_s4 + $0x308] sm:$0xff] %vm4039_vm6, %v3641_v63  ;;  %v2797_v63 = vmax.f32 %v2541_v14, 0.0  ;;  %v2861_v57 = vmax.f32 %v2605_v3, 0.0  ;;  %v2671_v19 = vmax.f32 %v2415_v60, 0.0  ;;  %v2864_v3 = vmax.f32 %v2608_v55, 0.0 }
 0x5c8   :  { %v2931_v20 = vpack.c.bf16 %v2734_v45, %v2733_v40  ;;  %v1898_v40 = vmul.f32 %v8068_v6, %v10877_v53  ;;  %v10878_v45 = vld [vmem:[#allocation100_spill] sm:$0xff]  ;;  %v10887_v53 = vld [vmem:[#allocation103_spill] sm:$0xff] }
 0x5c9   :  { %v2963_v59 = vpack.c.bf16 %v2798_v17, %v2797_v63  ;;  %v1961_v63 = vmul.f32 %v8068_v6, %v10878_v45  ;;  %v10879_v17 = vld [vmem:[#allocation101_spill] sm:$0xff]  ;;  %v10888_v45 = vld [vmem:[#allocation156_spill] sm:$0xff] }
 0x5cb   :  { %v3801_v5 = vpop.f32.mrf.mxu2  ;;  %v3961_v61 = vpop.f32.mrf.mxu3 }
 0x5cc   :  { %4201 = vst.msk [vmem:[%s10265_s4 + $0x508] sm:$0xff] %vm4039_vm6, %v3801_v5  ;;  %v3484_v31 = vpop.f32.mrf.mxu0  ;;  %v3644_v44 = vpop.f32.mrf.mxu1  ;;  %v2995_v5 = vpack.c.bf16 %v2862_v42, %v2861_v57  ;;  %v1962_v57 = vmul.f32 %v8068_v6, %v10879_v17 }
 0x5cd   :  { %4265 = vst.msk [vmem:[%s10265_s4 + $0x708] sm:$0xff] %vm4039_vm6, %v3961_v61  ;;  %v10873_v61 = vld [vmem:[#allocation153_spill] sm:$0xff] }
 0x5ce   :  { %4074 = vst.msk [vmem:[%s10265_s4 + $0x110] sm:$0xff] %vm4039_vm6, %v3484_v31  ;;  %v2156_v31 = vmul.f32 %v9257_v2, %v1896_v21  ;;  %v10881_v21 = vld [vmem:[#allocation155_spill] sm:$0xff] }
 0x5cf   :  { %4138 = vst.msk [vmem:[%s10265_s4 + $0x310] sm:$0xff] %vm4039_vm6, %v3644_v44  ;;  %4325 = vmatmul.msk.bf16.gmra.mxu0 %vm274_vm1, %v2898_v58  ;;  %4357 = vmatmul.msk.bf16.gmra.mxu1 %vm274_vm1, %v2930_v26  ;;  %v2024_v58 = vmul.f32 %v8068_v6, %v10873_v61  ;;  %v10874_v26 = vld [vmem:[#allocation206_spill] sm:$0xff]  ;;  %v2219_v44 = vmul.f32 %v9257_v2, %v1959_v22 }
 0x5d0   :  { %4389 = vmatmul.msk.bf16.gmra.mxu2 %vm274_vm1, %v2962_v49  ;;  %4421 = vmatmul.msk.bf16.gmra.mxu3 %vm274_vm1, %v2994_v10  ;;  %v2087_v7 = vmul.f32 %v8068_v6, %v10874_v26  ;;  %v2220_v49 = vmul.f32 %v9257_v2, %v1960_v25  ;;  %v2283_v10 = vmul.f32 %v9257_v2, %v2023_v30 }
 0x5d1   :  { %v2284_v51 = vmul.f32 %v9257_v2, %v2024_v58  ;;  %v2416_v34 = vadd.f32 %v9273_v43, %v2156_v31  ;;  %v2479_v16 = vadd.f32 %v9273_v43, %v2219_v44  ;;  %v2089_v25 = vmul.f32 %v8068_v6, %v10882_v38 }
 0x5d2   :  { %v2347_v4 = vmul.f32 %v9257_v2, %v2087_v7  ;;  %v2480_v9 = vadd.f32 %v9273_v43, %v2220_v49  ;;  %v2543_v13 = vadd.f32 %v9273_v43, %v2283_v10  ;;  %v2090_v30 = vmul.f32 %v8068_v6, %v10883_v8 }
 0x5d3   :  { %v3804_v18 = vpop.f32.mrf.mxu2  ;;  %v3964_v37 = vpop.f32.mrf.mxu3  ;;  %v2544_v36 = vadd.f32 %v9273_v43, %v2284_v51  ;;  %v2222_v61 = vmul.f32 %v9257_v2, %v1962_v57  ;;  %v2285_v58 = vmul.f32 %v9257_v2, %v2025_v29  ;;  %v2349_v7 = vmul.f32 %v9257_v2, %v2089_v25  ;;  %v10891_v29 = vld [vmem:[#allocation211_spill] sm:$0xff] }
 0x5d4   :  { %4202 = vst.msk [vmem:[%s10265_s4 + $0x510] sm:$0xff] %vm4039_vm6, %v3804_v18  ;;  %v3486_v39 = vpop.f32.mrf.mxu0  ;;  %v3646_v48 = vpop.f32.mrf.mxu1  ;;  %v2607_v47 = vadd.f32 %v9273_v43, %v2347_v4  ;;  %v2672_v18 = vmax.f32 %v2416_v34, 0.0  ;;  %v2736_v14 = vmax.f32 %v2480_v9, 0.0  ;;  %v2799_v32 = vmax.f32 %v2543_v13, 0.0 }
 0x5d5   :  { %4266 = vst.msk [vmem:[%s10265_s4 + $0x710] sm:$0xff] %vm4039_vm6, %v3964_v37  ;;  %v2735_v37 = vmax.f32 %v2479_v16, 0.0  ;;  %v2350_v0 = vmul.f32 %v9257_v2, %v2090_v30  ;;  %v2482_v44 = vadd.f32 %v9273_v43, %v2222_v61  ;;  %v2545_v51 = vadd.f32 %v9273_v43, %v2285_v58 }
 0x5d6   :  { %4075 = vst.msk [vmem:[%s10265_s4 + $0x118] sm:$0xff] %vm4039_vm6, %v3486_v39  ;;  %v2800_v39 = vmax.f32 %v2544_v36, 0.0 }
 0x5d7   :  { %4139 = vst.msk [vmem:[%s10265_s4 + $0x318] sm:$0xff] %vm4039_vm6, %v3646_v48  ;;  %v2863_v48 = vmax.f32 %v2607_v47, 0.0  ;;  %v2932_v23 = vpack.c.bf16 %v2736_v14, %v2735_v37  ;;  %v2610_v60 = vadd.f32 %v9273_v43, %v2350_v0  ;;  %v10885_v14 = vld [vmem:[#allocation49_spill] sm:$0xff] }
 0x5d8   :  { %v2964_v12 = vpack.c.bf16 %v2800_v39, %v2799_v32  ;;  %v1900_v32 = vmul.f32 %v8068_v6, %v10885_v14 }
 0x5d9   :  { %v2996_v22 = vpack.c.bf16 %v2864_v3, %v2863_v48  ;;  %v2866_v47 = vmax.f32 %v2610_v60, 0.0  ;;  %v10892_v60 = vld [vmem:[#allocation50_spill] sm:$0xff] }
 0x5db   :  { %v3806_v54 = vpop.f32.mrf.mxu2  ;;  %v3966_v41 = vpop.f32.mrf.mxu3 }
 0x5dc   :  { %4203 = vst.msk [vmem:[%s10265_s4 + $0x518] sm:$0xff] %vm4039_vm6, %v3806_v54  ;;  %v3489_v46 = vpop.f32.mrf.mxu0  ;;  %v3649_v56 = vpop.f32.mrf.mxu1  ;;  %v2026_v54 = vmul.f32 %v8068_v6, %v10881_v21  ;;  %v2092_v21 = vmul.f32 %v8068_v6, %v10891_v29 }
 0x5dd   :  { %4267 = vst.msk [vmem:[%s10265_s4 + $0x718] sm:$0xff] %vm4039_vm6, %v3966_v41 }
 0x5de   :  { %4076 = vst.msk [vmem:[%s10265_s4 + $0x120] sm:$0xff] %vm4039_vm6, %v3489_v46  ;;  %v2157_v46 = vmul.f32 %v9257_v2, %v1897_v62  ;;  %v2286_v26 = vmul.f32 %v9257_v2, %v2026_v54  ;;  %v1963_v62 = vmul.f32 %v8068_v6, %v10886_v28  ;;  %v2352_v8 = vmul.f32 %v9257_v2, %v2092_v21 }
 0x5df   :  { %4140 = vst.msk [vmem:[%s10265_s4 + $0x320] sm:$0xff] %vm4039_vm6, %v3649_v56  ;;  %4326 = vmatmul.msk.bf16.gmra.mxu0 %vm274_vm1, %v2899_v35  ;;  %4358 = vmatmul.msk.bf16.gmra.mxu1 %vm274_vm1, %v2931_v20  ;;  %v2900_v20 = vpack.c.bf16 %v2672_v18, %v2671_v19  ;;  %v2158_v56 = vmul.f32 %v9257_v2, %v1898_v40  ;;  %v10884_v18 = vld [vmem:[#allocation48_spill] sm:$0xff] }
 0x5e0   :  { %4390 = vmatmul.msk.bf16.gmra.mxu2 %vm274_vm1, %v2963_v59  ;;  %4422 = vmatmul.msk.bf16.gmra.mxu3 %vm274_vm1, %v2995_v5  ;;  %v2221_v5 = vmul.f32 %v9257_v2, %v1961_v63  ;;  %v2417_v1 = vadd.f32 %v9273_v43, %v2157_v46  ;;  %v2546_v4 = vadd.f32 %v9273_v43, %v2286_v26 }
 0x5e1   :  { %v2418_v15 = vadd.f32 %v9273_v43, %v2158_v56  ;;  %v1899_v37 = vmul.f32 %v8068_v6, %v10884_v18  ;;  %v1964_v40 = vmul.f32 %v8068_v6, %v10887_v53  ;;  %v2027_v63 = vmul.f32 %v8068_v6, %v10888_v45  ;;  %v10898_v53 = vld [vmem:[#allocation212_spill] sm:$0xff]  ;;  %v10899_v45 = vld [vmem:[#allocation213_spill] sm:$0xff] }
 0x5e2   :  { %v2481_v31 = vadd.f32 %v9273_v43, %v2221_v5  ;;  %v2673_v34 = vmax.f32 %v2417_v1, 0.0  ;;  %v2802_v13 = vmax.f32 %v2546_v4, 0.0 }
 0x5e3   :  { %v3809_v52 = vpop.f32.mrf.mxu2  ;;  %v3969_v33 = vpop.f32.mrf.mxu3  ;;  %v2674_v16 = vmax.f32 %v2418_v15, 0.0  ;;  %v2159_v54 = vmul.f32 %v9257_v2, %v1899_v37  ;;  %v10896_v37 = vld [vmem:[#allocation158_spill] sm:$0xff] }
 0x5e4   :  { %4204 = vst.msk [vmem:[%s10265_s4 + $0x520] sm:$0xff] %vm4039_vm6, %v3809_v52  ;;  %v3491_v27 = vpop.f32.mrf.mxu0  ;;  %v3651_v11 = vpop.f32.mrf.mxu1  ;;  %v2737_v9 = vmax.f32 %v2481_v31, 0.0  ;;  %v2612_v31 = vadd.f32 %v9273_v43, %v2352_v8  ;;  %v2029_v14 = vmul.f32 %v8068_v6, %v10896_v37 }
 0x5e5   :  { %4268 = vst.msk [vmem:[%s10265_s4 + $0x720] sm:$0xff] %vm4039_vm6, %v3969_v33  ;;  %v2609_v33 = vadd.f32 %v9273_v43, %v2349_v7  ;;  %v2901_v55 = vpack.c.bf16 %v2674_v16, %v2673_v34  ;;  %v2419_v56 = vadd.f32 %v9273_v43, %v2159_v54  ;;  %v1901_v34 = vmul.f32 %v8068_v6, %v10892_v60  ;;  %v10893_v16 = vld [vmem:[#allocation51_spill] sm:$0xff] }
 0x5e6   :  { %4077 = vst.msk [vmem:[%s10265_s4 + $0x128] sm:$0xff] %vm4039_vm6, %v3491_v27  ;;  %v2738_v27 = vmax.f32 %v2482_v44, 0.0  ;;  %v10903_v60 = vld [vmem:[#allocation107_spill] sm:$0xff] }
 0x5e7   :  { %4141 = vst.msk [vmem:[%s10265_s4 + $0x328] sm:$0xff] %vm4039_vm6, %v3651_v11  ;;  %v2801_v11 = vmax.f32 %v2545_v51, 0.0  ;;  %v2865_v36 = vmax.f32 %v2609_v33, 0.0  ;;  %v2675_v44 = vmax.f32 %v2419_v56, 0.0  ;;  %v2868_v33 = vmax.f32 %v2612_v31, 0.0  ;;  %v10900_v31 = vld [vmem:[#allocation52_spill] sm:$0xff] }
 0x5e8   :  { %v2933_v19 = vpack.c.bf16 %v2738_v27, %v2737_v9  ;;  %v1902_v9 = vmul.f32 %v8068_v6, %v10893_v16  ;;  %v10894_v27 = vld [vmem:[#allocation104_spill] sm:$0xff] }
 0x5e9   :  { %v2965_v3 = vpack.c.bf16 %v2802_v13, %v2801_v11  ;;  %v1965_v11 = vmul.f32 %v8068_v6, %v10894_v27  ;;  %v10895_v13 = vld [vmem:[#allocation105_spill] sm:$0xff]  ;;  %v10904_v16 = vld [vmem:[#allocation160_spill] sm:$0xff] }
 0x5eb   :  { %v3811_v42 = vpop.f32.mrf.mxu2  ;;  %v3971_v35 = vpop.f32.mrf.mxu3 }
 0x5ec   :  { %4205 = vst.msk [vmem:[%s10265_s4 + $0x528] sm:$0xff] %vm4039_vm6, %v3811_v42  ;;  %v3494_v41 = vpop.f32.mrf.mxu0  ;;  %v3654_v59 = vpop.f32.mrf.mxu1  ;;  %v2997_v42 = vpack.c.bf16 %v2866_v47, %v2865_v36  ;;  %v1966_v36 = vmul.f32 %v8068_v6, %v10895_v13 }
 0x5ed   :  { %4269 = vst.msk [vmem:[%s10265_s4 + $0x728] sm:$0xff] %vm4039_vm6, %v3971_v35  ;;  %v10889_v35 = vld [vmem:[#allocation157_spill] sm:$0xff] }
 0x5ee   :  { %4078 = vst.msk [vmem:[%s10265_s4 + $0x130] sm:$0xff] %vm4039_vm6, %v3494_v41  ;;  %v2160_v41 = vmul.f32 %v9257_v2, %v1900_v32  ;;  %v10897_v32 = vld [vmem:[#allocation159_spill] sm:$0xff] }
 0x5ef   :  { %4142 = vst.msk [vmem:[%s10265_s4 + $0x330] sm:$0xff] %vm4039_vm6, %v3654_v59  ;;  %4327 = vmatmul.msk.bf16.gmra.mxu0 %vm274_vm1, %v2900_v20  ;;  %4359 = vmatmul.msk.bf16.gmra.mxu1 %vm274_vm1, %v2932_v23  ;;  %v2028_v20 = vmul.f32 %v8068_v6, %v10889_v35  ;;  %v10890_v23 = vld [vmem:[#allocation210_spill] sm:$0xff]  ;;  %v2223_v59 = vmul.f32 %v9257_v2, %v1963_v62 }
 0x5f0   :  { %4391 = vmatmul.msk.bf16.gmra.mxu2 %vm274_vm1, %v2964_v12  ;;  %4423 = vmatmul.msk.bf16.gmra.mxu3 %vm274_vm1, %v2996_v22  ;;  %v2091_v24 = vmul.f32 %v8068_v6, %v10890_v23  ;;  %v2224_v12 = vmul.f32 %v9257_v2, %v1964_v40  ;;  %v2287_v22 = vmul.f32 %v9257_v2, %v2027_v63 }
 0x5f1   :  { %v2288_v38 = vmul.f32 %v9257_v2, %v2028_v20  ;;  %v2420_v5 = vadd.f32 %v9273_v43, %v2160_v41  ;;  %v2483_v61 = vadd.f32 %v9273_v43, %v2223_v59  ;;  %v2093_v40 = vmul.f32 %v8068_v6, %v10898_v53 }
 0x5f2   :  { %v2351_v25 = vmul.f32 %v9257_v2, %v2091_v24  ;;  %v2484_v58 = vadd.f32 %v9273_v43, %v2224_v12  ;;  %v2547_v0 = vadd.f32 %v9273_v43, %v2287_v22  ;;  %v2094_v63 = vmul.f32 %v8068_v6, %v10899_v45 }
 0x5f3   :  { %v3814_v49 = vpop.f32.mrf.mxu2  ;;  %v3974_v10 = vpop.f32.mrf.mxu3  ;;  %v2548_v1 = vadd.f32 %v9273_v43, %v2288_v38  ;;  %v2226_v35 = vmul.f32 %v9257_v2, %v1966_v36  ;;  %v2289_v20 = vmul.f32 %v9257_v2, %v2029_v14  ;;  %v2353_v24 = vmul.f32 %v9257_v2, %v2093_v40  ;;  %v10905_v36 = vld [vmem:[#allocation161_spill] sm:$0xff]  ;;  %v4698_v14 = vld [vmem:[%s10263_s1] ss:$0 sm:$0xff] }
 0x5f4   :  { %4206 = vst.msk [vmem:[%s10265_s4 + $0x530] sm:$0xff] %vm4039_vm6, %v3814_v49  ;;  %v3496_v50 = vpop.f32.mrf.mxu0  ;;  %v3656_v52 = vpop.f32.mrf.mxu1  ;;  %v2611_v15 = vadd.f32 %v9273_v43, %v2351_v25  ;;  %v2676_v49 = vmax.f32 %v2420_v5, 0.0  ;;  %v2740_v51 = vmax.f32 %v2484_v58, 0.0  ;;  %v2803_v4 = vmax.f32 %v2547_v0, 0.0 }
 0x5f5   :  { %4270 = vst.msk [vmem:[%s10265_s4 + $0x730] sm:$0xff] %vm4039_vm6, %v3974_v10  ;;  %v2739_v10 = vmax.f32 %v2483_v61, 0.0  ;;  %v2354_v29 = vmul.f32 %v9257_v2, %v2094_v63  ;;  %v2486_v59 = vadd.f32 %v9273_v43, %v2226_v35  ;;  %v2549_v38 = vadd.f32 %v9273_v43, %v2289_v20  ;;  %v4699_v63 = vld [vmem:[%s10264_s2] ss:$0 sm:$0xff] }
 0x5f6   :  { %4079 = vst.msk [vmem:[%s10265_s4 + $0x138] sm:$0xff] %vm4039_vm6, %v3496_v50  ;;  %v2804_v50 = vmax.f32 %v2548_v1, 0.0 }
 0x5f7   :  { %4143 = vst.msk [vmem:[%s10265_s4 + $0x338] sm:$0xff] %vm4039_vm6, %v3656_v52  ;;  %v2867_v52 = vmax.f32 %v2611_v15, 0.0  ;;  %v2934_v18 = vpack.c.bf16 %v2740_v51, %v2739_v10  ;;  %v2742_v58 = vmax.f32 %v2486_v59, 0.0 }
 0x5f8   :  { %v2966_v28 = vpack.c.bf16 %v2804_v50, %v2803_v4 }
 0x5f9   :  { %v2998_v62 = vpack.c.bf16 %v2868_v33, %v2867_v52  ;;  %v10902_v52 = vld [vmem:[#allocation106_spill] sm:$0xff] }
 0x5fa   :  { %v1967_v33 = vmul.f32 %v8068_v6, %v10902_v52 }
 0x5fb   :  { %v3816_v39 = vpop.f32.mrf.mxu2  ;;  %v3976_v48 = vpop.f32.mrf.mxu3 }
 0x5fc   :  { %4207 = vst.msk [vmem:[%s10265_s4 + $0x538] sm:$0xff] %vm4039_vm6, %v3816_v39  ;;  %v3499_v17 = vpop.f32.mrf.mxu0  ;;  %v3659_v57 = vpop.f32.mrf.mxu1  ;;  %v2030_v39 = vmul.f32 %v8068_v6, %v10897_v32 }
 0x5fd   :  { %4271 = vst.msk [vmem:[%s10265_s4 + $0x738] sm:$0xff] %vm4039_vm6, %v3976_v48 }
 0x5fe   :  { %4080 = vst.msk [vmem:[%s10265_s4 + $0x140] sm:$0xff] %vm4039_vm6, %v3499_v17  ;;  %v2161_v17 = vmul.f32 %v9257_v2, %v1901_v34  ;;  %v2290_v23 = vmul.f32 %v9257_v2, %v2030_v39  ;;  %v1968_v34 = vmul.f32 %v8068_v6, %v10903_v60 }
 0x5ff   :  { %4144 = vst.msk [vmem:[%s10265_s4 + $0x340] sm:$0xff] %vm4039_vm6, %v3659_v57  ;;  %4328 = vmatmul.msk.bf16.gmra.mxu0 %vm274_vm1, %v2901_v55  ;;  %4360 = vmatmul.msk.bf16.gmra.mxu1 %vm274_vm1, %v2933_v19  ;;  %v2902_v19 = vpack.c.bf16 %v2676_v49, %v2675_v44  ;;  %v2162_v57 = vmul.f32 %v9257_v2, %v1902_v9  ;;  %v10901_v49 = vld [vmem:[#allocation53_spill] sm:$0xff] }
 0x600   :  { %4392 = vmatmul.msk.bf16.gmra.mxu2 %vm274_vm1, %v2965_v3  ;;  %4424 = vmatmul.msk.bf16.gmra.mxu3 %vm274_vm1, %v2997_v42  ;;  %v2225_v42 = vmul.f32 %v9257_v2, %v1965_v11  ;;  %v2421_v21 = vadd.f32 %v9273_v43, %v2161_v17  ;;  %v2550_v25 = vadd.f32 %v9273_v43, %v2290_v23 }
 0x601   :  { %v2422_v54 = vadd.f32 %v9273_v43, %v2162_v57  ;;  %v1903_v44 = vmul.f32 %v8068_v6, %v10900_v31  ;;  %v1904_v10 = vmul.f32 %v8068_v6, %v10901_v49  ;;  %v2031_v9 = vmul.f32 %v8068_v6, %v10904_v16 }
 0x602   :  { %v2485_v41 = vadd.f32 %v9273_v43, %v2225_v42  ;;  %v2677_v56 = vmax.f32 %v2421_v21, 0.0 }
 0x603   :  { %v3819_v30 = vpop.f32.mrf.mxu2  ;;  %v3979_v46 = vpop.f32.mrf.mxu3  ;;  %v2678_v5 = vmax.f32 %v2422_v54, 0.0  ;;  %v2163_v32 = vmul.f32 %v4698_v14, %v1903_v44  ;;  %v2164_v39 = vmul.f32 %v4698_v14, %v1904_v10 }
 0x604   :  { %4208 = vst.msk [vmem:[%s10265_s4 + $0x540] sm:$0xff] %vm4039_vm6, %v3819_v30  ;;  %v3501_v26 = vpop.f32.mrf.mxu0  ;;  %v3661_v7 = vpop.f32.mrf.mxu1  ;;  %v2613_v30 = vadd.f32 %v9273_v43, %v2353_v24  ;;  %v2741_v61 = vmax.f32 %v2485_v41, 0.0 }
 0x605   :  { %4272 = vst.msk [vmem:[%s10265_s4 + $0x740] sm:$0xff] %vm4039_vm6, %v3979_v46  ;;  %v2614_v46 = vadd.f32 %v9273_v43, %v2354_v29  ;;  %v2805_v43 = vmax.f32 %v2549_v38, 0.0  ;;  %v2903_v1 = vpack.c.bf16 %v2678_v5, %v2677_v56  ;;  %v2423_v17 = vadd.f32 %v4699_v63, %v2163_v32 }
 0x606   :  { %4081 = vst.msk [vmem:[%s10265_s4 + $0x148] sm:$0xff] %vm4039_vm6, %v3501_v26  ;;  %v2806_v26 = vmax.f32 %v2550_v25, 0.0  ;;  %v2935_v15 = vpack.c.bf16 %v2742_v58, %v2741_v61  ;;  %v2424_v57 = vadd.f32 %v4699_v63, %v2164_v39 }
 0x607   :  { %4145 = vst.msk [vmem:[%s10265_s4 + $0x348] sm:$0xff] %vm4039_vm6, %v3661_v7  ;;  %v2869_v7 = vmax.f32 %v2613_v30, 0.0  ;;  %v2870_v0 = vmax.f32 %v2614_v46, 0.0  ;;  %v2679_v41 = vmax.f32 %v2423_v17, 0.0 }
 0x608   :  { %v2967_v50 = vpack.c.bf16 %v2806_v26, %v2805_v43  ;;  %v2680_v59 = vmax.f32 %v2424_v57, 0.0 }
 0x609   :  { %v2999_v13 = vpack.c.bf16 %v2870_v0, %v2869_v7 }
 0x60a   :  { %v2904_v56 = vpack.c.bf16 %v2680_v59, %v2679_v41 }
 0x60b   :  { %v3821_v47 = vpop.f32.mrf.mxu2  ;;  %v3981_v55 = vpop.f32.mrf.mxu3 }
 0x60c   :  { %4209 = vst.msk [vmem:[%s10265_s4 + $0x548] sm:$0xff] %vm4039_vm6, %v3821_v47  ;;  %v3504_v48 = vpop.f32.mrf.mxu0  ;;  %v3664_v3 = vpop.f32.mrf.mxu1  ;;  %v2032_v47 = vmul.f32 %v8068_v6, %v10905_v36 }
 0x60d   :  { %4273 = vst.msk [vmem:[%s10265_s4 + $0x748] sm:$0xff] %vm4039_vm6, %v3981_v55  ;;  %v10906_v55 = vld [vmem:[#allocation214_spill] sm:$0xff] }
 0x60e   :  { %4082 = vst.msk [vmem:[%s10265_s4 + $0x150] sm:$0xff] %vm4039_vm6, %v3504_v48  ;;  %v2228_v48 = vmul.f32 %v4698_v14, %v1968_v34 }
 0x60f   :  { %4146 = vst.msk [vmem:[%s10265_s4 + $0x350] sm:$0xff] %vm4039_vm6, %v3664_v3  ;;  %4329 = vmatmul.msk.bf16.gmra.mxu0 %vm274_vm1, %v2902_v19  ;;  %4361 = vmatmul.msk.bf16.gmra.mxu1 %vm274_vm1, %v2934_v18  ;;  %v2095_v19 = vmul.f32 %v8068_v6, %v10906_v55  ;;  %v10907_v18 = vld [vmem:[#allocation215_spill] sm:$0xff]  ;;  %v2291_v3 = vmul.f32 %v4698_v14, %v2031_v9 }
 0x610   :  { %4393 = vmatmul.msk.bf16.gmra.mxu2 %vm274_vm1, %v2966_v28  ;;  %4425 = vmatmul.msk.bf16.gmra.mxu3 %vm274_vm1, %v2998_v62  ;;  %v2096_v37 = vmul.f32 %v8068_v6, %v10907_v18  ;;  %v2227_v6 = vmul.f32 %v4698_v14, %v1967_v33  ;;  %v2292_v28 = vmul.f32 %v4698_v14, %v2032_v47 }
 0x611   :  { %v2355_v62 = vmul.f32 %v4698_v14, %v2095_v19  ;;  %v2488_v35 = vadd.f32 %v4699_v63, %v2228_v48  ;;  %v2551_v24 = vadd.f32 %v4699_v63, %v2291_v3 }
 0x612   :  { %v2356_v53 = vmul.f32 %v4698_v14, %v2096_v37  ;;  %v2487_v42 = vadd.f32 %v4699_v63, %v2227_v6  ;;  %v2552_v29 = vadd.f32 %v4699_v63, %v2292_v28 }
 0x613   :  { %v3824_v12 = vpop.f32.mrf.mxu2  ;;  %v3984_v22 = vpop.f32.mrf.mxu3  ;;  %v2615_v21 = vadd.f32 %v4699_v63, %v2355_v62  ;;  %v2807_v38 = vmax.f32 %v2551_v24, 0.0 }
 0x614   :  { %4210 = vst.msk [vmem:[%s10265_s4 + $0x550] sm:$0xff] %vm4039_vm6, %v3824_v12  ;;  %v3506_v2 = vpop.f32.mrf.mxu0  ;;  %v3666_v8 = vpop.f32.mrf.mxu1  ;;  %v2616_v54 = vadd.f32 %v4699_v63, %v2356_v53  ;;  %v2743_v12 = vmax.f32 %v2487_v42, 0.0  ;;  %v2808_v25 = vmax.f32 %v2552_v29, 0.0 }
 0x615   :  { %4274 = vst.msk [vmem:[%s10265_s4 + $0x750] sm:$0xff] %vm4039_vm6, %v3984_v22  ;;  %v2744_v22 = vmax.f32 %v2488_v35, 0.0 }
 0x616   :  { %4083 = vst.msk [vmem:[%s10265_s4 + $0x158] sm:$0xff] %vm4039_vm6, %v3506_v2  ;;  %v2871_v2 = vmax.f32 %v2615_v21, 0.0  ;;  %v2968_v43 = vpack.c.bf16 %v2808_v25, %v2807_v38 }
 0x617   :  { %4147 = vst.msk [vmem:[%s10265_s4 + $0x358] sm:$0xff] %vm4039_vm6, %v3666_v8  ;;  %v2872_v8 = vmax.f32 %v2616_v54, 0.0  ;;  %v2936_v5 = vpack.c.bf16 %v2744_v22, %v2743_v12 }
 0x619   :  { %v3000_v26 = vpack.c.bf16 %v2872_v8, %v2871_v2 }
 0x61b   :  { %v3826_v51 = vpop.f32.mrf.mxu2  ;;  %v3986_v4 = vpop.f32.mrf.mxu3 }
 0x61c   :  { %4211 = vst.msk [vmem:[%s10265_s4 + $0x558] sm:$0xff] %vm4039_vm6, %v3826_v51  ;;  %v3509_v27 = vpop.f32.mrf.mxu0  ;;  %v3669_v11 = vpop.f32.mrf.mxu1 }
 0x61d   :  { %4275 = vst.msk [vmem:[%s10265_s4 + $0x758] sm:$0xff] %vm4039_vm6, %v3986_v4 }
 0x61e   :  { %4084 = vst.msk [vmem:[%s10265_s4 + $0x160] sm:$0xff] %vm4039_vm6, %v3509_v27 }
 0x61f   :  { %4148 = vst.msk [vmem:[%s10265_s4 + $0x360] sm:$0xff] %vm4039_vm6, %v3669_v11  ;;  %4330 = vmatmul.msk.bf16.gmra.mxu0 %vm274_vm1, %v2903_v1  ;;  %4362 = vmatmul.msk.bf16.gmra.mxu1 %vm274_vm1, %v2935_v15 }
 0x620   :  { %4394 = vmatmul.msk.bf16.gmra.mxu2 %vm274_vm1, %v2967_v50  ;;  %4426 = vmatmul.msk.bf16.gmra.mxu3 %vm274_vm1, %v2999_v13 }
 0x623   :  { %v3829_v40 = vpop.f32.mrf.mxu2  ;;  %v3989_v45 = vpop.f32.mrf.mxu3 }
 0x624   :  { %4212 = vst.msk [vmem:[%s10265_s4 + $0x560] sm:$0xff] %vm4039_vm6, %v3829_v40  ;;  %v3511_v20 = vpop.f32.mrf.mxu0  ;;  %v3671_v23 = vpop.f32.mrf.mxu1 }
 0x625   :  { %4276 = vst.msk [vmem:[%s10265_s4 + $0x760] sm:$0xff] %vm4039_vm6, %v3989_v45 }
 0x626   :  { %4085 = vst.msk [vmem:[%s10265_s4 + $0x168] sm:$0xff] %vm4039_vm6, %v3511_v20 }
 0x627   :  { %4149 = vst.msk [vmem:[%s10265_s4 + $0x368] sm:$0xff] %vm4039_vm6, %v3671_v23 }
 0x62b   :  { %v3831_v30 = vpop.f32.mrf.mxu2  ;;  %v3991_v46 = vpop.f32.mrf.mxu3 }
 0x62c   :  { %4213 = vst.msk [vmem:[%s10265_s4 + $0x568] sm:$0xff] %vm4039_vm6, %v3831_v30  ;;  %v3514_v61 = vpop.f32.mrf.mxu0  ;;  %v3674_v58 = vpop.f32.mrf.mxu1 }
 0x62d   :  { %4277 = vst.msk [vmem:[%s10265_s4 + $0x768] sm:$0xff] %vm4039_vm6, %v3991_v46 }
 0x62e   :  { %4086 = vst.msk [vmem:[%s10265_s4 + $0x170] sm:$0xff] %vm4039_vm6, %v3514_v61 }
 0x62f   :  { %4150 = vst.msk [vmem:[%s10265_s4 + $0x370] sm:$0xff] %vm4039_vm6, %v3674_v58  ;;  %4331 = vmatmul.msk.bf16.gmra.mxu0 %vm274_vm1, %v2904_v56  ;;  %4363 = vmatmul.msk.bf16.gmra.mxu1 %vm274_vm1, %v2936_v5 }
 0x630   :  { %4395 = vmatmul.msk.bf16.gmra.mxu2 %vm274_vm1, %v2968_v43  ;;  %4427 = vmatmul.msk.bf16.gmra.mxu3 %vm274_vm1, %v3000_v26 }
 0x633   :  { %v3834_v7 = vpop.f32.mrf.mxu2  ;;  %v3994_v0 = vpop.f32.mrf.mxu3 }
 0x634   :  { %4214 = vst.msk [vmem:[%s10265_s4 + $0x570] sm:$0xff] %vm4039_vm6, %v3834_v7  ;;  %v3516_v1 = vpop.f32.mrf.mxu0  ;;  %v3676_v15 = vpop.f32.mrf.mxu1 }
 0x635   :  { %4278 = vst.msk [vmem:[%s10265_s4 + $0x770] sm:$0xff] %vm4039_vm6, %v3994_v0 }
 0x636   :  { %4087 = vst.msk [vmem:[%s10265_s4 + $0x178] sm:$0xff] %vm4039_vm6, %v3516_v1 }
 0x637   :  { %4151 = vst.msk [vmem:[%s10265_s4 + $0x378] sm:$0xff] %vm4039_vm6, %v3676_v15 }
 0x63b   :  { %v3836_v31 = vpop.f32.mrf.mxu2  ;;  %v3996_v44 = vpop.f32.mrf.mxu3 }
 0x63c   :  { %4215 = vst.msk [vmem:[%s10265_s4 + $0x578] sm:$0xff] %vm4039_vm6, %v3836_v31  ;;  %v3519_v49 = vpop.f32.mrf.mxu0  ;;  %v3679_v10 = vpop.f32.mrf.mxu1 }
 0x63d   :  { %4279 = vst.msk [vmem:[%s10265_s4 + $0x778] sm:$0xff] %vm4039_vm6, %v3996_v44 }
 0x63e   :  { %4088 = vst.msk [vmem:[%s10265_s4 + $0x180] sm:$0xff] %vm4039_vm6, %v3519_v49 }
 0x63f   :  { %4152 = vst.msk [vmem:[%s10265_s4 + $0x380] sm:$0xff] %vm4039_vm6, %v3679_v10 }
 0x643   :  { %v3839_v51 = vpop.f32.mrf.mxu2  ;;  %v3999_v4 = vpop.f32.mrf.mxu3 }
 0x644   :  { %4216 = vst.msk [vmem:[%s10265_s4 + $0x580] sm:$0xff] %vm4039_vm6, %v3839_v51  ;;  %v3521_v50 = vpop.f32.mrf.mxu0  ;;  %v3681_v52 = vpop.f32.mrf.mxu1 }
 0x645   :  { %4280 = vst.msk [vmem:[%s10265_s4 + $0x780] sm:$0xff] %vm4039_vm6, %v3999_v4 }
 0x646   :  { %4089 = vst.msk [vmem:[%s10265_s4 + $0x188] sm:$0xff] %vm4039_vm6, %v3521_v50 }
 0x647   :  { %4153 = vst.msk [vmem:[%s10265_s4 + $0x388] sm:$0xff] %vm4039_vm6, %v3681_v52 }
 0x64b   :  { %v3841_v33 = vpop.f32.mrf.mxu2  ;;  %v4001_v60 = vpop.f32.mrf.mxu3 }
 0x64c   :  { %4217 = vst.msk [vmem:[%s10265_s4 + $0x588] sm:$0xff] %vm4039_vm6, %v3841_v33  ;;  %v3524_v34 = vpop.f32.mrf.mxu0  ;;  %v3684_v16 = vpop.f32.mrf.mxu1 }
 0x64d   :  { %4281 = vst.msk [vmem:[%s10265_s4 + $0x788] sm:$0xff] %vm4039_vm6, %v4001_v60 }
 0x64e   :  { %4090 = vst.msk [vmem:[%s10265_s4 + $0x190] sm:$0xff] %vm4039_vm6, %v3524_v34 }
 0x64f   :  { %4154 = vst.msk [vmem:[%s10265_s4 + $0x390] sm:$0xff] %vm4039_vm6, %v3684_v16 }
 0x653   :  { %v3844_v9 = vpop.f32.mrf.mxu2  ;;  %v4004_v27 = vpop.f32.mrf.mxu3 }
 0x654   :  { %4218 = vst.msk [vmem:[%s10265_s4 + $0x590] sm:$0xff] %vm4039_vm6, %v3844_v9  ;;  %v3526_v11 = vpop.f32.mrf.mxu0  ;;  %v3686_v13 = vpop.f32.mrf.mxu1 }
 0x655   :  { %4282 = vst.msk [vmem:[%s10265_s4 + $0x790] sm:$0xff] %vm4039_vm6, %v4004_v27 }
 0x656   :  { %4091 = vst.msk [vmem:[%s10265_s4 + $0x198] sm:$0xff] %vm4039_vm6, %v3526_v11 }
 0x657   :  { %4155 = vst.msk [vmem:[%s10265_s4 + $0x398] sm:$0xff] %vm4039_vm6, %v3686_v13 }
 0x65b   :  { %v3846_v36 = vpop.f32.mrf.mxu2  ;;  %v4006_v47 = vpop.f32.mrf.mxu3 }
 0x65c   :  { %4219 = vst.msk [vmem:[%s10265_s4 + $0x598] sm:$0xff] %vm4039_vm6, %v3846_v36  ;;  %v3529_v55 = vpop.f32.mrf.mxu0  ;;  %v3689_v19 = vpop.f32.mrf.mxu1 }
 0x65d   :  { %4283 = vst.msk [vmem:[%s10265_s4 + $0x798] sm:$0xff] %vm4039_vm6, %v4006_v47 }
 0x65e   :  { %4092 = vst.msk [vmem:[%s10265_s4 + $0x1a0] sm:$0xff] %vm4039_vm6, %v3529_v55 }
 0x65f   :  { %4156 = vst.msk [vmem:[%s10265_s4 + $0x3a0] sm:$0xff] %vm4039_vm6, %v3689_v19 }
 0x663   :  { %v3849_v18 = vpop.f32.mrf.mxu2  ;;  %v4009_v37 = vpop.f32.mrf.mxu3 }
 0x664   :  { %4220 = vst.msk [vmem:[%s10265_s4 + $0x5a0] sm:$0xff] %vm4039_vm6, %v3849_v18  ;;  %v3531_v14 = vpop.f32.mrf.mxu0  ;;  %v3691_v32 = vpop.f32.mrf.mxu1 }
 0x665   :  { %4284 = vst.msk [vmem:[%s10265_s4 + $0x7a0] sm:$0xff] %vm4039_vm6, %v4009_v37 }
 0x666   :  { %4093 = vst.msk [vmem:[%s10265_s4 + $0x1a8] sm:$0xff] %vm4039_vm6, %v3531_v14 }
 0x667   :  { %4157 = vst.msk [vmem:[%s10265_s4 + $0x3a8] sm:$0xff] %vm4039_vm6, %v3691_v32 }
 0x66b   :  { %v3851_v39 = vpop.f32.mrf.mxu2  ;;  %v4011_v6 = vpop.f32.mrf.mxu3 }
 0x66c   :  { %4221 = vst.msk [vmem:[%s10265_s4 + $0x5a8] sm:$0xff] %vm4039_vm6, %v3851_v39  ;;  %v3534_v48 = vpop.f32.mrf.mxu0  ;;  %v3694_v3 = vpop.f32.mrf.mxu1 }
 0x66d   :  { %4285 = vst.msk [vmem:[%s10265_s4 + $0x7a8] sm:$0xff] %vm4039_vm6, %v4011_v6 }
 0x66e   :  { %4094 = vst.msk [vmem:[%s10265_s4 + $0x1b0] sm:$0xff] %vm4039_vm6, %v3534_v48 }
 0x66f   :  { %4158 = vst.msk [vmem:[%s10265_s4 + $0x3b0] sm:$0xff] %vm4039_vm6, %v3694_v3 }
 0x673   :  { %v3854_v28 = vpop.f32.mrf.mxu2  ;;  %v4014_v62 = vpop.f32.mrf.mxu3 }
 0x674   :  { %4222 = vst.msk [vmem:[%s10265_s4 + $0x5b0] sm:$0xff] %vm4039_vm6, %v3854_v28  ;;  %v3536_v53 = vpop.f32.mrf.mxu0  ;;  %v3696_v40 = vpop.f32.mrf.mxu1 }
 0x675   :  { %4286 = vst.msk [vmem:[%s10265_s4 + $0x7b0] sm:$0xff] %vm4039_vm6, %v4014_v62 }
 0x676   :  { %4095 = vst.msk [vmem:[%s10265_s4 + $0x1b8] sm:$0xff] %vm4039_vm6, %v3536_v53 }
 0x677   :  { %4159 = vst.msk [vmem:[%s10265_s4 + $0x3b8] sm:$0xff] %vm4039_vm6, %v3696_v40 }
 0x67b   :  { %v3856_v45 = vpop.f32.mrf.mxu2  ;;  %v4016_v63 = vpop.f32.mrf.mxu3 }
 0x67c   :  { %4223 = vst.msk [vmem:[%s10265_s4 + $0x5b8] sm:$0xff] %vm4039_vm6, %v3856_v45  ;;  %v3539_v17 = vpop.f32.mrf.mxu0  ;;  %v3699_v57 = vpop.f32.mrf.mxu1 }
 0x67d   :  { %4287 = vst.msk [vmem:[%s10265_s4 + $0x7b8] sm:$0xff] %vm4039_vm6, %v4016_v63 }
 0x67e   :  { %4096 = vst.msk [vmem:[%s10265_s4 + $0x1c0] sm:$0xff] %vm4039_vm6, %v3539_v17 }
 0x67f   :  { %4160 = vst.msk [vmem:[%s10265_s4 + $0x3c0] sm:$0xff] %vm4039_vm6, %v3699_v57 }
 0x683   :  { %v3859_v42 = vpop.f32.mrf.mxu2  ;;  %v4019_v35 = vpop.f32.mrf.mxu3 }
 0x684   :  { %4224 = vst.msk [vmem:[%s10265_s4 + $0x5c0] sm:$0xff] %vm4039_vm6, %v3859_v42  ;;  %v3541_v20 = vpop.f32.mrf.mxu0  ;;  %v3701_v23 = vpop.f32.mrf.mxu1 }
 0x685   :  { %4288 = vst.msk [vmem:[%s10265_s4 + $0x7c0] sm:$0xff] %vm4039_vm6, %v4019_v35 }
 0x686   :  { %4097 = vst.msk [vmem:[%s10265_s4 + $0x1c8] sm:$0xff] %vm4039_vm6, %v3541_v20 }
 0x687   :  { %4161 = vst.msk [vmem:[%s10265_s4 + $0x3c8] sm:$0xff] %vm4039_vm6, %v3701_v23 }
 0x68b   :  { %v3861_v24 = vpop.f32.mrf.mxu2  ;;  %v4021_v29 = vpop.f32.mrf.mxu3 }
 0x68c   :  { %4225 = vst.msk [vmem:[%s10265_s4 + $0x5c8] sm:$0xff] %vm4039_vm6, %v3861_v24  ;;  %v3544_v21 = vpop.f32.mrf.mxu0  ;;  %v3704_v54 = vpop.f32.mrf.mxu1 }
 0x68d   :  { %4289 = vst.msk [vmem:[%s10265_s4 + $0x7c8] sm:$0xff] %vm4039_vm6, %v4021_v29 }
 0x68e   :  { %4098 = vst.msk [vmem:[%s10265_s4 + $0x1d0] sm:$0xff] %vm4039_vm6, %v3544_v21 }
 0x68f   :  { %4162 = vst.msk [vmem:[%s10265_s4 + $0x3d0] sm:$0xff] %vm4039_vm6, %v3704_v54 }
 0x693   :  { %v3864_v41 = vpop.f32.mrf.mxu2  ;;  %v4024_v59 = vpop.f32.mrf.mxu3 }
 0x694   :  { %4226 = vst.msk [vmem:[%s10265_s4 + $0x5d0] sm:$0xff] %vm4039_vm6, %v3864_v41  ;;  %v3546_v12 = vpop.f32.mrf.mxu0  ;;  %v3706_v22 = vpop.f32.mrf.mxu1 }
 0x695   :  { %4290 = vst.msk [vmem:[%s10265_s4 + $0x7d0] sm:$0xff] %vm4039_vm6, %v4024_v59 }
 0x696   :  { %4099 = vst.msk [vmem:[%s10265_s4 + $0x1d8] sm:$0xff] %vm4039_vm6, %v3546_v12 }
 0x697   :  { %4163 = vst.msk [vmem:[%s10265_s4 + $0x3d8] sm:$0xff] %vm4039_vm6, %v3706_v22 }
 0x69b   :  { %v3866_v38 = vpop.f32.mrf.mxu2  ;;  %v4026_v25 = vpop.f32.mrf.mxu3 }
 0x69c   :  { %4227 = vst.msk [vmem:[%s10265_s4 + $0x5d8] sm:$0xff] %vm4039_vm6, %v3866_v38  ;;  %v3549_v2 = vpop.f32.mrf.mxu0  ;;  %v3709_v8 = vpop.f32.mrf.mxu1 }
 0x69d   :  { %4291 = vst.msk [vmem:[%s10265_s4 + $0x7d8] sm:$0xff] %vm4039_vm6, %v4026_v25 }
 0x69e   :  { %4100 = vst.msk [vmem:[%s10265_s4 + $0x1e0] sm:$0xff] %vm4039_vm6, %v3549_v2 }
 0x69f   :  { %4164 = vst.msk [vmem:[%s10265_s4 + $0x3e0] sm:$0xff] %vm4039_vm6, %v3709_v8 }
 0x6a3   :  { %v3869_v30 = vpop.f32.mrf.mxu2  ;;  %v4029_v46 = vpop.f32.mrf.mxu3 }
 0x6a4   :  { %4228 = vst.msk [vmem:[%s10265_s4 + $0x5e0] sm:$0xff] %vm4039_vm6, %v3869_v30  ;;  %v3551_v56 = vpop.f32.mrf.mxu0  ;;  %v3711_v5 = vpop.f32.mrf.mxu1 }
 0x6a5   :  { %4292 = vst.msk [vmem:[%s10265_s4 + $0x7e0] sm:$0xff] %vm4039_vm6, %v4029_v46 }
 0x6a6   :  { %4101 = vst.msk [vmem:[%s10265_s4 + $0x1e8] sm:$0xff] %vm4039_vm6, %v3551_v56 }
 0x6a7   :  { %4165 = vst.msk [vmem:[%s10265_s4 + $0x3e8] sm:$0xff] %vm4039_vm6, %v3711_v5 }
 0x6ab   :  { %v3871_v61 = vpop.f32.mrf.mxu2  ;;  %v4031_v58 = vpop.f32.mrf.mxu3 }
 0x6ac   :  { %4229 = vst.msk [vmem:[%s10265_s4 + $0x5e8] sm:$0xff] %vm4039_vm6, %v3871_v61  ;;  %v3554_v43 = vpop.f32.mrf.mxu0  ;;  %v3714_v26 = vpop.f32.mrf.mxu1 }
 0x6ad   :  { %4293 = vst.msk [vmem:[%s10265_s4 + $0x7e8] sm:$0xff] %vm4039_vm6, %v4031_v58 }
 0x6ae   :  { %4102 = vst.msk [vmem:[%s10265_s4 + $0x1f0] sm:$0xff] %vm4039_vm6, %v3554_v43 }
 0x6af   :  { %4166 = vst.msk [vmem:[%s10265_s4 + $0x3f0] sm:$0xff] %vm4039_vm6, %v3714_v26 }
 0x6b3   :  { %v3874_v7 = vpop.f32.mrf.mxu2  ;;  %v4034_v0 = vpop.f32.mrf.mxu3 }
 0x6b4   :  { %4230 = vst.msk [vmem:[%s10265_s4 + $0x5f0] sm:$0xff] %vm4039_vm6, %v3874_v7  ;;  %v3556_v1 = vpop.f32.mrf.mxu0  ;;  %v3716_v15 = vpop.f32.mrf.mxu1 }
 0x6b5   :  { %4294 = vst.msk [vmem:[%s10265_s4 + $0x7f0] sm:$0xff] %vm4039_vm6, %v4034_v0 }
 0x6b6   :  { %4103 = vst.msk [vmem:[%s10265_s4 + $0x1f8] sm:$0xff] %vm4039_vm6, %v3556_v1 }
 0x6b7   :  { %4167 = vst.msk [vmem:[%s10265_s4 + $0x3f8] sm:$0xff] %vm4039_vm6, %v3716_v15 }
 0x6bb   :  { %v3876_v31 = vpop.f32.mrf.mxu2  ;;  %v4036_v44 = vpop.f32.mrf.mxu3 }
 0x6bc   :  { %4231 = vst.msk [vmem:[%s10265_s4 + $0x5f8] sm:$0xff] %vm4039_vm6, %v3876_v31 }
 0x6bd   :  { %4295 = vst.msk [vmem:[%s10265_s4 + $0x7f8] sm:$0xff] %vm4039_vm6, %v4036_v44 }

// kernel: generator_forward.11
= control target key start
LH: loop header
LB: loop body
LE: loop exit
PB: predicated region body
PF: predicated region fallthrough
CT: control target
= control target key end

     0   :  { %s286_s0 = inlined_call_operand.vmem [shape: f32[192,128], index: 0, kind: input, shape index: {}]   ;;  %s287_s1 = inlined_call_operand.vmem [shape: f32[192,128], index: 1, kind: output, shape index: {}]  }
   0x1   :  { %v8_v0 = vld [vmem:[%s286_s0] sm:$0xff]  ;;  %v9_v1 = vld [vmem:[%s286_s0 + $0x8] sm:$0xff]  ;;  %v10_v2 = vld [vmem:[%s286_s0 + $0x10] sm:$0xff] }
   0x2   :  { %84 = vtanh.f32 %v8_v0  ;;  %v11_v3 = vld [vmem:[%s286_s0 + $0x18] sm:$0xff]  ;;  %v12_v4 = vld [vmem:[%s286_s0 + $0x20] sm:$0xff]  ;;  %v13_v5 = vld [vmem:[%s286_s0 + $0x28] sm:$0xff] }
   0x3   :  { %86 = vtanh.f32 %v9_v1  ;;  %v14_v6 = vld [vmem:[%s286_s0 + $0x30] sm:$0xff]  ;;  %v15_v7 = vld [vmem:[%s286_s0 + $0x38] sm:$0xff]  ;;  %v16_v8 = vld [vmem:[%s286_s0 + $0x40] sm:$0xff] }
   0x4   :  { %88 = vtanh.f32 %v10_v2  ;;  %v17_v10 = vld [vmem:[%s286_s0 + $0x48] sm:$0xff]  ;;  %v18_v12 = vld [vmem:[%s286_s0 + $0x50] sm:$0xff]  ;;  %v19_v14 = vld [vmem:[%s286_s0 + $0x58] sm:$0xff] }
   0x5   :  { %90 = vtanh.f32 %v11_v3  ;;  %v20_v16 = vld [vmem:[%s286_s0 + $0x60] sm:$0xff]  ;;  %v21_v18 = vld [vmem:[%s286_s0 + $0x68] sm:$0xff]  ;;  %v22_v20 = vld [vmem:[%s286_s0 + $0x70] sm:$0xff] }
   0x6   :  { %92 = vtanh.f32 %v12_v4  ;;  %v23_v22 = vld [vmem:[%s286_s0 + $0x78] sm:$0xff]  ;;  %v24_v24 = vld [vmem:[%s286_s0 + $0x80] sm:$0xff]  ;;  %v25_v26 = vld [vmem:[%s286_s0 + $0x88] sm:$0xff] }
   0x7   :  { %94 = vtanh.f32 %v13_v5  ;;  %v26_v28 = vld [vmem:[%s286_s0 + $0x90] sm:$0xff]  ;;  %v27_v30 = vld [vmem:[%s286_s0 + $0x98] sm:$0xff]  ;;  %v28_v32 = vld [vmem:[%s286_s0 + $0xa0] sm:$0xff] }
   0x8   :  { %v85_v9 = vpop.eup %84  ;;  %96 = vtanh.f32 %v14_v6  ;;  %v29_v34 = vld [vmem:[%s286_s0 + $0xa8] sm:$0xff]  ;;  %v30_v36 = vld [vmem:[%s286_s0 + $0xb0] sm:$0xff]  ;;  %v31_v38 = vld [vmem:[%s286_s0 + $0xb8] sm:$0xff] }
   0x9   :  { %v87_v11 = vpop.eup %86  ;;  %56 = vst [vmem:[%s287_s1] sm:$0xff] %v85_v9  ;;  %98 = vtanh.f32 %v15_v7 }
   0xa   :  { %v89_v13 = vpop.eup %88  ;;  %57 = vst [vmem:[%s287_s1 + $0x8] sm:$0xff] %v87_v11  ;;  %100 = vtanh.f32 %v16_v8 }
   0xb   :  { %v91_v15 = vpop.eup %90  ;;  %58 = vst [vmem:[%s287_s1 + $0x10] sm:$0xff] %v89_v13  ;;  %102 = vtanh.f32 %v17_v10 }
   0xc   :  { %v93_v17 = vpop.eup %92  ;;  %59 = vst [vmem:[%s287_s1 + $0x18] sm:$0xff] %v91_v15  ;;  %104 = vtanh.f32 %v18_v12 }
   0xd   :  { %v95_v19 = vpop.eup %94  ;;  %60 = vst [vmem:[%s287_s1 + $0x20] sm:$0xff] %v93_v17  ;;  %106 = vtanh.f32 %v19_v14 }
   0xe   :  { %v97_v21 = vpop.eup %96  ;;  %61 = vst [vmem:[%s287_s1 + $0x28] sm:$0xff] %v95_v19  ;;  %108 = vtanh.f32 %v20_v16 }
   0xf   :  { %v99_v23 = vpop.eup %98  ;;  %62 = vst [vmem:[%s287_s1 + $0x30] sm:$0xff] %v97_v21  ;;  %110 = vtanh.f32 %v21_v18 }
  0x10   :  { %v101_v25 = vpop.eup %100  ;;  %63 = vst [vmem:[%s287_s1 + $0x38] sm:$0xff] %v99_v23  ;;  %112 = vtanh.f32 %v22_v20 }
  0x11   :  { %v103_v27 = vpop.eup %102  ;;  %64 = vst [vmem:[%s287_s1 + $0x40] sm:$0xff] %v101_v25  ;;  %114 = vtanh.f32 %v23_v22 }
  0x12   :  { %v105_v29 = vpop.eup %104  ;;  %65 = vst [vmem:[%s287_s1 + $0x48] sm:$0xff] %v103_v27  ;;  %116 = vtanh.f32 %v24_v24 }
  0x13   :  { %v107_v31 = vpop.eup %106  ;;  %66 = vst [vmem:[%s287_s1 + $0x50] sm:$0xff] %v105_v29  ;;  %118 = vtanh.f32 %v25_v26 }
  0x14   :  { %v109_v33 = vpop.eup %108  ;;  %67 = vst [vmem:[%s287_s1 + $0x58] sm:$0xff] %v107_v31  ;;  %120 = vtanh.f32 %v26_v28 }
  0x15   :  { %v111_v35 = vpop.eup %110  ;;  %68 = vst [vmem:[%s287_s1 + $0x60] sm:$0xff] %v109_v33  ;;  %122 = vtanh.f32 %v27_v30 }
  0x16   :  { %v113_v37 = vpop.eup %112  ;;  %69 = vst [vmem:[%s287_s1 + $0x68] sm:$0xff] %v111_v35  ;;  %124 = vtanh.f32 %v28_v32 }
  0x17   :  { %v115_v39 = vpop.eup %114  ;;  %70 = vst [vmem:[%s287_s1 + $0x70] sm:$0xff] %v113_v37  ;;  %126 = vtanh.f32 %v29_v34 }
  0x18   :  { %v117_v40 = vpop.eup %116  ;;  %71 = vst [vmem:[%s287_s1 + $0x78] sm:$0xff] %v115_v39  ;;  %128 = vtanh.f32 %v30_v36 }
  0x19   :  { %v119_v41 = vpop.eup %118  ;;  %72 = vst [vmem:[%s287_s1 + $0x80] sm:$0xff] %v117_v40  ;;  %130 = vtanh.f32 %v31_v38 }
  0x1a   :  { %v121_v42 = vpop.eup %120  ;;  %73 = vst [vmem:[%s287_s1 + $0x88] sm:$0xff] %v119_v41 }
  0x1b   :  { %v123_v43 = vpop.eup %122  ;;  %74 = vst [vmem:[%s287_s1 + $0x90] sm:$0xff] %v121_v42 }
  0x1c   :  { %v125_v44 = vpop.eup %124  ;;  %75 = vst [vmem:[%s287_s1 + $0x98] sm:$0xff] %v123_v43 }
  0x1d   :  { %v127_v45 = vpop.eup %126  ;;  %76 = vst [vmem:[%s287_s1 + $0xa0] sm:$0xff] %v125_v44 }
  0x1e   :  { %v129_v46 = vpop.eup %128  ;;  %77 = vst [vmem:[%s287_s1 + $0xa8] sm:$0xff] %v127_v45 }
  0x1f   :  { %v131_v47 = vpop.eup %130  ;;  %78 = vst [vmem:[%s287_s1 + $0xb0] sm:$0xff] %v129_v46 }
  0x20   :  { %79 = vst [vmem:[%s287_s1 + $0xb8] sm:$0xff] %v131_v47 }

</bundles_post_ra>
